<compile_context>
chip_gen: v6e
topology: v6e:2x2x1
jax: 0.10.0
libtpu: 0.0.40
codegen_flags: <defaults>
</compile_context>

<pallas_src>
import functools

import jax
import jax.numpy as jnp
from jax.experimental import pallas as pl
from jax.experimental.pallas import tpu as pltpu


def _leaky(v, slope):
    return jnp.where(v >= 0, v, slope * v)


# ----------------------------------------------------------------------------
# Fused KernelPredictor kernel (channels-first, one launch per batch item).
# ----------------------------------------------------------------------------
def _kernel_predictor_kernel(c_ref, inw_ref, inb_ref, rw_ref, rb_ref,
                             ow_ref, ob_ref, o_ref, pad_ref, col_ref, *,
                             Lc, cond_ch, hidden, Kin, Kp, slope, maxp):
    f32 = jnp.float32
    pad_ref[...] = jnp.zeros_like(pad_ref)   # zero edges once; only center is rewritten

    def conv(h, w2d, bcol, K, p, cin):
        # h: (cin, Lc) value.  Write into the zero-padded scratch, build the
        # im2col matrix (K*cin, Lc) by stacking shifted windows on sublanes,
        # then a single MXU matmul.
        pad_ref[:cin, maxp:maxp + Lc] = h
        for k in range(K):
            off = maxp - p + k
            col_ref[k * cin:(k + 1) * cin, :] = pad_ref[:cin, off:off + Lc]
        col = col_ref[:K * cin, :]
        return jnp.dot(w2d.astype(f32), col,
                       preferred_element_type=f32) + bcol.astype(f32)

    c = c_ref[0].astype(f32)                                        # (cond, Lc)
    h = _leaky(conv(c, inw_ref[...], inb_ref[...], Kin, (Kin - 1) // 2,
                    cond_ch), slope)
    for r in range(3):                                              # residual blocks
        t = _leaky(conv(h, rw_ref[2 * r], rb_ref[2 * r],
                        Kp, (Kp - 1) // 2, hidden), slope)
        t = _leaky(conv(t, rw_ref[2 * r + 1], rb_ref[2 * r + 1],
                        Kp, (Kp - 1) // 2, hidden), slope)
        h = h + t
    # fused kernel_conv + bias_conv (weights concatenated along out-channels)
    kb = conv(h, ow_ref[...], ob_ref[...], Kp, (Kp - 1) // 2, hidden)
    o_ref[0] = kb.astype(o_ref.dtype)


def kernel_predictor(c, inw, inb, rw, rb, ow, ob, *, hidden, Kin, Kp, slope):
    """c: (B, cond_ch, Lc) -> (B, kC + bC, Lc)."""
    B, cond_ch, Lc = c.shape
    out_ch = ow.shape[0]
    maxp = max((Kin - 1) // 2, (Kp - 1) // 2)
    pad_rows = max(cond_ch, hidden)
    col_rows = max(Kin * cond_ch, Kp * hidden)
    kern = functools.partial(_kernel_predictor_kernel, Lc=Lc, cond_ch=cond_ch,
                             hidden=hidden, Kin=Kin, Kp=Kp, slope=slope,
                             maxp=maxp)
    return pl.pallas_call(
        kern,
        out_shape=jax.ShapeDtypeStruct((B, out_ch, Lc), c.dtype),
        grid=(B,),
        in_specs=[
            pl.BlockSpec((1, cond_ch, Lc), lambda b: (b, 0, 0)),
            pl.BlockSpec(inw.shape, lambda b: (0, 0)),
            pl.BlockSpec(inb.shape, lambda b: (0, 0)),
            pl.BlockSpec(rw.shape, lambda b: (0, 0, 0)),
            pl.BlockSpec(rb.shape, lambda b: (0, 0, 0)),
            pl.BlockSpec(ow.shape, lambda b: (0, 0)),
            pl.BlockSpec(ob.shape, lambda b: (0, 0)),
        ],
        out_specs=pl.BlockSpec((1, out_ch, Lc), lambda b: (b, 0, 0)),
        scratch_shapes=[
            pltpu.VMEM((pad_rows, Lc + 2 * maxp), jnp.float32),
            pltpu.VMEM((col_rows, Lc), jnp.float32),
        ],
        compiler_params=pltpu.CompilerParams(
            dimension_semantics=("parallel",)),
    )(c, inw, inb, rw, rb, ow, ob)


# ----------------------------------------------------------------------------
# Fused main kernel: convt_pre + per-layer (dilated conv + LVC + gate + res).
# ----------------------------------------------------------------------------
def _lvc_stack_kernel(xu_ref, wt_ref, bt_ref, bw_ref, bb_ref, lk_ref, lb_ref,
                      o_ref, pad_ref, col_ref, z_ref, *,
                      L, Lk, hop, Cin, Cout, K, Kt, dilations, slope, maxpad):
    f32 = jnp.float32
    pad_ref[...] = jnp.zeros_like(pad_ref)   # zero edges once; only center is rewritten

    # --- convt_pre: LeakyReLU + ConvTranspose1d, done as a regular conv over
    #     the zero-stuffed, pre-padded input (leaky(0)==0 commutes with the
    #     zero insertion / padding).  im2col over Kt taps.
    for k in range(Kt):
        col_ref[k * Cin:(k + 1) * Cin, :] = _leaky(
            xu_ref[0, :, k:k + L].astype(f32), slope)
    x0 = jnp.dot(wt_ref[...].astype(f32), col_ref[:Kt * Cin, :],
                 preferred_element_type=f32) + bt_ref[...].astype(f32)
    o_ref[0] = x0.astype(o_ref.dtype)        # o_ref doubles as the running x

    lvc_p = (K - 1) // 2
    for i, d in enumerate(dilations):
        dp = d * (K - 1) // 2
        # --- conv_blocks[i]: LeakyReLU -> dilated Conv1d -> LeakyReLU
        pad_ref[:, maxpad:maxpad + L] = _leaky(o_ref[0].astype(f32), slope)
        for k in range(K):
            off = maxpad - dp + k * d
            col_ref[k * Cin:(k + 1) * Cin, :] = pad_ref[:, off:off + L]
        co = _leaky(
            jnp.dot(bw_ref[i].astype(f32), col_ref[:K * Cin, :],
                    preferred_element_type=f32) + bb_ref[i].astype(f32), slope)

        # --- location-variable convolution: per-frame kernels, fused with the
        #     bias add, sigmoid/tanh gate and the residual add.
        pad_ref[:, maxpad:maxpad + L] = co
        for k in range(K):
            off = maxpad - lvc_p + k
            col_ref[k * Cin:(k + 1) * Cin, :] = pad_ref[:, off:off + L]
        for l in range(Lk):
            z_ref[:, l * hop:(l + 1) * hop] = jnp.dot(
                lk_ref[0, i, l].astype(f32),
                col_ref[:K * Cin, l * hop:(l + 1) * hop],
                preferred_element_type=f32)
        z = z_ref[...] + lb_ref[0, i].astype(f32)          # (Cout, L)
        gate = jax.nn.sigmoid(z[:Cin, :]) * jnp.tanh(z[Cin:, :])
        o_ref[0] = (o_ref[0].astype(f32) + gate).astype(o_ref.dtype)


def lvc_stack(xu, wt2d, bt, bw2d, bb, lvc_k, lvc_b, *, L, hop, K, Kt,
              dilations, slope):
    B, Cin, Lu = xu.shape
    Cout = lvc_k.shape[3]
    Lk = L // hop
    maxpad = max(max(d * (K - 1) // 2 for d in dilations), (K - 1) // 2)
    col_rows = max(Kt, K) * Cin
    kern = functools.partial(_lvc_stack_kernel, L=L, Lk=Lk, hop=hop, Cin=Cin,
                             Cout=Cout, K=K, Kt=Kt, dilations=tuple(dilations),
                             slope=slope, maxpad=maxpad)
    return pl.pallas_call(
        kern,
        out_shape=jax.ShapeDtypeStruct((B, Cin, L), xu.dtype),
        grid=(B,),
        in_specs=[
            pl.BlockSpec((1, Cin, Lu), lambda b: (b, 0, 0)),
            pl.BlockSpec(wt2d.shape, lambda b: (0, 0)),
            pl.BlockSpec(bt.shape, lambda b: (0, 0)),
            pl.BlockSpec(bw2d.shape, lambda b: (0, 0, 0)),
            pl.BlockSpec(bb.shape, lambda b: (0, 0, 0)),
            pl.BlockSpec((1,) + lvc_k.shape[1:], lambda b: (b, 0, 0, 0, 0)),
            pl.BlockSpec((1,) + lvc_b.shape[1:], lambda b: (b, 0, 0, 0)),
        ],
        out_specs=pl.BlockSpec((1, Cin, L), lambda b: (b, 0, 0)),
        scratch_shapes=[
            pltpu.VMEM((Cin, L + 2 * maxpad), jnp.float32),
            pltpu.VMEM((col_rows, L), jnp.float32),
            pltpu.VMEM((Cout, L), jnp.float32),
        ],
        compiler_params=pltpu.CompilerParams(
            dimension_semantics=("parallel",)),
    )(xu, wt2d, bt, bw2d, bb, lvc_k, lvc_b)


# ----------------------------------------------------------------------------
# Module forward (PyTorch NCL I/O, all layout prep is cheap one-time XLA glue).
# ----------------------------------------------------------------------------
def lvc_block_forward(x_ncl, c_ncl, params, *, stride, dilations, hop,
                      conv_kernel_size, kp_conv_size, kp_hidden, slope=0.2):
    """x_ncl: (B, in_ch, T), c_ncl: (B, cond_ch, Lc) -> (B, in_ch, T*stride)."""
    B, Cin, T = x_ncl.shape
    _, cond_ch, Lc = c_ncl.shape
    K = conv_kernel_size
    Kp = kp_conv_size
    Cout = 2 * Cin
    Kt = 2 * stride
    layers = len(dilations)
    L = T * stride
    assert L == Lc * hop, (L, Lc, hop)
    kC = layers * Cin * Cout * K
    bC = layers * Cout

    # --- weight prep: PyTorch layouts -> (Cout, K*Cin) matmul weights --------
    def c1d(w):                       # Conv1d weight (Cout, Cin, K) -> (Cout, K*Cin)
        co, ci, k = w.shape
        return jnp.transpose(w, (0, 2, 1)).reshape(co, k * ci)

    # ConvTranspose1d weight (Cin, Cout, Kt): time-flip + swap channel axes so
    # it applies as a regular conv on the zero-stuffed input.
    wt = params["convt_w"]
    wt2d = jnp.transpose(wt[:, :, ::-1], (1, 2, 0)).reshape(Cin, Kt * Cin)
    bt = params["convt_b"].reshape(Cin, 1)

    bw2d = jnp.stack([c1d(params[f"block{i}_w"]) for i in range(layers)])
    bb = jnp.stack([params[f"block{i}_b"]
                    for i in range(layers)]).reshape(layers, Cin, 1)

    kp = params["kp"]
    inw = c1d(kp["in_w"])
    inb = kp["in_b"].reshape(-1, 1)
    rw = jnp.stack([c1d(kp[f"res{r}_w{j}"]) for r in range(3) for j in (1, 2)])
    rb = jnp.stack([kp[f"res{r}_b{j}"]
                    for r in range(3) for j in (1, 2)]).reshape(6, -1, 1)
    # fuse kernel_conv + bias_conv into one conv (single launch, dense output)
    ow = jnp.concatenate([c1d(kp["k_w"]), c1d(kp["b_w"])], axis=0)
    ob = jnp.concatenate([kp["k_b"], kp["b_b"]], axis=0).reshape(-1, 1)

    # --- kernel predictor (one fused pallas_call) ----------------------------
    kb = kernel_predictor(c_ncl, inw, inb, rw, rb, ow, ob,
                          hidden=kp_hidden, Kin=5, Kp=Kp, slope=slope)
    k = kb[:, :kC, :]
    b = kb[:, kC:, :]
    # PyTorch view: (B, layers, Cin, Cout, K, Lc) -> per-frame (Cout, K*Cin)
    kernels = k.reshape(B, layers, Cin, Cout, K, Lc)
    kernels = jnp.transpose(kernels, (0, 1, 5, 3, 4, 2)).reshape(
        B, layers, Lc, Cout, K * Cin)
    bias = b.reshape(B, layers, Cout, Lc)
    bias_full = jnp.repeat(bias, hop, axis=-1)            # (B, layers, Cout, L)

    # --- zero-stuff + pad the input for ConvTranspose1d-as-regular-conv ------
    # TODO(synk): polyphase formulation would avoid shipping the stuffed zeros.
    p_ct = stride // 2 + stride % 2
    opad = stride % 2
    xup = jnp.zeros((B, Cin, (T - 1) * stride + 1), x_ncl.dtype)
    xup = xup.at[:, :, ::stride].set(x_ncl)
    left = Kt - 1 - p_ct
    right = Kt - 1 - p_ct + opad
    xup = jnp.pad(xup, ((0, 0), (0, 0), (left, right)))   # (B, Cin, L + Kt - 1)

    # --- fused convt + len(dilations) x (dilated conv + LVC gate + residual) -
    return lvc_stack(xup, wt2d, bt, bw2d, bb, kernels, bias_full,
                     L=L, hop=hop, K=K, Kt=Kt, dilations=dilations, slope=slope)


# ----------------------------------------------------------------------------
# Deterministic synthetic parameter init (PyTorch weight layouts).
# ----------------------------------------------------------------------------
def _uniform(key, shape, fan_in):
    bound = 1.0 / (fan_in ** 0.5)
    return jax.random.uniform(key, shape, jnp.float32, -bound, bound)


def init_params(key, *, in_channels, cond_channels, stride, dilations,
                conv_kernel_size, kpnet_hidden, kpnet_conv_size):
    Cin, Cout, K = in_channels, 2 * in_channels, conv_kernel_size
    layers = len(dilations)
    Kt = 2 * stride
    keys = iter(jax.random.split(key, 64))
    p = {}
    p["convt_w"] = _uniform(next(keys), (Cin, Cin, Kt), Cin * Kt)      # (in, out, K)
    p["convt_b"] = _uniform(next(keys), (Cin,), Cin * Kt)
    for i in range(layers):
        p[f"block{i}_w"] = _uniform(next(keys), (Cin, Cin, K), Cin * K)  # (out, in, K)
        p[f"block{i}_b"] = _uniform(next(keys), (Cin,), Cin * K)
    kp = {}
    kp["in_w"] = _uniform(next(keys), (kpnet_hidden, cond_channels, 5),
                          cond_channels * 5)
    kp["in_b"] = _uniform(next(keys), (kpnet_hidden,), cond_channels * 5)
    fan_h = kpnet_hidden * kpnet_conv_size
    for r in range(3):
        for j in (1, 2):
            kp[f"res{r}_w{j}"] = _uniform(
                next(keys), (kpnet_hidden, kpnet_hidden, kpnet_conv_size), fan_h)
            kp[f"res{r}_b{j}"] = _uniform(next(keys), (kpnet_hidden,), fan_h)
    kC = layers * Cin * Cout * K
    bC = layers * Cout
    kp["k_w"] = _uniform(next(keys), (kC, kpnet_hidden, kpnet_conv_size), fan_h)
    kp["k_b"] = _uniform(next(keys), (kC,), fan_h)
    kp["b_w"] = _uniform(next(keys), (bC, kpnet_hidden, kpnet_conv_size), fan_h)
    kp["b_b"] = _uniform(next(keys), (bC,), fan_h)
    p["kp"] = kp
    return p


# ----------------------------------------------------------------------------
if __name__ == "__main__":
    B = 2
    in_channels = 8
    cond_channels = 16
    stride = 4
    dilations = (1, 3, 9, 27)
    conv_kernel_size = 3
    cond_hop_length = 32
    kpnet_hidden = 16
    kpnet_conv_size = 3
    T = 32                               # input length
    L = T * stride                       # output length = 128
    Lc = L // cond_hop_length            # cond length = 4

    key = jax.random.PRNGKey(0)
    kp_key, kx, kc = jax.random.split(key, 3)
    params = init_params(kp_key, in_channels=in_channels,
                         cond_channels=cond_channels, stride=stride,
                         dilations=dilations,
                         conv_kernel_size=conv_kernel_size,
                         kpnet_hidden=kpnet_hidden,
                         kpnet_conv_size=kpnet_conv_size)

    x = jax.random.normal(kx, (B, in_channels, T), jnp.float32)
    c = jax.random.normal(kc, (B, cond_channels, Lc), jnp.float32)

    fwd = jax.jit(functools.partial(
        lvc_block_forward, stride=stride, dilations=dilations,
        hop=cond_hop_length, conv_kernel_size=conv_kernel_size,
        kp_conv_size=kpnet_conv_size, kp_hidden=kpnet_hidden, slope=0.2))

    out = jax.block_until_ready(fwd(x, c, params))
    assert out.shape == (B, in_channels, L), out.shape
    assert bool(jnp.all(jnp.isfinite(out)))
    print("KERNEL_OK")
</pallas_src>

<mosaic_0001>
module attributes {stable_mosaic.version = 11 : i64} {
  func.func @_kernel_predictor_kernel(%arg0: i32, %arg1: memref<1x16x4xf32, #tpu.memory_space<vmem>>, %arg2: memref<16x80xf32, #tpu.memory_space<vmem>>, %arg3: memref<16x1xf32, #tpu.memory_space<vmem>>, %arg4: memref<6x16x48xf32, #tpu.memory_space<vmem>>, %arg5: memref<6x16x1xf32, #tpu.memory_space<vmem>>, %arg6: memref<1600x48xf32, #tpu.memory_space<vmem>>, %arg7: memref<1600x1xf32, #tpu.memory_space<vmem>>, %arg8: memref<1x1600x4xf32, #tpu.memory_space<vmem>>, %arg9: memref<16x8xf32, #tpu.memory_space<vmem>>, %arg10: memref<80x4xf32, #tpu.memory_space<vmem>>) attributes {dimension_semantics = [#tpu.dimension_semantics<parallel>], iteration_bounds = array<i64: 2>, scalar_prefetch = 0 : i64, scratch_operands = 2 : i64, tpu.core_type = #tpu.core_type<tc>, window_params = [{transform_indices = @transform_0, window_bounds = array<i64: 1, 16, 4>}, {pipeline_mode = #tpu.pipeline_mode<synchronous>, transform_indices = @transform_1, window_bounds = array<i64: 16, 80>}, {pipeline_mode = #tpu.pipeline_mode<synchronous>, transform_indices = @transform_2, window_bounds = array<i64: 16, 1>}, {pipeline_mode = #tpu.pipeline_mode<synchronous>, transform_indices = @transform_3, window_bounds = array<i64: 6, 16, 48>}, {pipeline_mode = #tpu.pipeline_mode<synchronous>, transform_indices = @transform_4, window_bounds = array<i64: 6, 16, 1>}, {pipeline_mode = #tpu.pipeline_mode<synchronous>, transform_indices = @transform_5, window_bounds = array<i64: 1600, 48>}, {pipeline_mode = #tpu.pipeline_mode<synchronous>, transform_indices = @transform_6, window_bounds = array<i64: 1600, 1>}, {transform_indices = @transform_7, window_bounds = array<i64: 1, 1600, 4>}]} {
    %cst = arith.constant 0.000000e+00 : f32
    %0 = vector.broadcast %cst : f32 to vector<16x8xf32>
    %c0 = arith.constant 0 : index
    %c0_0 = arith.constant 0 : index
    %1 = vector.load %arg9[%c0, %c0_0] : memref<16x8xf32, #tpu.memory_space<vmem>>, vector<16x8xf32>
    tpu.vector_store %arg9[%c0, %c0_0], %0 {strides = array<i32>} : memref<16x8xf32, #tpu.memory_space<vmem>>, vector<16x8xf32>,
    %c0_1 = arith.constant 0 : index
    %c0_2 = arith.constant 0 : index
    %c0_3 = arith.constant 0 : index
    %2 = vector.load %arg1[%c0_1, %c0_2, %c0_3] : memref<1x16x4xf32, #tpu.memory_space<vmem>>, vector<1x16x4xf32>
    %3 = vector.shape_cast %2 : vector<1x16x4xf32> to vector<16x4xf32>
    %c0_4 = arith.constant 0 : index
    %c0_5 = arith.constant 0 : index
    %4 = vector.load %arg2[%c0_4, %c0_5] : memref<16x80xf32, #tpu.memory_space<vmem>>, vector<16x80xf32>
    %c0_6 = arith.constant 0 : index
    %c0_7 = arith.constant 0 : index
    %5 = vector.load %arg3[%c0_6, %c0_7] : memref<16x1xf32, #tpu.memory_space<vmem>>, vector<16x1xf32>
    %c0_8 = arith.constant 0 : index
    %c2 = arith.constant 2 : index
    %6 = vector.load %arg9[%c0_8, %c2] : memref<16x8xf32, #tpu.memory_space<vmem>>, vector<16x4xf32>
    tpu.vector_store %arg9[%c0_8, %c2], %3 {strides = array<i32>} : memref<16x8xf32, #tpu.memory_space<vmem>>, vector<16x4xf32>,
    %c0_9 = arith.constant 0 : index
    %c0_10 = arith.constant 0 : index
    %7 = vector.load %arg9[%c0_9, %c0_10] : memref<16x8xf32, #tpu.memory_space<vmem>>, vector<16x4xf32>
    %c0_11 = arith.constant 0 : index
    %c0_12 = arith.constant 0 : index
    %8 = vector.load %arg10[%c0_11, %c0_12] : memref<80x4xf32, #tpu.memory_space<vmem>>, vector<16x4xf32>
    tpu.vector_store %arg10[%c0_11, %c0_12], %7 {strides = array<i32>} : memref<80x4xf32, #tpu.memory_space<vmem>>, vector<16x4xf32>,
    %c0_13 = arith.constant 0 : index
    %c1 = arith.constant 1 : index
    %9 = vector.load %arg9[%c0_13, %c1] : memref<16x8xf32, #tpu.memory_space<vmem>>, vector<16x4xf32>
    %c16 = arith.constant 16 : index
    %c0_14 = arith.constant 0 : index
    %10 = vector.load %arg10[%c16, %c0_14] : memref<80x4xf32, #tpu.memory_space<vmem>>, vector<16x4xf32>
    tpu.vector_store %arg10[%c16, %c0_14], %9 {strides = array<i32>} : memref<80x4xf32, #tpu.memory_space<vmem>>, vector<16x4xf32>,
    %c0_15 = arith.constant 0 : index
    %c2_16 = arith.constant 2 : index
    %11 = vector.load %arg9[%c0_15, %c2_16] : memref<16x8xf32, #tpu.memory_space<vmem>>, vector<16x4xf32>
    %c32 = arith.constant 32 : index
    %c0_17 = arith.constant 0 : index
    %12 = vector.load %arg10[%c32, %c0_17] : memref<80x4xf32, #tpu.memory_space<vmem>>, vector<16x4xf32>
    tpu.vector_store %arg10[%c32, %c0_17], %11 {strides = array<i32>} : memref<80x4xf32, #tpu.memory_space<vmem>>, vector<16x4xf32>,
    %c0_18 = arith.constant 0 : index
    %c3 = arith.constant 3 : index
    %13 = vector.load %arg9[%c0_18, %c3] : memref<16x8xf32, #tpu.memory_space<vmem>>, vector<16x4xf32>
    %c48 = arith.constant 48 : index
    %c0_19 = arith.constant 0 : index
    %14 = vector.load %arg10[%c48, %c0_19] : memref<80x4xf32, #tpu.memory_space<vmem>>, vector<16x4xf32>
    tpu.vector_store %arg10[%c48, %c0_19], %13 {strides = array<i32>} : memref<80x4xf32, #tpu.memory_space<vmem>>, vector<16x4xf32>,
    %c0_20 = arith.constant 0 : index
    %c4 = arith.constant 4 : index
    %15 = vector.load %arg9[%c0_20, %c4] : memref<16x8xf32, #tpu.memory_space<vmem>>, vector<16x4xf32>
    %c64 = arith.constant 64 : index
    %c0_21 = arith.constant 0 : index
    %16 = vector.load %arg10[%c64, %c0_21] : memref<80x4xf32, #tpu.memory_space<vmem>>, vector<16x4xf32>
    tpu.vector_store %arg10[%c64, %c0_21], %15 {strides = array<i32>} : memref<80x4xf32, #tpu.memory_space<vmem>>, vector<16x4xf32>,
    %c0_22 = arith.constant 0 : index
    %c0_23 = arith.constant 0 : index
    %17 = vector.load %arg10[%c0_22, %c0_23] : memref<80x4xf32, #tpu.memory_space<vmem>>, vector<80x4xf32>
    %cst_24 = arith.constant dense<0.000000e+00> : vector<16x4xf32>
    %18 = tpu.matmul %4, %17, %cst_24 {dimension_numbers = #tpu.dot_dimension_numbers<[1], [0], [0], [1], [0, 0, 1, 1], [], []>} : vector<16x80xf32>, vector<80x4xf32>, vector<16x4xf32> -> vector<16x4xf32>
    %19 = vector.broadcast %5 : vector<16x1xf32> to vector<16x4xf32>
    %20 = arith.addf %18, %19 : vector<16x4xf32>
    %cst_25 = arith.constant 0.000000e+00 : f32
    %21 = vector.broadcast %cst_25 : f32 to vector<16x4xf32>
    %22 = arith.cmpf oge, %20, %21 : vector<16x4xf32>
    %cst_26 = arith.constant 2.000000e-01 : f32
    %23 = vector.broadcast %cst_26 : f32 to vector<16x4xf32>
    %24 = arith.mulf %23, %20 : vector<16x4xf32>
    %25 = arith.select %22, %20, %24 : vector<16x4xi1>, vector<16x4xf32>
    %c0_27 = arith.constant 0 : index
    %c0_28 = arith.constant 0 : index
    %c0_29 = arith.constant 0 : index
    %26 = vector.load %arg4[%c0_27, %c0_28, %c0_29] : memref<6x16x48xf32, #tpu.memory_space<vmem>>, vector<1x16x48xf32>
    %27 = vector.shape_cast %26 : vector<1x16x48xf32> to vector<16x48xf32>
    %c0_30 = arith.constant 0 : index
    %c0_31 = arith.constant 0 : index
    %c0_32 = arith.constant 0 : index
    %28 = vector.load %arg5[%c0_30, %c0_31, %c0_32] : memref<6x16x1xf32, #tpu.memory_space<vmem>>, vector<1x16x1xf32>
    %29 = vector.shape_cast %28 : vector<1x16x1xf32> to vector<16x1xf32>
    %c0_33 = arith.constant 0 : index
    %c2_34 = arith.constant 2 : index
    %30 = vector.load %arg9[%c0_33, %c2_34] : memref<16x8xf32, #tpu.memory_space<vmem>>, vector<16x4xf32>
    tpu.vector_store %arg9[%c0_33, %c2_34], %25 {strides = array<i32>} : memref<16x8xf32, #tpu.memory_space<vmem>>, vector<16x4xf32>,
    %c0_35 = arith.constant 0 : index
    %c1_36 = arith.constant 1 : index
    %31 = vector.load %arg9[%c0_35, %c1_36] : memref<16x8xf32, #tpu.memory_space<vmem>>, vector<16x4xf32>
    %c0_37 = arith.constant 0 : index
    %c0_38 = arith.constant 0 : index
    %32 = vector.load %arg10[%c0_37, %c0_38] : memref<80x4xf32, #tpu.memory_space<vmem>>, vector<16x4xf32>
    tpu.vector_store %arg10[%c0_37, %c0_38], %31 {strides = array<i32>} : memref<80x4xf32, #tpu.memory_space<vmem>>, vector<16x4xf32>,
    %c0_39 = arith.constant 0 : index
    %c2_40 = arith.constant 2 : index
    %33 = vector.load %arg9[%c0_39, %c2_40] : memref<16x8xf32, #tpu.memory_space<vmem>>, vector<16x4xf32>
    %c16_41 = arith.constant 16 : index
    %c0_42 = arith.constant 0 : index
    %34 = vector.load %arg10[%c16_41, %c0_42] : memref<80x4xf32, #tpu.memory_space<vmem>>, vector<16x4xf32>
    tpu.vector_store %arg10[%c16_41, %c0_42], %33 {strides = array<i32>} : memref<80x4xf32, #tpu.memory_space<vmem>>, vector<16x4xf32>,
    %c0_43 = arith.constant 0 : index
    %c3_44 = arith.constant 3 : index
    %35 = vector.load %arg9[%c0_43, %c3_44] : memref<16x8xf32, #tpu.memory_space<vmem>>, vector<16x4xf32>
    %c32_45 = arith.constant 32 : index
    %c0_46 = arith.constant 0 : index
    %36 = vector.load %arg10[%c32_45, %c0_46] : memref<80x4xf32, #tpu.memory_space<vmem>>, vector<16x4xf32>
    tpu.vector_store %arg10[%c32_45, %c0_46], %35 {strides = array<i32>} : memref<80x4xf32, #tpu.memory_space<vmem>>, vector<16x4xf32>,
    %c0_47 = arith.constant 0 : index
    %c0_48 = arith.constant 0 : index
    %37 = vector.load %arg10[%c0_47, %c0_48] : memref<80x4xf32, #tpu.memory_space<vmem>>, vector<48x4xf32>
    %cst_49 = arith.constant dense<0.000000e+00> : vector<16x4xf32>
    %38 = tpu.matmul %27, %37, %cst_49 {dimension_numbers = #tpu.dot_dimension_numbers<[1], [0], [0], [1], [0, 0, 1, 1], [], []>} : vector<16x48xf32>, vector<48x4xf32>, vector<16x4xf32> -> vector<16x4xf32>
    %39 = vector.broadcast %29 : vector<16x1xf32> to vector<16x4xf32>
    %40 = arith.addf %38, %39 : vector<16x4xf32>
    %cst_50 = arith.constant 0.000000e+00 : f32
    %41 = vector.broadcast %cst_50 : f32 to vector<16x4xf32>
    %42 = arith.cmpf oge, %40, %41 : vector<16x4xf32>
    %cst_51 = arith.constant 2.000000e-01 : f32
    %43 = vector.broadcast %cst_51 : f32 to vector<16x4xf32>
    %44 = arith.mulf %43, %40 : vector<16x4xf32>
    %45 = arith.select %42, %40, %44 : vector<16x4xi1>, vector<16x4xf32>
    %c1_52 = arith.constant 1 : index
    %c0_53 = arith.constant 0 : index
    %c0_54 = arith.constant 0 : index
    %46 = vector.load %arg4[%c1_52, %c0_53, %c0_54] : memref<6x16x48xf32, #tpu.memory_space<vmem>>, vector<1x16x48xf32>
    %47 = vector.shape_cast %46 : vector<1x16x48xf32> to vector<16x48xf32>
    %c1_55 = arith.constant 1 : index
    %c0_56 = arith.constant 0 : index
    %c0_57 = arith.constant 0 : index
    %48 = vector.load %arg5[%c1_55, %c0_56, %c0_57] : memref<6x16x1xf32, #tpu.memory_space<vmem>>, vector<1x16x1xf32>
    %49 = vector.shape_cast %48 : vector<1x16x1xf32> to vector<16x1xf32>
    %c0_58 = arith.constant 0 : index
    %c2_59 = arith.constant 2 : index
    %50 = vector.load %arg9[%c0_58, %c2_59] : memref<16x8xf32, #tpu.memory_space<vmem>>, vector<16x4xf32>
    tpu.vector_store %arg9[%c0_58, %c2_59], %45 {strides = array<i32>} : memref<16x8xf32, #tpu.memory_space<vmem>>, vector<16x4xf32>,
    %c0_60 = arith.constant 0 : index
    %c1_61 = arith.constant 1 : index
    %51 = vector.load %arg9[%c0_60, %c1_61] : memref<16x8xf32, #tpu.memory_space<vmem>>, vector<16x4xf32>
    %c0_62 = arith.constant 0 : index
    %c0_63 = arith.constant 0 : index
    %52 = vector.load %arg10[%c0_62, %c0_63] : memref<80x4xf32, #tpu.memory_space<vmem>>, vector<16x4xf32>
    tpu.vector_store %arg10[%c0_62, %c0_63], %51 {strides = array<i32>} : memref<80x4xf32, #tpu.memory_space<vmem>>, vector<16x4xf32>,
    %c0_64 = arith.constant 0 : index
    %c2_65 = arith.constant 2 : index
    %53 = vector.load %arg9[%c0_64, %c2_65] : memref<16x8xf32, #tpu.memory_space<vmem>>, vector<16x4xf32>
    %c16_66 = arith.constant 16 : index
    %c0_67 = arith.constant 0 : index
    %54 = vector.load %arg10[%c16_66, %c0_67] : memref<80x4xf32, #tpu.memory_space<vmem>>, vector<16x4xf32>
    tpu.vector_store %arg10[%c16_66, %c0_67], %53 {strides = array<i32>} : memref<80x4xf32, #tpu.memory_space<vmem>>, vector<16x4xf32>,
    %c0_68 = arith.constant 0 : index
    %c3_69 = arith.constant 3 : index
    %55 = vector.load %arg9[%c0_68, %c3_69] : memref<16x8xf32, #tpu.memory_space<vmem>>, vector<16x4xf32>
    %c32_70 = arith.constant 32 : index
    %c0_71 = arith.constant 0 : index
    %56 = vector.load %arg10[%c32_70, %c0_71] : memref<80x4xf32, #tpu.memory_space<vmem>>, vector<16x4xf32>
    tpu.vector_store %arg10[%c32_70, %c0_71], %55 {strides = array<i32>} : memref<80x4xf32, #tpu.memory_space<vmem>>, vector<16x4xf32>,
    %c0_72 = arith.constant 0 : index
    %c0_73 = arith.constant 0 : index
    %57 = vector.load %arg10[%c0_72, %c0_73] : memref<80x4xf32, #tpu.memory_space<vmem>>, vector<48x4xf32>
    %cst_74 = arith.constant dense<0.000000e+00> : vector<16x4xf32>
    %58 = tpu.matmul %47, %57, %cst_74 {dimension_numbers = #tpu.dot_dimension_numbers<[1], [0], [0], [1], [0, 0, 1, 1], [], []>} : vector<16x48xf32>, vector<48x4xf32>, vector<16x4xf32> -> vector<16x4xf32>
    %59 = vector.broadcast %49 : vector<16x1xf32> to vector<16x4xf32>
    %60 = arith.addf %58, %59 : vector<16x4xf32>
    %cst_75 = arith.constant 0.000000e+00 : f32
    %61 = vector.broadcast %cst_75 : f32 to vector<16x4xf32>
    %62 = arith.cmpf oge, %60, %61 : vector<16x4xf32>
    %cst_76 = arith.constant 2.000000e-01 : f32
    %63 = vector.broadcast %cst_76 : f32 to vector<16x4xf32>
    %64 = arith.mulf %63, %60 : vector<16x4xf32>
    %65 = arith.select %62, %60, %64 : vector<16x4xi1>, vector<16x4xf32>
    %66 = arith.addf %25, %65 : vector<16x4xf32>
    %c2_77 = arith.constant 2 : index
    %c0_78 = arith.constant 0 : index
    %c0_79 = arith.constant 0 : index
    %67 = vector.load %arg4[%c2_77, %c0_78, %c0_79] : memref<6x16x48xf32, #tpu.memory_space<vmem>>, vector<1x16x48xf32>
    %68 = vector.shape_cast %67 : vector<1x16x48xf32> to vector<16x48xf32>
    %c2_80 = arith.constant 2 : index
    %c0_81 = arith.constant 0 : index
    %c0_82 = arith.constant 0 : index
    %69 = vector.load %arg5[%c2_80, %c0_81, %c0_82] : memref<6x16x1xf32, #tpu.memory_space<vmem>>, vector<1x16x1xf32>
    %70 = vector.shape_cast %69 : vector<1x16x1xf32> to vector<16x1xf32>
    %c0_83 = arith.constant 0 : index
    %c2_84 = arith.constant 2 : index
    %71 = vector.load %arg9[%c0_83, %c2_84] : memref<16x8xf32, #tpu.memory_space<vmem>>, vector<16x4xf32>
    tpu.vector_store %arg9[%c0_83, %c2_84], %66 {strides = array<i32>} : memref<16x8xf32, #tpu.memory_space<vmem>>, vector<16x4xf32>,
    %c0_85 = arith.constant 0 : index
    %c1_86 = arith.constant 1 : index
    %72 = vector.load %arg9[%c0_85, %c1_86] : memref<16x8xf32, #tpu.memory_space<vmem>>, vector<16x4xf32>
    %c0_87 = arith.constant 0 : index
    %c0_88 = arith.constant 0 : index
    %73 = vector.load %arg10[%c0_87, %c0_88] : memref<80x4xf32, #tpu.memory_space<vmem>>, vector<16x4xf32>
    tpu.vector_store %arg10[%c0_87, %c0_88], %72 {strides = array<i32>} : memref<80x4xf32, #tpu.memory_space<vmem>>, vector<16x4xf32>,
    %c0_89 = arith.constant 0 : index
    %c2_90 = arith.constant 2 : index
    %74 = vector.load %arg9[%c0_89, %c2_90] : memref<16x8xf32, #tpu.memory_space<vmem>>, vector<16x4xf32>
    %c16_91 = arith.constant 16 : index
    %c0_92 = arith.constant 0 : index
    %75 = vector.load %arg10[%c16_91, %c0_92] : memref<80x4xf32, #tpu.memory_space<vmem>>, vector<16x4xf32>
    tpu.vector_store %arg10[%c16_91, %c0_92], %74 {strides = array<i32>} : memref<80x4xf32, #tpu.memory_space<vmem>>, vector<16x4xf32>,
    %c0_93 = arith.constant 0 : index
    %c3_94 = arith.constant 3 : index
    %76 = vector.load %arg9[%c0_93, %c3_94] : memref<16x8xf32, #tpu.memory_space<vmem>>, vector<16x4xf32>
    %c32_95 = arith.constant 32 : index
    %c0_96 = arith.constant 0 : index
    %77 = vector.load %arg10[%c32_95, %c0_96] : memref<80x4xf32, #tpu.memory_space<vmem>>, vector<16x4xf32>
    tpu.vector_store %arg10[%c32_95, %c0_96], %76 {strides = array<i32>} : memref<80x4xf32, #tpu.memory_space<vmem>>, vector<16x4xf32>,
    %c0_97 = arith.constant 0 : index
    %c0_98 = arith.constant 0 : index
    %78 = vector.load %arg10[%c0_97, %c0_98] : memref<80x4xf32, #tpu.memory_space<vmem>>, vector<48x4xf32>
    %cst_99 = arith.constant dense<0.000000e+00> : vector<16x4xf32>
    %79 = tpu.matmul %68, %78, %cst_99 {dimension_numbers = #tpu.dot_dimension_numbers<[1], [0], [0], [1], [0, 0, 1, 1], [], []>} : vector<16x48xf32>, vector<48x4xf32>, vector<16x4xf32> -> vector<16x4xf32>
    %80 = vector.broadcast %70 : vector<16x1xf32> to vector<16x4xf32>
    %81 = arith.addf %79, %80 : vector<16x4xf32>
    %cst_100 = arith.constant 0.000000e+00 : f32
    %82 = vector.broadcast %cst_100 : f32 to vector<16x4xf32>
    %83 = arith.cmpf oge, %81, %82 : vector<16x4xf32>
    %cst_101 = arith.constant 2.000000e-01 : f32
    %84 = vector.broadcast %cst_101 : f32 to vector<16x4xf32>
    %85 = arith.mulf %84, %81 : vector<16x4xf32>
    %86 = arith.select %83, %81, %85 : vector<16x4xi1>, vector<16x4xf32>
    %c3_102 = arith.constant 3 : index
    %c0_103 = arith.constant 0 : index
    %c0_104 = arith.constant 0 : index
    %87 = vector.load %arg4[%c3_102, %c0_103, %c0_104] : memref<6x16x48xf32, #tpu.memory_space<vmem>>, vector<1x16x48xf32>
    %88 = vector.shape_cast %87 : vector<1x16x48xf32> to vector<16x48xf32>
    %c3_105 = arith.constant 3 : index
    %c0_106 = arith.constant 0 : index
    %c0_107 = arith.constant 0 : index
    %89 = vector.load %arg5[%c3_105, %c0_106, %c0_107] : memref<6x16x1xf32, #tpu.memory_space<vmem>>, vector<1x16x1xf32>
    %90 = vector.shape_cast %89 : vector<1x16x1xf32> to vector<16x1xf32>
    %c0_108 = arith.constant 0 : index
    %c2_109 = arith.constant 2 : index
    %91 = vector.load %arg9[%c0_108, %c2_109] : memref<16x8xf32, #tpu.memory_space<vmem>>, vector<16x4xf32>
    tpu.vector_store %arg9[%c0_108, %c2_109], %86 {strides = array<i32>} : memref<16x8xf32, #tpu.memory_space<vmem>>, vector<16x4xf32>,
    %c0_110 = arith.constant 0 : index
    %c1_111 = arith.constant 1 : index
    %92 = vector.load %arg9[%c0_110, %c1_111] : memref<16x8xf32, #tpu.memory_space<vmem>>, vector<16x4xf32>
    %c0_112 = arith.constant 0 : index
    %c0_113 = arith.constant 0 : index
    %93 = vector.load %arg10[%c0_112, %c0_113] : memref<80x4xf32, #tpu.memory_space<vmem>>, vector<16x4xf32>
    tpu.vector_store %arg10[%c0_112, %c0_113], %92 {strides = array<i32>} : memref<80x4xf32, #tpu.memory_space<vmem>>, vector<16x4xf32>,
    %c0_114 = arith.constant 0 : index
    %c2_115 = arith.constant 2 : index
    %94 = vector.load %arg9[%c0_114, %c2_115] : memref<16x8xf32, #tpu.memory_space<vmem>>, vector<16x4xf32>
    %c16_116 = arith.constant 16 : index
    %c0_117 = arith.constant 0 : index
    %95 = vector.load %arg10[%c16_116, %c0_117] : memref<80x4xf32, #tpu.memory_space<vmem>>, vector<16x4xf32>
    tpu.vector_store %arg10[%c16_116, %c0_117], %94 {strides = array<i32>} : memref<80x4xf32, #tpu.memory_space<vmem>>, vector<16x4xf32>,
    %c0_118 = arith.constant 0 : index
    %c3_119 = arith.constant 3 : index
    %96 = vector.load %arg9[%c0_118, %c3_119] : memref<16x8xf32, #tpu.memory_space<vmem>>, vector<16x4xf32>
    %c32_120 = arith.constant 32 : index
    %c0_121 = arith.constant 0 : index
    %97 = vector.load %arg10[%c32_120, %c0_121] : memref<80x4xf32, #tpu.memory_space<vmem>>, vector<16x4xf32>
    tpu.vector_store %arg10[%c32_120, %c0_121], %96 {strides = array<i32>} : memref<80x4xf32, #tpu.memory_space<vmem>>, vector<16x4xf32>,
    %c0_122 = arith.constant 0 : index
    %c0_123 = arith.constant 0 : index
    %98 = vector.load %arg10[%c0_122, %c0_123] : memref<80x4xf32, #tpu.memory_space<vmem>>, vector<48x4xf32>
    %cst_124 = arith.constant dense<0.000000e+00> : vector<16x4xf32>
    %99 = tpu.matmul %88, %98, %cst_124 {dimension_numbers = #tpu.dot_dimension_numbers<[1], [0], [0], [1], [0, 0, 1, 1], [], []>} : vector<16x48xf32>, vector<48x4xf32>, vector<16x4xf32> -> vector<16x4xf32>
    %100 = vector.broadcast %90 : vector<16x1xf32> to vector<16x4xf32>
    %101 = arith.addf %99, %100 : vector<16x4xf32>
    %cst_125 = arith.constant 0.000000e+00 : f32
    %102 = vector.broadcast %cst_125 : f32 to vector<16x4xf32>
    %103 = arith.cmpf oge, %101, %102 : vector<16x4xf32>
    %cst_126 = arith.constant 2.000000e-01 : f32
    %104 = vector.broadcast %cst_126 : f32 to vector<16x4xf32>
    %105 = arith.mulf %104, %101 : vector<16x4xf32>
    %106 = arith.select %103, %101, %105 : vector<16x4xi1>, vector<16x4xf32>
    %107 = arith.addf %66, %106 : vector<16x4xf32>
    %c4_127 = arith.constant 4 : index
    %c0_128 = arith.constant 0 : index
    %c0_129 = arith.constant 0 : index
    %108 = vector.load %arg4[%c4_127, %c0_128, %c0_129] : memref<6x16x48xf32, #tpu.memory_space<vmem>>, vector<1x16x48xf32>
    %109 = vector.shape_cast %108 : vector<1x16x48xf32> to vector<16x48xf32>
    %c4_130 = arith.constant 4 : index
    %c0_131 = arith.constant 0 : index
    %c0_132 = arith.constant 0 : index
    %110 = vector.load %arg5[%c4_130, %c0_131, %c0_132] : memref<6x16x1xf32, #tpu.memory_space<vmem>>, vector<1x16x1xf32>
    %111 = vector.shape_cast %110 : vector<1x16x1xf32> to vector<16x1xf32>
    %c0_133 = arith.constant 0 : index
    %c2_134 = arith.constant 2 : index
    %112 = vector.load %arg9[%c0_133, %c2_134] : memref<16x8xf32, #tpu.memory_space<vmem>>, vector<16x4xf32>
    tpu.vector_store %arg9[%c0_133, %c2_134], %107 {strides = array<i32>} : memref<16x8xf32, #tpu.memory_space<vmem>>, vector<16x4xf32>,
    %c0_135 = arith.constant 0 : index
    %c1_136 = arith.constant 1 : index
    %113 = vector.load %arg9[%c0_135, %c1_136] : memref<16x8xf32, #tpu.memory_space<vmem>>, vector<16x4xf32>
    %c0_137 = arith.constant 0 : index
    %c0_138 = arith.constant 0 : index
    %114 = vector.load %arg10[%c0_137, %c0_138] : memref<80x4xf32, #tpu.memory_space<vmem>>, vector<16x4xf32>
    tpu.vector_store %arg10[%c0_137, %c0_138], %113 {strides = array<i32>} : memref<80x4xf32, #tpu.memory_space<vmem>>, vector<16x4xf32>,
    %c0_139 = arith.constant 0 : index
    %c2_140 = arith.constant 2 : index
    %115 = vector.load %arg9[%c0_139, %c2_140] : memref<16x8xf32, #tpu.memory_space<vmem>>, vector<16x4xf32>
    %c16_141 = arith.constant 16 : index
    %c0_142 = arith.constant 0 : index
    %116 = vector.load %arg10[%c16_141, %c0_142] : memref<80x4xf32, #tpu.memory_space<vmem>>, vector<16x4xf32>
    tpu.vector_store %arg10[%c16_141, %c0_142], %115 {strides = array<i32>} : memref<80x4xf32, #tpu.memory_space<vmem>>, vector<16x4xf32>,
    %c0_143 = arith.constant 0 : index
    %c3_144 = arith.constant 3 : index
    %117 = vector.load %arg9[%c0_143, %c3_144] : memref<16x8xf32, #tpu.memory_space<vmem>>, vector<16x4xf32>
    %c32_145 = arith.constant 32 : index
    %c0_146 = arith.constant 0 : index
    %118 = vector.load %arg10[%c32_145, %c0_146] : memref<80x4xf32, #tpu.memory_space<vmem>>, vector<16x4xf32>
    tpu.vector_store %arg10[%c32_145, %c0_146], %117 {strides = array<i32>} : memref<80x4xf32, #tpu.memory_space<vmem>>, vector<16x4xf32>,
    %c0_147 = arith.constant 0 : index
    %c0_148 = arith.constant 0 : index
    %119 = vector.load %arg10[%c0_147, %c0_148] : memref<80x4xf32, #tpu.memory_space<vmem>>, vector<48x4xf32>
    %cst_149 = arith.constant dense<0.000000e+00> : vector<16x4xf32>
    %120 = tpu.matmul %109, %119, %cst_149 {dimension_numbers = #tpu.dot_dimension_numbers<[1], [0], [0], [1], [0, 0, 1, 1], [], []>} : vector<16x48xf32>, vector<48x4xf32>, vector<16x4xf32> -> vector<16x4xf32>
    %121 = vector.broadcast %111 : vector<16x1xf32> to vector<16x4xf32>
    %122 = arith.addf %120, %121 : vector<16x4xf32>
    %cst_150 = arith.constant 0.000000e+00 : f32
    %123 = vector.broadcast %cst_150 : f32 to vector<16x4xf32>
    %124 = arith.cmpf oge, %122, %123 : vector<16x4xf32>
    %cst_151 = arith.constant 2.000000e-01 : f32
    %125 = vector.broadcast %cst_151 : f32 to vector<16x4xf32>
    %126 = arith.mulf %125, %122 : vector<16x4xf32>
    %127 = arith.select %124, %122, %126 : vector<16x4xi1>, vector<16x4xf32>
    %c5 = arith.constant 5 : index
    %c0_152 = arith.constant 0 : index
    %c0_153 = arith.constant 0 : index
    %128 = vector.load %arg4[%c5, %c0_152, %c0_153] : memref<6x16x48xf32, #tpu.memory_space<vmem>>, vector<1x16x48xf32>
    %129 = vector.shape_cast %128 : vector<1x16x48xf32> to vector<16x48xf32>
    %c5_154 = arith.constant 5 : index
    %c0_155 = arith.constant 0 : index
    %c0_156 = arith.constant 0 : index
    %130 = vector.load %arg5[%c5_154, %c0_155, %c0_156] : memref<6x16x1xf32, #tpu.memory_space<vmem>>, vector<1x16x1xf32>
    %131 = vector.shape_cast %130 : vector<1x16x1xf32> to vector<16x1xf32>
    %c0_157 = arith.constant 0 : index
    %c2_158 = arith.constant 2 : index
    %132 = vector.load %arg9[%c0_157, %c2_158] : memref<16x8xf32, #tpu.memory_space<vmem>>, vector<16x4xf32>
    tpu.vector_store %arg9[%c0_157, %c2_158], %127 {strides = array<i32>} : memref<16x8xf32, #tpu.memory_space<vmem>>, vector<16x4xf32>,
    %c0_159 = arith.constant 0 : index
    %c1_160 = arith.constant 1 : index
    %133 = vector.load %arg9[%c0_159, %c1_160] : memref<16x8xf32, #tpu.memory_space<vmem>>, vector<16x4xf32>
    %c0_161 = arith.constant 0 : index
    %c0_162 = arith.constant 0 : index
    %134 = vector.load %arg10[%c0_161, %c0_162] : memref<80x4xf32, #tpu.memory_space<vmem>>, vector<16x4xf32>
    tpu.vector_store %arg10[%c0_161, %c0_162], %133 {strides = array<i32>} : memref<80x4xf32, #tpu.memory_space<vmem>>, vector<16x4xf32>,
    %c0_163 = arith.constant 0 : index
    %c2_164 = arith.constant 2 : index
    %135 = vector.load %arg9[%c0_163, %c2_164] : memref<16x8xf32, #tpu.memory_space<vmem>>, vector<16x4xf32>
    %c16_165 = arith.constant 16 : index
    %c0_166 = arith.constant 0 : index
    %136 = vector.load %arg10[%c16_165, %c0_166] : memref<80x4xf32, #tpu.memory_space<vmem>>, vector<16x4xf32>
    tpu.vector_store %arg10[%c16_165, %c0_166], %135 {strides = array<i32>} : memref<80x4xf32, #tpu.memory_space<vmem>>, vector<16x4xf32>,
    %c0_167 = arith.constant 0 : index
    %c3_168 = arith.constant 3 : index
    %137 = vector.load %arg9[%c0_167, %c3_168] : memref<16x8xf32, #tpu.memory_space<vmem>>, vector<16x4xf32>
    %c32_169 = arith.constant 32 : index
    %c0_170 = arith.constant 0 : index
    %138 = vector.load %arg10[%c32_169, %c0_170] : memref<80x4xf32, #tpu.memory_space<vmem>>, vector<16x4xf32>
    tpu.vector_store %arg10[%c32_169, %c0_170], %137 {strides = array<i32>} : memref<80x4xf32, #tpu.memory_space<vmem>>, vector<16x4xf32>,
    %c0_171 = arith.constant 0 : index
    %c0_172 = arith.constant 0 : index
    %139 = vector.load %arg10[%c0_171, %c0_172] : memref<80x4xf32, #tpu.memory_space<vmem>>, vector<48x4xf32>
    %cst_173 = arith.constant dense<0.000000e+00> : vector<16x4xf32>
    %140 = tpu.matmul %129, %139, %cst_173 {dimension_numbers = #tpu.dot_dimension_numbers<[1], [0], [0], [1], [0, 0, 1, 1], [], []>} : vector<16x48xf32>, vector<48x4xf32>, vector<16x4xf32> -> vector<16x4xf32>
    %141 = vector.broadcast %131 : vector<16x1xf32> to vector<16x4xf32>
    %142 = arith.addf %140, %141 : vector<16x4xf32>
    %cst_174 = arith.constant 0.000000e+00 : f32
    %143 = vector.broadcast %cst_174 : f32 to vector<16x4xf32>
    %144 = arith.cmpf oge, %142, %143 : vector<16x4xf32>
    %cst_175 = arith.constant 2.000000e-01 : f32
    %145 = vector.broadcast %cst_175 : f32 to vector<16x4xf32>
    %146 = arith.mulf %145, %142 : vector<16x4xf32>
    %147 = arith.select %144, %142, %146 : vector<16x4xi1>, vector<16x4xf32>
    %148 = arith.addf %107, %147 : vector<16x4xf32>
    %c0_176 = arith.constant 0 : index
    %c0_177 = arith.constant 0 : index
    %149 = vector.load %arg6[%c0_176, %c0_177] : memref<1600x48xf32, #tpu.memory_space<vmem>>, vector<1600x48xf32>
    %c0_178 = arith.constant 0 : index
    %c0_179 = arith.constant 0 : index
    %150 = vector.load %arg7[%c0_178, %c0_179] : memref<1600x1xf32, #tpu.memory_space<vmem>>, vector<1600x1xf32>
    %c0_180 = arith.constant 0 : index
    %c2_181 = arith.constant 2 : index
    %151 = vector.load %arg9[%c0_180, %c2_181] : memref<16x8xf32, #tpu.memory_space<vmem>>, vector<16x4xf32>
    tpu.vector_store %arg9[%c0_180, %c2_181], %148 {strides = array<i32>} : memref<16x8xf32, #tpu.memory_space<vmem>>, vector<16x4xf32>,
    %c0_182 = arith.constant 0 : index
    %c1_183 = arith.constant 1 : index
    %152 = vector.load %arg9[%c0_182, %c1_183] : memref<16x8xf32, #tpu.memory_space<vmem>>, vector<16x4xf32>
    %c0_184 = arith.constant 0 : index
    %c0_185 = arith.constant 0 : index
    %153 = vector.load %arg10[%c0_184, %c0_185] : memref<80x4xf32, #tpu.memory_space<vmem>>, vector<16x4xf32>
    tpu.vector_store %arg10[%c0_184, %c0_185], %152 {strides = array<i32>} : memref<80x4xf32, #tpu.memory_space<vmem>>, vector<16x4xf32>,
    %c0_186 = arith.constant 0 : index
    %c2_187 = arith.constant 2 : index
    %154 = vector.load %arg9[%c0_186, %c2_187] : memref<16x8xf32, #tpu.memory_space<vmem>>, vector<16x4xf32>
    %c16_188 = arith.constant 16 : index
    %c0_189 = arith.constant 0 : index
    %155 = vector.load %arg10[%c16_188, %c0_189] : memref<80x4xf32, #tpu.memory_space<vmem>>, vector<16x4xf32>
    tpu.vector_store %arg10[%c16_188, %c0_189], %154 {strides = array<i32>} : memref<80x4xf32, #tpu.memory_space<vmem>>, vector<16x4xf32>,
    %c0_190 = arith.constant 0 : index
    %c3_191 = arith.constant 3 : index
    %156 = vector.load %arg9[%c0_190, %c3_191] : memref<16x8xf32, #tpu.memory_space<vmem>>, vector<16x4xf32>
    %c32_192 = arith.constant 32 : index
    %c0_193 = arith.constant 0 : index
    %157 = vector.load %arg10[%c32_192, %c0_193] : memref<80x4xf32, #tpu.memory_space<vmem>>, vector<16x4xf32>
    tpu.vector_store %arg10[%c32_192, %c0_193], %156 {strides = array<i32>} : memref<80x4xf32, #tpu.memory_space<vmem>>, vector<16x4xf32>,
    %c0_194 = arith.constant 0 : index
    %c0_195 = arith.constant 0 : index
    %158 = vector.load %arg10[%c0_194, %c0_195] : memref<80x4xf32, #tpu.memory_space<vmem>>, vector<48x4xf32>
    %cst_196 = arith.constant dense<0.000000e+00> : vector<1600x4xf32>
    %159 = tpu.matmul %149, %158, %cst_196 {dimension_numbers = #tpu.dot_dimension_numbers<[1], [0], [0], [1], [0, 0, 1, 1], [], []>} : vector<1600x48xf32>, vector<48x4xf32>, vector<1600x4xf32> -> vector<1600x4xf32>
    %160 = vector.broadcast %150 : vector<1600x1xf32> to vector<1600x4xf32>
    %161 = arith.addf %159, %160 : vector<1600x4xf32>
    %c0_197 = arith.constant 0 : index
    %c0_198 = arith.constant 0 : index
    %c0_199 = arith.constant 0 : index
    %162 = vector.load %arg8[%c0_197, %c0_198, %c0_199] : memref<1x1600x4xf32, #tpu.memory_space<vmem>>, vector<1x1600x4xf32>
    %163 = vector.shape_cast %162 : vector<1x1600x4xf32> to vector<1600x4xf32>
    %164 = vector.shape_cast %161 : vector<1600x4xf32> to vector<1x1600x4xf32>
    tpu.vector_store %arg8[%c0_197, %c0_198, %c0_199], %164 {strides = array<i32>} : memref<1x1600x4xf32, #tpu.memory_space<vmem>>, vector<1x1600x4xf32>,
    return
  }
  func.func @transform_0(%arg0: i32) -> (i32, i32, i32) {
    %c0_i32 = arith.constant 0 : i32
    %c0_i32_0 = arith.constant 0 : i32
    %c0_i32_1 = arith.constant 0 : i32
    return %arg0, %c0_i32, %c0_i32_0 : i32, i32, i32
  }
  func.func @transform_1(%arg0: i32) -> (i32, i32) {
    %c0_i32 = arith.constant 0 : i32
    %c0_i32_0 = arith.constant 0 : i32
    %c0_i32_1 = arith.constant 0 : i32
    return %c0_i32, %c0_i32_0 : i32, i32
  }
  func.func @transform_2(%arg0: i32) -> (i32, i32) {
    %c0_i32 = arith.constant 0 : i32
    %c0_i32_0 = arith.constant 0 : i32
    %c0_i32_1 = arith.constant 0 : i32
    return %c0_i32, %c0_i32_0 : i32, i32
  }
  func.func @transform_3(%arg0: i32) -> (i32, i32, i32) {
    %c0_i32 = arith.constant 0 : i32
    %c0_i32_0 = arith.constant 0 : i32
    %c0_i32_1 = arith.constant 0 : i32
    %c0_i32_2 = arith.constant 0 : i32
    return %c0_i32, %c0_i32_0, %c0_i32_1 : i32, i32, i32
  }
  func.func @transform_4(%arg0: i32) -> (i32, i32, i32) {
    %c0_i32 = arith.constant 0 : i32
    %c0_i32_0 = arith.constant 0 : i32
    %c0_i32_1 = arith.constant 0 : i32
    %c0_i32_2 = arith.constant 0 : i32
    return %c0_i32, %c0_i32_0, %c0_i32_1 : i32, i32, i32
  }
  func.func @transform_5(%arg0: i32) -> (i32, i32) {
    %c0_i32 = arith.constant 0 : i32
    %c0_i32_0 = arith.constant 0 : i32
    %c0_i32_1 = arith.constant 0 : i32
    return %c0_i32, %c0_i32_0 : i32, i32
  }
  func.func @transform_6(%arg0: i32) -> (i32, i32) {
    %c0_i32 = arith.constant 0 : i32
    %c0_i32_0 = arith.constant 0 : i32
    %c0_i32_1 = arith.constant 0 : i32
    return %c0_i32, %c0_i32_0 : i32, i32
  }
  func.func @transform_7(%arg0: i32) -> (i32, i32, i32) {
    %c0_i32 = arith.constant 0 : i32
    %c0_i32_0 = arith.constant 0 : i32
    %c0_i32_1 = arith.constant 0 : i32
    return %arg0, %c0_i32, %c0_i32_0 : i32, i32, i32
  }
}

module attributes {stable_mosaic.version = 11 : i64} {
  func.func @_lvc_stack_kernel(%arg0: i32, %arg1: memref<1x8x135xf32, #tpu.memory_space<vmem>>, %arg2: memref<8x64xf32, #tpu.memory_space<vmem>>, %arg3: memref<8x1xf32, #tpu.memory_space<vmem>>, %arg4: memref<4x8x24xf32, #tpu.memory_space<vmem>>, %arg5: memref<4x8x1xf32, #tpu.memory_space<vmem>>, %arg6: memref<1x4x4x16x24xf32, #tpu.memory_space<vmem>>, %arg7: memref<1x4x16x128xf32, #tpu.memory_space<vmem>>, %arg8: memref<1x8x128xf32, #tpu.memory_space<vmem>>, %arg9: memref<8x182xf32, #tpu.memory_space<vmem>>, %arg10: memref<64x128xf32, #tpu.memory_space<vmem>>, %arg11: memref<16x128xf32, #tpu.memory_space<vmem>>) attributes {dimension_semantics = [#tpu.dimension_semantics<parallel>], iteration_bounds = array<i64: 2>, scalar_prefetch = 0 : i64, scratch_operands = 3 : i64, tpu.core_type = #tpu.core_type<tc>, window_params = [{transform_indices = @transform_0, window_bounds = array<i64: 1, 8, 135>}, {pipeline_mode = #tpu.pipeline_mode<synchronous>, transform_indices = @transform_1, window_bounds = array<i64: 8, 64>}, {pipeline_mode = #tpu.pipeline_mode<synchronous>, transform_indices = @transform_2, window_bounds = array<i64: 8, 1>}, {pipeline_mode = #tpu.pipeline_mode<synchronous>, transform_indices = @transform_3, window_bounds = array<i64: 4, 8, 24>}, {pipeline_mode = #tpu.pipeline_mode<synchronous>, transform_indices = @transform_4, window_bounds = array<i64: 4, 8, 1>}, {transform_indices = @transform_5, window_bounds = array<i64: 1, 4, 4, 16, 24>}, {transform_indices = @transform_6, window_bounds = array<i64: 1, 4, 16, 128>}, {transform_indices = @transform_7, window_bounds = array<i64: 1, 8, 128>}]} {
    %cst = arith.constant 0.000000e+00 : f32
    %0 = vector.broadcast %cst : f32 to vector<8x182xf32>
    %c0 = arith.constant 0 : index
    %c0_0 = arith.constant 0 : index
    %1 = vector.load %arg9[%c0, %c0_0] : memref<8x182xf32, #tpu.memory_space<vmem>>, vector<8x182xf32>
    tpu.vector_store %arg9[%c0, %c0_0], %0 {strides = array<i32>} : memref<8x182xf32, #tpu.memory_space<vmem>>, vector<8x182xf32>,
    %c0_1 = arith.constant 0 : index
    %c0_2 = arith.constant 0 : index
    %c0_3 = arith.constant 0 : index
    %2 = vector.load %arg1[%c0_1, %c0_2, %c0_3] : memref<1x8x135xf32, #tpu.memory_space<vmem>>, vector<1x8x128xf32>
    %3 = vector.shape_cast %2 : vector<1x8x128xf32> to vector<8x128xf32>
    %cst_4 = arith.constant 0.000000e+00 : f32
    %4 = vector.broadcast %cst_4 : f32 to vector<8x128xf32>
    %5 = arith.cmpf oge, %3, %4 : vector<8x128xf32>
    %cst_5 = arith.constant 2.000000e-01 : f32
    %6 = vector.broadcast %cst_5 : f32 to vector<8x128xf32>
    %7 = arith.mulf %6, %3 : vector<8x128xf32>
    %8 = arith.select %5, %3, %7 : vector<8x128xi1>, vector<8x128xf32>
    %c0_6 = arith.constant 0 : index
    %c0_7 = arith.constant 0 : index
    %9 = vector.load %arg10[%c0_6, %c0_7] : memref<64x128xf32, #tpu.memory_space<vmem>>, vector<8x128xf32>
    tpu.vector_store %arg10[%c0_6, %c0_7], %8 {strides = array<i32>} : memref<64x128xf32, #tpu.memory_space<vmem>>, vector<8x128xf32>,
    %c0_8 = arith.constant 0 : index
    %c0_9 = arith.constant 0 : index
    %c1 = arith.constant 1 : index
    %10 = vector.load %arg1[%c0_8, %c0_9, %c1] : memref<1x8x135xf32, #tpu.memory_space<vmem>>, vector<1x8x128xf32>
    %11 = vector.shape_cast %10 : vector<1x8x128xf32> to vector<8x128xf32>
    %cst_10 = arith.constant 0.000000e+00 : f32
    %12 = vector.broadcast %cst_10 : f32 to vector<8x128xf32>
    %13 = arith.cmpf oge, %11, %12 : vector<8x128xf32>
    %cst_11 = arith.constant 2.000000e-01 : f32
    %14 = vector.broadcast %cst_11 : f32 to vector<8x128xf32>
    %15 = arith.mulf %14, %11 : vector<8x128xf32>
    %16 = arith.select %13, %11, %15 : vector<8x128xi1>, vector<8x128xf32>
    %c8 = arith.constant 8 : index
    %c0_12 = arith.constant 0 : index
    %17 = vector.load %arg10[%c8, %c0_12] : memref<64x128xf32, #tpu.memory_space<vmem>>, vector<8x128xf32>
    tpu.vector_store %arg10[%c8, %c0_12], %16 {strides = array<i32>} : memref<64x128xf32, #tpu.memory_space<vmem>>, vector<8x128xf32>,
    %c0_13 = arith.constant 0 : index
    %c0_14 = arith.constant 0 : index
    %c2 = arith.constant 2 : index
    %18 = vector.load %arg1[%c0_13, %c0_14, %c2] : memref<1x8x135xf32, #tpu.memory_space<vmem>>, vector<1x8x128xf32>
    %19 = vector.shape_cast %18 : vector<1x8x128xf32> to vector<8x128xf32>
    %cst_15 = arith.constant 0.000000e+00 : f32
    %20 = vector.broadcast %cst_15 : f32 to vector<8x128xf32>
    %21 = arith.cmpf oge, %19, %20 : vector<8x128xf32>
    %cst_16 = arith.constant 2.000000e-01 : f32
    %22 = vector.broadcast %cst_16 : f32 to vector<8x128xf32>
    %23 = arith.mulf %22, %19 : vector<8x128xf32>
    %24 = arith.select %21, %19, %23 : vector<8x128xi1>, vector<8x128xf32>
    %c16 = arith.constant 16 : index
    %c0_17 = arith.constant 0 : index
    %25 = vector.load %arg10[%c16, %c0_17] : memref<64x128xf32, #tpu.memory_space<vmem>>, vector<8x128xf32>
    tpu.vector_store %arg10[%c16, %c0_17], %24 {strides = array<i32>} : memref<64x128xf32, #tpu.memory_space<vmem>>, vector<8x128xf32>,
    %c0_18 = arith.constant 0 : index
    %c0_19 = arith.constant 0 : index
    %c3 = arith.constant 3 : index
    %26 = vector.load %arg1[%c0_18, %c0_19, %c3] : memref<1x8x135xf32, #tpu.memory_space<vmem>>, vector<1x8x128xf32>
    %27 = vector.shape_cast %26 : vector<1x8x128xf32> to vector<8x128xf32>
    %cst_20 = arith.constant 0.000000e+00 : f32
    %28 = vector.broadcast %cst_20 : f32 to vector<8x128xf32>
    %29 = arith.cmpf oge, %27, %28 : vector<8x128xf32>
    %cst_21 = arith.constant 2.000000e-01 : f32
    %30 = vector.broadcast %cst_21 : f32 to vector<8x128xf32>
    %31 = arith.mulf %30, %27 : vector<8x128xf32>
    %32 = arith.select %29, %27, %31 : vector<8x128xi1>, vector<8x128xf32>
    %c24 = arith.constant 24 : index
    %c0_22 = arith.constant 0 : index
    %33 = vector.load %arg10[%c24, %c0_22] : memref<64x128xf32, #tpu.memory_space<vmem>>, vector<8x128xf32>
    tpu.vector_store %arg10[%c24, %c0_22], %32 {strides = array<i32>} : memref<64x128xf32, #tpu.memory_space<vmem>>, vector<8x128xf32>,
    %c0_23 = arith.constant 0 : index
    %c0_24 = arith.constant 0 : index
    %c4 = arith.constant 4 : index
    %34 = vector.load %arg1[%c0_23, %c0_24, %c4] : memref<1x8x135xf32, #tpu.memory_space<vmem>>, vector<1x8x128xf32>
    %35 = vector.shape_cast %34 : vector<1x8x128xf32> to vector<8x128xf32>
    %cst_25 = arith.constant 0.000000e+00 : f32
    %36 = vector.broadcast %cst_25 : f32 to vector<8x128xf32>
    %37 = arith.cmpf oge, %35, %36 : vector<8x128xf32>
    %cst_26 = arith.constant 2.000000e-01 : f32
    %38 = vector.broadcast %cst_26 : f32 to vector<8x128xf32>
    %39 = arith.mulf %38, %35 : vector<8x128xf32>
    %40 = arith.select %37, %35, %39 : vector<8x128xi1>, vector<8x128xf32>
    %c32 = arith.constant 32 : index
    %c0_27 = arith.constant 0 : index
    %41 = vector.load %arg10[%c32, %c0_27] : memref<64x128xf32, #tpu.memory_space<vmem>>, vector<8x128xf32>
    tpu.vector_store %arg10[%c32, %c0_27], %40 {strides = array<i32>} : memref<64x128xf32, #tpu.memory_space<vmem>>, vector<8x128xf32>,
    %c0_28 = arith.constant 0 : index
    %c0_29 = arith.constant 0 : index
    %c5 = arith.constant 5 : index
    %42 = vector.load %arg1[%c0_28, %c0_29, %c5] : memref<1x8x135xf32, #tpu.memory_space<vmem>>, vector<1x8x128xf32>
    %43 = vector.shape_cast %42 : vector<1x8x128xf32> to vector<8x128xf32>
    %cst_30 = arith.constant 0.000000e+00 : f32
    %44 = vector.broadcast %cst_30 : f32 to vector<8x128xf32>
    %45 = arith.cmpf oge, %43, %44 : vector<8x128xf32>
    %cst_31 = arith.constant 2.000000e-01 : f32
    %46 = vector.broadcast %cst_31 : f32 to vector<8x128xf32>
    %47 = arith.mulf %46, %43 : vector<8x128xf32>
    %48 = arith.select %45, %43, %47 : vector<8x128xi1>, vector<8x128xf32>
    %c40 = arith.constant 40 : index
    %c0_32 = arith.constant 0 : index
    %49 = vector.load %arg10[%c40, %c0_32] : memref<64x128xf32, #tpu.memory_space<vmem>>, vector<8x128xf32>
    tpu.vector_store %arg10[%c40, %c0_32], %48 {strides = array<i32>} : memref<64x128xf32, #tpu.memory_space<vmem>>, vector<8x128xf32>,
    %c0_33 = arith.constant 0 : index
    %c0_34 = arith.constant 0 : index
    %c6 = arith.constant 6 : index
    %50 = vector.load %arg1[%c0_33, %c0_34, %c6] : memref<1x8x135xf32, #tpu.memory_space<vmem>>, vector<1x8x128xf32>
    %51 = vector.shape_cast %50 : vector<1x8x128xf32> to vector<8x128xf32>
    %cst_35 = arith.constant 0.000000e+00 : f32
    %52 = vector.broadcast %cst_35 : f32 to vector<8x128xf32>
    %53 = arith.cmpf oge, %51, %52 : vector<8x128xf32>
    %cst_36 = arith.constant 2.000000e-01 : f32
    %54 = vector.broadcast %cst_36 : f32 to vector<8x128xf32>
    %55 = arith.mulf %54, %51 : vector<8x128xf32>
    %56 = arith.select %53, %51, %55 : vector<8x128xi1>, vector<8x128xf32>
    %c48 = arith.constant 48 : index
    %c0_37 = arith.constant 0 : index
    %57 = vector.load %arg10[%c48, %c0_37] : memref<64x128xf32, #tpu.memory_space<vmem>>, vector<8x128xf32>
    tpu.vector_store %arg10[%c48, %c0_37], %56 {strides = array<i32>} : memref<64x128xf32, #tpu.memory_space<vmem>>, vector<8x128xf32>,
    %c0_38 = arith.constant 0 : index
    %c0_39 = arith.constant 0 : index
    %c7 = arith.constant 7 : index
    %58 = vector.load %arg1[%c0_38, %c0_39, %c7] : memref<1x8x135xf32, #tpu.memory_space<vmem>>, vector<1x8x128xf32>
    %59 = vector.shape_cast %58 : vector<1x8x128xf32> to vector<8x128xf32>
    %cst_40 = arith.constant 0.000000e+00 : f32
    %60 = vector.broadcast %cst_40 : f32 to vector<8x128xf32>
    %61 = arith.cmpf oge, %59, %60 : vector<8x128xf32>
    %cst_41 = arith.constant 2.000000e-01 : f32
    %62 = vector.broadcast %cst_41 : f32 to vector<8x128xf32>
    %63 = arith.mulf %62, %59 : vector<8x128xf32>
    %64 = arith.select %61, %59, %63 : vector<8x128xi1>, vector<8x128xf32>
    %c56 = arith.constant 56 : index
    %c0_42 = arith.constant 0 : index
    %65 = vector.load %arg10[%c56, %c0_42] : memref<64x128xf32, #tpu.memory_space<vmem>>, vector<8x128xf32>
    tpu.vector_store %arg10[%c56, %c0_42], %64 {strides = array<i32>} : memref<64x128xf32, #tpu.memory_space<vmem>>, vector<8x128xf32>,
    %c0_43 = arith.constant 0 : index
    %c0_44 = arith.constant 0 : index
    %66 = vector.load %arg2[%c0_43, %c0_44] : memref<8x64xf32, #tpu.memory_space<vmem>>, vector<8x64xf32>
    %c0_45 = arith.constant 0 : index
    %c0_46 = arith.constant 0 : index
    %67 = vector.load %arg10[%c0_45, %c0_46] : memref<64x128xf32, #tpu.memory_space<vmem>>, vector<64x128xf32>
    %cst_47 = arith.constant dense<0.000000e+00> : vector<8x128xf32>
    %68 = tpu.matmul %66, %67, %cst_47 {dimension_numbers = #tpu.dot_dimension_numbers<[1], [0], [0], [1], [0, 0, 1, 1], [], []>} : vector<8x64xf32>, vector<64x128xf32>, vector<8x128xf32> -> vector<8x128xf32>
    %c0_48 = arith.constant 0 : index
    %c0_49 = arith.constant 0 : index
    %69 = vector.load %arg3[%c0_48, %c0_49] : memref<8x1xf32, #tpu.memory_space<vmem>>, vector<8x1xf32>
    %70 = vector.broadcast %69 : vector<8x1xf32> to vector<8x128xf32>
    %71 = arith.addf %68, %70 : vector<8x128xf32>
    %c0_50 = arith.constant 0 : index
    %c0_51 = arith.constant 0 : index
    %c0_52 = arith.constant 0 : index
    %72 = vector.load %arg8[%c0_50, %c0_51, %c0_52] : memref<1x8x128xf32, #tpu.memory_space<vmem>>, vector<1x8x128xf32>
    %73 = vector.shape_cast %72 : vector<1x8x128xf32> to vector<8x128xf32>
    %74 = vector.shape_cast %71 : vector<8x128xf32> to vector<1x8x128xf32>
    tpu.vector_store %arg8[%c0_50, %c0_51, %c0_52], %74 {strides = array<i32>} : memref<1x8x128xf32, #tpu.memory_space<vmem>>, vector<1x8x128xf32>,
    %c0_53 = arith.constant 0 : index
    %c0_54 = arith.constant 0 : index
    %c0_55 = arith.constant 0 : index
    %75 = vector.load %arg8[%c0_53, %c0_54, %c0_55] : memref<1x8x128xf32, #tpu.memory_space<vmem>>, vector<1x8x128xf32>
    %76 = vector.shape_cast %75 : vector<1x8x128xf32> to vector<8x128xf32>
    %cst_56 = arith.constant 0.000000e+00 : f32
    %77 = vector.broadcast %cst_56 : f32 to vector<8x128xf32>
    %78 = arith.cmpf oge, %76, %77 : vector<8x128xf32>
    %cst_57 = arith.constant 2.000000e-01 : f32
    %79 = vector.broadcast %cst_57 : f32 to vector<8x128xf32>
    %80 = arith.mulf %79, %76 : vector<8x128xf32>
    %81 = arith.select %78, %76, %80 : vector<8x128xi1>, vector<8x128xf32>
    %c0_58 = arith.constant 0 : index
    %c27 = arith.constant 27 : index
    %82 = vector.load %arg9[%c0_58, %c27] : memref<8x182xf32, #tpu.memory_space<vmem>>, vector<8x128xf32>
    tpu.vector_store %arg9[%c0_58, %c27], %81 {strides = array<i32>} : memref<8x182xf32, #tpu.memory_space<vmem>>, vector<8x128xf32>,
    %c0_59 = arith.constant 0 : index
    %c26 = arith.constant 26 : index
    %83 = vector.load %arg9[%c0_59, %c26] : memref<8x182xf32, #tpu.memory_space<vmem>>, vector<8x128xf32>
    %c0_60 = arith.constant 0 : index
    %c0_61 = arith.constant 0 : index
    %84 = vector.load %arg10[%c0_60, %c0_61] : memref<64x128xf32, #tpu.memory_space<vmem>>, vector<8x128xf32>
    tpu.vector_store %arg10[%c0_60, %c0_61], %83 {strides = array<i32>} : memref<64x128xf32, #tpu.memory_space<vmem>>, vector<8x128xf32>,
    %c0_62 = arith.constant 0 : index
    %c27_63 = arith.constant 27 : index
    %85 = vector.load %arg9[%c0_62, %c27_63] : memref<8x182xf32, #tpu.memory_space<vmem>>, vector<8x128xf32>
    %c8_64 = arith.constant 8 : index
    %c0_65 = arith.constant 0 : index
    %86 = vector.load %arg10[%c8_64, %c0_65] : memref<64x128xf32, #tpu.memory_space<vmem>>, vector<8x128xf32>
    tpu.vector_store %arg10[%c8_64, %c0_65], %85 {strides = array<i32>} : memref<64x128xf32, #tpu.memory_space<vmem>>, vector<8x128xf32>,
    %c0_66 = arith.constant 0 : index
    %c28 = arith.constant 28 : index
    %87 = vector.load %arg9[%c0_66, %c28] : memref<8x182xf32, #tpu.memory_space<vmem>>, vector<8x128xf32>
    %c16_67 = arith.constant 16 : index
    %c0_68 = arith.constant 0 : index
    %88 = vector.load %arg10[%c16_67, %c0_68] : memref<64x128xf32, #tpu.memory_space<vmem>>, vector<8x128xf32>
    tpu.vector_store %arg10[%c16_67, %c0_68], %87 {strides = array<i32>} : memref<64x128xf32, #tpu.memory_space<vmem>>, vector<8x128xf32>,
    %c0_69 = arith.constant 0 : index
    %c0_70 = arith.constant 0 : index
    %c0_71 = arith.constant 0 : index
    %89 = vector.load %arg4[%c0_69, %c0_70, %c0_71] : memref<4x8x24xf32, #tpu.memory_space<vmem>>, vector<1x8x24xf32>
    %90 = vector.shape_cast %89 : vector<1x8x24xf32> to vector<8x24xf32>
    %c0_72 = arith.constant 0 : index
    %c0_73 = arith.constant 0 : index
    %91 = vector.load %arg10[%c0_72, %c0_73] : memref<64x128xf32, #tpu.memory_space<vmem>>, vector<24x128xf32>
    %cst_74 = arith.constant dense<0.000000e+00> : vector<8x128xf32>
    %92 = tpu.matmul %90, %91, %cst_74 {dimension_numbers = #tpu.dot_dimension_numbers<[1], [0], [0], [1], [0, 0, 1, 1], [], []>} : vector<8x24xf32>, vector<24x128xf32>, vector<8x128xf32> -> vector<8x128xf32>
    %c0_75 = arith.constant 0 : index
    %c0_76 = arith.constant 0 : index
    %c0_77 = arith.constant 0 : index
    %93 = vector.load %arg5[%c0_75, %c0_76, %c0_77] : memref<4x8x1xf32, #tpu.memory_space<vmem>>, vector<1x8x1xf32>
    %94 = vector.shape_cast %93 : vector<1x8x1xf32> to vector<8x1xf32>
    %95 = vector.broadcast %94 : vector<8x1xf32> to vector<8x128xf32>
    %96 = arith.addf %92, %95 : vector<8x128xf32>
    %cst_78 = arith.constant 0.000000e+00 : f32
    %97 = vector.broadcast %cst_78 : f32 to vector<8x128xf32>
    %98 = arith.cmpf oge, %96, %97 : vector<8x128xf32>
    %cst_79 = arith.constant 2.000000e-01 : f32
    %99 = vector.broadcast %cst_79 : f32 to vector<8x128xf32>
    %100 = arith.mulf %99, %96 : vector<8x128xf32>
    %101 = arith.select %98, %96, %100 : vector<8x128xi1>, vector<8x128xf32>
    %c0_80 = arith.constant 0 : index
    %c27_81 = arith.constant 27 : index
    %102 = vector.load %arg9[%c0_80, %c27_81] : memref<8x182xf32, #tpu.memory_space<vmem>>, vector<8x128xf32>
    tpu.vector_store %arg9[%c0_80, %c27_81], %101 {strides = array<i32>} : memref<8x182xf32, #tpu.memory_space<vmem>>, vector<8x128xf32>,
    %c0_82 = arith.constant 0 : index
    %c26_83 = arith.constant 26 : index
    %103 = vector.load %arg9[%c0_82, %c26_83] : memref<8x182xf32, #tpu.memory_space<vmem>>, vector<8x128xf32>
    %c0_84 = arith.constant 0 : index
    %c0_85 = arith.constant 0 : index
    %104 = vector.load %arg10[%c0_84, %c0_85] : memref<64x128xf32, #tpu.memory_space<vmem>>, vector<8x128xf32>
    tpu.vector_store %arg10[%c0_84, %c0_85], %103 {strides = array<i32>} : memref<64x128xf32, #tpu.memory_space<vmem>>, vector<8x128xf32>,
    %c0_86 = arith.constant 0 : index
    %c27_87 = arith.constant 27 : index
    %105 = vector.load %arg9[%c0_86, %c27_87] : memref<8x182xf32, #tpu.memory_space<vmem>>, vector<8x128xf32>
    %c8_88 = arith.constant 8 : index
    %c0_89 = arith.constant 0 : index
    %106 = vector.load %arg10[%c8_88, %c0_89] : memref<64x128xf32, #tpu.memory_space<vmem>>, vector<8x128xf32>
    tpu.vector_store %arg10[%c8_88, %c0_89], %105 {strides = array<i32>} : memref<64x128xf32, #tpu.memory_space<vmem>>, vector<8x128xf32>,
    %c0_90 = arith.constant 0 : index
    %c28_91 = arith.constant 28 : index
    %107 = vector.load %arg9[%c0_90, %c28_91] : memref<8x182xf32, #tpu.memory_space<vmem>>, vector<8x128xf32>
    %c16_92 = arith.constant 16 : index
    %c0_93 = arith.constant 0 : index
    %108 = vector.load %arg10[%c16_92, %c0_93] : memref<64x128xf32, #tpu.memory_space<vmem>>, vector<8x128xf32>
    tpu.vector_store %arg10[%c16_92, %c0_93], %107 {strides = array<i32>} : memref<64x128xf32, #tpu.memory_space<vmem>>, vector<8x128xf32>,
    %c0_94 = arith.constant 0 : index
    %c0_95 = arith.constant 0 : index
    %c0_96 = arith.constant 0 : index
    %c0_97 = arith.constant 0 : index
    %c0_98 = arith.constant 0 : index
    %109 = vector.load %arg6[%c0_94, %c0_95, %c0_96, %c0_97, %c0_98] : memref<1x4x4x16x24xf32, #tpu.memory_space<vmem>>, vector<1x1x1x16x24xf32>
    %110 = vector.shape_cast %109 : vector<1x1x1x16x24xf32> to vector<16x24xf32>
    %c0_99 = arith.constant 0 : index
    %c0_100 = arith.constant 0 : index
    %111 = vector.load %arg10[%c0_99, %c0_100] : memref<64x128xf32, #tpu.memory_space<vmem>>, vector<24x32xf32>
    %cst_101 = arith.constant dense<0.000000e+00> : vector<16x32xf32>
    %112 = tpu.matmul %110, %111, %cst_101 {dimension_numbers = #tpu.dot_dimension_numbers<[1], [0], [0], [1], [0, 0, 1, 1], [], []>} : vector<16x24xf32>, vector<24x32xf32>, vector<16x32xf32> -> vector<16x32xf32>
    %c0_102 = arith.constant 0 : index
    %c0_103 = arith.constant 0 : index
    %113 = vector.load %arg11[%c0_102, %c0_103] : memref<16x128xf32, #tpu.memory_space<vmem>>, vector<16x32xf32>
    tpu.vector_store %arg11[%c0_102, %c0_103], %112 {strides = array<i32>} : memref<16x128xf32, #tpu.memory_space<vmem>>, vector<16x32xf32>,
    %c0_104 = arith.constant 0 : index
    %c0_105 = arith.constant 0 : index
    %c1_106 = arith.constant 1 : index
    %c0_107 = arith.constant 0 : index
    %c0_108 = arith.constant 0 : index
    %114 = vector.load %arg6[%c0_104, %c0_105, %c1_106, %c0_107, %c0_108] : memref<1x4x4x16x24xf32, #tpu.memory_space<vmem>>, vector<1x1x1x16x24xf32>
    %115 = vector.shape_cast %114 : vector<1x1x1x16x24xf32> to vector<16x24xf32>
    %c0_109 = arith.constant 0 : index
    %c32_110 = arith.constant 32 : index
    %116 = vector.load %arg10[%c0_109, %c32_110] : memref<64x128xf32, #tpu.memory_space<vmem>>, vector<24x32xf32>
    %cst_111 = arith.constant dense<0.000000e+00> : vector<16x32xf32>
    %117 = tpu.matmul %115, %116, %cst_111 {dimension_numbers = #tpu.dot_dimension_numbers<[1], [0], [0], [1], [0, 0, 1, 1], [], []>} : vector<16x24xf32>, vector<24x32xf32>, vector<16x32xf32> -> vector<16x32xf32>
    %c0_112 = arith.constant 0 : index
    %c32_113 = arith.constant 32 : index
    %118 = vector.load %arg11[%c0_112, %c32_113] : memref<16x128xf32, #tpu.memory_space<vmem>>, vector<16x32xf32>
    tpu.vector_store %arg11[%c0_112, %c32_113], %117 {strides = array<i32>} : memref<16x128xf32, #tpu.memory_space<vmem>>, vector<16x32xf32>,
    %c0_114 = arith.constant 0 : index
    %c0_115 = arith.constant 0 : index
    %c2_116 = arith.constant 2 : index
    %c0_117 = arith.constant 0 : index
    %c0_118 = arith.constant 0 : index
    %119 = vector.load %arg6[%c0_114, %c0_115, %c2_116, %c0_117, %c0_118] : memref<1x4x4x16x24xf32, #tpu.memory_space<vmem>>, vector<1x1x1x16x24xf32>
    %120 = vector.shape_cast %119 : vector<1x1x1x16x24xf32> to vector<16x24xf32>
    %c0_119 = arith.constant 0 : index
    %c64 = arith.constant 64 : index
    %121 = vector.load %arg10[%c0_119, %c64] : memref<64x128xf32, #tpu.memory_space<vmem>>, vector<24x32xf32>
    %cst_120 = arith.constant dense<0.000000e+00> : vector<16x32xf32>
    %122 = tpu.matmul %120, %121, %cst_120 {dimension_numbers = #tpu.dot_dimension_numbers<[1], [0], [0], [1], [0, 0, 1, 1], [], []>} : vector<16x24xf32>, vector<24x32xf32>, vector<16x32xf32> -> vector<16x32xf32>
    %c0_121 = arith.constant 0 : index
    %c64_122 = arith.constant 64 : index
    %123 = vector.load %arg11[%c0_121, %c64_122] : memref<16x128xf32, #tpu.memory_space<vmem>>, vector<16x32xf32>
    tpu.vector_store %arg11[%c0_121, %c64_122], %122 {strides = array<i32>} : memref<16x128xf32, #tpu.memory_space<vmem>>, vector<16x32xf32>,
    %c0_123 = arith.constant 0 : index
    %c0_124 = arith.constant 0 : index
    %c3_125 = arith.constant 3 : index
    %c0_126 = arith.constant 0 : index
    %c0_127 = arith.constant 0 : index
    %124 = vector.load %arg6[%c0_123, %c0_124, %c3_125, %c0_126, %c0_127] : memref<1x4x4x16x24xf32, #tpu.memory_space<vmem>>, vector<1x1x1x16x24xf32>
    %125 = vector.shape_cast %124 : vector<1x1x1x16x24xf32> to vector<16x24xf32>
    %c0_128 = arith.constant 0 : index
    %c96 = arith.constant 96 : index
    %126 = vector.load %arg10[%c0_128, %c96] : memref<64x128xf32, #tpu.memory_space<vmem>>, vector<24x32xf32>
    %cst_129 = arith.constant dense<0.000000e+00> : vector<16x32xf32>
    %127 = tpu.matmul %125, %126, %cst_129 {dimension_numbers = #tpu.dot_dimension_numbers<[1], [0], [0], [1], [0, 0, 1, 1], [], []>} : vector<16x24xf32>, vector<24x32xf32>, vector<16x32xf32> -> vector<16x32xf32>
    %c0_130 = arith.constant 0 : index
    %c96_131 = arith.constant 96 : index
    %128 = vector.load %arg11[%c0_130, %c96_131] : memref<16x128xf32, #tpu.memory_space<vmem>>, vector<16x32xf32>
    tpu.vector_store %arg11[%c0_130, %c96_131], %127 {strides = array<i32>} : memref<16x128xf32, #tpu.memory_space<vmem>>, vector<16x32xf32>,
    %c0_132 = arith.constant 0 : index
    %c0_133 = arith.constant 0 : index
    %129 = vector.load %arg11[%c0_132, %c0_133] : memref<16x128xf32, #tpu.memory_space<vmem>>, vector<16x128xf32>
    %c0_134 = arith.constant 0 : index
    %c0_135 = arith.constant 0 : index
    %c0_136 = arith.constant 0 : index
    %c0_137 = arith.constant 0 : index
    %130 = vector.load %arg7[%c0_134, %c0_135, %c0_136, %c0_137] : memref<1x4x16x128xf32, #tpu.memory_space<vmem>>, vector<1x1x16x128xf32>
    %131 = vector.shape_cast %130 : vector<1x1x16x128xf32> to vector<16x128xf32>
    %132 = arith.addf %129, %131 : vector<16x128xf32>
    %133 = vector.extract_strided_slice %132 {offsets = [0, 0], sizes = [8, 128], strides = [1, 1]} : vector<16x128xf32> to vector<8x128xf32>
    %134 = arith.negf %133 : vector<8x128xf32>
    %135 = math.exp %134 : vector<8x128xf32>
    %cst_138 = arith.constant 1.000000e+00 : f32
    %136 = vector.broadcast %cst_138 : f32 to vector<8x128xf32>
    %137 = arith.addf %136, %135 : vector<8x128xf32>
    %138 = arith.divf %136, %137 : vector<8x128xf32>
    %139 = vector.extract_strided_slice %132 {offsets = [8, 0], sizes = [8, 128], strides = [1, 1]} : vector<16x128xf32> to vector<8x128xf32>
    %140 = math.tanh %139 : vector<8x128xf32>
    %141 = arith.mulf %138, %140 : vector<8x128xf32>
    %c0_139 = arith.constant 0 : index
    %c0_140 = arith.constant 0 : index
    %c0_141 = arith.constant 0 : index
    %142 = vector.load %arg8[%c0_139, %c0_140, %c0_141] : memref<1x8x128xf32, #tpu.memory_space<vmem>>, vector<1x8x128xf32>
    %143 = vector.shape_cast %142 : vector<1x8x128xf32> to vector<8x128xf32>
    %144 = arith.addf %143, %141 : vector<8x128xf32>
    %c0_142 = arith.constant 0 : index
    %c0_143 = arith.constant 0 : index
    %c0_144 = arith.constant 0 : index
    %145 = vector.load %arg8[%c0_142, %c0_143, %c0_144] : memref<1x8x128xf32, #tpu.memory_space<vmem>>, vector<1x8x128xf32>
    %146 = vector.shape_cast %145 : vector<1x8x128xf32> to vector<8x128xf32>
    %147 = vector.shape_cast %144 : vector<8x128xf32> to vector<1x8x128xf32>
    tpu.vector_store %arg8[%c0_142, %c0_143, %c0_144], %147 {strides = array<i32>} : memref<1x8x128xf32, #tpu.memory_space<vmem>>, vector<1x8x128xf32>,
    %c0_145 = arith.constant 0 : index
    %c0_146 = arith.constant 0 : index
    %c0_147 = arith.constant 0 : index
    %148 = vector.load %arg8[%c0_145, %c0_146, %c0_147] : memref<1x8x128xf32, #tpu.memory_space<vmem>>, vector<1x8x128xf32>
    %149 = vector.shape_cast %148 : vector<1x8x128xf32> to vector<8x128xf32>
    %cst_148 = arith.constant 0.000000e+00 : f32
    %150 = vector.broadcast %cst_148 : f32 to vector<8x128xf32>
    %151 = arith.cmpf oge, %149, %150 : vector<8x128xf32>
    %cst_149 = arith.constant 2.000000e-01 : f32
    %152 = vector.broadcast %cst_149 : f32 to vector<8x128xf32>
    %153 = arith.mulf %152, %149 : vector<8x128xf32>
    %154 = arith.select %151, %149, %153 : vector<8x128xi1>, vector<8x128xf32>
    %c0_150 = arith.constant 0 : index
    %c27_151 = arith.constant 27 : index
    %155 = vector.load %arg9[%c0_150, %c27_151] : memref<8x182xf32, #tpu.memory_space<vmem>>, vector<8x128xf32>
    tpu.vector_store %arg9[%c0_150, %c27_151], %154 {strides = array<i32>} : memref<8x182xf32, #tpu.memory_space<vmem>>, vector<8x128xf32>,
    %c0_152 = arith.constant 0 : index
    %c24_153 = arith.constant 24 : index
    %156 = vector.load %arg9[%c0_152, %c24_153] : memref<8x182xf32, #tpu.memory_space<vmem>>, vector<8x128xf32>
    %c0_154 = arith.constant 0 : index
    %c0_155 = arith.constant 0 : index
    %157 = vector.load %arg10[%c0_154, %c0_155] : memref<64x128xf32, #tpu.memory_space<vmem>>, vector<8x128xf32>
    tpu.vector_store %arg10[%c0_154, %c0_155], %156 {strides = array<i32>} : memref<64x128xf32, #tpu.memory_space<vmem>>, vector<8x128xf32>,
    %c0_156 = arith.constant 0 : index
    %c27_157 = arith.constant 27 : index
    %158 = vector.load %arg9[%c0_156, %c27_157] : memref<8x182xf32, #tpu.memory_space<vmem>>, vector<8x128xf32>
    %c8_158 = arith.constant 8 : index
    %c0_159 = arith.constant 0 : index
    %159 = vector.load %arg10[%c8_158, %c0_159] : memref<64x128xf32, #tpu.memory_space<vmem>>, vector<8x128xf32>
    tpu.vector_store %arg10[%c8_158, %c0_159], %158 {strides = array<i32>} : memref<64x128xf32, #tpu.memory_space<vmem>>, vector<8x128xf32>,
    %c0_160 = arith.constant 0 : index
    %c30 = arith.constant 30 : index
    %160 = vector.load %arg9[%c0_160, %c30] : memref<8x182xf32, #tpu.memory_space<vmem>>, vector<8x128xf32>
    %c16_161 = arith.constant 16 : index
    %c0_162 = arith.constant 0 : index
    %161 = vector.load %arg10[%c16_161, %c0_162] : memref<64x128xf32, #tpu.memory_space<vmem>>, vector<8x128xf32>
    tpu.vector_store %arg10[%c16_161, %c0_162], %160 {strides = array<i32>} : memref<64x128xf32, #tpu.memory_space<vmem>>, vector<8x128xf32>,
    %c1_163 = arith.constant 1 : index
    %c0_164 = arith.constant 0 : index
    %c0_165 = arith.constant 0 : index
    %162 = vector.load %arg4[%c1_163, %c0_164, %c0_165] : memref<4x8x24xf32, #tpu.memory_space<vmem>>, vector<1x8x24xf32>
    %163 = vector.shape_cast %162 : vector<1x8x24xf32> to vector<8x24xf32>
    %c0_166 = arith.constant 0 : index
    %c0_167 = arith.constant 0 : index
    %164 = vector.load %arg10[%c0_166, %c0_167] : memref<64x128xf32, #tpu.memory_space<vmem>>, vector<24x128xf32>
    %cst_168 = arith.constant dense<0.000000e+00> : vector<8x128xf32>
    %165 = tpu.matmul %163, %164, %cst_168 {dimension_numbers = #tpu.dot_dimension_numbers<[1], [0], [0], [1], [0, 0, 1, 1], [], []>} : vector<8x24xf32>, vector<24x128xf32>, vector<8x128xf32> -> vector<8x128xf32>
    %c1_169 = arith.constant 1 : index
    %c0_170 = arith.constant 0 : index
    %c0_171 = arith.constant 0 : index
    %166 = vector.load %arg5[%c1_169, %c0_170, %c0_171] : memref<4x8x1xf32, #tpu.memory_space<vmem>>, vector<1x8x1xf32>
    %167 = vector.shape_cast %166 : vector<1x8x1xf32> to vector<8x1xf32>
    %168 = vector.broadcast %167 : vector<8x1xf32> to vector<8x128xf32>
    %169 = arith.addf %165, %168 : vector<8x128xf32>
    %cst_172 = arith.constant 0.000000e+00 : f32
    %170 = vector.broadcast %cst_172 : f32 to vector<8x128xf32>
    %171 = arith.cmpf oge, %169, %170 : vector<8x128xf32>
    %cst_173 = arith.constant 2.000000e-01 : f32
    %172 = vector.broadcast %cst_173 : f32 to vector<8x128xf32>
    %173 = arith.mulf %172, %169 : vector<8x128xf32>
    %174 = arith.select %171, %169, %173 : vector<8x128xi1>, vector<8x128xf32>
    %c0_174 = arith.constant 0 : index
    %c27_175 = arith.constant 27 : index
    %175 = vector.load %arg9[%c0_174, %c27_175] : memref<8x182xf32, #tpu.memory_space<vmem>>, vector<8x128xf32>
    tpu.vector_store %arg9[%c0_174, %c27_175], %174 {strides = array<i32>} : memref<8x182xf32, #tpu.memory_space<vmem>>, vector<8x128xf32>,
    %c0_176 = arith.constant 0 : index
    %c26_177 = arith.constant 26 : index
    %176 = vector.load %arg9[%c0_176, %c26_177] : memref<8x182xf32, #tpu.memory_space<vmem>>, vector<8x128xf32>
    %c0_178 = arith.constant 0 : index
    %c0_179 = arith.constant 0 : index
    %177 = vector.load %arg10[%c0_178, %c0_179] : memref<64x128xf32, #tpu.memory_space<vmem>>, vector<8x128xf32>
    tpu.vector_store %arg10[%c0_178, %c0_179], %176 {strides = array<i32>} : memref<64x128xf32, #tpu.memory_space<vmem>>, vector<8x128xf32>,
    %c0_180 = arith.constant 0 : index
    %c27_181 = arith.constant 27 : index
    %178 = vector.load %arg9[%c0_180, %c27_181] : memref<8x182xf32, #tpu.memory_space<vmem>>, vector<8x128xf32>
    %c8_182 = arith.constant 8 : index
    %c0_183 = arith.constant 0 : index
    %179 = vector.load %arg10[%c8_182, %c0_183] : memref<64x128xf32, #tpu.memory_space<vmem>>, vector<8x128xf32>
    tpu.vector_store %arg10[%c8_182, %c0_183], %178 {strides = array<i32>} : memref<64x128xf32, #tpu.memory_space<vmem>>, vector<8x128xf32>,
    %c0_184 = arith.constant 0 : index
    %c28_185 = arith.constant 28 : index
    %180 = vector.load %arg9[%c0_184, %c28_185] : memref<8x182xf32, #tpu.memory_space<vmem>>, vector<8x128xf32>
    %c16_186 = arith.constant 16 : index
    %c0_187 = arith.constant 0 : index
    %181 = vector.load %arg10[%c16_186, %c0_187] : memref<64x128xf32, #tpu.memory_space<vmem>>, vector<8x128xf32>
    tpu.vector_store %arg10[%c16_186, %c0_187], %180 {strides = array<i32>} : memref<64x128xf32, #tpu.memory_space<vmem>>, vector<8x128xf32>,
    %c0_188 = arith.constant 0 : index
    %c1_189 = arith.constant 1 : index
    %c0_190 = arith.constant 0 : index
    %c0_191 = arith.constant 0 : index
    %c0_192 = arith.constant 0 : index
    %182 = vector.load %arg6[%c0_188, %c1_189, %c0_190, %c0_191, %c0_192] : memref<1x4x4x16x24xf32, #tpu.memory_space<vmem>>, vector<1x1x1x16x24xf32>
    %183 = vector.shape_cast %182 : vector<1x1x1x16x24xf32> to vector<16x24xf32>
    %c0_193 = arith.constant 0 : index
    %c0_194 = arith.constant 0 : index
    %184 = vector.load %arg10[%c0_193, %c0_194] : memref<64x128xf32, #tpu.memory_space<vmem>>, vector<24x32xf32>
    %cst_195 = arith.constant dense<0.000000e+00> : vector<16x32xf32>
    %185 = tpu.matmul %183, %184, %cst_195 {dimension_numbers = #tpu.dot_dimension_numbers<[1], [0], [0], [1], [0, 0, 1, 1], [], []>} : vector<16x24xf32>, vector<24x32xf32>, vector<16x32xf32> -> vector<16x32xf32>
    %c0_196 = arith.constant 0 : index
    %c0_197 = arith.constant 0 : index
    %186 = vector.load %arg11[%c0_196, %c0_197] : memref<16x128xf32, #tpu.memory_space<vmem>>, vector<16x32xf32>
    tpu.vector_store %arg11[%c0_196, %c0_197], %185 {strides = array<i32>} : memref<16x128xf32, #tpu.memory_space<vmem>>, vector<16x32xf32>,
    %c0_198 = arith.constant 0 : index
    %c1_199 = arith.constant 1 : index
    %c1_200 = arith.constant 1 : index
    %c0_201 = arith.constant 0 : index
    %c0_202 = arith.constant 0 : index
    %187 = vector.load %arg6[%c0_198, %c1_199, %c1_200, %c0_201, %c0_202] : memref<1x4x4x16x24xf32, #tpu.memory_space<vmem>>, vector<1x1x1x16x24xf32>
    %188 = vector.shape_cast %187 : vector<1x1x1x16x24xf32> to vector<16x24xf32>
    %c0_203 = arith.constant 0 : index
    %c32_204 = arith.constant 32 : index
    %189 = vector.load %arg10[%c0_203, %c32_204] : memref<64x128xf32, #tpu.memory_space<vmem>>, vector<24x32xf32>
    %cst_205 = arith.constant dense<0.000000e+00> : vector<16x32xf32>
    %190 = tpu.matmul %188, %189, %cst_205 {dimension_numbers = #tpu.dot_dimension_numbers<[1], [0], [0], [1], [0, 0, 1, 1], [], []>} : vector<16x24xf32>, vector<24x32xf32>, vector<16x32xf32> -> vector<16x32xf32>
    %c0_206 = arith.constant 0 : index
    %c32_207 = arith.constant 32 : index
    %191 = vector.load %arg11[%c0_206, %c32_207] : memref<16x128xf32, #tpu.memory_space<vmem>>, vector<16x32xf32>
    tpu.vector_store %arg11[%c0_206, %c32_207], %190 {strides = array<i32>} : memref<16x128xf32, #tpu.memory_space<vmem>>, vector<16x32xf32>,
    %c0_208 = arith.constant 0 : index
    %c1_209 = arith.constant 1 : index
    %c2_210 = arith.constant 2 : index
    %c0_211 = arith.constant 0 : index
    %c0_212 = arith.constant 0 : index
    %192 = vector.load %arg6[%c0_208, %c1_209, %c2_210, %c0_211, %c0_212] : memref<1x4x4x16x24xf32, #tpu.memory_space<vmem>>, vector<1x1x1x16x24xf32>
    %193 = vector.shape_cast %192 : vector<1x1x1x16x24xf32> to vector<16x24xf32>
    %c0_213 = arith.constant 0 : index
    %c64_214 = arith.constant 64 : index
    %194 = vector.load %arg10[%c0_213, %c64_214] : memref<64x128xf32, #tpu.memory_space<vmem>>, vector<24x32xf32>
    %cst_215 = arith.constant dense<0.000000e+00> : vector<16x32xf32>
    %195 = tpu.matmul %193, %194, %cst_215 {dimension_numbers = #tpu.dot_dimension_numbers<[1], [0], [0], [1], [0, 0, 1, 1], [], []>} : vector<16x24xf32>, vector<24x32xf32>, vector<16x32xf32> -> vector<16x32xf32>
    %c0_216 = arith.constant 0 : index
    %c64_217 = arith.constant 64 : index
    %196 = vector.load %arg11[%c0_216, %c64_217] : memref<16x128xf32, #tpu.memory_space<vmem>>, vector<16x32xf32>
    tpu.vector_store %arg11[%c0_216, %c64_217], %195 {strides = array<i32>} : memref<16x128xf32, #tpu.memory_space<vmem>>, vector<16x32xf32>,
    %c0_218 = arith.constant 0 : index
    %c1_219 = arith.constant 1 : index
    %c3_220 = arith.constant 3 : index
    %c0_221 = arith.constant 0 : index
    %c0_222 = arith.constant 0 : index
    %197 = vector.load %arg6[%c0_218, %c1_219, %c3_220, %c0_221, %c0_222] : memref<1x4x4x16x24xf32, #tpu.memory_space<vmem>>, vector<1x1x1x16x24xf32>
    %198 = vector.shape_cast %197 : vector<1x1x1x16x24xf32> to vector<16x24xf32>
    %c0_223 = arith.constant 0 : index
    %c96_224 = arith.constant 96 : index
    %199 = vector.load %arg10[%c0_223, %c96_224] : memref<64x128xf32, #tpu.memory_space<vmem>>, vector<24x32xf32>
    %cst_225 = arith.constant dense<0.000000e+00> : vector<16x32xf32>
    %200 = tpu.matmul %198, %199, %cst_225 {dimension_numbers = #tpu.dot_dimension_numbers<[1], [0], [0], [1], [0, 0, 1, 1], [], []>} : vector<16x24xf32>, vector<24x32xf32>, vector<16x32xf32> -> vector<16x32xf32>
    %c0_226 = arith.constant 0 : index
    %c96_227 = arith.constant 96 : index
    %201 = vector.load %arg11[%c0_226, %c96_227] : memref<16x128xf32, #tpu.memory_space<vmem>>, vector<16x32xf32>
    tpu.vector_store %arg11[%c0_226, %c96_227], %200 {strides = array<i32>} : memref<16x128xf32, #tpu.memory_space<vmem>>, vector<16x32xf32>,
    %c0_228 = arith.constant 0 : index
    %c0_229 = arith.constant 0 : index
    %202 = vector.load %arg11[%c0_228, %c0_229] : memref<16x128xf32, #tpu.memory_space<vmem>>, vector<16x128xf32>
    %c0_230 = arith.constant 0 : index
    %c1_231 = arith.constant 1 : index
    %c0_232 = arith.constant 0 : index
    %c0_233 = arith.constant 0 : index
    %203 = vector.load %arg7[%c0_230, %c1_231, %c0_232, %c0_233] : memref<1x4x16x128xf32, #tpu.memory_space<vmem>>, vector<1x1x16x128xf32>
    %204 = vector.shape_cast %203 : vector<1x1x16x128xf32> to vector<16x128xf32>
    %205 = arith.addf %202, %204 : vector<16x128xf32>
    %206 = vector.extract_strided_slice %205 {offsets = [0, 0], sizes = [8, 128], strides = [1, 1]} : vector<16x128xf32> to vector<8x128xf32>
    %207 = arith.negf %206 : vector<8x128xf32>
    %208 = math.exp %207 : vector<8x128xf32>
    %cst_234 = arith.constant 1.000000e+00 : f32
    %209 = vector.broadcast %cst_234 : f32 to vector<8x128xf32>
    %210 = arith.addf %209, %208 : vector<8x128xf32>
    %211 = arith.divf %209, %210 : vector<8x128xf32>
    %212 = vector.extract_strided_slice %205 {offsets = [8, 0], sizes = [8, 128], strides = [1, 1]} : vector<16x128xf32> to vector<8x128xf32>
    %213 = math.tanh %212 : vector<8x128xf32>
    %214 = arith.mulf %211, %213 : vector<8x128xf32>
    %c0_235 = arith.constant 0 : index
    %c0_236 = arith.constant 0 : index
    %c0_237 = arith.constant 0 : index
    %215 = vector.load %arg8[%c0_235, %c0_236, %c0_237] : memref<1x8x128xf32, #tpu.memory_space<vmem>>, vector<1x8x128xf32>
    %216 = vector.shape_cast %215 : vector<1x8x128xf32> to vector<8x128xf32>
    %217 = arith.addf %216, %214 : vector<8x128xf32>
    %c0_238 = arith.constant 0 : index
    %c0_239 = arith.constant 0 : index
    %c0_240 = arith.constant 0 : index
    %218 = vector.load %arg8[%c0_238, %c0_239, %c0_240] : memref<1x8x128xf32, #tpu.memory_space<vmem>>, vector<1x8x128xf32>
    %219 = vector.shape_cast %218 : vector<1x8x128xf32> to vector<8x128xf32>
    %220 = vector.shape_cast %217 : vector<8x128xf32> to vector<1x8x128xf32>
    tpu.vector_store %arg8[%c0_238, %c0_239, %c0_240], %220 {strides = array<i32>} : memref<1x8x128xf32, #tpu.memory_space<vmem>>, vector<1x8x128xf32>,
    %c0_241 = arith.constant 0 : index
    %c0_242 = arith.constant 0 : index
    %c0_243 = arith.constant 0 : index
    %221 = vector.load %arg8[%c0_241, %c0_242, %c0_243] : memref<1x8x128xf32, #tpu.memory_space<vmem>>, vector<1x8x128xf32>
    %222 = vector.shape_cast %221 : vector<1x8x128xf32> to vector<8x128xf32>
    %cst_244 = arith.constant 0.000000e+00 : f32
    %223 = vector.broadcast %cst_244 : f32 to vector<8x128xf32>
    %224 = arith.cmpf oge, %222, %223 : vector<8x128xf32>
    %cst_245 = arith.constant 2.000000e-01 : f32
    %225 = vector.broadcast %cst_245 : f32 to vector<8x128xf32>
    %226 = arith.mulf %225, %222 : vector<8x128xf32>
    %227 = arith.select %224, %222, %226 : vector<8x128xi1>, vector<8x128xf32>
    %c0_246 = arith.constant 0 : index
    %c27_247 = arith.constant 27 : index
    %228 = vector.load %arg9[%c0_246, %c27_247] : memref<8x182xf32, #tpu.memory_space<vmem>>, vector<8x128xf32>
    tpu.vector_store %arg9[%c0_246, %c27_247], %227 {strides = array<i32>} : memref<8x182xf32, #tpu.memory_space<vmem>>, vector<8x128xf32>,
    %c0_248 = arith.constant 0 : index
    %c18 = arith.constant 18 : index
    %229 = vector.load %arg9[%c0_248, %c18] : memref<8x182xf32, #tpu.memory_space<vmem>>, vector<8x128xf32>
    %c0_249 = arith.constant 0 : index
    %c0_250 = arith.constant 0 : index
    %230 = vector.load %arg10[%c0_249, %c0_250] : memref<64x128xf32, #tpu.memory_space<vmem>>, vector<8x128xf32>
    tpu.vector_store %arg10[%c0_249, %c0_250], %229 {strides = array<i32>} : memref<64x128xf32, #tpu.memory_space<vmem>>, vector<8x128xf32>,
    %c0_251 = arith.constant 0 : index
    %c27_252 = arith.constant 27 : index
    %231 = vector.load %arg9[%c0_251, %c27_252] : memref<8x182xf32, #tpu.memory_space<vmem>>, vector<8x128xf32>
    %c8_253 = arith.constant 8 : index
    %c0_254 = arith.constant 0 : index
    %232 = vector.load %arg10[%c8_253, %c0_254] : memref<64x128xf32, #tpu.memory_space<vmem>>, vector<8x128xf32>
    tpu.vector_store %arg10[%c8_253, %c0_254], %231 {strides = array<i32>} : memref<64x128xf32, #tpu.memory_space<vmem>>, vector<8x128xf32>,
    %c0_255 = arith.constant 0 : index
    %c36 = arith.constant 36 : index
    %233 = vector.load %arg9[%c0_255, %c36] : memref<8x182xf32, #tpu.memory_space<vmem>>, vector<8x128xf32>
    %c16_256 = arith.constant 16 : index
    %c0_257 = arith.constant 0 : index
    %234 = vector.load %arg10[%c16_256, %c0_257] : memref<64x128xf32, #tpu.memory_space<vmem>>, vector<8x128xf32>
    tpu.vector_store %arg10[%c16_256, %c0_257], %233 {strides = array<i32>} : memref<64x128xf32, #tpu.memory_space<vmem>>, vector<8x128xf32>,
    %c2_258 = arith.constant 2 : index
    %c0_259 = arith.constant 0 : index
    %c0_260 = arith.constant 0 : index
    %235 = vector.load %arg4[%c2_258, %c0_259, %c0_260] : memref<4x8x24xf32, #tpu.memory_space<vmem>>, vector<1x8x24xf32>
    %236 = vector.shape_cast %235 : vector<1x8x24xf32> to vector<8x24xf32>
    %c0_261 = arith.constant 0 : index
    %c0_262 = arith.constant 0 : index
    %237 = vector.load %arg10[%c0_261, %c0_262] : memref<64x128xf32, #tpu.memory_space<vmem>>, vector<24x128xf32>
    %cst_263 = arith.constant dense<0.000000e+00> : vector<8x128xf32>
    %238 = tpu.matmul %236, %237, %cst_263 {dimension_numbers = #tpu.dot_dimension_numbers<[1], [0], [0], [1], [0, 0, 1, 1], [], []>} : vector<8x24xf32>, vector<24x128xf32>, vector<8x128xf32> -> vector<8x128xf32>
    %c2_264 = arith.constant 2 : index
    %c0_265 = arith.constant 0 : index
    %c0_266 = arith.constant 0 : index
    %239 = vector.load %arg5[%c2_264, %c0_265, %c0_266] : memref<4x8x1xf32, #tpu.memory_space<vmem>>, vector<1x8x1xf32>
    %240 = vector.shape_cast %239 : vector<1x8x1xf32> to vector<8x1xf32>
    %241 = vector.broadcast %240 : vector<8x1xf32> to vector<8x128xf32>
    %242 = arith.addf %238, %241 : vector<8x128xf32>
    %cst_267 = arith.constant 0.000000e+00 : f32
    %243 = vector.broadcast %cst_267 : f32 to vector<8x128xf32>
    %244 = arith.cmpf oge, %242, %243 : vector<8x128xf32>
    %cst_268 = arith.constant 2.000000e-01 : f32
    %245 = vector.broadcast %cst_268 : f32 to vector<8x128xf32>
    %246 = arith.mulf %245, %242 : vector<8x128xf32>
    %247 = arith.select %244, %242, %246 : vector<8x128xi1>, vector<8x128xf32>
    %c0_269 = arith.constant 0 : index
    %c27_270 = arith.constant 27 : index
    %248 = vector.load %arg9[%c0_269, %c27_270] : memref<8x182xf32, #tpu.memory_space<vmem>>, vector<8x128xf32>
    tpu.vector_store %arg9[%c0_269, %c27_270], %247 {strides = array<i32>} : memref<8x182xf32, #tpu.memory_space<vmem>>, vector<8x128xf32>,
    %c0_271 = arith.constant 0 : index
    %c26_272 = arith.constant 26 : index
    %249 = vector.load %arg9[%c0_271, %c26_272] : memref<8x182xf32, #tpu.memory_space<vmem>>, vector<8x128xf32>
    %c0_273 = arith.constant 0 : index
    %c0_274 = arith.constant 0 : index
    %250 = vector.load %arg10[%c0_273, %c0_274] : memref<64x128xf32, #tpu.memory_space<vmem>>, vector<8x128xf32>
    tpu.vector_store %arg10[%c0_273, %c0_274], %249 {strides = array<i32>} : memref<64x128xf32, #tpu.memory_space<vmem>>, vector<8x128xf32>,
    %c0_275 = arith.constant 0 : index
    %c27_276 = arith.constant 27 : index
    %251 = vector.load %arg9[%c0_275, %c27_276] : memref<8x182xf32, #tpu.memory_space<vmem>>, vector<8x128xf32>
    %c8_277 = arith.constant 8 : index
    %c0_278 = arith.constant 0 : index
    %252 = vector.load %arg10[%c8_277, %c0_278] : memref<64x128xf32, #tpu.memory_space<vmem>>, vector<8x128xf32>
    tpu.vector_store %arg10[%c8_277, %c0_278], %251 {strides = array<i32>} : memref<64x128xf32, #tpu.memory_space<vmem>>, vector<8x128xf32>,
    %c0_279 = arith.constant 0 : index
    %c28_280 = arith.constant 28 : index
    %253 = vector.load %arg9[%c0_279, %c28_280] : memref<8x182xf32, #tpu.memory_space<vmem>>, vector<8x128xf32>
    %c16_281 = arith.constant 16 : index
    %c0_282 = arith.constant 0 : index
    %254 = vector.load %arg10[%c16_281, %c0_282] : memref<64x128xf32, #tpu.memory_space<vmem>>, vector<8x128xf32>
    tpu.vector_store %arg10[%c16_281, %c0_282], %253 {strides = array<i32>} : memref<64x128xf32, #tpu.memory_space<vmem>>, vector<8x128xf32>,
    %c0_283 = arith.constant 0 : index
    %c2_284 = arith.constant 2 : index
    %c0_285 = arith.constant 0 : index
    %c0_286 = arith.constant 0 : index
    %c0_287 = arith.constant 0 : index
    %255 = vector.load %arg6[%c0_283, %c2_284, %c0_285, %c0_286, %c0_287] : memref<1x4x4x16x24xf32, #tpu.memory_space<vmem>>, vector<1x1x1x16x24xf32>
    %256 = vector.shape_cast %255 : vector<1x1x1x16x24xf32> to vector<16x24xf32>
    %c0_288 = arith.constant 0 : index
    %c0_289 = arith.constant 0 : index
    %257 = vector.load %arg10[%c0_288, %c0_289] : memref<64x128xf32, #tpu.memory_space<vmem>>, vector<24x32xf32>
    %cst_290 = arith.constant dense<0.000000e+00> : vector<16x32xf32>
    %258 = tpu.matmul %256, %257, %cst_290 {dimension_numbers = #tpu.dot_dimension_numbers<[1], [0], [0], [1], [0, 0, 1, 1], [], []>} : vector<16x24xf32>, vector<24x32xf32>, vector<16x32xf32> -> vector<16x32xf32>
    %c0_291 = arith.constant 0 : index
    %c0_292 = arith.constant 0 : index
    %259 = vector.load %arg11[%c0_291, %c0_292] : memref<16x128xf32, #tpu.memory_space<vmem>>, vector<16x32xf32>
    tpu.vector_store %arg11[%c0_291, %c0_292], %258 {strides = array<i32>} : memref<16x128xf32, #tpu.memory_space<vmem>>, vector<16x32xf32>,
    %c0_293 = arith.constant 0 : index
    %c2_294 = arith.constant 2 : index
    %c1_295 = arith.constant 1 : index
    %c0_296 = arith.constant 0 : index
    %c0_297 = arith.constant 0 : index
    %260 = vector.load %arg6[%c0_293, %c2_294, %c1_295, %c0_296, %c0_297] : memref<1x4x4x16x24xf32, #tpu.memory_space<vmem>>, vector<1x1x1x16x24xf32>
    %261 = vector.shape_cast %260 : vector<1x1x1x16x24xf32> to vector<16x24xf32>
    %c0_298 = arith.constant 0 : index
    %c32_299 = arith.constant 32 : index
    %262 = vector.load %arg10[%c0_298, %c32_299] : memref<64x128xf32, #tpu.memory_space<vmem>>, vector<24x32xf32>
    %cst_300 = arith.constant dense<0.000000e+00> : vector<16x32xf32>
    %263 = tpu.matmul %261, %262, %cst_300 {dimension_numbers = #tpu.dot_dimension_numbers<[1], [0], [0], [1], [0, 0, 1, 1], [], []>} : vector<16x24xf32>, vector<24x32xf32>, vector<16x32xf32> -> vector<16x32xf32>
    %c0_301 = arith.constant 0 : index
    %c32_302 = arith.constant 32 : index
    %264 = vector.load %arg11[%c0_301, %c32_302] : memref<16x128xf32, #tpu.memory_space<vmem>>, vector<16x32xf32>
    tpu.vector_store %arg11[%c0_301, %c32_302], %263 {strides = array<i32>} : memref<16x128xf32, #tpu.memory_space<vmem>>, vector<16x32xf32>,
    %c0_303 = arith.constant 0 : index
    %c2_304 = arith.constant 2 : index
    %c2_305 = arith.constant 2 : index
    %c0_306 = arith.constant 0 : index
    %c0_307 = arith.constant 0 : index
    %265 = vector.load %arg6[%c0_303, %c2_304, %c2_305, %c0_306, %c0_307] : memref<1x4x4x16x24xf32, #tpu.memory_space<vmem>>, vector<1x1x1x16x24xf32>
    %266 = vector.shape_cast %265 : vector<1x1x1x16x24xf32> to vector<16x24xf32>
    %c0_308 = arith.constant 0 : index
    %c64_309 = arith.constant 64 : index
    %267 = vector.load %arg10[%c0_308, %c64_309] : memref<64x128xf32, #tpu.memory_space<vmem>>, vector<24x32xf32>
    %cst_310 = arith.constant dense<0.000000e+00> : vector<16x32xf32>
    %268 = tpu.matmul %266, %267, %cst_310 {dimension_numbers = #tpu.dot_dimension_numbers<[1], [0], [0], [1], [0, 0, 1, 1], [], []>} : vector<16x24xf32>, vector<24x32xf32>, vector<16x32xf32> -> vector<16x32xf32>
    %c0_311 = arith.constant 0 : index
    %c64_312 = arith.constant 64 : index
    %269 = vector.load %arg11[%c0_311, %c64_312] : memref<16x128xf32, #tpu.memory_space<vmem>>, vector<16x32xf32>
    tpu.vector_store %arg11[%c0_311, %c64_312], %268 {strides = array<i32>} : memref<16x128xf32, #tpu.memory_space<vmem>>, vector<16x32xf32>,
    %c0_313 = arith.constant 0 : index
    %c2_314 = arith.constant 2 : index
    %c3_315 = arith.constant 3 : index
    %c0_316 = arith.constant 0 : index
    %c0_317 = arith.constant 0 : index
    %270 = vector.load %arg6[%c0_313, %c2_314, %c3_315, %c0_316, %c0_317] : memref<1x4x4x16x24xf32, #tpu.memory_space<vmem>>, vector<1x1x1x16x24xf32>
    %271 = vector.shape_cast %270 : vector<1x1x1x16x24xf32> to vector<16x24xf32>
    %c0_318 = arith.constant 0 : index
    %c96_319 = arith.constant 96 : index
    %272 = vector.load %arg10[%c0_318, %c96_319] : memref<64x128xf32, #tpu.memory_space<vmem>>, vector<24x32xf32>
    %cst_320 = arith.constant dense<0.000000e+00> : vector<16x32xf32>
    %273 = tpu.matmul %271, %272, %cst_320 {dimension_numbers = #tpu.dot_dimension_numbers<[1], [0], [0], [1], [0, 0, 1, 1], [], []>} : vector<16x24xf32>, vector<24x32xf32>, vector<16x32xf32> -> vector<16x32xf32>
    %c0_321 = arith.constant 0 : index
    %c96_322 = arith.constant 96 : index
    %274 = vector.load %arg11[%c0_321, %c96_322] : memref<16x128xf32, #tpu.memory_space<vmem>>, vector<16x32xf32>
    tpu.vector_store %arg11[%c0_321, %c96_322], %273 {strides = array<i32>} : memref<16x128xf32, #tpu.memory_space<vmem>>, vector<16x32xf32>,
    %c0_323 = arith.constant 0 : index
    %c0_324 = arith.constant 0 : index
    %275 = vector.load %arg11[%c0_323, %c0_324] : memref<16x128xf32, #tpu.memory_space<vmem>>, vector<16x128xf32>
    %c0_325 = arith.constant 0 : index
    %c2_326 = arith.constant 2 : index
    %c0_327 = arith.constant 0 : index
    %c0_328 = arith.constant 0 : index
    %276 = vector.load %arg7[%c0_325, %c2_326, %c0_327, %c0_328] : memref<1x4x16x128xf32, #tpu.memory_space<vmem>>, vector<1x1x16x128xf32>
    %277 = vector.shape_cast %276 : vector<1x1x16x128xf32> to vector<16x128xf32>
    %278 = arith.addf %275, %277 : vector<16x128xf32>
    %279 = vector.extract_strided_slice %278 {offsets = [0, 0], sizes = [8, 128], strides = [1, 1]} : vector<16x128xf32> to vector<8x128xf32>
    %280 = arith.negf %279 : vector<8x128xf32>
    %281 = math.exp %280 : vector<8x128xf32>
    %cst_329 = arith.constant 1.000000e+00 : f32
    %282 = vector.broadcast %cst_329 : f32 to vector<8x128xf32>
    %283 = arith.addf %282, %281 : vector<8x128xf32>
    %284 = arith.divf %282, %283 : vector<8x128xf32>
    %285 = vector.extract_strided_slice %278 {offsets = [8, 0], sizes = [8, 128], strides = [1, 1]} : vector<16x128xf32> to vector<8x128xf32>
    %286 = math.tanh %285 : vector<8x128xf32>
    %287 = arith.mulf %284, %286 : vector<8x128xf32>
    %c0_330 = arith.constant 0 : index
    %c0_331 = arith.constant 0 : index
    %c0_332 = arith.constant 0 : index
    %288 = vector.load %arg8[%c0_330, %c0_331, %c0_332] : memref<1x8x128xf32, #tpu.memory_space<vmem>>, vector<1x8x128xf32>
    %289 = vector.shape_cast %288 : vector<1x8x128xf32> to vector<8x128xf32>
    %290 = arith.addf %289, %287 : vector<8x128xf32>
    %c0_333 = arith.constant 0 : index
    %c0_334 = arith.constant 0 : index
    %c0_335 = arith.constant 0 : index
    %291 = vector.load %arg8[%c0_333, %c0_334, %c0_335] : memref<1x8x128xf32, #tpu.memory_space<vmem>>, vector<1x8x128xf32>
    %292 = vector.shape_cast %291 : vector<1x8x128xf32> to vector<8x128xf32>
    %293 = vector.shape_cast %290 : vector<8x128xf32> to vector<1x8x128xf32>
    tpu.vector_store %arg8[%c0_333, %c0_334, %c0_335], %293 {strides = array<i32>} : memref<1x8x128xf32, #tpu.memory_space<vmem>>, vector<1x8x128xf32>,
    %c0_336 = arith.constant 0 : index
    %c0_337 = arith.constant 0 : index
    %c0_338 = arith.constant 0 : index
    %294 = vector.load %arg8[%c0_336, %c0_337, %c0_338] : memref<1x8x128xf32, #tpu.memory_space<vmem>>, vector<1x8x128xf32>
    %295 = vector.shape_cast %294 : vector<1x8x128xf32> to vector<8x128xf32>
    %cst_339 = arith.constant 0.000000e+00 : f32
    %296 = vector.broadcast %cst_339 : f32 to vector<8x128xf32>
    %297 = arith.cmpf oge, %295, %296 : vector<8x128xf32>
    %cst_340 = arith.constant 2.000000e-01 : f32
    %298 = vector.broadcast %cst_340 : f32 to vector<8x128xf32>
    %299 = arith.mulf %298, %295 : vector<8x128xf32>
    %300 = arith.select %297, %295, %299 : vector<8x128xi1>, vector<8x128xf32>
    %c0_341 = arith.constant 0 : index
    %c27_342 = arith.constant 27 : index
    %301 = vector.load %arg9[%c0_341, %c27_342] : memref<8x182xf32, #tpu.memory_space<vmem>>, vector<8x128xf32>
    tpu.vector_store %arg9[%c0_341, %c27_342], %300 {strides = array<i32>} : memref<8x182xf32, #tpu.memory_space<vmem>>, vector<8x128xf32>,
    %c0_343 = arith.constant 0 : index
    %c0_344 = arith.constant 0 : index
    %302 = vector.load %arg9[%c0_343, %c0_344] : memref<8x182xf32, #tpu.memory_space<vmem>>, vector<8x128xf32>
    %c0_345 = arith.constant 0 : index
    %c0_346 = arith.constant 0 : index
    %303 = vector.load %arg10[%c0_345, %c0_346] : memref<64x128xf32, #tpu.memory_space<vmem>>, vector<8x128xf32>
    tpu.vector_store %arg10[%c0_345, %c0_346], %302 {strides = array<i32>} : memref<64x128xf32, #tpu.memory_space<vmem>>, vector<8x128xf32>,
    %c0_347 = arith.constant 0 : index
    %c27_348 = arith.constant 27 : index
    %304 = vector.load %arg9[%c0_347, %c27_348] : memref<8x182xf32, #tpu.memory_space<vmem>>, vector<8x128xf32>
    %c8_349 = arith.constant 8 : index
    %c0_350 = arith.constant 0 : index
    %305 = vector.load %arg10[%c8_349, %c0_350] : memref<64x128xf32, #tpu.memory_space<vmem>>, vector<8x128xf32>
    tpu.vector_store %arg10[%c8_349, %c0_350], %304 {strides = array<i32>} : memref<64x128xf32, #tpu.memory_space<vmem>>, vector<8x128xf32>,
    %c0_351 = arith.constant 0 : index
    %c54 = arith.constant 54 : index
    %306 = vector.load %arg9[%c0_351, %c54] : memref<8x182xf32, #tpu.memory_space<vmem>>, vector<8x128xf32>
    %c16_352 = arith.constant 16 : index
    %c0_353 = arith.constant 0 : index
    %307 = vector.load %arg10[%c16_352, %c0_353] : memref<64x128xf32, #tpu.memory_space<vmem>>, vector<8x128xf32>
    tpu.vector_store %arg10[%c16_352, %c0_353], %306 {strides = array<i32>} : memref<64x128xf32, #tpu.memory_space<vmem>>, vector<8x128xf32>,
    %c3_354 = arith.constant 3 : index
    %c0_355 = arith.constant 0 : index
    %c0_356 = arith.constant 0 : index
    %308 = vector.load %arg4[%c3_354, %c0_355, %c0_356] : memref<4x8x24xf32, #tpu.memory_space<vmem>>, vector<1x8x24xf32>
    %309 = vector.shape_cast %308 : vector<1x8x24xf32> to vector<8x24xf32>
    %c0_357 = arith.constant 0 : index
    %c0_358 = arith.constant 0 : index
    %310 = vector.load %arg10[%c0_357, %c0_358] : memref<64x128xf32, #tpu.memory_space<vmem>>, vector<24x128xf32>
    %cst_359 = arith.constant dense<0.000000e+00> : vector<8x128xf32>
    %311 = tpu.matmul %309, %310, %cst_359 {dimension_numbers = #tpu.dot_dimension_numbers<[1], [0], [0], [1], [0, 0, 1, 1], [], []>} : vector<8x24xf32>, vector<24x128xf32>, vector<8x128xf32> -> vector<8x128xf32>
    %c3_360 = arith.constant 3 : index
    %c0_361 = arith.constant 0 : index
    %c0_362 = arith.constant 0 : index
    %312 = vector.load %arg5[%c3_360, %c0_361, %c0_362] : memref<4x8x1xf32, #tpu.memory_space<vmem>>, vector<1x8x1xf32>
    %313 = vector.shape_cast %312 : vector<1x8x1xf32> to vector<8x1xf32>
    %314 = vector.broadcast %313 : vector<8x1xf32> to vector<8x128xf32>
    %315 = arith.addf %311, %314 : vector<8x128xf32>
    %cst_363 = arith.constant 0.000000e+00 : f32
    %316 = vector.broadcast %cst_363 : f32 to vector<8x128xf32>
    %317 = arith.cmpf oge, %315, %316 : vector<8x128xf32>
    %cst_364 = arith.constant 2.000000e-01 : f32
    %318 = vector.broadcast %cst_364 : f32 to vector<8x128xf32>
    %319 = arith.mulf %318, %315 : vector<8x128xf32>
    %320 = arith.select %317, %315, %319 : vector<8x128xi1>, vector<8x128xf32>
    %c0_365 = arith.constant 0 : index
    %c27_366 = arith.constant 27 : index
    %321 = vector.load %arg9[%c0_365, %c27_366] : memref<8x182xf32, #tpu.memory_space<vmem>>, vector<8x128xf32>
    tpu.vector_store %arg9[%c0_365, %c27_366], %320 {strides = array<i32>} : memref<8x182xf32, #tpu.memory_space<vmem>>, vector<8x128xf32>,
    %c0_367 = arith.constant 0 : index
    %c26_368 = arith.constant 26 : index
    %322 = vector.load %arg9[%c0_367, %c26_368] : memref<8x182xf32, #tpu.memory_space<vmem>>, vector<8x128xf32>
    %c0_369 = arith.constant 0 : index
    %c0_370 = arith.constant 0 : index
    %323 = vector.load %arg10[%c0_369, %c0_370] : memref<64x128xf32, #tpu.memory_space<vmem>>, vector<8x128xf32>
    tpu.vector_store %arg10[%c0_369, %c0_370], %322 {strides = array<i32>} : memref<64x128xf32, #tpu.memory_space<vmem>>, vector<8x128xf32>,
    %c0_371 = arith.constant 0 : index
    %c27_372 = arith.constant 27 : index
    %324 = vector.load %arg9[%c0_371, %c27_372] : memref<8x182xf32, #tpu.memory_space<vmem>>, vector<8x128xf32>
    %c8_373 = arith.constant 8 : index
    %c0_374 = arith.constant 0 : index
    %325 = vector.load %arg10[%c8_373, %c0_374] : memref<64x128xf32, #tpu.memory_space<vmem>>, vector<8x128xf32>
    tpu.vector_store %arg10[%c8_373, %c0_374], %324 {strides = array<i32>} : memref<64x128xf32, #tpu.memory_space<vmem>>, vector<8x128xf32>,
    %c0_375 = arith.constant 0 : index
    %c28_376 = arith.constant 28 : index
    %326 = vector.load %arg9[%c0_375, %c28_376] : memref<8x182xf32, #tpu.memory_space<vmem>>, vector<8x128xf32>
    %c16_377 = arith.constant 16 : index
    %c0_378 = arith.constant 0 : index
    %327 = vector.load %arg10[%c16_377, %c0_378] : memref<64x128xf32, #tpu.memory_space<vmem>>, vector<8x128xf32>
    tpu.vector_store %arg10[%c16_377, %c0_378], %326 {strides = array<i32>} : memref<64x128xf32, #tpu.memory_space<vmem>>, vector<8x128xf32>,
    %c0_379 = arith.constant 0 : index
    %c3_380 = arith.constant 3 : index
    %c0_381 = arith.constant 0 : index
    %c0_382 = arith.constant 0 : index
    %c0_383 = arith.constant 0 : index
    %328 = vector.load %arg6[%c0_379, %c3_380, %c0_381, %c0_382, %c0_383] : memref<1x4x4x16x24xf32, #tpu.memory_space<vmem>>, vector<1x1x1x16x24xf32>
    %329 = vector.shape_cast %328 : vector<1x1x1x16x24xf32> to vector<16x24xf32>
    %c0_384 = arith.constant 0 : index
    %c0_385 = arith.constant 0 : index
    %330 = vector.load %arg10[%c0_384, %c0_385] : memref<64x128xf32, #tpu.memory_space<vmem>>, vector<24x32xf32>
    %cst_386 = arith.constant dense<0.000000e+00> : vector<16x32xf32>
    %331 = tpu.matmul %329, %330, %cst_386 {dimension_numbers = #tpu.dot_dimension_numbers<[1], [0], [0], [1], [0, 0, 1, 1], [], []>} : vector<16x24xf32>, vector<24x32xf32>, vector<16x32xf32> -> vector<16x32xf32>
    %c0_387 = arith.constant 0 : index
    %c0_388 = arith.constant 0 : index
    %332 = vector.load %arg11[%c0_387, %c0_388] : memref<16x128xf32, #tpu.memory_space<vmem>>, vector<16x32xf32>
    tpu.vector_store %arg11[%c0_387, %c0_388], %331 {strides = array<i32>} : memref<16x128xf32, #tpu.memory_space<vmem>>, vector<16x32xf32>,
    %c0_389 = arith.constant 0 : index
    %c3_390 = arith.constant 3 : index
    %c1_391 = arith.constant 1 : index
    %c0_392 = arith.constant 0 : index
    %c0_393 = arith.constant 0 : index
    %333 = vector.load %arg6[%c0_389, %c3_390, %c1_391, %c0_392, %c0_393] : memref<1x4x4x16x24xf32, #tpu.memory_space<vmem>>, vector<1x1x1x16x24xf32>
    %334 = vector.shape_cast %333 : vector<1x1x1x16x24xf32> to vector<16x24xf32>
    %c0_394 = arith.constant 0 : index
    %c32_395 = arith.constant 32 : index
    %335 = vector.load %arg10[%c0_394, %c32_395] : memref<64x128xf32, #tpu.memory_space<vmem>>, vector<24x32xf32>
    %cst_396 = arith.constant dense<0.000000e+00> : vector<16x32xf32>
    %336 = tpu.matmul %334, %335, %cst_396 {dimension_numbers = #tpu.dot_dimension_numbers<[1], [0], [0], [1], [0, 0, 1, 1], [], []>} : vector<16x24xf32>, vector<24x32xf32>, vector<16x32xf32> -> vector<16x32xf32>
    %c0_397 = arith.constant 0 : index
    %c32_398 = arith.constant 32 : index
    %337 = vector.load %arg11[%c0_397, %c32_398] : memref<16x128xf32, #tpu.memory_space<vmem>>, vector<16x32xf32>
    tpu.vector_store %arg11[%c0_397, %c32_398], %336 {strides = array<i32>} : memref<16x128xf32, #tpu.memory_space<vmem>>, vector<16x32xf32>,
    %c0_399 = arith.constant 0 : index
    %c3_400 = arith.constant 3 : index
    %c2_401 = arith.constant 2 : index
    %c0_402 = arith.constant 0 : index
    %c0_403 = arith.constant 0 : index
    %338 = vector.load %arg6[%c0_399, %c3_400, %c2_401, %c0_402, %c0_403] : memref<1x4x4x16x24xf32, #tpu.memory_space<vmem>>, vector<1x1x1x16x24xf32>
    %339 = vector.shape_cast %338 : vector<1x1x1x16x24xf32> to vector<16x24xf32>
    %c0_404 = arith.constant 0 : index
    %c64_405 = arith.constant 64 : index
    %340 = vector.load %arg10[%c0_404, %c64_405] : memref<64x128xf32, #tpu.memory_space<vmem>>, vector<24x32xf32>
    %cst_406 = arith.constant dense<0.000000e+00> : vector<16x32xf32>
    %341 = tpu.matmul %339, %340, %cst_406 {dimension_numbers = #tpu.dot_dimension_numbers<[1], [0], [0], [1], [0, 0, 1, 1], [], []>} : vector<16x24xf32>, vector<24x32xf32>, vector<16x32xf32> -> vector<16x32xf32>
    %c0_407 = arith.constant 0 : index
    %c64_408 = arith.constant 64 : index
    %342 = vector.load %arg11[%c0_407, %c64_408] : memref<16x128xf32, #tpu.memory_space<vmem>>, vector<16x32xf32>
    tpu.vector_store %arg11[%c0_407, %c64_408], %341 {strides = array<i32>} : memref<16x128xf32, #tpu.memory_space<vmem>>, vector<16x32xf32>,
    %c0_409 = arith.constant 0 : index
    %c3_410 = arith.constant 3 : index
    %c3_411 = arith.constant 3 : index
    %c0_412 = arith.constant 0 : index
    %c0_413 = arith.constant 0 : index
    %343 = vector.load %arg6[%c0_409, %c3_410, %c3_411, %c0_412, %c0_413] : memref<1x4x4x16x24xf32, #tpu.memory_space<vmem>>, vector<1x1x1x16x24xf32>
    %344 = vector.shape_cast %343 : vector<1x1x1x16x24xf32> to vector<16x24xf32>
    %c0_414 = arith.constant 0 : index
    %c96_415 = arith.constant 96 : index
    %345 = vector.load %arg10[%c0_414, %c96_415] : memref<64x128xf32, #tpu.memory_space<vmem>>, vector<24x32xf32>
    %cst_416 = arith.constant dense<0.000000e+00> : vector<16x32xf32>
    %346 = tpu.matmul %344, %345, %cst_416 {dimension_numbers = #tpu.dot_dimension_numbers<[1], [0], [0], [1], [0, 0, 1, 1], [], []>} : vector<16x24xf32>, vector<24x32xf32>, vector<16x32xf32> -> vector<16x32xf32>
    %c0_417 = arith.constant 0 : index
    %c96_418 = arith.constant 96 : index
    %347 = vector.load %arg11[%c0_417, %c96_418] : memref<16x128xf32, #tpu.memory_space<vmem>>, vector<16x32xf32>
    tpu.vector_store %arg11[%c0_417, %c96_418], %346 {strides = array<i32>} : memref<16x128xf32, #tpu.memory_space<vmem>>, vector<16x32xf32>,
    %c0_419 = arith.constant 0 : index
    %c0_420 = arith.constant 0 : index
    %348 = vector.load %arg11[%c0_419, %c0_420] : memref<16x128xf32, #tpu.memory_space<vmem>>, vector<16x128xf32>
    %c0_421 = arith.constant 0 : index
    %c3_422 = arith.constant 3 : index
    %c0_423 = arith.constant 0 : index
    %c0_424 = arith.constant 0 : index
    %349 = vector.load %arg7[%c0_421, %c3_422, %c0_423, %c0_424] : memref<1x4x16x128xf32, #tpu.memory_space<vmem>>, vector<1x1x16x128xf32>
    %350 = vector.shape_cast %349 : vector<1x1x16x128xf32> to vector<16x128xf32>
    %351 = arith.addf %348, %350 : vector<16x128xf32>
    %352 = vector.extract_strided_slice %351 {offsets = [0, 0], sizes = [8, 128], strides = [1, 1]} : vector<16x128xf32> to vector<8x128xf32>
    %353 = arith.negf %352 : vector<8x128xf32>
    %354 = math.exp %353 : vector<8x128xf32>
    %cst_425 = arith.constant 1.000000e+00 : f32
    %355 = vector.broadcast %cst_425 : f32 to vector<8x128xf32>
    %356 = arith.addf %355, %354 : vector<8x128xf32>
    %357 = arith.divf %355, %356 : vector<8x128xf32>
    %358 = vector.extract_strided_slice %351 {offsets = [8, 0], sizes = [8, 128], strides = [1, 1]} : vector<16x128xf32> to vector<8x128xf32>
    %359 = math.tanh %358 : vector<8x128xf32>
    %360 = arith.mulf %357, %359 : vector<8x128xf32>
    %c0_426 = arith.constant 0 : index
    %c0_427 = arith.constant 0 : index
    %c0_428 = arith.constant 0 : index
    %361 = vector.load %arg8[%c0_426, %c0_427, %c0_428] : memref<1x8x128xf32, #tpu.memory_space<vmem>>, vector<1x8x128xf32>
    %362 = vector.shape_cast %361 : vector<1x8x128xf32> to vector<8x128xf32>
    %363 = arith.addf %362, %360 : vector<8x128xf32>
    %c0_429 = arith.constant 0 : index
    %c0_430 = arith.constant 0 : index
    %c0_431 = arith.constant 0 : index
    %364 = vector.load %arg8[%c0_429, %c0_430, %c0_431] : memref<1x8x128xf32, #tpu.memory_space<vmem>>, vector<1x8x128xf32>
    %365 = vector.shape_cast %364 : vector<1x8x128xf32> to vector<8x128xf32>
    %366 = vector.shape_cast %363 : vector<8x128xf32> to vector<1x8x128xf32>
    tpu.vector_store %arg8[%c0_429, %c0_430, %c0_431], %366 {strides = array<i32>} : memref<1x8x128xf32, #tpu.memory_space<vmem>>, vector<1x8x128xf32>,
    return
  }
  func.func @transform_0(%arg0: i32) -> (i32, i32, i32) {
    %c0_i32 = arith.constant 0 : i32
    %c0_i32_0 = arith.constant 0 : i32
    %c0_i32_1 = arith.constant 0 : i32
    return %arg0, %c0_i32, %c0_i32_0 : i32, i32, i32
  }
  func.func @transform_1(%arg0: i32) -> (i32, i32) {
    %c0_i32 = arith.constant 0 : i32
    %c0_i32_0 = arith.constant 0 : i32
    %c0_i32_1 = arith.constant 0 : i32
    return %c0_i32, %c0_i32_0 : i32, i32
  }
  func.func @transform_2(%arg0: i32) -> (i32, i32) {
    %c0_i32 = arith.constant 0 : i32
    %c0_i32_0 = arith.constant 0 : i32
    %c0_i32_1 = arith.constant 0 : i32
    return %c0_i32, %c0_i32_0 : i32, i32
  }
  func.func @transform_3(%arg0: i32) -> (i32, i32, i32) {
    %c0_i32 = arith.constant 0 : i32
    %c0_i32_0 = arith.constant 0 : i32
    %c0_i32_1 = arith.constant 0 : i32
    %c0_i32_2 = arith.constant 0 : i32
    return %c0_i32, %c0_i32_0, %c0_i32_1 : i32, i32, i32
  }
  func.func @transform_4(%arg0: i32) -> (i32, i32, i32) {
    %c0_i32 = arith.constant 0 : i32
    %c0_i32_0 = arith.constant 0 : i32
    %c0_i32_1 = arith.constant 0 : i32
    %c0_i32_2 = arith.constant 0 : i32
    return %c0_i32, %c0_i32_0, %c0_i32_1 : i32, i32, i32
  }
  func.func @transform_5(%arg0: i32) -> (i32, i32, i32, i32, i32) {
    %c0_i32 = arith.constant 0 : i32
    %c0_i32_0 = arith.constant 0 : i32
    %c0_i32_1 = arith.constant 0 : i32
    %c0_i32_2 = arith.constant 0 : i32
    %c0_i32_3 = arith.constant 0 : i32
    return %arg0, %c0_i32, %c0_i32_0, %c0_i32_1, %c0_i32_2 : i32, i32, i32, i32, i32
  }
  func.func @transform_6(%arg0: i32) -> (i32, i32, i32, i32) {
    %c0_i32 = arith.constant 0 : i32
    %c0_i32_0 = arith.constant 0 : i32
    %c0_i32_1 = arith.constant 0 : i32
    %c0_i32_2 = arith.constant 0 : i32
    return %arg0, %c0_i32, %c0_i32_0, %c0_i32_1 : i32, i32, i32, i32
  }
  func.func @transform_7(%arg0: i32) -> (i32, i32, i32) {
    %c0_i32 = arith.constant 0 : i32
    %c0_i32_0 = arith.constant 0 : i32
    %c0_i32_1 = arith.constant 0 : i32
    return %arg0, %c0_i32, %c0_i32_0 : i32, i32, i32
  }
}

</mosaic_0001>

<bundles_post_ra>
// kernel: lvc_block_forward.2
= control target key start
LH: loop header
LB: loop body
LE: loop exit
PB: predicated region body
PF: predicated region fallthrough
CT: control target
= control target key end

     0   :  { %s5788_s24 = smov 0   ;;  %s8171_s0 = inlined_call_operand.vmem [shape: f32[2,16,4], index: 0, kind: input, shape index: {}]   ;;  %s8172_s1 = inlined_call_operand.vmem [shape: f32[16,80], index: 1, kind: input, shape index: {}]   ;;  %s8173_s2 = inlined_call_operand.vmem [shape: f32[16,1], index: 2, kind: input, shape index: {}]   ;;  %s8174_s3 = inlined_call_operand.vmem [shape: f32[6,16,48], index: 3, kind: input, shape index: {}]   ;;  %s8175_s4 = inlined_call_operand.vmem [shape: f32[6,16,1], index: 4, kind: input, shape index: {}]   ;;  %s8176_s5 = inlined_call_operand.vmem [shape: f32[1600,48], index: 5, kind: input, shape index: {}]   ;;  %s8177_s6 = inlined_call_operand.vmem [shape: f32[1600,1], index: 6, kind: input, shape index: {}]   ;;  %s8178_s7 = inlined_call_operand.vmem [shape: f32[2,1600,4], index: 7, kind: output, shape index: {}]  }
   0x1 LB: > { %s4767_s25 = sadd.s32 4294967295, %s5739_s24   ;;  %p4771_p0 = scmp.ge.s32.totalorder %s5739_s24, 1  ;;  %s5739_s24 = sphi %s5788_s24, %s17_s24  }
   0x2   : > { %p237_p1 = scmp.lt.s32.totalorder %s5739_s24, 3 }
   0x4   : > { %p238_p2 = pnand %p4771_p0, %p237_p1 }
   0x6   : > { %241 = sbr.rel (%p238_p2) target bundleno = 3900 (0xf3c), region = 48 }
   0xb   : > { %p269_p3 = scmp.lt.s32.totalorder %s4767_s25, 1  ;;  %vm279_vm0 = vcmask 64512   ;;  %v5741_v0 = vmov 0.0   ;;  %s5742_s30 = smov 2   ;;  %vm296_vm1 = vcmask 48144   ;;  %vm301_vm2 = vcmask 31744  }
   0xc   : > { %281 = vst.msk [vmem:[#allocation2 + $0x8] sm:$0xff] %vm279_vm0, %v5741_v0  ;;  %280 = vst.msk [vmem:[#allocation2] sm:$0xff] %vm279_vm0, %v5741_v0  ;;  %s5743_s8 = smov 124   ;;  %s5744_s9 = smov 125   ;;  %v284_v7 = vld [vmem:[%s8172_s1] sm:$0xff]  ;;  %vm372_vm3 = vcmask 654336  }
   0xd   : > { %s8280_s25 = smov (!%p269_p3, %s4767_s25), 1  ;;  %s5745_s10 = smov 126   ;;  %5298 = vmatprep.mubr.msk.f32.mxu0 %vm372_vm3, %v284_v7  ;;  %v287_v8 = vld [vmem:[%s8173_s2 + $0x8] sm:$0xff]  ;;  %v286_v9 = vld [vmem:[%s8173_s2] sm:$0xff]  ;;  %v5747_v10 = vmov 0   ;;  %vm526_vm6 = vcmask 392192  }
   0xe   : > { %s5011_s26 = sshll.u32 %s8280_s25, 4  ;;  %s5746_s11 = smov 127   ;;  %5731 = vset.pattern.permute.xlu0 %v5747_v10  ;;  %5732 = vset.pattern.permute.xlu1 %v5747_v10  ;;  %v285_v29 = vld [vmem:[%s8172_s1 + $0x8] sm:$0xff]  ;;  %v460_v44 = vld [vmem:[%s8174_s3] sm:$0xff]  ;;  %v4779_v10 = vld [vmem:[%s8174_s3 + $0x10] sm:$0xff] }
   0xf   : > { %s273_s29 = scalar_lea.vmem %s8171_s0, %s5011_s26  ;;  %5313 = vmatprep.mubr.msk.f32.mxu1 %vm526_vm6, %v460_v44  ;;  %v463_v45 = vld [vmem:[%s8175_s4 + $0x8] sm:$0xff]  ;;  %v462_v46 = vld [vmem:[%s8175_s4] sm:$0xff]  ;;  %s5715_s15 = smul.u32 1600, %s8280_s25 }
  0x10   : > { %v283_v1 = vld [vmem:[%s273_s29 + $0x8] sm:$0xff]  ;;  %v282_v2 = vld [vmem:[%s273_s29] sm:$0xff] }
  0x11   : > { %292 = vrot.lane.b32.xlu0 %v283_v1, %s5742_s30  ;;  %v461_v59 = vld [vmem:[%s8174_s3 + $0x8] sm:$0xff]  ;;  %v4787_v44 = vld [vmem:[%s8175_s4 + $0x20] sm:$0xff] }
  0x15   : > { %290 = vrot.lane.b32.xlu0 %v282_v2, %s5742_s30 }
  0x83   : > { %v293_v3 = vpop.permute.xlu0 %292 }
  0x84   : > { %298 = vst.msk [vmem:[#allocation2 + $0x8] sm:$0xff] %vm296_vm1, %v293_v3 }
  0x87   : > { %v291_v4 = vpop.permute.xlu0 %290 }
  0x88   : > { %297 = vst.msk [vmem:[#allocation2] sm:$0xff] %vm296_vm1, %v291_v4 }
  0x8b   : > { %v300_v5 = vld [vmem:[#allocation2 + $0x8] sm:$0xff] }
  0x8c   : > { %346 = vrot.lane.b32.xlu1 %v300_v5, %s5743_s8  ;;  %334 = vrot.lane.b32.xlu0 %v300_v5, %s5744_s9  ;;  %303 = vst.msk [vmem:[#allocation3 + $0x8] sm:$0xff] %vm301_vm2, %v300_v5 }
  0x8f   : > { %v299_v6 = vld [vmem:[#allocation2] sm:$0xff] }
  0x90   : > { %322 = vrot.lane.b32.xlu0 %v300_v5, %s5745_s10  ;;  %344 = vrot.lane.b32.xlu1 %v299_v6, %s5743_s8  ;;  %302 = vst.msk [vmem:[#allocation3] sm:$0xff] %vm301_vm2, %v299_v6 }
  0x93   : > { %v353_v27 = vld [vmem:[#allocation3 + $0x8] sm:$0xff] }
  0x94   : > { %310 = vrot.lane.b32.xlu0 %v300_v5, %s5746_s11  ;;  %332 = vrot.lane.b32.xlu1 %v299_v6, %s5744_s9 }
  0x97   : > { %v352_v28 = vld [vmem:[#allocation3] sm:$0xff] }
  0x98   : > { %320 = vrot.lane.b32.xlu1 %v299_v6, %s5745_s10  ;;  %369 = vperm.xlu0 %5731, %v287_v8  }
  0x9c   : > { %308 = vrot.lane.b32.xlu1 %v299_v6, %s5746_s11 }
  0xa0   : > { %364 = vperm.xlu1 %5732, %v286_v9  }
  0xfe   : > { %v347_v11 = vpop.permute.xlu1 %346  ;;  %v335_v12 = vpop.permute.xlu0 %334 }
  0xff   : > { %351 = vst.msk [vmem:[#allocation3 + $0x48] sm:$0xff] %vm301_vm2, %v347_v11  ;;  %339 = vst.msk [vmem:[#allocation3 + $0x38] sm:$0xff] %vm301_vm2, %v335_v12  ;;  %v4782_v11 = vld [vmem:[%s8175_s4 + $0x18] sm:$0xff]  ;;  %v4781_v12 = vld [vmem:[%s8175_s4 + $0x10] sm:$0xff] }
 0x102   : > { %v345_v13 = vpop.permute.xlu1 %344  ;;  %v323_v14 = vpop.permute.xlu0 %322 }
 0x103   : > { %350 = vst.msk [vmem:[#allocation3 + $0x40] sm:$0xff] %vm301_vm2, %v345_v13  ;;  %327 = vst.msk [vmem:[#allocation3 + $0x28] sm:$0xff] %vm301_vm2, %v323_v14 }
 0x106   : > { %v333_v15 = vpop.permute.xlu1 %332  ;;  %v311_v16 = vpop.permute.xlu0 %310  ;;  %v361_v17 = vld [vmem:[#allocation3 + $0x48] sm:$0xff]  ;;  %v359_v20 = vld [vmem:[#allocation3 + $0x38] sm:$0xff] }
 0x107   : > { %338 = vst.msk [vmem:[#allocation3 + $0x30] sm:$0xff] %vm301_vm2, %v333_v15  ;;  %315 = vst.msk [vmem:[#allocation3 + $0x18] sm:$0xff] %vm301_vm2, %v311_v16  ;;  %5278 = vmatprep.subr.mxu0 %v361_v17 }
 0x108   : > { %5279 = vmatpush3.msra.mxu0 %v361_v17 }
 0x10a   : > { %v321_v18 = vpop.permute.xlu1 %320  ;;  %v360_v19 = vld [vmem:[#allocation3 + $0x40] sm:$0xff]  ;;  %v357_v23 = vld [vmem:[#allocation3 + $0x28] sm:$0xff] }
 0x10b   : > { %326 = vst.msk [vmem:[#allocation3 + $0x20] sm:$0xff] %vm301_vm2, %v321_v18  ;;  %5280 = vmatprep.subr.mxu0 %v360_v19 }
 0x10c   : > { %5281 = vmatpush3.msra.mxu0 %v360_v19 }
 0x10d   : > { %5282 = vmatprep.subr.mxu0 %v359_v20 }
 0x10e   : > { %v309_v21 = vpop.permute.xlu1 %308  ;;  %5283 = vmatpush3.msra.mxu0 %v359_v20  ;;  %v358_v22 = vld [vmem:[#allocation3 + $0x30] sm:$0xff]  ;;  %v355_v25 = vld [vmem:[#allocation3 + $0x18] sm:$0xff] }
 0x10f   : > { %314 = vst.msk [vmem:[#allocation3 + $0x10] sm:$0xff] %vm301_vm2, %v309_v21  ;;  %5284 = vmatprep.subr.mxu0 %v358_v22 }
 0x110   : > { %5285 = vmatpush3.msra.mxu0 %v358_v22 }
 0x111   : > { %5286 = vmatprep.subr.mxu0 %v357_v23 }
 0x112   : > { %5287 = vmatpush3.msra.mxu0 %v357_v23  ;;  %v356_v24 = vld [vmem:[#allocation3 + $0x20] sm:$0xff] }
 0x113   : > { %5288 = vmatprep.subr.mxu0 %v356_v24  ;;  %v370_v30 = vpop.permute.xlu0 %369 }
 0x114   : > { %5289 = vmatpush3.msra.mxu0 %v356_v24 }
 0x115   : > { %5290 = vmatprep.subr.mxu0 %v355_v25 }
 0x116   : > { %5291 = vmatpush3.msra.mxu0 %v355_v25  ;;  %v354_v26 = vld [vmem:[#allocation3 + $0x10] sm:$0xff]  ;;  %v4780_v25 = vld [vmem:[%s8174_s3 + $0x18] sm:$0xff] }
 0x117   : > { %5292 = vmatprep.subr.mxu0 %v354_v26 }
 0x118   : > { %5293 = vmatpush3.msra.mxu0 %v354_v26 }
 0x119   : > { %5294 = vmatprep.subr.mxu0 %v353_v27 }
 0x11a   : > { %5295 = vmatpush3.msra.mxu0 %v353_v27 }
 0x11b   : > { %5296 = vmatprep.subr.mxu0 %v352_v28  ;;  %v365_v32 = vpop.permute.xlu1 %364 }
 0x11c   : > { %5297 = vmatpush3.msra.mxu0 %v352_v28 }
 0x11d   : > { %5299 = vmatmul.mubr.msk.f32.vlgmr.msra.gmra.mxu0 %vm372_vm3, %v285_v29 }
 0x1dd   : > { %v5300_v31 = vpop.f32.mrf.mxu0 }
 0x1de   : > { %v451_v33 = vadd.f32 %v5300_v31, %v370_v30 }
 0x1df   : > { %v445_v34 = vpop.f32.mrf.mxu0 }
 0x1e0   : > { %v446_v35 = vadd.f32 %v445_v34, %v365_v32  ;;  %vm455_vm4 = vcmp.ge.f32.partialorder %v451_v33, 0.0  ;;  %v457_v36 = vmul.f32 0.2, %v451_v33 }
 0x1e2   : > { %v456_v37 = vmul.f32 0.2, %v446_v35  ;;  %v5836_v38 = vsel %vm455_vm4, %v451_v33, %v457_v36  ;;  %vm454_vm5 = vcmp.ge.f32.partialorder %v446_v35, 0.0 }
 0x1e3   : > { %468 = vrot.lane.b32.xlu1 %v5836_v38, %s5742_s30 }
 0x1e4   : > { %v5840_v39 = vsel %vm454_vm5, %v446_v35, %v456_v37 }
 0x1e5   : > { %466 = vrot.lane.b32.xlu0 %v5840_v39, %s5742_s30 }
 0x255   : > { %v469_v40 = vpop.permute.xlu1 %468 }
 0x256   : > { %473 = vst.msk [vmem:[#allocation2 + $0x8] sm:$0xff] %vm296_vm1, %v469_v40 }
 0x257   : > { %v467_v41 = vpop.permute.xlu0 %466 }
 0x258   : > { %472 = vst.msk [vmem:[#allocation2] sm:$0xff] %vm296_vm1, %v467_v41 }
 0x25d   : > { %v499_v42 = vld [vmem:[#allocation2 + $0x8] sm:$0xff] }
 0x25e   : > { %504 = vrot.lane.b32.xlu1 %v499_v42, %s5744_s9 }
 0x25f   : > { %v498_v43 = vld [vmem:[#allocation2] sm:$0xff] }
 0x260   : > { %502 = vrot.lane.b32.xlu0 %v498_v43, %s5744_s9 }
 0x262   : > { %492 = vrot.lane.b32.xlu1 %v499_v42, %s5745_s10 }
 0x264   : > { %490 = vrot.lane.b32.xlu0 %v498_v43, %s5745_s10 }
 0x266   : > { %480 = vrot.lane.b32.xlu1 %v499_v42, %s5746_s11 }
 0x268   : > { %478 = vrot.lane.b32.xlu0 %v498_v43, %s5746_s11  ;;  %v4788_v43 = vld [vmem:[%s8175_s4 + $0x28] sm:$0xff] }
 0x26a   : > { %523 = vperm.xlu1 %5732, %v463_v45  }
 0x26c   : > { %518 = vperm.xlu0 %5731, %v462_v46  }
 0x2d0   : > { %v505_v47 = vpop.permute.xlu1 %504 }
 0x2d1   : > { %509 = vst.msk [vmem:[#allocation3 + $0x28] sm:$0xff] %vm301_vm2, %v505_v47 }
 0x2d2   : > { %v503_v48 = vpop.permute.xlu0 %502 }
 0x2d3   : > { %508 = vst.msk [vmem:[#allocation3 + $0x20] sm:$0xff] %vm301_vm2, %v503_v48 }
 0x2d4   : > { %v493_v49 = vpop.permute.xlu1 %492 }
 0x2d5   : > { %497 = vst.msk [vmem:[#allocation3 + $0x18] sm:$0xff] %vm301_vm2, %v493_v49 }
 0x2d6   : > { %v491_v50 = vpop.permute.xlu0 %490 }
 0x2d7   : > { %496 = vst.msk [vmem:[#allocation3 + $0x10] sm:$0xff] %vm301_vm2, %v491_v50 }
 0x2d8   : > { %v481_v51 = vpop.permute.xlu1 %480  ;;  %v515_v52 = vld [vmem:[#allocation3 + $0x28] sm:$0xff] }
 0x2d9   : > { %485 = vst.msk [vmem:[#allocation3 + $0x8] sm:$0xff] %vm301_vm2, %v481_v51  ;;  %5301 = vmatprep.subr.mxu1 %v515_v52 }
 0x2da   : > { %5302 = vmatpush3.msra.mxu1 %v515_v52  ;;  %v479_v53 = vpop.permute.xlu0 %478  ;;  %v514_v54 = vld [vmem:[#allocation3 + $0x20] sm:$0xff] }
 0x2db   : > { %484 = vst.msk [vmem:[#allocation3] sm:$0xff] %vm301_vm2, %v479_v53  ;;  %5303 = vmatprep.subr.mxu1 %v514_v54 }
 0x2dc   : > { %5304 = vmatpush3.msra.mxu1 %v514_v54  ;;  %v513_v55 = vld [vmem:[#allocation3 + $0x18] sm:$0xff] }
 0x2dd   : > { %5305 = vmatprep.subr.mxu1 %v513_v55 }
 0x2de   : > { %5306 = vmatpush3.msra.mxu1 %v513_v55  ;;  %v512_v56 = vld [vmem:[#allocation3 + $0x10] sm:$0xff] }
 0x2df   : > { %5307 = vmatprep.subr.mxu1 %v512_v56 }
 0x2e0   : > { %5308 = vmatpush3.msra.mxu1 %v512_v56  ;;  %v511_v57 = vld [vmem:[#allocation3 + $0x8] sm:$0xff] }
 0x2e1   : > { %5309 = vmatprep.subr.mxu1 %v511_v57 }
 0x2e2   : > { %5310 = vmatpush3.msra.mxu1 %v511_v57  ;;  %v510_v58 = vld [vmem:[#allocation3] sm:$0xff]  ;;  %v4786_v57 = vld [vmem:[%s8174_s3 + $0x28] sm:$0xff] }
 0x2e3   : > { %5311 = vmatprep.subr.mxu1 %v510_v58 }
 0x2e4   : > { %5312 = vmatpush3.msra.mxu1 %v510_v58 }
 0x2e5   : > { %5314 = vmatmul.mubr.msk.f32.vlgmr.msra.gmra.mxu1 %vm526_vm6, %v461_v59  ;;  %v524_v60 = vpop.permute.xlu1 %523 }
 0x2e6   : > { %5328 = vmatprep.mubr.msk.f32.mxu1 %vm526_vm6, %v4779_v10  ;;  %v4793_v10 = vld [vmem:[%s8175_s4 + $0x30] sm:$0xff] }
 0x2e7   : > { %v519_v63 = vpop.permute.xlu0 %518 }
 0x3a5   : > { %v5315_v61 = vpop.f32.mrf.mxu1 }
 0x3a6   : > { %v605_v62 = vadd.f32 %v5315_v61, %v524_v60 }
 0x3a7   : > { %v599_v0 = vpop.f32.mrf.mxu1 }
 0x3a8   : > { %v611_v1 = vmul.f32 0.2, %v605_v62  ;;  %v600_v2 = vadd.f32 %v599_v0, %v519_v63  ;;  %vm609_vm7 = vcmp.ge.f32.partialorder %v605_v62, 0.0 }
 0x3aa   : > { %v610_v3 = vmul.f32 0.2, %v600_v2  ;;  %v613_v4 = vsel %vm609_vm7, %v605_v62, %v611_v1  ;;  %vm608_vm8 = vcmp.ge.f32.partialorder %v600_v2, 0.0 }
 0x3ab   : > { %624 = vrot.lane.b32.xlu1 %v613_v4, %s5742_s30 }
 0x3ac   : > { %v612_v5 = vsel %vm608_vm8, %v600_v2, %v610_v3 }
 0x3ad   : > { %622 = vrot.lane.b32.xlu0 %v612_v5, %s5742_s30 }
 0x41d   : > { %v625_v6 = vpop.permute.xlu1 %624 }
 0x41e   : > { %629 = vst.msk [vmem:[#allocation2 + $0x8] sm:$0xff] %vm296_vm1, %v625_v6 }
 0x41f   : > { %v623_v7 = vpop.permute.xlu0 %622 }
 0x420   : > { %628 = vst.msk [vmem:[#allocation2] sm:$0xff] %vm296_vm1, %v623_v7 }
 0x425   : > { %v655_v8 = vld [vmem:[#allocation2 + $0x8] sm:$0xff] }
 0x426   : > { %660 = vrot.lane.b32.xlu1 %v655_v8, %s5744_s9 }
 0x427   : > { %v654_v9 = vld [vmem:[#allocation2] sm:$0xff] }
 0x428   : > { %658 = vrot.lane.b32.xlu0 %v654_v9, %s5744_s9 }
 0x42a   : > { %648 = vrot.lane.b32.xlu1 %v655_v8, %s5745_s10 }
 0x42c   : > { %646 = vrot.lane.b32.xlu0 %v654_v9, %s5745_s10 }
 0x42e   : > { %636 = vrot.lane.b32.xlu1 %v655_v8, %s5746_s11  ;;  %v4791_v8 = vld [vmem:[%s8174_s3 + $0x30] sm:$0xff] }
 0x430   : > { %634 = vrot.lane.b32.xlu0 %v654_v9, %s5746_s11  ;;  %v4794_v9 = vld [vmem:[%s8175_s4 + $0x38] sm:$0xff] }
 0x432   : > { %679 = vperm.xlu1 %5732, %v4782_v11  }
 0x434   : > { %674 = vperm.xlu0 %5731, %v4781_v12  }
 0x498   : > { %v661_v13 = vpop.permute.xlu1 %660 }
 0x499   : > { %665 = vst.msk [vmem:[#allocation3 + $0x28] sm:$0xff] %vm301_vm2, %v661_v13 }
 0x49a   : > { %v659_v14 = vpop.permute.xlu0 %658 }
 0x49b   : > { %664 = vst.msk [vmem:[#allocation3 + $0x20] sm:$0xff] %vm301_vm2, %v659_v14 }
 0x49c   : > { %v649_v15 = vpop.permute.xlu1 %648 }
 0x49d   : > { %653 = vst.msk [vmem:[#allocation3 + $0x18] sm:$0xff] %vm301_vm2, %v649_v15 }
 0x49e   : > { %v647_v16 = vpop.permute.xlu0 %646 }
 0x49f   : > { %652 = vst.msk [vmem:[#allocation3 + $0x10] sm:$0xff] %vm301_vm2, %v647_v16 }
 0x4a0   : > { %v637_v17 = vpop.permute.xlu1 %636  ;;  %v671_v18 = vld [vmem:[#allocation3 + $0x28] sm:$0xff] }
 0x4a1   : > { %641 = vst.msk [vmem:[#allocation3 + $0x8] sm:$0xff] %vm301_vm2, %v637_v17  ;;  %5316 = vmatprep.subr.mxu1 %v671_v18 }
 0x4a2   : > { %5317 = vmatpush3.msra.mxu1 %v671_v18  ;;  %v635_v19 = vpop.permute.xlu0 %634  ;;  %v670_v20 = vld [vmem:[#allocation3 + $0x20] sm:$0xff] }
 0x4a3   : > { %640 = vst.msk [vmem:[#allocation3] sm:$0xff] %vm301_vm2, %v635_v19  ;;  %5318 = vmatprep.subr.mxu1 %v670_v20 }
 0x4a4   : > { %5319 = vmatpush3.msra.mxu1 %v670_v20  ;;  %v669_v21 = vld [vmem:[#allocation3 + $0x18] sm:$0xff] }
 0x4a5   : > { %5320 = vmatprep.subr.mxu1 %v669_v21 }
 0x4a6   : > { %5321 = vmatpush3.msra.mxu1 %v669_v21  ;;  %v668_v22 = vld [vmem:[#allocation3 + $0x10] sm:$0xff] }
 0x4a7   : > { %5322 = vmatprep.subr.mxu1 %v668_v22 }
 0x4a8   : > { %5323 = vmatpush3.msra.mxu1 %v668_v22  ;;  %v667_v23 = vld [vmem:[#allocation3 + $0x8] sm:$0xff] }
 0x4a9   : > { %5324 = vmatprep.subr.mxu1 %v667_v23 }
 0x4aa   : > { %5325 = vmatpush3.msra.mxu1 %v667_v23  ;;  %v666_v24 = vld [vmem:[#allocation3] sm:$0xff]  ;;  %v4792_v23 = vld [vmem:[%s8174_s3 + $0x38] sm:$0xff] }
 0x4ab   : > { %5326 = vmatprep.subr.mxu1 %v666_v24 }
 0x4ac   : > { %5327 = vmatpush3.msra.mxu1 %v666_v24 }
 0x4ad   : > { %5329 = vmatmul.mubr.msk.f32.vlgmr.msra.gmra.mxu1 %vm526_vm6, %v4780_v25  ;;  %v680_v26 = vpop.permute.xlu1 %679 }
 0x4ae   : > { %5358 = vmatprep.mubr.msk.f32.mxu1 %vm526_vm6, %v4791_v8  ;;  %v4803_v8 = vld [vmem:[%s8174_s3 + $0x50] sm:$0xff] }
 0x4af   : > { %v675_v29 = vpop.permute.xlu0 %674 }
 0x56d   : > { %v5330_v27 = vpop.f32.mrf.mxu1 }
 0x56e   : > { %v760_v28 = vadd.f32 %v5330_v27, %v680_v26 }
 0x56f   : > { %v754_v30 = vpop.f32.mrf.mxu1 }
 0x570   : > { %vm764_vm9 = vcmp.ge.f32.partialorder %v760_v28, 0.0  ;;  %v766_v31 = vmul.f32 0.2, %v760_v28  ;;  %v755_v32 = vadd.f32 %v754_v30, %v675_v29 }
 0x572   : > { %vm763_vm10 = vcmp.ge.f32.partialorder %v755_v32, 0.0  ;;  %v765_v33 = vmul.f32 0.2, %v755_v32  ;;  %v768_v34 = vsel %vm764_vm9, %v760_v28, %v766_v31 }
 0x573   : > { %v5903_v35 = vadd.f32 %v768_v34, %v5836_v38 }
 0x574   : > { %v767_v36 = vsel %vm763_vm10, %v755_v32, %v765_v33 }
 0x575   : > { %781 = vrot.lane.b32.xlu1 %v5903_v35, %s5742_s30  ;;  %v5908_v37 = vadd.f32 %v767_v36, %v5840_v39  ;;  %v4785_v39 = vld [vmem:[%s8174_s3 + $0x20] sm:$0xff] }
 0x576   : > { %5343 = vmatprep.mubr.msk.f32.mxu0 %vm526_vm6, %v4785_v39  ;;  %v4799_v39 = vld [vmem:[%s8175_s4 + $0x40] sm:$0xff] }
 0x577   : > { %779 = vrot.lane.b32.xlu0 %v5908_v37, %s5742_s30 }
 0x5e7   : > { %v782_v40 = vpop.permute.xlu1 %781 }
 0x5e8   : > { %786 = vst.msk [vmem:[#allocation2 + $0x8] sm:$0xff] %vm296_vm1, %v782_v40 }
 0x5e9   : > { %v780_v41 = vpop.permute.xlu0 %779 }
 0x5ea   : > { %785 = vst.msk [vmem:[#allocation2] sm:$0xff] %vm296_vm1, %v780_v41 }
 0x5ef   : > { %v812_v42 = vld [vmem:[#allocation2 + $0x8] sm:$0xff] }
 0x5f0   : > { %817 = vrot.lane.b32.xlu1 %v812_v42, %s5744_s9 }
 0x5f1   : > { %v811_v38 = vld [vmem:[#allocation2] sm:$0xff] }
 0x5f2   : > { %815 = vrot.lane.b32.xlu0 %v811_v38, %s5744_s9 }
 0x5f4   : > { %805 = vrot.lane.b32.xlu1 %v812_v42, %s5745_s10 }
 0x5f6   : > { %803 = vrot.lane.b32.xlu0 %v811_v38, %s5745_s10 }
 0x5f8   : > { %793 = vrot.lane.b32.xlu1 %v812_v42, %s5746_s11 }
 0x5fa   : > { %791 = vrot.lane.b32.xlu0 %v811_v38, %s5746_s11  ;;  %v4800_v38 = vld [vmem:[%s8175_s4 + $0x48] sm:$0xff] }
 0x5fc   : > { %836 = vperm.xlu1 %5732, %v4788_v43  }
 0x5fe   : > { %831 = vperm.xlu0 %5731, %v4787_v44  }
 0x662   : > { %v818_v45 = vpop.permute.xlu1 %817 }
 0x663   : > { %822 = vst.msk [vmem:[#allocation3 + $0x28] sm:$0xff] %vm301_vm2, %v818_v45 }
 0x664   : > { %v816_v46 = vpop.permute.xlu0 %815 }
 0x665   : > { %821 = vst.msk [vmem:[#allocation3 + $0x20] sm:$0xff] %vm301_vm2, %v816_v46 }
 0x666   : > { %v806_v47 = vpop.permute.xlu1 %805 }
 0x667   : > { %810 = vst.msk [vmem:[#allocation3 + $0x18] sm:$0xff] %vm301_vm2, %v806_v47 }
 0x668   : > { %v804_v48 = vpop.permute.xlu0 %803 }
 0x669   : > { %809 = vst.msk [vmem:[#allocation3 + $0x10] sm:$0xff] %vm301_vm2, %v804_v48 }
 0x66a   : > { %v794_v49 = vpop.permute.xlu1 %793  ;;  %v828_v50 = vld [vmem:[#allocation3 + $0x28] sm:$0xff] }
 0x66b   : > { %798 = vst.msk [vmem:[#allocation3 + $0x8] sm:$0xff] %vm301_vm2, %v794_v49  ;;  %5331 = vmatprep.subr.mxu0 %v828_v50 }
 0x66c   : > { %5332 = vmatpush3.msra.mxu0 %v828_v50  ;;  %v792_v51 = vpop.permute.xlu0 %791  ;;  %v827_v52 = vld [vmem:[#allocation3 + $0x20] sm:$0xff] }
 0x66d   : > { %797 = vst.msk [vmem:[#allocation3] sm:$0xff] %vm301_vm2, %v792_v51  ;;  %5333 = vmatprep.subr.mxu0 %v827_v52 }
 0x66e   : > { %5334 = vmatpush3.msra.mxu0 %v827_v52  ;;  %v826_v53 = vld [vmem:[#allocation3 + $0x18] sm:$0xff] }
 0x66f   : > { %5335 = vmatprep.subr.mxu0 %v826_v53 }
 0x670   : > { %5336 = vmatpush3.msra.mxu0 %v826_v53  ;;  %v825_v54 = vld [vmem:[#allocation3 + $0x10] sm:$0xff] }
 0x671   : > { %5337 = vmatprep.subr.mxu0 %v825_v54 }
 0x672   : > { %5338 = vmatpush3.msra.mxu0 %v825_v54  ;;  %v824_v55 = vld [vmem:[#allocation3 + $0x8] sm:$0xff] }
 0x673   : > { %5339 = vmatprep.subr.mxu0 %v824_v55 }
 0x674   : > { %5340 = vmatpush3.msra.mxu0 %v824_v55  ;;  %v823_v56 = vld [vmem:[#allocation3] sm:$0xff]  ;;  %v4798_v55 = vld [vmem:[%s8174_s3 + $0x48] sm:$0xff] }
 0x675   : > { %5341 = vmatprep.subr.mxu0 %v823_v56 }
 0x676   : > { %5342 = vmatpush3.msra.mxu0 %v823_v56 }
 0x677   : > { %5344 = vmatmul.mubr.msk.f32.vlgmr.msra.gmra.mxu0 %vm526_vm6, %v4786_v57  ;;  %v837_v58 = vpop.permute.xlu1 %836 }
 0x679   : > { %v832_v61 = vpop.permute.xlu0 %831 }
 0x737   : > { %v5345_v59 = vpop.f32.mrf.mxu0 }
 0x738   : > { %v917_v60 = vadd.f32 %v5345_v59, %v837_v58 }
 0x739   : > { %v911_v62 = vpop.f32.mrf.mxu0 }
 0x73a   : > { %v923_v63 = vmul.f32 0.2, %v917_v60  ;;  %v912_v0 = vadd.f32 %v911_v62, %v832_v61  ;;  %vm921_vm11 = vcmp.ge.f32.partialorder %v917_v60, 0.0 }
 0x73c   : > { %v922_v1 = vmul.f32 0.2, %v912_v0  ;;  %v925_v2 = vsel %vm921_vm11, %v917_v60, %v923_v63  ;;  %vm920_vm12 = vcmp.ge.f32.partialorder %v912_v0, 0.0 }
 0x73d   : > { %936 = vrot.lane.b32.xlu1 %v925_v2, %s5742_s30 }
 0x73e   : > { %v924_v3 = vsel %vm920_vm12, %v912_v0, %v922_v1 }
 0x73f   : > { %934 = vrot.lane.b32.xlu0 %v924_v3, %s5742_s30 }
 0x7af   : > { %v937_v4 = vpop.permute.xlu1 %936 }
 0x7b0   : > { %941 = vst.msk [vmem:[#allocation2 + $0x8] sm:$0xff] %vm296_vm1, %v937_v4 }
 0x7b1   : > { %v935_v5 = vpop.permute.xlu0 %934 }
 0x7b2   : > { %940 = vst.msk [vmem:[#allocation2] sm:$0xff] %vm296_vm1, %v935_v5 }
 0x7b7   : > { %v967_v6 = vld [vmem:[#allocation2 + $0x8] sm:$0xff] }
 0x7b8   : > { %972 = vrot.lane.b32.xlu1 %v967_v6, %s5744_s9 }
 0x7b9   : > { %v966_v7 = vld [vmem:[#allocation2] sm:$0xff] }
 0x7ba   : > { %970 = vrot.lane.b32.xlu0 %v966_v7, %s5744_s9 }
 0x7bc   : > { %960 = vrot.lane.b32.xlu1 %v967_v6, %s5745_s10 }
 0x7be   : > { %958 = vrot.lane.b32.xlu0 %v966_v7, %s5745_s10 }
 0x7c0   : > { %948 = vrot.lane.b32.xlu1 %v967_v6, %s5746_s11  ;;  %v4806_v6 = vld [vmem:[%s8175_s4 + $0x58] sm:$0xff] }
 0x7c2   : > { %946 = vrot.lane.b32.xlu0 %v966_v7, %s5746_s11  ;;  %v4805_v7 = vld [vmem:[%s8175_s4 + $0x50] sm:$0xff] }
 0x7c4   : > { %991 = vperm.xlu1 %5732, %v4794_v9  }
 0x7c6   : > { %986 = vperm.xlu0 %5731, %v4793_v10  }
 0x82a   : > { %v973_v11 = vpop.permute.xlu1 %972 }
 0x82b   : > { %977 = vst.msk [vmem:[#allocation3 + $0x28] sm:$0xff] %vm301_vm2, %v973_v11 }
 0x82c   : > { %v971_v12 = vpop.permute.xlu0 %970 }
 0x82d   : > { %976 = vst.msk [vmem:[#allocation3 + $0x20] sm:$0xff] %vm301_vm2, %v971_v12 }
 0x82e   : > { %v961_v13 = vpop.permute.xlu1 %960 }
 0x82f   : > { %965 = vst.msk [vmem:[#allocation3 + $0x18] sm:$0xff] %vm301_vm2, %v961_v13 }
 0x830   : > { %v959_v14 = vpop.permute.xlu0 %958 }
 0x831   : > { %964 = vst.msk [vmem:[#allocation3 + $0x10] sm:$0xff] %vm301_vm2, %v959_v14 }
 0x832   : > { %v949_v15 = vpop.permute.xlu1 %948  ;;  %v983_v16 = vld [vmem:[#allocation3 + $0x28] sm:$0xff] }
 0x833   : > { %953 = vst.msk [vmem:[#allocation3 + $0x8] sm:$0xff] %vm301_vm2, %v949_v15  ;;  %5346 = vmatprep.subr.mxu1 %v983_v16 }
 0x834   : > { %5347 = vmatpush3.msra.mxu1 %v983_v16  ;;  %v947_v17 = vpop.permute.xlu0 %946  ;;  %v982_v18 = vld [vmem:[#allocation3 + $0x20] sm:$0xff] }
 0x835   : > { %952 = vst.msk [vmem:[#allocation3] sm:$0xff] %vm301_vm2, %v947_v17  ;;  %5348 = vmatprep.subr.mxu1 %v982_v18 }
 0x836   : > { %5349 = vmatpush3.msra.mxu1 %v982_v18  ;;  %v981_v19 = vld [vmem:[#allocation3 + $0x18] sm:$0xff] }
 0x837   : > { %5350 = vmatprep.subr.mxu1 %v981_v19 }
 0x838   : > { %5351 = vmatpush3.msra.mxu1 %v981_v19  ;;  %v980_v20 = vld [vmem:[#allocation3 + $0x10] sm:$0xff] }
 0x839   : > { %5352 = vmatprep.subr.mxu1 %v980_v20 }
 0x83a   : > { %5353 = vmatpush3.msra.mxu1 %v980_v20  ;;  %v979_v21 = vld [vmem:[#allocation3 + $0x8] sm:$0xff] }
 0x83b   : > { %5354 = vmatprep.subr.mxu1 %v979_v21 }
 0x83c   : > { %5355 = vmatpush3.msra.mxu1 %v979_v21  ;;  %v978_v22 = vld [vmem:[#allocation3] sm:$0xff]  ;;  %v4804_v21 = vld [vmem:[%s8174_s3 + $0x58] sm:$0xff] }
 0x83d   : > { %5356 = vmatprep.subr.mxu1 %v978_v22 }
 0x83e   : > { %5357 = vmatpush3.msra.mxu1 %v978_v22 }
 0x83f   : > { %5359 = vmatmul.mubr.msk.f32.vlgmr.msra.gmra.mxu1 %vm526_vm6, %v4792_v23  ;;  %v992_v24 = vpop.permute.xlu1 %991 }
 0x840   : > { %5388 = vmatprep.mubr.msk.f32.mxu1 %vm526_vm6, %v4803_v8  ;;  %v1628_v8 = vld [vmem:[%s8177_s6 + $0x108] sm:$0xff] }
 0x841   : > { %v987_v27 = vpop.permute.xlu0 %986 }
 0x8ff   : > { %v5360_v25 = vpop.f32.mrf.mxu1 }
 0x900   : > { %v1072_v26 = vadd.f32 %v5360_v25, %v992_v24 }
 0x901   : > { %v1066_v28 = vpop.f32.mrf.mxu1 }
 0x902   : > { %vm1076_vm13 = vcmp.ge.f32.partialorder %v1072_v26, 0.0  ;;  %v1078_v29 = vmul.f32 0.2, %v1072_v26  ;;  %v1067_v30 = vadd.f32 %v1066_v28, %v987_v27 }
 0x904   : > { %vm1075_vm14 = vcmp.ge.f32.partialorder %v1067_v30, 0.0  ;;  %v1077_v31 = vmul.f32 0.2, %v1067_v30  ;;  %v1080_v32 = vsel %vm1076_vm13, %v1072_v26, %v1078_v29 }
 0x905   : > { %v5971_v33 = vadd.f32 %v1080_v32, %v5903_v35 }
 0x906   : > { %v1079_v34 = vsel %vm1075_vm14, %v1067_v30, %v1077_v31 }
 0x907   : > { %1093 = vrot.lane.b32.xlu1 %v5971_v33, %s5742_s30  ;;  %v5976_v36 = vadd.f32 %v1079_v34, %v5908_v37  ;;  %v4797_v37 = vld [vmem:[%s8174_s3 + $0x40] sm:$0xff] }
 0x908   : > { %5373 = vmatprep.mubr.msk.f32.mxu0 %vm526_vm6, %v4797_v37  ;;  %v1598_v37 = vld [vmem:[%s8177_s6 + $0x18] sm:$0xff] }
 0x909   : > { %1091 = vrot.lane.b32.xlu0 %v5976_v36, %s5742_s30 }
 0x979   : > { %v1094_v40 = vpop.permute.xlu1 %1093 }
 0x97a   : > { %1098 = vst.msk [vmem:[#allocation2 + $0x8] sm:$0xff] %vm296_vm1, %v1094_v40 }
 0x97b   : > { %v1092_v41 = vpop.permute.xlu0 %1091 }
 0x97c   : > { %1097 = vst.msk [vmem:[#allocation2] sm:$0xff] %vm296_vm1, %v1092_v41 }
 0x981   : > { %v1124_v42 = vld [vmem:[#allocation2 + $0x8] sm:$0xff] }
 0x982   : > { %1129 = vrot.lane.b32.xlu1 %v1124_v42, %s5744_s9 }
 0x983   : > { %v1123_v35 = vld [vmem:[#allocation2] sm:$0xff] }
 0x984   : > { %1127 = vrot.lane.b32.xlu0 %v1123_v35, %s5744_s9 }
 0x986   : > { %1117 = vrot.lane.b32.xlu1 %v1124_v42, %s5745_s10 }
 0x988   : > { %1115 = vrot.lane.b32.xlu0 %v1123_v35, %s5745_s10 }
 0x98a   : > { %1105 = vrot.lane.b32.xlu1 %v1124_v42, %s5746_s11 }
 0x98c   : > { %1103 = vrot.lane.b32.xlu0 %v1123_v35, %s5746_s11 }
 0x98e   : > { %1148 = vperm.xlu1 %5732, %v4800_v38   ;;  %v1597_v38 = vld [vmem:[%s8177_s6 + $0x10] sm:$0xff] }
 0x990   : > { %1143 = vperm.xlu0 %5731, %v4799_v39   ;;  %v1395_v39 = vld [vmem:[%s8176_s5] sm:$0xff] }
 0x9f4   : > { %v1130_v43 = vpop.permute.xlu1 %1129 }
 0x9f5   : > { %1134 = vst.msk [vmem:[#allocation3 + $0x28] sm:$0xff] %vm301_vm2, %v1130_v43  ;;  %v1600_v43 = vld [vmem:[%s8177_s6 + $0x28] sm:$0xff] }
 0x9f6   : > { %v1128_v44 = vpop.permute.xlu0 %1127 }
 0x9f7   : > { %1133 = vst.msk [vmem:[#allocation3 + $0x20] sm:$0xff] %vm301_vm2, %v1128_v44  ;;  %v1497_v44 = vld [vmem:[%s8176_s5 + $0x330] sm:$0xff] }
 0x9f8   : > { %v1118_v45 = vpop.permute.xlu1 %1117 }
 0x9f9   : > { %1122 = vst.msk [vmem:[#allocation3 + $0x18] sm:$0xff] %vm301_vm2, %v1118_v45  ;;  %v1599_v45 = vld [vmem:[%s8177_s6 + $0x20] sm:$0xff] }
 0x9fa   : > { %v1116_v46 = vpop.permute.xlu0 %1115 }
 0x9fb   : > { %1121 = vst.msk [vmem:[#allocation3 + $0x10] sm:$0xff] %vm301_vm2, %v1116_v46  ;;  %v1602_v46 = vld [vmem:[%s8177_s6 + $0x38] sm:$0xff] }
 0x9fc   : > { %v1106_v47 = vpop.permute.xlu1 %1105  ;;  %v1140_v48 = vld [vmem:[#allocation3 + $0x28] sm:$0xff] }
 0x9fd   : > { %1110 = vst.msk [vmem:[#allocation3 + $0x8] sm:$0xff] %vm301_vm2, %v1106_v47  ;;  %5361 = vmatprep.subr.mxu0 %v1140_v48  ;;  %v1601_v47 = vld [vmem:[%s8177_s6 + $0x30] sm:$0xff] }
 0x9fe   : > { %5362 = vmatpush3.msra.mxu0 %v1140_v48  ;;  %v1104_v49 = vpop.permute.xlu0 %1103  ;;  %v1139_v50 = vld [vmem:[#allocation3 + $0x20] sm:$0xff]  ;;  %v1604_v48 = vld [vmem:[%s8177_s6 + $0x48] sm:$0xff] }
 0x9ff   : > { %1109 = vst.msk [vmem:[#allocation3] sm:$0xff] %vm301_vm2, %v1104_v49  ;;  %5363 = vmatprep.subr.mxu0 %v1139_v50  ;;  %v1603_v49 = vld [vmem:[%s8177_s6 + $0x40] sm:$0xff] }
 0xa00   : > { %5364 = vmatpush3.msra.mxu0 %v1139_v50  ;;  %v1138_v51 = vld [vmem:[#allocation3 + $0x18] sm:$0xff]  ;;  %v1606_v50 = vld [vmem:[%s8177_s6 + $0x58] sm:$0xff] }
 0xa01   : > { %5365 = vmatprep.subr.mxu0 %v1138_v51 }
 0xa02   : > { %5366 = vmatpush3.msra.mxu0 %v1138_v51  ;;  %v1137_v52 = vld [vmem:[#allocation3 + $0x10] sm:$0xff]  ;;  %v1605_v51 = vld [vmem:[%s8177_s6 + $0x50] sm:$0xff] }
 0xa03   : > { %5367 = vmatprep.subr.mxu0 %v1137_v52 }
 0xa04   : > { %5368 = vmatpush3.msra.mxu0 %v1137_v52  ;;  %v1136_v53 = vld [vmem:[#allocation3 + $0x8] sm:$0xff]  ;;  %v1608_v52 = vld [vmem:[%s8177_s6 + $0x68] sm:$0xff] }
 0xa05   : > { %5369 = vmatprep.subr.mxu0 %v1136_v53 }
 0xa06   : > { %5370 = vmatpush3.msra.mxu0 %v1136_v53  ;;  %v1135_v54 = vld [vmem:[#allocation3] sm:$0xff]  ;;  %v1607_v53 = vld [vmem:[%s8177_s6 + $0x60] sm:$0xff] }
 0xa07   : > { %5371 = vmatprep.subr.mxu0 %v1135_v54 }
 0xa08   : > { %5372 = vmatpush3.msra.mxu0 %v1135_v54  ;;  %v1610_v54 = vld [vmem:[%s8177_s6 + $0x78] sm:$0xff] }
 0xa09   : > { %5374 = vmatmul.mubr.msk.f32.vlgmr.msra.gmra.mxu0 %vm526_vm6, %v4798_v55  ;;  %v1149_v56 = vpop.permute.xlu1 %1148  ;;  %v1609_v55 = vld [vmem:[%s8177_s6 + $0x70] sm:$0xff] }
 0xa0a   : > { %5403 = vmatprep.mubr.msk.f32.mxu0 %vm526_vm6, %v1395_v39  ;;  %v1656_v39 = vld [vmem:[%s8177_s6 + $0x1e8] sm:$0xff] }
 0xa0b   : > { %v1144_v59 = vpop.permute.xlu0 %1143 }
 0xac9   : > { %v5375_v57 = vpop.f32.mrf.mxu0 }
 0xaca   : > { %v1229_v58 = vadd.f32 %v5375_v57, %v1149_v56  ;;  %v1612_v56 = vld [vmem:[%s8177_s6 + $0x88] sm:$0xff]  ;;  %v1611_v57 = vld [vmem:[%s8177_s6 + $0x80] sm:$0xff] }
 0xacb   : > { %v1223_v60 = vpop.f32.mrf.mxu0 }
 0xacc   : > { %v1235_v61 = vmul.f32 0.2, %v1229_v58  ;;  %v1224_v62 = vadd.f32 %v1223_v60, %v1144_v59  ;;  %vm1233_vm15 = vcmp.ge.f32.partialorder %v1229_v58, 0.0  ;;  %v1613_v59 = vld [vmem:[%s8177_s6 + $0x90] sm:$0xff]  ;;  %v1616_v60 = vld [vmem:[%s8177_s6 + $0xa8] sm:$0xff] }
 0xace   : > { %v1234_v63 = vmul.f32 0.2, %v1224_v62  ;;  %v1237_v0 = vsel %vm1233_vm15, %v1229_v58, %v1235_v61  ;;  %vm1232_vm0 = vcmp.ge.f32.partialorder %v1224_v62, 0.0  ;;  %v1614_v58 = vld [vmem:[%s8177_s6 + $0x98] sm:$0xff]  ;;  %v1615_v61 = vld [vmem:[%s8177_s6 + $0xa0] sm:$0xff] }
 0xacf   : > { %1248 = vrot.lane.b32.xlu1 %v1237_v0, %s5742_s30  ;;  %v1620_v0 = vld [vmem:[%s8177_s6 + $0xc8] sm:$0xff] }
 0xad0   : > { %v1236_v1 = vsel %vm1232_vm0, %v1224_v62, %v1234_v63  ;;  %v1618_v62 = vld [vmem:[%s8177_s6 + $0xb8] sm:$0xff]  ;;  %v1617_v63 = vld [vmem:[%s8177_s6 + $0xb0] sm:$0xff] }
 0xad1   : > { %1246 = vrot.lane.b32.xlu0 %v1236_v1, %s5742_s30  ;;  %v1619_v1 = vld [vmem:[%s8177_s6 + $0xc0] sm:$0xff] }
 0xb41   : > { %v1249_v2 = vpop.permute.xlu1 %1248 }
 0xb42   : > { %1253 = vst.msk [vmem:[#allocation2 + $0x8] sm:$0xff] %vm296_vm1, %v1249_v2  ;;  %v1622_v2 = vld [vmem:[%s8177_s6 + $0xd8] sm:$0xff] }
 0xb43   : > { %v1247_v3 = vpop.permute.xlu0 %1246 }
 0xb44   : > { %1252 = vst.msk [vmem:[#allocation2] sm:$0xff] %vm296_vm1, %v1247_v3  ;;  %v1621_v3 = vld [vmem:[%s8177_s6 + $0xd0] sm:$0xff] }
 0xb49   : > { %v1255_v4 = vld [vmem:[#allocation2 + $0x8] sm:$0xff] }
 0xb4a   : > { %1260 = vrot.lane.b32.xlu0 %v1255_v4, %s5746_s11 }
 0xb4b   : > { %v1254_v5 = vld [vmem:[#allocation2] sm:$0xff] }
 0xb4c   : > { %1258 = vrot.lane.b32.xlu1 %v1254_v5, %s5746_s11 }
 0xb4e   : > { %1272 = vrot.lane.b32.xlu0 %v1255_v4, %s5745_s10 }
 0xb50   : > { %1270 = vrot.lane.b32.xlu1 %v1254_v5, %s5745_s10 }
 0xb52   : > { %1284 = vrot.lane.b32.xlu0 %v1255_v4, %s5744_s9  ;;  %v1624_v4 = vld [vmem:[%s8177_s6 + $0xe8] sm:$0xff] }
 0xb54   : > { %1282 = vrot.lane.b32.xlu1 %v1254_v5, %s5744_s9  ;;  %v1623_v5 = vld [vmem:[%s8177_s6 + $0xe0] sm:$0xff] }
 0xb56   : > { %1303 = vperm.xlu0 %5731, %v4806_v6   ;;  %v1626_v6 = vld [vmem:[%s8177_s6 + $0xf8] sm:$0xff] }
 0xb58   : > { %1298 = vperm.xlu1 %5732, %v4805_v7   ;;  %v1625_v7 = vld [vmem:[%s8177_s6 + $0xf0] sm:$0xff] }
 0xbbc   : > { %v1261_v9 = vpop.permute.xlu0 %1260 }
 0xbbd   : > { %1265 = vst.msk [vmem:[#allocation3 + $0x8] sm:$0xff] %vm301_vm2, %v1261_v9  ;;  %v1627_v9 = vld [vmem:[%s8177_s6 + $0x100] sm:$0xff] }
 0xbbe   : > { %v1259_v10 = vpop.permute.xlu1 %1258 }
 0xbbf   : > { %1264 = vst.msk [vmem:[#allocation3] sm:$0xff] %vm301_vm2, %v1259_v10  ;;  %v1630_v10 = vld [vmem:[%s8177_s6 + $0x118] sm:$0xff] }
 0xbc0   : > { %v1273_v11 = vpop.permute.xlu0 %1272 }
 0xbc1   : > { %1277 = vst.msk [vmem:[#allocation3 + $0x18] sm:$0xff] %vm301_vm2, %v1273_v11  ;;  %v1629_v11 = vld [vmem:[%s8177_s6 + $0x110] sm:$0xff] }
 0xbc2   : > { %v1271_v12 = vpop.permute.xlu1 %1270 }
 0xbc3   : > { %1276 = vst.msk [vmem:[#allocation3 + $0x10] sm:$0xff] %vm301_vm2, %v1271_v12  ;;  %v1632_v12 = vld [vmem:[%s8177_s6 + $0x128] sm:$0xff] }
 0xbc4   : > { %v1285_v13 = vpop.permute.xlu0 %1284  ;;  %v1291_v19 = vld [vmem:[#allocation3 + $0x8] sm:$0xff] }
 0xbc5   : > { %1289 = vst.msk [vmem:[#allocation3 + $0x28] sm:$0xff] %vm301_vm2, %v1285_v13  ;;  %v1631_v13 = vld [vmem:[%s8177_s6 + $0x120] sm:$0xff] }
 0xbc6   : > { %v1283_v14 = vpop.permute.xlu1 %1282  ;;  %v1290_v20 = vld [vmem:[#allocation3] sm:$0xff] }
 0xbc7   : > { %1288 = vst.msk [vmem:[#allocation3 + $0x20] sm:$0xff] %vm301_vm2, %v1283_v14  ;;  %v1634_v14 = vld [vmem:[%s8177_s6 + $0x138] sm:$0xff] }
 0xbc8   : > { %v1293_v17 = vld [vmem:[#allocation3 + $0x18] sm:$0xff] }
 0xbca   : > { %v1292_v18 = vld [vmem:[#allocation3 + $0x10] sm:$0xff] }
 0xbcc   : > { %v1295_v15 = vld [vmem:[#allocation3 + $0x28] sm:$0xff] }
 0xbcd   : > { %5376 = vmatprep.subr.mxu1 %v1295_v15 }
 0xbce   : > { %5377 = vmatpush3.msra.mxu1 %v1295_v15  ;;  %v1294_v16 = vld [vmem:[#allocation3 + $0x20] sm:$0xff] }
 0xbcf   : > { %5378 = vmatprep.subr.mxu1 %v1294_v16  ;;  %v1633_v15 = vld [vmem:[%s8177_s6 + $0x130] sm:$0xff] }
 0xbd0   : > { %5379 = vmatpush3.msra.mxu1 %v1294_v16  ;;  %v1636_v16 = vld [vmem:[%s8177_s6 + $0x148] sm:$0xff] }
 0xbd1   : > { %5380 = vmatprep.subr.mxu1 %v1293_v17  ;;  %v1304_v22 = vpop.permute.xlu0 %1303 }
 0xbd2   : > { %5381 = vmatpush3.msra.mxu1 %v1293_v17  ;;  %v1635_v17 = vld [vmem:[%s8177_s6 + $0x140] sm:$0xff] }
 0xbd3   : > { %5382 = vmatprep.subr.mxu1 %v1292_v18  ;;  %v1299_v25 = vpop.permute.xlu1 %1298 }
 0xbd4   : > { %5383 = vmatpush3.msra.mxu1 %v1292_v18  ;;  %v1638_v18 = vld [vmem:[%s8177_s6 + $0x158] sm:$0xff] }
 0xbd5   : > { %5384 = vmatprep.subr.mxu1 %v1291_v19 }
 0xbd6   : > { %5385 = vmatpush3.msra.mxu1 %v1291_v19  ;;  %v1637_v19 = vld [vmem:[%s8177_s6 + $0x150] sm:$0xff] }
 0xbd7   : > { %5386 = vmatprep.subr.mxu1 %v1290_v20 }
 0xbd8   : > { %5387 = vmatpush3.msra.mxu1 %v1290_v20  ;;  %v1640_v20 = vld [vmem:[%s8177_s6 + $0x168] sm:$0xff] }
 0xbd9   : > { %5389 = vmatmul.mubr.msk.f32.vlgmr.msra.gmra.mxu1 %vm526_vm6, %v4804_v21  ;;  %v1639_v21 = vld [vmem:[%s8177_s6 + $0x160] sm:$0xff] }
 0xbda   : > { %5556 = vmatprep.mubr.msk.f32.mxu1 %vm526_vm6, %v1497_v44  ;;  %v1655_v44 = vld [vmem:[%s8177_s6 + $0x1e0] sm:$0xff] }
 0xc99   : > { %v5390_v23 = vpop.f32.mrf.mxu1 }
 0xc9a   : > { %v1384_v24 = vadd.f32 %v5390_v23, %v1304_v22  ;;  %v1642_v22 = vld [vmem:[%s8177_s6 + $0x178] sm:$0xff]  ;;  %v1641_v23 = vld [vmem:[%s8177_s6 + $0x170] sm:$0xff] }
 0xc9b   : > { %v1378_v26 = vpop.f32.mrf.mxu1 }
 0xc9c   : > { %vm1388_vm3 = vcmp.ge.f32.partialorder %v1384_v24, 0.0  ;;  %v1390_v27 = vmul.f32 0.2, %v1384_v24  ;;  %v1379_v28 = vadd.f32 %v1378_v26, %v1299_v25  ;;  %v1643_v25 = vld [vmem:[%s8177_s6 + $0x180] sm:$0xff]  ;;  %v1646_v26 = vld [vmem:[%s8177_s6 + $0x198] sm:$0xff] }
 0xc9e   : > { %vm1387_vm4 = vcmp.ge.f32.partialorder %v1379_v28, 0.0  ;;  %v1389_v29 = vmul.f32 0.2, %v1379_v28  ;;  %v1392_v30 = vsel %vm1388_vm3, %v1384_v24, %v1390_v27  ;;  %v1644_v24 = vld [vmem:[%s8177_s6 + $0x188] sm:$0xff]  ;;  %v1645_v27 = vld [vmem:[%s8177_s6 + $0x190] sm:$0xff] }
 0xc9f   : > { %v1394_v31 = vadd.f32 %v1392_v30, %v5971_v33  ;;  %v1596_v33 = vld [vmem:[%s8177_s6 + $0x8] sm:$0xff]  ;;  %v1647_v30 = vld [vmem:[%s8177_s6 + $0x1a0] sm:$0xff] }
 0xca0   : > { %v1391_v32 = vsel %vm1387_vm4, %v1379_v28, %v1389_v29  ;;  %v1648_v28 = vld [vmem:[%s8177_s6 + $0x1a8] sm:$0xff] }
 0xca1   : > { %1799 = vrot.lane.b32.xlu0 %v1394_v31, %s5742_s30  ;;  %v1393_v34 = vadd.f32 %v1391_v32, %v5976_v36  ;;  %v1595_v36 = vld [vmem:[%s8177_s6] sm:$0xff]  ;;  %v1650_v32 = vld [vmem:[%s8177_s6 + $0x1b8] sm:$0xff] }
 0xca3   : > { %1797 = vrot.lane.b32.xlu1 %v1393_v34, %s5742_s30 }
 0xd13   : > { %v1800_v40 = vpop.permute.xlu0 %1799 }
 0xd14   : > { %1804 = vst.msk [vmem:[#allocation2 + $0x8] sm:$0xff] %vm296_vm1, %v1800_v40  ;;  %v1649_v40 = vld [vmem:[%s8177_s6 + $0x1b0] sm:$0xff] }
 0xd15   : > { %v1798_v41 = vpop.permute.xlu1 %1797 }
 0xd16   : > { %1803 = vst.msk [vmem:[#allocation2] sm:$0xff] %vm296_vm1, %v1798_v41 }
 0xd1b   : > { %v1806_v42 = vld [vmem:[#allocation2 + $0x8] sm:$0xff] }
 0xd1c   : > { %1811 = vrot.lane.b32.xlu0 %v1806_v42, %s5746_s11 }
 0xd1d   : > { %v1805_v35 = vld [vmem:[#allocation2] sm:$0xff] }
 0xd1e   : > { %1809 = vrot.lane.b32.xlu1 %v1805_v35, %s5746_s11 }
 0xd20   : > { %1823 = vrot.lane.b32.xlu0 %v1806_v42, %s5745_s10 }
 0xd22   : > { %1821 = vrot.lane.b32.xlu1 %v1805_v35, %s5745_s10 }
 0xd24   : > { %1835 = vrot.lane.b32.xlu0 %v1806_v42, %s5744_s9  ;;  %v1652_v42 = vld [vmem:[%s8177_s6 + $0x1c8] sm:$0xff] }
 0xd26   : > { %1833 = vrot.lane.b32.xlu1 %v1805_v35, %s5744_s9  ;;  %s7539_s9 = scalar_lea.vmem %s8178_s7, %s5715_s15 }
 0xd28   : > { %1854 = vperm.xlu0 %5731, %v1596_v33   ;;  %v1651_v33 = vld [vmem:[%s8177_s6 + $0x1c0] sm:$0xff] }
 0xd2a   : > { %1849 = vperm.xlu1 %5732, %v1595_v36  }
 0xd2c   : > { %1864 = vperm.xlu0 %5731, %v1598_v37   ;;  %v1654_v37 = vld [vmem:[%s8177_s6 + $0x1d8] sm:$0xff] }
 0xd2e   : > { %1859 = vperm.xlu1 %5732, %v1597_v38   ;;  %v1653_v38 = vld [vmem:[%s8177_s6 + $0x1d0] sm:$0xff] }
 0xd30   : > { %1874 = vperm.xlu0 %5731, %v1600_v43  }
 0xd32   : > { %1869 = vperm.xlu1 %5732, %v1599_v45  }
 0xd34   : > { %1884 = vperm.xlu0 %5731, %v1602_v46   ;;  %v1658_v46 = vld [vmem:[%s8177_s6 + $0x1f8] sm:$0xff] }
 0xd36   : > { %1879 = vperm.xlu1 %5732, %v1601_v47  }
 0xd38   : > { %1894 = vperm.xlu0 %5731, %v1604_v48  }
 0xd3a   : > { %1889 = vperm.xlu1 %5732, %v1603_v49   ;;  %v1657_v49 = vld [vmem:[%s8177_s6 + $0x1f0] sm:$0xff] }
 0xd3c   : > { %1904 = vperm.xlu0 %5731, %v1606_v50  }
 0xd3e   : > { %1899 = vperm.xlu1 %5732, %v1605_v51  }
 0xd40   : > { %1914 = vperm.xlu0 %5731, %v1608_v52  }
 0xd42   : > { %1909 = vperm.xlu1 %5732, %v1607_v53   ;;  %v1660_v53 = vld [vmem:[%s8177_s6 + $0x208] sm:$0xff] }
 0xd44   : > { %1924 = vperm.xlu0 %5731, %v1610_v54  }
 0xd46   : > { %1919 = vperm.xlu1 %5732, %v1609_v55  }
 0xd48   : > { %1934 = vperm.xlu0 %5731, %v1612_v56   ;;  %v1659_v56 = vld [vmem:[%s8177_s6 + $0x200] sm:$0xff] }
 0xd4a   : > { %1929 = vperm.xlu1 %5732, %v1611_v57  }
 0xd4c   : > { %1944 = vperm.xlu0 %5731, %v1614_v58   ;;  %v1396_v58 = vld [vmem:[%s8176_s5 + $0x8] sm:$0xff] }
 0xd4e   : > { %1939 = vperm.xlu1 %5732, %v1613_v59  }
 0xd50   : > { %1954 = vperm.xlu0 %5731, %v1616_v60   ;;  %v1662_v60 = vld [vmem:[%s8177_s6 + $0x218] sm:$0xff] }
 0xd52   : > { %1949 = vperm.xlu1 %5732, %v1615_v61   ;;  %v1397_v61 = vld [vmem:[%s8176_s5 + $0x10] sm:$0xff] }
 0xd54   : > { %1964 = vperm.xlu0 %5731, %v1618_v62   ;;  %v1498_v62 = vld [vmem:[%s8176_s5 + $0x338] sm:$0xff] }
 0xd56   : > { %1959 = vperm.xlu1 %5732, %v1617_v63  }
 0xd58   : > { %1974 = vperm.xlu0 %5731, %v1620_v0   ;;  %v1661_v0 = vld [vmem:[%s8177_s6 + $0x210] sm:$0xff] }
 0xd5a   : > { %1969 = vperm.xlu1 %5732, %v1619_v1   ;;  %v1499_v1 = vld [vmem:[%s8176_s5 + $0x340] sm:$0xff] }
 0xd5c   : > { %1984 = vperm.xlu0 %5731, %v1622_v2   ;;  %v1398_v2 = vld [vmem:[%s8176_s5 + $0x18] sm:$0xff] }
 0xd5e   : > { %1979 = vperm.xlu1 %5732, %v1621_v3  }
 0xd60   : > { %1994 = vperm.xlu0 %5731, %v1624_v4   ;;  %v1664_v4 = vld [vmem:[%s8177_s6 + $0x228] sm:$0xff] }
 0xd62   : > { %1989 = vperm.xlu1 %5732, %v1623_v5   ;;  %v1399_v5 = vld [vmem:[%s8176_s5 + $0x20] sm:$0xff] }
 0xd64   : > { %2004 = vperm.xlu0 %5731, %v1626_v6   ;;  %v1500_v6 = vld [vmem:[%s8176_s5 + $0x348] sm:$0xff] }
 0xd66   : > { %1999 = vperm.xlu1 %5732, %v1625_v7  }
 0xd68   : > { %2014 = vperm.xlu0 %5731, %v1628_v8   ;;  %v1663_v8 = vld [vmem:[%s8177_s6 + $0x220] sm:$0xff] }
 0xd6a   : > { %2009 = vperm.xlu1 %5732, %v1627_v9   ;;  %v1501_v9 = vld [vmem:[%s8176_s5 + $0x350] sm:$0xff] }
 0xd6c   : > { %2024 = vperm.xlu0 %5731, %v1630_v10   ;;  %v1400_v10 = vld [vmem:[%s8176_s5 + $0x28] sm:$0xff] }
 0xd6e   : > { %2019 = vperm.xlu1 %5732, %v1629_v11  }
 0xd70   : > { %2034 = vperm.xlu0 %5731, %v1632_v12   ;;  %v1666_v12 = vld [vmem:[%s8177_s6 + $0x238] sm:$0xff] }
 0xd72   : > { %2029 = vperm.xlu1 %5732, %v1631_v13   ;;  %v1401_v13 = vld [vmem:[%s8176_s5 + $0x30] sm:$0xff] }
 0xd74   : > { %2044 = vperm.xlu0 %5731, %v1634_v14   ;;  %v1502_v14 = vld [vmem:[%s8176_s5 + $0x358] sm:$0xff] }
 0xd76   : > { %2039 = vperm.xlu1 %5732, %v1633_v15  }
 0xd78   : > { %2054 = vperm.xlu0 %5731, %v1636_v16   ;;  %v1665_v16 = vld [vmem:[%s8177_s6 + $0x230] sm:$0xff] }
 0xd7a   : > { %2049 = vperm.xlu1 %5732, %v1635_v17   ;;  %v1503_v17 = vld [vmem:[%s8176_s5 + $0x360] sm:$0xff] }
 0xd7c   : > { %2064 = vperm.xlu0 %5731, %v1638_v18   ;;  %v1402_v18 = vld [vmem:[%s8176_s5 + $0x38] sm:$0xff] }
 0xd7e   : > { %2059 = vperm.xlu1 %5732, %v1637_v19  }
 0xd80   : > { %2074 = vperm.xlu0 %5731, %v1640_v20   ;;  %v1668_v20 = vld [vmem:[%s8177_s6 + $0x248] sm:$0xff] }
 0xd82   : > { %2069 = vperm.xlu1 %5732, %v1639_v21   ;;  %v1403_v21 = vld [vmem:[%s8176_s5 + $0x40] sm:$0xff] }
 0xd84   : > { %2084 = vperm.xlu0 %5731, %v1642_v22   ;;  %v1504_v22 = vld [vmem:[%s8176_s5 + $0x368] sm:$0xff] }
 0xd86   : > { %2079 = vperm.xlu1 %5732, %v1641_v23  }
 0xd88   : > { %2094 = vperm.xlu0 %5731, %v1644_v24   ;;  %v1667_v24 = vld [vmem:[%s8177_s6 + $0x240] sm:$0xff] }
 0xd8a   : > { %2089 = vperm.xlu1 %5732, %v1643_v25   ;;  %v1505_v25 = vld [vmem:[%s8176_s5 + $0x370] sm:$0xff] }
 0xd8c   : > { %2104 = vperm.xlu0 %5731, %v1646_v26   ;;  %v1404_v26 = vld [vmem:[%s8176_s5 + $0x48] sm:$0xff] }
 0xd8e   : > { %2099 = vperm.xlu1 %5732, %v1645_v27   ;;  %v1812_v29 = vpop.permute.xlu0 %1811 }
 0xd8f   : > { %1816 = vst.msk [vmem:[#allocation3 + $0x8] sm:$0xff] %vm301_vm2, %v1812_v29  ;;  %v1405_v29 = vld [vmem:[%s8176_s5 + $0x50] sm:$0xff] }
 0xd90   : > { %v1810_v31 = vpop.permute.xlu1 %1809  ;;  %2114 = vperm.xlu0 %5731, %v1648_v28   ;;  %v1670_v28 = vld [vmem:[%s8177_s6 + $0x258] sm:$0xff] }
 0xd91   : > { %1815 = vst.msk [vmem:[#allocation3] sm:$0xff] %vm301_vm2, %v1810_v31 }
 0xd92   : > { %2109 = vperm.xlu1 %5732, %v1647_v30   ;;  %v1824_v34 = vpop.permute.xlu0 %1823  ;;  %v1506_v30 = vld [vmem:[%s8176_s5 + $0x378] sm:$0xff] }
 0xd93   : > { %1828 = vst.msk [vmem:[#allocation3 + $0x18] sm:$0xff] %vm301_vm2, %v1824_v34  ;;  %v1507_v34 = vld [vmem:[%s8176_s5 + $0x380] sm:$0xff] }
 0xd94   : > { %v1822_v41 = vpop.permute.xlu1 %1821  ;;  %2124 = vperm.xlu0 %5731, %v1650_v32   ;;  %v1669_v32 = vld [vmem:[%s8177_s6 + $0x250] sm:$0xff] }
 0xd95   : > { %1827 = vst.msk [vmem:[#allocation3 + $0x10] sm:$0xff] %vm301_vm2, %v1822_v41 }
 0xd96   : > { %2119 = vperm.xlu1 %5732, %v1649_v40   ;;  %v1836_v35 = vpop.permute.xlu0 %1835  ;;  %v1842_v54 = vld [vmem:[#allocation3 + $0x8] sm:$0xff] }
 0xd97   : > { %1840 = vst.msk [vmem:[#allocation3 + $0x28] sm:$0xff] %vm301_vm2, %v1836_v35  ;;  %v1406_v40 = vld [vmem:[%s8176_s5 + $0x58] sm:$0xff]  ;;  %v1407_v35 = vld [vmem:[%s8176_s5 + $0x60] sm:$0xff] }
 0xd98   : > { %v1834_v36 = vpop.permute.xlu1 %1833  ;;  %2134 = vperm.xlu0 %5731, %v1652_v42   ;;  %v1841_v57 = vld [vmem:[#allocation3] sm:$0xff]  ;;  %v1672_v42 = vld [vmem:[%s8177_s6 + $0x268] sm:$0xff] }
 0xd99   : > { %1839 = vst.msk [vmem:[#allocation3 + $0x20] sm:$0xff] %vm301_vm2, %v1834_v36 }
 0xd9a   : > { %2129 = vperm.xlu1 %5732, %v1651_v33   ;;  %v1844_v47 = vld [vmem:[#allocation3 + $0x18] sm:$0xff] }
 0xd9b   : > { %v1508_v33 = vld [vmem:[%s8176_s5 + $0x388] sm:$0xff] }
 0xd9c   : > { %2144 = vperm.xlu0 %5731, %v1654_v37   ;;  %v1843_v51 = vld [vmem:[#allocation3 + $0x10] sm:$0xff] }
 0xd9d   : > { %v1671_v37 = vld [vmem:[%s8177_s6 + $0x260] sm:$0xff] }
 0xd9e   : > { %2139 = vperm.xlu1 %5732, %v1653_v38   ;;  %v1846_v43 = vld [vmem:[#allocation3 + $0x28] sm:$0xff]  ;;  %v1509_v38 = vld [vmem:[%s8176_s5 + $0x390] sm:$0xff] }
 0xd9f   : > { %5391 = vmatprep.subr.mxu0 %v1846_v43  ;;  %5703 = vmatprep.subr.mxu1 %v1846_v43 }
 0xda0   : > { %2154 = vperm.xlu0 %5731, %v1656_v39   ;;  %5392 = vmatpush3.msra.mxu0 %v1846_v43  ;;  %v1845_v45 = vld [vmem:[#allocation3 + $0x20] sm:$0xff]  ;;  %v1408_v39 = vld [vmem:[%s8176_s5 + $0x68] sm:$0xff] }
 0xda1   : > { %5709 = vmatpush3.msra.mxu1 %v1846_v43  ;;  %5393 = vmatprep.subr.mxu0 %v1845_v45 }
 0xda2   : > { %5704 = vmatprep.subr.mxu1 %v1845_v45  ;;  %2149 = vperm.xlu1 %5732, %v1655_v44   ;;  %v1674_v44 = vld [vmem:[%s8177_s6 + $0x278] sm:$0xff] }
 0xda3   : > { %5394 = vmatpush3.msra.mxu0 %v1845_v45  ;;  %5710 = vmatpush3.msra.mxu1 %v1845_v45  ;;  %v6253_v48 = vpop.permute.xlu0 %1854  ;;  %v1409_v45 = vld [vmem:[%s8176_s5 + $0x70] sm:$0xff] }
 0xda4   : > { %5395 = vmatprep.subr.mxu0 %v1844_v47  ;;  %5705 = vmatprep.subr.mxu1 %v1844_v47 }
 0xda5   : > { %2164 = vperm.xlu0 %5731, %v1658_v46   ;;  %5396 = vmatpush3.msra.mxu0 %v1844_v47  ;;  %v6258_v50 = vpop.permute.xlu1 %1849  ;;  %v1510_v46 = vld [vmem:[%s8176_s5 + $0x398] sm:$0xff] }
 0xda6   : > { %5711 = vmatpush3.msra.mxu1 %v1844_v47  ;;  %5397 = vmatprep.subr.mxu0 %v1843_v51 }
 0xda7   : > { %5706 = vmatprep.subr.mxu1 %v1843_v51  ;;  %2159 = vperm.xlu1 %5732, %v1657_v49   ;;  %v6260_v52 = vpop.permute.xlu0 %1864  ;;  %v1673_v49 = vld [vmem:[%s8177_s6 + $0x270] sm:$0xff] }
 0xda8   : > { %5398 = vmatpush3.msra.mxu0 %v1843_v51  ;;  %5712 = vmatpush3.msra.mxu1 %v1843_v51  ;;  %v1511_v51 = vld [vmem:[%s8176_s5 + $0x3a0] sm:$0xff] }
 0xda9   : > { %5399 = vmatprep.subr.mxu0 %v1842_v54  ;;  %5707 = vmatprep.subr.mxu1 %v1842_v54  ;;  %v6265_v55 = vpop.permute.xlu1 %1859 }
 0xdaa   : > { %2174 = vperm.xlu0 %5731, %v1660_v53   ;;  %5400 = vmatpush3.msra.mxu0 %v1842_v54  ;;  %v1410_v53 = vld [vmem:[%s8176_s5 + $0x78] sm:$0xff] }
 0xdab   : > { %5713 = vmatpush3.msra.mxu1 %v1842_v54  ;;  %5401 = vmatprep.subr.mxu0 %v1841_v57  ;;  %v6273_v59 = vpop.permute.xlu0 %1874 }
 0xdac   : > { %5708 = vmatprep.subr.mxu1 %v1841_v57  ;;  %2169 = vperm.xlu1 %5732, %v1659_v56   ;;  %v1676_v56 = vld [vmem:[%s8177_s6 + $0x288] sm:$0xff] }
 0xdad   : > { %5402 = vmatpush3.msra.mxu0 %v1841_v57  ;;  %5714 = vmatpush3.msra.mxu1 %v1841_v57  ;;  %v6284_v63 = vpop.permute.xlu1 %1869  ;;  %v1411_v57 = vld [vmem:[%s8176_s5 + $0x80] sm:$0xff] }
 0xdae   : > { %5404 = vmatmul.mubr.msk.f32.vlgmr.msra.gmra.mxu0 %vm526_vm6, %v1396_v58  ;;  %2184 = vperm.xlu0 %5731, %v1662_v60   ;;  %v1512_v58 = vld [vmem:[%s8176_s5 + $0x3a8] sm:$0xff] }
 0xdaf   : > { %5406 = vmatprep.mubr.msk.f32.mxu0 %vm526_vm6, %v1397_v61  ;;  %5557 = vmatmul.mubr.msk.f32.vlgmr.msra.gmra.mxu1 %vm526_vm6, %v1498_v62  ;;  %v6298_v3 = vpop.permute.xlu0 %1884  ;;  %v1675_v61 = vld [vmem:[%s8177_s6 + $0x280] sm:$0xff]  ;;  %v1513_v62 = vld [vmem:[%s8176_s5 + $0x3b0] sm:$0xff] }
 0xdb0   : > { %2179 = vperm.xlu1 %5732, %v1661_v0   ;;  %5559 = vmatprep.mubr.msk.f32.mxu1 %vm526_vm6, %v1499_v1  ;;  %v1412_v0 = vld [vmem:[%s8176_s5 + $0x88] sm:$0xff] }
 0xdb1   : > { %v6310_v7 = vpop.permute.xlu1 %1879 }
 0xdb2   : > { %5407 = vmatmul.mubr.msk.f32.gmra.mxu0 %vm526_vm6, %v1398_v2  ;;  %2194 = vperm.xlu0 %5731, %v1664_v4   ;;  %v1678_v2 = vld [vmem:[%s8177_s6 + $0x298] sm:$0xff]  ;;  %v1413_v4 = vld [vmem:[%s8176_s5 + $0x90] sm:$0xff] }
 0xdb3   : > { %5409 = vmatprep.mubr.msk.f32.mxu0 %vm526_vm6, %v1399_v5  ;;  %5560 = vmatmul.mubr.msk.f32.gmra.mxu1 %vm526_vm6, %v1500_v6  ;;  %v6324_v11 = vpop.permute.xlu0 %1894  ;;  %v1514_v5 = vld [vmem:[%s8176_s5 + $0x3b8] sm:$0xff] }
 0xdb4   : > { %2189 = vperm.xlu1 %5732, %v1663_v8   ;;  %5562 = vmatprep.mubr.msk.f32.mxu1 %vm526_vm6, %v1501_v9  ;;  %v1677_v8 = vld [vmem:[%s8177_s6 + $0x290] sm:$0xff]  ;;  %v1515_v9 = vld [vmem:[%s8176_s5 + $0x3c0] sm:$0xff] }
 0xdb5   : > { %v6336_v15 = vpop.permute.xlu1 %1889 }
 0xdb6   : > { %5410 = vmatmul.mubr.msk.f32.gmra.mxu0 %vm526_vm6, %v1400_v10  ;;  %2204 = vperm.xlu0 %5731, %v1666_v12   ;;  %v1414_v10 = vld [vmem:[%s8176_s5 + $0x98] sm:$0xff] }
 0xdb7   : > { %5412 = vmatprep.mubr.msk.f32.mxu0 %vm526_vm6, %v1401_v13  ;;  %5563 = vmatmul.mubr.msk.f32.gmra.mxu1 %vm526_vm6, %v1502_v14  ;;  %v6350_v19 = vpop.permute.xlu0 %1904  ;;  %v1680_v13 = vld [vmem:[%s8177_s6 + $0x2a8] sm:$0xff]  ;;  %v1415_v14 = vld [vmem:[%s8176_s5 + $0xa0] sm:$0xff] }
 0xdb8   : > { %2199 = vperm.xlu1 %5732, %v1665_v16   ;;  %5565 = vmatprep.mubr.msk.f32.mxu1 %vm526_vm6, %v1503_v17  ;;  %v1516_v16 = vld [vmem:[%s8176_s5 + $0x3c8] sm:$0xff] }
 0xdb9   : > { %v6362_v23 = vpop.permute.xlu1 %1899 }
 0xdba   : > { %5413 = vmatmul.mubr.msk.f32.gmra.mxu0 %vm526_vm6, %v1402_v18  ;;  %2214 = vperm.xlu0 %5731, %v1668_v20   ;;  %v1679_v18 = vld [vmem:[%s8177_s6 + $0x2a0] sm:$0xff]  ;;  %v1517_v20 = vld [vmem:[%s8176_s5 + $0x3d0] sm:$0xff] }
 0xdbb   : > { %5415 = vmatprep.mubr.msk.f32.mxu0 %vm526_vm6, %v1403_v21  ;;  %5566 = vmatmul.mubr.msk.f32.gmra.mxu1 %vm526_vm6, %v1504_v22  ;;  %v6376_v27 = vpop.permute.xlu0 %1914  ;;  %v1416_v21 = vld [vmem:[%s8176_s5 + $0xa8] sm:$0xff] }
 0xdbc   : > { %2209 = vperm.xlu1 %5732, %v1667_v24   ;;  %5568 = vmatprep.mubr.msk.f32.mxu1 %vm526_vm6, %v1505_v25  ;;  %v1682_v24 = vld [vmem:[%s8177_s6 + $0x2b8] sm:$0xff]  ;;  %v1417_v25 = vld [vmem:[%s8176_s5 + $0xb0] sm:$0xff] }
 0xdbd   : > { %v6388_v31 = vpop.permute.xlu1 %1909 }
 0xdbe   : > { %5416 = vmatmul.mubr.msk.f32.gmra.mxu0 %vm526_vm6, %v1404_v26  ;;  %2224 = vperm.xlu0 %5731, %v1670_v28   ;;  %v1518_v26 = vld [vmem:[%s8176_s5 + $0x3d8] sm:$0xff] }
 0xdbf   : > { %5418 = vmatprep.mubr.msk.f32.mxu0 %vm526_vm6, %v1405_v29  ;;  %5569 = vmatmul.mubr.msk.f32.gmra.mxu1 %vm526_vm6, %v1506_v30  ;;  %v6402_v41 = vpop.permute.xlu0 %1924  ;;  %v1681_v29 = vld [vmem:[%s8177_s6 + $0x2b0] sm:$0xff]  ;;  %v1519_v30 = vld [vmem:[%s8176_s5 + $0x3e0] sm:$0xff] }
 0xdc0   : > { %2219 = vperm.xlu1 %5732, %v1669_v32   ;;  %5571 = vmatprep.mubr.msk.f32.mxu1 %vm526_vm6, %v1507_v34  ;;  %v1418_v32 = vld [vmem:[%s8176_s5 + $0xb8] sm:$0xff] }
 0xdc1   : > { %v6414_v36 = vpop.permute.xlu1 %1919 }
 0xdc2   : > { %5419 = vmatmul.mubr.msk.f32.gmra.mxu0 %vm526_vm6, %v1406_v40  ;;  %2234 = vperm.xlu0 %5731, %v1672_v42   ;;  %v1684_v40 = vld [vmem:[%s8177_s6 + $0x2c8] sm:$0xff]  ;;  %v1419_v42 = vld [vmem:[%s8176_s5 + $0xc0] sm:$0xff] }
 0xdc3   : > { %5421 = vmatprep.mubr.msk.f32.mxu0 %vm526_vm6, %v1407_v35  ;;  %5572 = vmatmul.mubr.msk.f32.gmra.mxu1 %vm526_vm6, %v1508_v33  ;;  %v6428_v43 = vpop.permute.xlu0 %1934  ;;  %v1520_v35 = vld [vmem:[%s8176_s5 + $0x3e8] sm:$0xff] }
 0xdc4   : > { %2229 = vperm.xlu1 %5732, %v1671_v37   ;;  %5574 = vmatprep.mubr.msk.f32.mxu1 %vm526_vm6, %v1509_v38  ;;  %v1683_v37 = vld [vmem:[%s8177_s6 + $0x2c0] sm:$0xff]  ;;  %v1521_v38 = vld [vmem:[%s8176_s5 + $0x3f0] sm:$0xff] }
 0xdc5   : > { %v6440_v47 = vpop.permute.xlu1 %1929 }
 0xdc6   : > { %5422 = vmatmul.mubr.msk.f32.gmra.mxu0 %vm526_vm6, %v1408_v39  ;;  %2244 = vperm.xlu0 %5731, %v1674_v44   ;;  %v1420_v39 = vld [vmem:[%s8176_s5 + $0xc8] sm:$0xff] }
 0xdc7   : > { %5424 = vmatprep.mubr.msk.f32.mxu0 %vm526_vm6, %v1409_v45  ;;  %5575 = vmatmul.mubr.msk.f32.gmra.mxu1 %vm526_vm6, %v1510_v46  ;;  %v6454_v54 = vpop.permute.xlu0 %1944  ;;  %v1686_v45 = vld [vmem:[%s8177_s6 + $0x2d8] sm:$0xff]  ;;  %v1421_v46 = vld [vmem:[%s8176_s5 + $0xd0] sm:$0xff] }
 0xdc8   : > { %2239 = vperm.xlu1 %5732, %v1673_v49   ;;  %5577 = vmatprep.mubr.msk.f32.mxu1 %vm526_vm6, %v1511_v51  ;;  %v1522_v49 = vld [vmem:[%s8176_s5 + $0x3f8] sm:$0xff] }
 0xdc9   : > { %v6466_v60 = vpop.permute.xlu1 %1939 }
 0xdca   : > { %5425 = vmatmul.mubr.msk.f32.gmra.mxu0 %vm526_vm6, %v1410_v53  ;;  %2254 = vperm.xlu0 %5731, %v1676_v56   ;;  %v1685_v53 = vld [vmem:[%s8177_s6 + $0x2d0] sm:$0xff]  ;;  %v1523_v56 = vld [vmem:[%s8176_s5 + $0x400] sm:$0xff] }
 0xdcb   : > { %5427 = vmatprep.mubr.msk.f32.mxu0 %vm526_vm6, %v1411_v57  ;;  %5578 = vmatmul.mubr.msk.f32.gmra.mxu1 %vm526_vm6, %v1512_v58  ;;  %v6480_v1 = vpop.permute.xlu0 %1954  ;;  %v1422_v57 = vld [vmem:[%s8176_s5 + $0xd8] sm:$0xff] }
 0xdcc   : > { %2249 = vperm.xlu1 %5732, %v1675_v61   ;;  %5580 = vmatprep.mubr.msk.f32.mxu1 %vm526_vm6, %v1513_v62  ;;  %v1688_v61 = vld [vmem:[%s8177_s6 + $0x2e8] sm:$0xff]  ;;  %v1423_v62 = vld [vmem:[%s8176_s5 + $0xe0] sm:$0xff] }
 0xdcd   : > { %v6492_v6 = vpop.permute.xlu1 %1949 }
 0xdce   : > { %5428 = vmatmul.mubr.msk.f32.gmra.mxu0 %vm526_vm6, %v1412_v0  ;;  %2264 = vperm.xlu0 %5731, %v1678_v2   ;;  %v1524_v0 = vld [vmem:[%s8176_s5 + $0x408] sm:$0xff] }
 0xdcf   : > { %5430 = vmatprep.mubr.msk.f32.mxu0 %vm526_vm6, %v1413_v4  ;;  %5581 = vmatmul.mubr.msk.f32.gmra.mxu1 %vm526_vm6, %v1514_v5  ;;  %v6506_v12 = vpop.permute.xlu0 %1964  ;;  %v1687_v4 = vld [vmem:[%s8177_s6 + $0x2e0] sm:$0xff]  ;;  %v1525_v5 = vld [vmem:[%s8176_s5 + $0x410] sm:$0xff] }
 0xdd0   : > { %2259 = vperm.xlu1 %5732, %v1677_v8   ;;  %5583 = vmatprep.mubr.msk.f32.mxu1 %vm526_vm6, %v1515_v9  ;;  %v1424_v8 = vld [vmem:[%s8176_s5 + $0xe8] sm:$0xff] }
 0xdd1   : > { %v6518_v17 = vpop.permute.xlu1 %1959 }
 0xdd2   : > { %5431 = vmatmul.mubr.msk.f32.gmra.mxu0 %vm526_vm6, %v1414_v10  ;;  %2274 = vperm.xlu0 %5731, %v1680_v13   ;;  %v1690_v10 = vld [vmem:[%s8177_s6 + $0x2f8] sm:$0xff]  ;;  %v1425_v13 = vld [vmem:[%s8176_s5 + $0xf0] sm:$0xff] }
 0xdd3   : > { %5433 = vmatprep.mubr.msk.f32.mxu0 %vm526_vm6, %v1415_v14  ;;  %5584 = vmatmul.mubr.msk.f32.gmra.mxu1 %vm526_vm6, %v1516_v16  ;;  %v6532_v22 = vpop.permute.xlu0 %1974  ;;  %v1526_v14 = vld [vmem:[%s8176_s5 + $0x418] sm:$0xff] }
 0xdd4   : > { %2269 = vperm.xlu1 %5732, %v1679_v18   ;;  %5586 = vmatprep.mubr.msk.f32.mxu1 %vm526_vm6, %v1517_v20  ;;  %v1689_v18 = vld [vmem:[%s8177_s6 + $0x2f0] sm:$0xff]  ;;  %v1527_v20 = vld [vmem:[%s8176_s5 + $0x420] sm:$0xff] }
 0xdd5   : > { %v6544_v28 = vpop.permute.xlu1 %1969 }
 0xdd6   : > { %5434 = vmatmul.mubr.msk.f32.gmra.mxu0 %vm526_vm6, %v1416_v21  ;;  %2284 = vperm.xlu0 %5731, %v1682_v24   ;;  %v1426_v21 = vld [vmem:[%s8176_s5 + $0xf8] sm:$0xff] }
 0xdd7   : > { %5436 = vmatprep.mubr.msk.f32.mxu0 %vm526_vm6, %v1417_v25  ;;  %5587 = vmatmul.mubr.msk.f32.gmra.mxu1 %vm526_vm6, %v1518_v26  ;;  %v6558_v34 = vpop.permute.xlu0 %1984  ;;  %v1692_v25 = vld [vmem:[%s8177_s6 + $0x308] sm:$0xff]  ;;  %v1427_v26 = vld [vmem:[%s8176_s5 + $0x100] sm:$0xff] }
 0xdd8   : > { %2279 = vperm.xlu1 %5732, %v1681_v29   ;;  %5589 = vmatprep.mubr.msk.f32.mxu1 %vm526_vm6, %v1519_v30  ;;  %v1528_v29 = vld [vmem:[%s8176_s5 + $0x428] sm:$0xff] }
 0xdd9   : > { %v6570_v33 = vpop.permute.xlu1 %1979 }
 0xdda   : > { %5437 = vmatmul.mubr.msk.f32.gmra.mxu0 %vm526_vm6, %v1418_v32  ;;  %2294 = vperm.xlu0 %5731, %v1684_v40   ;;  %v1691_v32 = vld [vmem:[%s8177_s6 + $0x300] sm:$0xff]  ;;  %v1529_v40 = vld [vmem:[%s8176_s5 + $0x430] sm:$0xff] }
 0xddb   : > { %5439 = vmatprep.mubr.msk.f32.mxu0 %vm526_vm6, %v1419_v42  ;;  %5590 = vmatmul.mubr.msk.f32.gmra.mxu1 %vm526_vm6, %v1520_v35  ;;  %v6584_v44 = vpop.permute.xlu0 %1994  ;;  %v1428_v42 = vld [vmem:[%s8176_s5 + $0x108] sm:$0xff] }
 0xddc   : > { %2289 = vperm.xlu1 %5732, %v1683_v37   ;;  %5592 = vmatprep.mubr.msk.f32.mxu1 %vm526_vm6, %v1521_v38  ;;  %v1694_v37 = vld [vmem:[%s8177_s6 + $0x318] sm:$0xff]  ;;  %v1429_v38 = vld [vmem:[%s8176_s5 + $0x110] sm:$0xff] }
 0xddd   : > { %v6596_v51 = vpop.permute.xlu1 %1989 }
 0xdde   : > { %5440 = vmatmul.mubr.msk.f32.gmra.mxu0 %vm526_vm6, %v1420_v39  ;;  %2304 = vperm.xlu0 %5731, %v1686_v45   ;;  %v1530_v39 = vld [vmem:[%s8176_s5 + $0x438] sm:$0xff] }
 0xddf   : > { %5442 = vmatprep.mubr.msk.f32.mxu0 %vm526_vm6, %v1421_v46  ;;  %5593 = vmatmul.mubr.msk.f32.gmra.mxu1 %vm526_vm6, %v1522_v49  ;;  %v6610_v58 = vpop.permute.xlu0 %2004  ;;  %v1693_v46 = vld [vmem:[%s8177_s6 + $0x310] sm:$0xff]  ;;  %v1531_v49 = vld [vmem:[%s8176_s5 + $0x440] sm:$0xff] }
 0xde0   : > { %2299 = vperm.xlu1 %5732, %v1685_v53   ;;  %5595 = vmatprep.mubr.msk.f32.mxu1 %vm526_vm6, %v1523_v56  ;;  %v1430_v53 = vld [vmem:[%s8176_s5 + $0x118] sm:$0xff] }
 0xde1   : > { %v6622_v2 = vpop.permute.xlu1 %1999 }
 0xde2   : > { %5443 = vmatmul.mubr.msk.f32.gmra.mxu0 %vm526_vm6, %v1422_v57  ;;  %2314 = vperm.xlu0 %5731, %v1688_v61   ;;  %v1696_v57 = vld [vmem:[%s8177_s6 + $0x328] sm:$0xff]  ;;  %v1431_v61 = vld [vmem:[%s8176_s5 + $0x120] sm:$0xff] }
 0xde3   : > { %5445 = vmatprep.mubr.msk.f32.mxu0 %vm526_vm6, %v1423_v62  ;;  %5596 = vmatmul.mubr.msk.f32.gmra.mxu1 %vm526_vm6, %v1524_v0  ;;  %v6636_v9 = vpop.permute.xlu0 %2014  ;;  %v1532_v62 = vld [vmem:[%s8176_s5 + $0x448] sm:$0xff] }
 0xde4   : > { %2309 = vperm.xlu1 %5732, %v1687_v4   ;;  %5598 = vmatprep.mubr.msk.f32.mxu1 %vm526_vm6, %v1525_v5  ;;  %v1695_v4 = vld [vmem:[%s8177_s6 + $0x320] sm:$0xff]  ;;  %v1533_v5 = vld [vmem:[%s8176_s5 + $0x450] sm:$0xff] }
 0xde5   : > { %v6648_v16 = vpop.permute.xlu1 %2009 }
 0xde6   : > { %5446 = vmatmul.mubr.msk.f32.gmra.mxu0 %vm526_vm6, %v1424_v8  ;;  %2324 = vperm.xlu0 %5731, %v1690_v10   ;;  %v1432_v8 = vld [vmem:[%s8176_s5 + $0x128] sm:$0xff] }
 0xde7   : > { %5448 = vmatprep.mubr.msk.f32.mxu0 %vm526_vm6, %v1425_v13  ;;  %5599 = vmatmul.mubr.msk.f32.gmra.mxu1 %vm526_vm6, %v1526_v14  ;;  %v6662_v24 = vpop.permute.xlu0 %2024  ;;  %v1698_v13 = vld [vmem:[%s8177_s6 + $0x338] sm:$0xff]  ;;  %v1433_v14 = vld [vmem:[%s8176_s5 + $0x130] sm:$0xff] }
 0xde8   : > { %2319 = vperm.xlu1 %5732, %v1689_v18   ;;  %5601 = vmatprep.mubr.msk.f32.mxu1 %vm526_vm6, %v1527_v20  ;;  %v1534_v18 = vld [vmem:[%s8176_s5 + $0x458] sm:$0xff] }
 0xde9   : > { %v6674_v30 = vpop.permute.xlu1 %2019 }
 0xdea   : > { %5449 = vmatmul.mubr.msk.f32.gmra.mxu0 %vm526_vm6, %v1426_v21  ;;  %2334 = vperm.xlu0 %5731, %v1692_v25   ;;  %v1697_v21 = vld [vmem:[%s8177_s6 + $0x330] sm:$0xff]  ;;  %v1535_v25 = vld [vmem:[%s8176_s5 + $0x460] sm:$0xff] }
 0xdeb   : > { %5451 = vmatprep.mubr.msk.f32.mxu0 %vm526_vm6, %v1427_v26  ;;  %5602 = vmatmul.mubr.msk.f32.gmra.mxu1 %vm526_vm6, %v1528_v29  ;;  %v6688_v35 = vpop.permute.xlu0 %2034  ;;  %v1434_v26 = vld [vmem:[%s8176_s5 + $0x138] sm:$0xff] }
 0xdec   : > { %2329 = vperm.xlu1 %5732, %v1691_v32   ;;  %5604 = vmatprep.mubr.msk.f32.mxu1 %vm526_vm6, %v1529_v40  ;;  %v1700_v32 = vld [vmem:[%s8177_s6 + $0x348] sm:$0xff]  ;;  %v1435_v40 = vld [vmem:[%s8176_s5 + $0x140] sm:$0xff] }
 0xded   : > { %v6700_v45 = vpop.permute.xlu1 %2029 }
 0xdee   : > { %5452 = vmatmul.mubr.msk.f32.gmra.mxu0 %vm526_vm6, %v1428_v42  ;;  %2344 = vperm.xlu0 %5731, %v1694_v37   ;;  %v1536_v42 = vld [vmem:[%s8176_s5 + $0x468] sm:$0xff] }
 0xdef   : > { %5454 = vmatprep.mubr.msk.f32.mxu0 %vm526_vm6, %v1429_v38  ;;  %5605 = vmatmul.mubr.msk.f32.gmra.mxu1 %vm526_vm6, %v1530_v39  ;;  %v6714_v56 = vpop.permute.xlu0 %2044  ;;  %v1699_v38 = vld [vmem:[%s8177_s6 + $0x340] sm:$0xff]  ;;  %v1537_v39 = vld [vmem:[%s8176_s5 + $0x470] sm:$0xff] }
 0xdf0   : > { %2339 = vperm.xlu1 %5732, %v1693_v46   ;;  %5607 = vmatprep.mubr.msk.f32.mxu1 %vm526_vm6, %v1531_v49  ;;  %v1436_v46 = vld [vmem:[%s8176_s5 + $0x148] sm:$0xff] }
 0xdf1   : > { %v6726_v0 = vpop.permute.xlu1 %2039 }
 0xdf2   : > { %5455 = vmatmul.mubr.msk.f32.gmra.mxu0 %vm526_vm6, %v1430_v53  ;;  %2354 = vperm.xlu0 %5731, %v1696_v57   ;;  %v1702_v53 = vld [vmem:[%s8177_s6 + $0x358] sm:$0xff]  ;;  %v1437_v57 = vld [vmem:[%s8176_s5 + $0x150] sm:$0xff] }
 0xdf3   : > { %5457 = vmatprep.mubr.msk.f32.mxu0 %vm526_vm6, %v1431_v61  ;;  %5608 = vmatmul.mubr.msk.f32.gmra.mxu1 %vm526_vm6, %v1532_v62  ;;  %v6740_v10 = vpop.permute.xlu0 %2054  ;;  %v1538_v61 = vld [vmem:[%s8176_s5 + $0x478] sm:$0xff] }
 0xdf4   : > { %2349 = vperm.xlu1 %5732, %v1695_v4   ;;  %5610 = vmatprep.mubr.msk.f32.mxu1 %vm526_vm6, %v1533_v5  ;;  %v1701_v4 = vld [vmem:[%s8177_s6 + $0x350] sm:$0xff]  ;;  %v1539_v5 = vld [vmem:[%s8176_s5 + $0x480] sm:$0xff] }
 0xdf5   : > { %v6752_v20 = vpop.permute.xlu1 %2049 }
 0xdf6   : > { %5458 = vmatmul.mubr.msk.f32.gmra.mxu0 %vm526_vm6, %v1432_v8  ;;  %2364 = vperm.xlu0 %5731, %v1698_v13   ;;  %v1438_v8 = vld [vmem:[%s8176_s5 + $0x158] sm:$0xff] }
 0xdf7   : > { %5460 = vmatprep.mubr.msk.f32.mxu0 %vm526_vm6, %v1433_v14  ;;  %5611 = vmatmul.mubr.msk.f32.gmra.mxu1 %vm526_vm6, %v1534_v18  ;;  %v6766_v29 = vpop.permute.xlu0 %2064  ;;  %v1704_v14 = vld [vmem:[%s8177_s6 + $0x368] sm:$0xff]  ;;  %v1439_v18 = vld [vmem:[%s8176_s5 + $0x160] sm:$0xff] }
 0xdf8   : > { %2359 = vperm.xlu1 %5732, %v1697_v21   ;;  %5613 = vmatprep.mubr.msk.f32.mxu1 %vm526_vm6, %v1535_v25  ;;  %v1540_v21 = vld [vmem:[%s8176_s5 + $0x488] sm:$0xff] }
 0xdf9   : > { %v6778_v37 = vpop.permute.xlu1 %2059 }
 0xdfa   : > { %5461 = vmatmul.mubr.msk.f32.gmra.mxu0 %vm526_vm6, %v1434_v26  ;;  %2374 = vperm.xlu0 %5731, %v1700_v32   ;;  %v1703_v26 = vld [vmem:[%s8177_s6 + $0x360] sm:$0xff]  ;;  %v1541_v32 = vld [vmem:[%s8176_s5 + $0x490] sm:$0xff] }
 0xdfb   : > { %5463 = vmatprep.mubr.msk.f32.mxu0 %vm526_vm6, %v1435_v40  ;;  %5614 = vmatmul.mubr.msk.f32.gmra.mxu1 %vm526_vm6, %v1536_v42  ;;  %v6792_v49 = vpop.permute.xlu0 %2074  ;;  %v1440_v40 = vld [vmem:[%s8176_s5 + $0x168] sm:$0xff] }
 0xdfc   : > { %2369 = vperm.xlu1 %5732, %v1699_v38   ;;  %5616 = vmatprep.mubr.msk.f32.mxu1 %vm526_vm6, %v1537_v39  ;;  %v1706_v38 = vld [vmem:[%s8177_s6 + $0x378] sm:$0xff]  ;;  %v1441_v39 = vld [vmem:[%s8176_s5 + $0x170] sm:$0xff] }
 0xdfd   : > { %v6804_v62 = vpop.permute.xlu1 %2069 }
 0xdfe   : > { %5464 = vmatmul.mubr.msk.f32.gmra.mxu0 %vm526_vm6, %v1436_v46  ;;  %2384 = vperm.xlu0 %5731, %v1702_v53   ;;  %v1542_v46 = vld [vmem:[%s8176_s5 + $0x498] sm:$0xff] }
 0xdff   : > { %5466 = vmatprep.mubr.msk.f32.mxu0 %vm526_vm6, %v1437_v57  ;;  %5617 = vmatmul.mubr.msk.f32.gmra.mxu1 %vm526_vm6, %v1538_v61  ;;  %v6818_v13 = vpop.permute.xlu0 %2084  ;;  %v1705_v57 = vld [vmem:[%s8177_s6 + $0x370] sm:$0xff]  ;;  %v1543_v61 = vld [vmem:[%s8176_s5 + $0x4a0] sm:$0xff] }
 0xe00   : > { %2379 = vperm.xlu1 %5732, %v1701_v4   ;;  %5619 = vmatprep.mubr.msk.f32.mxu1 %vm526_vm6, %v1539_v5  ;;  %v1442_v4 = vld [vmem:[%s8176_s5 + $0x178] sm:$0xff] }
 0xe01   : > { %v6830_v25 = vpop.permute.xlu1 %2079 }
 0xe02   : > { %5467 = vmatmul.mubr.msk.f32.gmra.mxu0 %vm526_vm6, %v1438_v8  ;;  %2394 = vperm.xlu0 %5731, %v1704_v14   ;;  %v1708_v8 = vld [vmem:[%s8177_s6 + $0x388] sm:$0xff]  ;;  %v1443_v14 = vld [vmem:[%s8176_s5 + $0x180] sm:$0xff] }
 0xe03   : > { %5469 = vmatprep.mubr.msk.f32.mxu0 %vm526_vm6, %v1439_v18  ;;  %5620 = vmatmul.mubr.msk.f32.gmra.mxu1 %vm526_vm6, %v1540_v21  ;;  %v6844_v42 = vpop.permute.xlu0 %2094  ;;  %v1544_v18 = vld [vmem:[%s8176_s5 + $0x4a8] sm:$0xff] }
 0xe04   : > { %2389 = vperm.xlu1 %5732, %v1703_v26   ;;  %5622 = vmatprep.mubr.msk.f32.mxu1 %vm526_vm6, %v1541_v32  ;;  %v1707_v26 = vld [vmem:[%s8177_s6 + $0x380] sm:$0xff]  ;;  %v1545_v32 = vld [vmem:[%s8176_s5 + $0x4b0] sm:$0xff] }
 0xe05   : > { %v6856_v53 = vpop.permute.xlu1 %2089 }
 0xe06   : > { %5470 = vmatmul.mubr.msk.f32.gmra.mxu0 %vm526_vm6, %v1440_v40  ;;  %2404 = vperm.xlu0 %5731, %v1706_v38   ;;  %v1444_v40 = vld [vmem:[%s8176_s5 + $0x188] sm:$0xff] }
 0xe07   : > { %5472 = vmatprep.mubr.msk.f32.mxu0 %vm526_vm6, %v1441_v39  ;;  %5623 = vmatmul.mubr.msk.f32.gmra.mxu1 %vm526_vm6, %v1542_v46  ;;  %v6870_v5 = vpop.permute.xlu0 %2104  ;;  %v1710_v39 = vld [vmem:[%s8177_s6 + $0x398] sm:$0xff]  ;;  %v1445_v46 = vld [vmem:[%s8176_s5 + $0x190] sm:$0xff] }
 0xe08   : > { %2399 = vperm.xlu1 %5732, %v1705_v57   ;;  %5625 = vmatprep.mubr.msk.f32.mxu1 %vm526_vm6, %v1543_v61  ;;  %v1546_v57 = vld [vmem:[%s8176_s5 + $0x4b8] sm:$0xff] }
 0xe09   : > { %v6882_v21 = vpop.permute.xlu1 %2099 }
 0xe0a   : > { %5473 = vmatmul.mubr.msk.f32.gmra.mxu0 %vm526_vm6, %v1442_v4  ;;  %2414 = vperm.xlu0 %5731, %v1708_v8   ;;  %v1709_v4 = vld [vmem:[%s8177_s6 + $0x390] sm:$0xff]  ;;  %v1547_v8 = vld [vmem:[%s8176_s5 + $0x4c0] sm:$0xff] }
 0xe0b   : > { %5475 = vmatprep.mubr.msk.f32.mxu0 %vm526_vm6, %v1443_v14  ;;  %5626 = vmatmul.mubr.msk.f32.gmra.mxu1 %vm526_vm6, %v1544_v18  ;;  %v6896_v38 = vpop.permute.xlu0 %2114  ;;  %v1446_v14 = vld [vmem:[%s8176_s5 + $0x198] sm:$0xff] }
 0xe0c   : > { %8179 = vst [vmem:[#allocation4_spill] sm:$0xff] %v6896_v38  ;;  %2409 = vperm.xlu1 %5732, %v1707_v26   ;;  %5628 = vmatprep.mubr.msk.f32.mxu1 %vm526_vm6, %v1545_v32  ;;  %v1712_v26 = vld [vmem:[%s8177_s6 + $0x3a8] sm:$0xff]  ;;  %v1447_v32 = vld [vmem:[%s8176_s5 + $0x1a0] sm:$0xff] }
 0xe0d   : > { %v6908_v61 = vpop.permute.xlu1 %2109 }
 0xe0e   : > { %8180 = vst [vmem:[#allocation5_spill] sm:$0xff] %v6908_v61  ;;  %5476 = vmatmul.mubr.msk.f32.gmra.mxu0 %vm526_vm6, %v1444_v40  ;;  %2424 = vperm.xlu0 %5731, %v1710_v39   ;;  %v1548_v40 = vld [vmem:[%s8176_s5 + $0x4c8] sm:$0xff] }
 0xe0f   : > { %5478 = vmatprep.mubr.msk.f32.mxu0 %vm526_vm6, %v1445_v46  ;;  %5629 = vmatmul.mubr.msk.f32.gmra.mxu1 %vm526_vm6, %v1546_v57  ;;  %v6922_v18 = vpop.permute.xlu0 %2124  ;;  %v1711_v46 = vld [vmem:[%s8177_s6 + $0x3a0] sm:$0xff]  ;;  %v1549_v57 = vld [vmem:[%s8176_s5 + $0x4d0] sm:$0xff]  ;;  %v1760_v61 = vld [vmem:[%s8177_s6 + $0x528] sm:$0xff] }
 0xe10   : > { %8181 = vst [vmem:[#allocation6_spill] sm:$0xff] %v6922_v18  ;;  %2419 = vperm.xlu1 %5732, %v1709_v4   ;;  %5631 = vmatprep.mubr.msk.f32.mxu1 %vm526_vm6, %v1547_v8  ;;  %v1448_v4 = vld [vmem:[%s8176_s5 + $0x1a8] sm:$0xff] }
 0xe11   : > { %v6934_v39 = vpop.permute.xlu1 %2119 }
 0xe12   : > { %8182 = vst [vmem:[#allocation7_spill] sm:$0xff] %v6934_v39  ;;  %5479 = vmatmul.mubr.msk.f32.gmra.mxu0 %vm526_vm6, %v1446_v14  ;;  %2434 = vperm.xlu0 %5731, %v1712_v26   ;;  %v1714_v39 = vld [vmem:[%s8177_s6 + $0x3b8] sm:$0xff]  ;;  %v1449_v14 = vld [vmem:[%s8176_s5 + $0x1b0] sm:$0xff] }
 0xe13   : > { %5481 = vmatprep.mubr.msk.f32.mxu0 %vm526_vm6, %v1447_v32  ;;  %5632 = vmatmul.mubr.msk.f32.gmra.mxu1 %vm526_vm6, %v1548_v40  ;;  %v6948_v8 = vpop.permute.xlu0 %2134  ;;  %v1550_v26 = vld [vmem:[%s8176_s5 + $0x4d8] sm:$0xff]  ;;  %v1713_v40 = vld [vmem:[%s8177_s6 + $0x3b0] sm:$0xff] }
 0xe14   : > { %8183 = vst [vmem:[#allocation8_spill] sm:$0xff] %v6948_v8  ;;  %2429 = vperm.xlu1 %5732, %v1711_v46   ;;  %5634 = vmatprep.mubr.msk.f32.mxu1 %vm526_vm6, %v1549_v57  ;;  %v1551_v46 = vld [vmem:[%s8176_s5 + $0x4e0] sm:$0xff]  ;;  %v1450_v57 = vld [vmem:[%s8176_s5 + $0x1b8] sm:$0xff]  ;;  %v1716_v8 = vld [vmem:[%s8177_s6 + $0x3c8] sm:$0xff] }
 0xe15   : > { %v6960_v32 = vpop.permute.xlu1 %2129 }
 0xe16   : > { %8184 = vst [vmem:[#allocation9_spill] sm:$0xff] %v6960_v32  ;;  %5482 = vmatmul.mubr.msk.f32.gmra.mxu0 %vm526_vm6, %v1448_v4  ;;  %2444 = vperm.xlu0 %5731, %v1714_v39   ;;  %v1451_v4 = vld [vmem:[%s8176_s5 + $0x1c0] sm:$0xff]  ;;  %v1552_v39 = vld [vmem:[%s8176_s5 + $0x4e8] sm:$0xff] }
 0xe17   : > { %5484 = vmatprep.mubr.msk.f32.mxu0 %vm526_vm6, %v1449_v14  ;;  %5635 = vmatmul.mubr.msk.f32.gmra.mxu1 %vm526_vm6, %v1550_v26  ;;  %v6974_v32 = vpop.permute.xlu0 %2144  ;;  %v1715_v26 = vld [vmem:[%s8177_s6 + $0x3c0] sm:$0xff] }
 0xe18   : > { %8185 = vst [vmem:[#allocation10_spill] sm:$0xff] %v6974_v32  ;;  %2439 = vperm.xlu1 %5732, %v1713_v40   ;;  %5637 = vmatprep.mubr.msk.f32.mxu1 %vm526_vm6, %v1551_v46  ;;  %v1553_v40 = vld [vmem:[%s8176_s5 + $0x4f0] sm:$0xff]  ;;  %v1452_v46 = vld [vmem:[%s8176_s5 + $0x1c8] sm:$0xff]  ;;  %v1718_v32 = vld [vmem:[%s8177_s6 + $0x3d8] sm:$0xff] }
 0xe19   : > { %v6986_v14 = vpop.permute.xlu1 %2139 }
 0xe1a   : > { %8186 = vst [vmem:[#allocation11_spill] sm:$0xff] %v6986_v14  ;;  %5485 = vmatmul.mubr.msk.f32.gmra.mxu0 %vm526_vm6, %v1450_v57  ;;  %2454 = vperm.xlu0 %5731, %v1716_v8   ;;  %v1453_v57 = vld [vmem:[%s8176_s5 + $0x1d0] sm:$0xff]  ;;  %v1554_v8 = vld [vmem:[%s8176_s5 + $0x4f8] sm:$0xff] }
 0xe1b   : > { %5487 = vmatprep.mubr.msk.f32.mxu0 %vm526_vm6, %v1451_v4  ;;  %5638 = vmatmul.mubr.msk.f32.gmra.mxu1 %vm526_vm6, %v1552_v39  ;;  %v7000_v14 = vpop.permute.xlu0 %2154  ;;  %v1717_v39 = vld [vmem:[%s8177_s6 + $0x3d0] sm:$0xff] }
 0xe1c   : > { %8187 = vst [vmem:[#allocation12_spill] sm:$0xff] %v7000_v14  ;;  %2449 = vperm.xlu1 %5732, %v1715_v26   ;;  %5640 = vmatprep.mubr.msk.f32.mxu1 %vm526_vm6, %v1553_v40  ;;  %v1555_v26 = vld [vmem:[%s8176_s5 + $0x500] sm:$0xff]  ;;  %v1454_v40 = vld [vmem:[%s8176_s5 + $0x1d8] sm:$0xff] }
 0xe1d   : > { %v7012_v4 = vpop.permute.xlu1 %2149 }
 0xe1e   : > { %8188 = vst [vmem:[#allocation13_spill] sm:$0xff] %v7012_v4  ;;  %5488 = vmatmul.mubr.msk.f32.gmra.mxu0 %vm526_vm6, %v1452_v46  ;;  %2464 = vperm.xlu0 %5731, %v1718_v32   ;;  %v1720_v4 = vld [vmem:[%s8177_s6 + $0x3e8] sm:$0xff]  ;;  %v1455_v46 = vld [vmem:[%s8176_s5 + $0x1e0] sm:$0xff] }
 0xe1f   : > { %5490 = vmatprep.mubr.msk.f32.mxu0 %vm526_vm6, %v1453_v57  ;;  %5641 = vmatmul.mubr.msk.f32.gmra.mxu1 %vm526_vm6, %v1554_v8  ;;  %v1556_v32 = vld [vmem:[%s8176_s5 + $0x508] sm:$0xff]  ;;  %v1719_v57 = vld [vmem:[%s8177_s6 + $0x3e0] sm:$0xff]  ;;  %v1557_v8 = vld [vmem:[%s8176_s5 + $0x510] sm:$0xff] }
 0xe20   : > { %2459 = vperm.xlu1 %5732, %v1717_v39   ;;  %v7029_v14 = vpop.permute.xlu0 %2164  ;;  %5643 = vmatprep.mubr.msk.f32.mxu1 %vm526_vm6, %v1555_v26  ;;  %v1456_v26 = vld [vmem:[%s8176_s5 + $0x1e8] sm:$0xff] }
 0xe21   : > { %8189 = vst [vmem:[#allocation14_spill] sm:$0xff] %v7029_v14  ;;  %v1722_v14 = vld [vmem:[%s8177_s6 + $0x3f8] sm:$0xff] }
 0xe22   : > { %5491 = vmatmul.mubr.msk.f32.gmra.mxu0 %vm526_vm6, %v1454_v40  ;;  %2474 = vperm.xlu0 %5731, %v1720_v4   ;;  %v7045_v39 = vpop.permute.xlu1 %2159  ;;  %v1457_v40 = vld [vmem:[%s8176_s5 + $0x1f0] sm:$0xff]  ;;  %v1558_v4 = vld [vmem:[%s8176_s5 + $0x518] sm:$0xff] }
 0xe23   : > { %8190 = vst [vmem:[#allocation15_spill] sm:$0xff] %v7045_v39  ;;  %5493 = vmatprep.mubr.msk.f32.mxu0 %vm526_vm6, %v1455_v46  ;;  %5644 = vmatmul.mubr.msk.f32.gmra.mxu1 %vm526_vm6, %v1556_v32  ;;  %v1721_v32 = vld [vmem:[%s8177_s6 + $0x3f0] sm:$0xff] }
 0xe24   : > { %2469 = vperm.xlu1 %5732, %v1719_v57   ;;  %5646 = vmatprep.mubr.msk.f32.mxu1 %vm526_vm6, %v1557_v8  ;;  %v1559_v57 = vld [vmem:[%s8176_s5 + $0x520] sm:$0xff]  ;;  %v1458_v8 = vld [vmem:[%s8176_s5 + $0x1f8] sm:$0xff] }
 0xe25   : > { %v7062_v46 = vpop.permute.xlu0 %2174 }
 0xe26   : > { %8191 = vst [vmem:[#allocation16_spill] sm:$0xff] %v7062_v46  ;;  %5494 = vmatmul.mubr.msk.f32.gmra.mxu0 %vm526_vm6, %v1456_v26  ;;  %2484 = vperm.xlu0 %5731, %v1722_v14   ;;  %v1724_v46 = vld [vmem:[%s8177_s6 + $0x408] sm:$0xff]  ;;  %v1459_v26 = vld [vmem:[%s8176_s5 + $0x200] sm:$0xff] }
 0xe27   : > { %v7071_v39 = vpop.permute.xlu1 %2169  ;;  %5496 = vmatprep.mubr.msk.f32.mxu0 %vm526_vm6, %v1457_v40  ;;  %5647 = vmatmul.mubr.msk.f32.gmra.mxu1 %vm526_vm6, %v1558_v4  ;;  %v1560_v14 = vld [vmem:[%s8176_s5 + $0x528] sm:$0xff]  ;;  %v1723_v4 = vld [vmem:[%s8177_s6 + $0x400] sm:$0xff] }
 0xe28   : > { %8192 = vst [vmem:[#allocation17_spill] sm:$0xff] %v7071_v39  ;;  %2479 = vperm.xlu1 %5732, %v1721_v32   ;;  %5649 = vmatprep.mubr.msk.f32.mxu1 %vm526_vm6, %v1559_v57  ;;  %v1561_v32 = vld [vmem:[%s8176_s5 + $0x530] sm:$0xff]  ;;  %v1460_v57 = vld [vmem:[%s8176_s5 + $0x208] sm:$0xff] }
 0xe29   : > { %v7088_v40 = vpop.permute.xlu0 %2184 }
 0xe2a   : > { %8193 = vst [vmem:[#allocation18_spill] sm:$0xff] %v7088_v40  ;;  %5497 = vmatmul.mubr.msk.f32.gmra.mxu0 %vm526_vm6, %v1458_v8  ;;  %2494 = vperm.xlu0 %5731, %v1724_v46   ;;  %v1726_v40 = vld [vmem:[%s8177_s6 + $0x418] sm:$0xff]  ;;  %v1461_v8 = vld [vmem:[%s8176_s5 + $0x210] sm:$0xff] }
 0xe2b   : > { %v7097_v39 = vpop.permute.xlu1 %2179  ;;  %5499 = vmatprep.mubr.msk.f32.mxu0 %vm526_vm6, %v1459_v26  ;;  %5650 = vmatmul.mubr.msk.f32.gmra.mxu1 %vm526_vm6, %v1560_v14  ;;  %v1562_v46 = vld [vmem:[%s8176_s5 + $0x538] sm:$0xff]  ;;  %v1725_v14 = vld [vmem:[%s8177_s6 + $0x410] sm:$0xff] }
 0xe2c   : > { %8194 = vst [vmem:[#allocation19_spill] sm:$0xff] %v7097_v39  ;;  %2489 = vperm.xlu1 %5732, %v1723_v4   ;;  %5652 = vmatprep.mubr.msk.f32.mxu1 %vm526_vm6, %v1561_v32  ;;  %v1563_v4 = vld [vmem:[%s8176_s5 + $0x540] sm:$0xff]  ;;  %v1462_v32 = vld [vmem:[%s8176_s5 + $0x218] sm:$0xff] }
 0xe2d   : > { %v7114_v26 = vpop.permute.xlu0 %2194 }
 0xe2e   : > { %8195 = vst [vmem:[#allocation20_spill] sm:$0xff] %v7114_v26  ;;  %5500 = vmatmul.mubr.msk.f32.gmra.mxu0 %vm526_vm6, %v1460_v57  ;;  %2504 = vperm.xlu0 %5731, %v1726_v40   ;;  %v1728_v26 = vld [vmem:[%s8177_s6 + $0x428] sm:$0xff]  ;;  %v1463_v57 = vld [vmem:[%s8176_s5 + $0x220] sm:$0xff] }
 0xe2f   : > { %v7123_v39 = vpop.permute.xlu1 %2189  ;;  %5502 = vmatprep.mubr.msk.f32.mxu0 %vm526_vm6, %v1461_v8  ;;  %5653 = vmatmul.mubr.msk.f32.gmra.mxu1 %vm526_vm6, %v1562_v46  ;;  %v1564_v40 = vld [vmem:[%s8176_s5 + $0x548] sm:$0xff]  ;;  %v1727_v46 = vld [vmem:[%s8177_s6 + $0x420] sm:$0xff] }
 0xe30   : > { %8196 = vst [vmem:[#allocation21_spill] sm:$0xff] %v7123_v39  ;;  %2499 = vperm.xlu1 %5732, %v1725_v14   ;;  %5655 = vmatprep.mubr.msk.f32.mxu1 %vm526_vm6, %v1563_v4  ;;  %v1565_v14 = vld [vmem:[%s8176_s5 + $0x550] sm:$0xff]  ;;  %v1464_v4 = vld [vmem:[%s8176_s5 + $0x228] sm:$0xff] }
 0xe31   : > { %v7140_v8 = vpop.permute.xlu0 %2204 }
 0xe32   : > { %8197 = vst [vmem:[#allocation22_spill] sm:$0xff] %v7140_v8  ;;  %5503 = vmatmul.mubr.msk.f32.gmra.mxu0 %vm526_vm6, %v1462_v32  ;;  %2514 = vperm.xlu0 %5731, %v1728_v26   ;;  %v1730_v8 = vld [vmem:[%s8177_s6 + $0x438] sm:$0xff]  ;;  %v1465_v32 = vld [vmem:[%s8176_s5 + $0x230] sm:$0xff] }
 0xe33   : > { %v7149_v39 = vpop.permute.xlu1 %2199  ;;  %5505 = vmatprep.mubr.msk.f32.mxu0 %vm526_vm6, %v1463_v57  ;;  %5656 = vmatmul.mubr.msk.f32.gmra.mxu1 %vm526_vm6, %v1564_v40  ;;  %v1566_v26 = vld [vmem:[%s8176_s5 + $0x558] sm:$0xff]  ;;  %v1729_v40 = vld [vmem:[%s8177_s6 + $0x430] sm:$0xff] }
 0xe34   : > { %8198 = vst [vmem:[#allocation23_spill] sm:$0xff] %v7149_v39  ;;  %2509 = vperm.xlu1 %5732, %v1727_v46   ;;  %5658 = vmatprep.mubr.msk.f32.mxu1 %vm526_vm6, %v1565_v14  ;;  %v1567_v46 = vld [vmem:[%s8176_s5 + $0x560] sm:$0xff]  ;;  %v1466_v14 = vld [vmem:[%s8176_s5 + $0x238] sm:$0xff] }
 0xe35   : > { %v7166_v57 = vpop.permute.xlu0 %2214 }
 0xe36   : > { %8199 = vst [vmem:[#allocation24_spill] sm:$0xff] %v7166_v57  ;;  %5506 = vmatmul.mubr.msk.f32.gmra.mxu0 %vm526_vm6, %v1464_v4  ;;  %2524 = vperm.xlu0 %5731, %v1730_v8   ;;  %v1732_v57 = vld [vmem:[%s8177_s6 + $0x448] sm:$0xff]  ;;  %v1467_v4 = vld [vmem:[%s8176_s5 + $0x240] sm:$0xff] }
 0xe37   : > { %v7175_v39 = vpop.permute.xlu1 %2209  ;;  %5508 = vmatprep.mubr.msk.f32.mxu0 %vm526_vm6, %v1465_v32  ;;  %5659 = vmatmul.mubr.msk.f32.gmra.mxu1 %vm526_vm6, %v1566_v26  ;;  %v1568_v8 = vld [vmem:[%s8176_s5 + $0x568] sm:$0xff]  ;;  %v1731_v26 = vld [vmem:[%s8177_s6 + $0x440] sm:$0xff] }
 0xe38   : > { %8200 = vst [vmem:[#allocation25_spill] sm:$0xff] %v7175_v39  ;;  %2519 = vperm.xlu1 %5732, %v1729_v40   ;;  %5661 = vmatprep.mubr.msk.f32.mxu1 %vm526_vm6, %v1567_v46  ;;  %v1569_v40 = vld [vmem:[%s8176_s5 + $0x570] sm:$0xff]  ;;  %v1468_v46 = vld [vmem:[%s8176_s5 + $0x248] sm:$0xff] }
 0xe39   : > { %v7192_v32 = vpop.permute.xlu0 %2224 }
 0xe3a   : > { %8201 = vst [vmem:[#allocation26_spill] sm:$0xff] %v7192_v32  ;;  %5509 = vmatmul.mubr.msk.f32.gmra.mxu0 %vm526_vm6, %v1466_v14  ;;  %2534 = vperm.xlu0 %5731, %v1732_v57   ;;  %v1734_v32 = vld [vmem:[%s8177_s6 + $0x458] sm:$0xff]  ;;  %v1469_v14 = vld [vmem:[%s8176_s5 + $0x250] sm:$0xff] }
 0xe3b   : > { %v7201_v39 = vpop.permute.xlu1 %2219  ;;  %5511 = vmatprep.mubr.msk.f32.mxu0 %vm526_vm6, %v1467_v4  ;;  %5662 = vmatmul.mubr.msk.f32.gmra.mxu1 %vm526_vm6, %v1568_v8  ;;  %v1570_v57 = vld [vmem:[%s8176_s5 + $0x578] sm:$0xff]  ;;  %v1733_v8 = vld [vmem:[%s8177_s6 + $0x450] sm:$0xff] }
 0xe3c   : > { %8202 = vst [vmem:[#allocation27_spill] sm:$0xff] %v7201_v39  ;;  %2529 = vperm.xlu1 %5732, %v1731_v26   ;;  %5664 = vmatprep.mubr.msk.f32.mxu1 %vm526_vm6, %v1569_v40  ;;  %v1571_v26 = vld [vmem:[%s8176_s5 + $0x580] sm:$0xff]  ;;  %v1470_v40 = vld [vmem:[%s8176_s5 + $0x258] sm:$0xff] }
 0xe3d   : > { %v7218_v4 = vpop.permute.xlu0 %2234 }
 0xe3e   : > { %8203 = vst [vmem:[#allocation28_spill] sm:$0xff] %v7218_v4  ;;  %5512 = vmatmul.mubr.msk.f32.gmra.mxu0 %vm526_vm6, %v1468_v46  ;;  %2544 = vperm.xlu0 %5731, %v1734_v32   ;;  %v1736_v4 = vld [vmem:[%s8177_s6 + $0x468] sm:$0xff]  ;;  %v1471_v46 = vld [vmem:[%s8176_s5 + $0x260] sm:$0xff] }
 0xe3f   : > { %v7227_v39 = vpop.permute.xlu1 %2229  ;;  %5514 = vmatprep.mubr.msk.f32.mxu0 %vm526_vm6, %v1469_v14  ;;  %5665 = vmatmul.mubr.msk.f32.gmra.mxu1 %vm526_vm6, %v1570_v57  ;;  %v1572_v32 = vld [vmem:[%s8176_s5 + $0x588] sm:$0xff]  ;;  %v1735_v57 = vld [vmem:[%s8177_s6 + $0x460] sm:$0xff] }
 0xe40   : > { %8204 = vst [vmem:[#allocation29_spill] sm:$0xff] %v7227_v39  ;;  %2539 = vperm.xlu1 %5732, %v1733_v8   ;;  %5667 = vmatprep.mubr.msk.f32.mxu1 %vm526_vm6, %v1571_v26  ;;  %v1573_v8 = vld [vmem:[%s8176_s5 + $0x590] sm:$0xff]  ;;  %v1472_v26 = vld [vmem:[%s8176_s5 + $0x268] sm:$0xff] }
 0xe41   : > { %v7244_v14 = vpop.permute.xlu0 %2244 }
 0xe42   : > { %8205 = vst [vmem:[#allocation30_spill] sm:$0xff] %v7244_v14  ;;  %5515 = vmatmul.mubr.msk.f32.gmra.mxu0 %vm526_vm6, %v1470_v40  ;;  %2554 = vperm.xlu0 %5731, %v1736_v4   ;;  %v1738_v14 = vld [vmem:[%s8177_s6 + $0x478] sm:$0xff]  ;;  %v1473_v40 = vld [vmem:[%s8176_s5 + $0x270] sm:$0xff] }
 0xe43   : > { %v7253_v39 = vpop.permute.xlu1 %2239  ;;  %5517 = vmatprep.mubr.msk.f32.mxu0 %vm526_vm6, %v1471_v46  ;;  %5668 = vmatmul.mubr.msk.f32.gmra.mxu1 %vm526_vm6, %v1572_v32  ;;  %v1574_v4 = vld [vmem:[%s8176_s5 + $0x598] sm:$0xff]  ;;  %v1737_v32 = vld [vmem:[%s8177_s6 + $0x470] sm:$0xff] }
 0xe44   : > { %8206 = vst [vmem:[#allocation31_spill] sm:$0xff] %v7253_v39  ;;  %2549 = vperm.xlu1 %5732, %v1735_v57   ;;  %5670 = vmatprep.mubr.msk.f32.mxu1 %vm526_vm6, %v1573_v8  ;;  %v1575_v57 = vld [vmem:[%s8176_s5 + $0x5a0] sm:$0xff]  ;;  %v1474_v8 = vld [vmem:[%s8176_s5 + $0x278] sm:$0xff] }
 0xe45   : > { %v7270_v46 = vpop.permute.xlu0 %2254 }
 0xe46   : > { %8207 = vst [vmem:[#allocation32_spill] sm:$0xff] %v7270_v46  ;;  %5518 = vmatmul.mubr.msk.f32.gmra.mxu0 %vm526_vm6, %v1472_v26  ;;  %2564 = vperm.xlu0 %5731, %v1738_v14   ;;  %v1740_v46 = vld [vmem:[%s8177_s6 + $0x488] sm:$0xff]  ;;  %v1475_v26 = vld [vmem:[%s8176_s5 + $0x280] sm:$0xff] }
 0xe47   : > { %v7279_v39 = vpop.permute.xlu1 %2249  ;;  %5520 = vmatprep.mubr.msk.f32.mxu0 %vm526_vm6, %v1473_v40  ;;  %5671 = vmatmul.mubr.msk.f32.gmra.mxu1 %vm526_vm6, %v1574_v4  ;;  %v1576_v14 = vld [vmem:[%s8176_s5 + $0x5a8] sm:$0xff]  ;;  %v1739_v4 = vld [vmem:[%s8177_s6 + $0x480] sm:$0xff] }
 0xe48   : > { %8208 = vst [vmem:[#allocation33_spill] sm:$0xff] %v7279_v39  ;;  %2559 = vperm.xlu1 %5732, %v1737_v32   ;;  %5673 = vmatprep.mubr.msk.f32.mxu1 %vm526_vm6, %v1575_v57  ;;  %v1577_v32 = vld [vmem:[%s8176_s5 + $0x5b0] sm:$0xff]  ;;  %v1476_v57 = vld [vmem:[%s8176_s5 + $0x288] sm:$0xff] }
 0xe49   : > { %v7296_v40 = vpop.permute.xlu0 %2264 }
 0xe4a   : > { %8209 = vst [vmem:[#allocation34_spill] sm:$0xff] %v7296_v40  ;;  %5521 = vmatmul.mubr.msk.f32.gmra.mxu0 %vm526_vm6, %v1474_v8  ;;  %2574 = vperm.xlu0 %5731, %v1740_v46   ;;  %v1742_v40 = vld [vmem:[%s8177_s6 + $0x498] sm:$0xff]  ;;  %v1477_v8 = vld [vmem:[%s8176_s5 + $0x290] sm:$0xff] }
 0xe4b   : > { %v7305_v39 = vpop.permute.xlu1 %2259  ;;  %5523 = vmatprep.mubr.msk.f32.mxu0 %vm526_vm6, %v1475_v26  ;;  %5674 = vmatmul.mubr.msk.f32.gmra.mxu1 %vm526_vm6, %v1576_v14  ;;  %v1578_v46 = vld [vmem:[%s8176_s5 + $0x5b8] sm:$0xff]  ;;  %v1741_v14 = vld [vmem:[%s8177_s6 + $0x490] sm:$0xff] }
 0xe4c   : > { %8210 = vst [vmem:[#allocation35_spill] sm:$0xff] %v7305_v39  ;;  %2569 = vperm.xlu1 %5732, %v1739_v4   ;;  %5676 = vmatprep.mubr.msk.f32.mxu1 %vm526_vm6, %v1577_v32  ;;  %v1579_v4 = vld [vmem:[%s8176_s5 + $0x5c0] sm:$0xff]  ;;  %v1478_v32 = vld [vmem:[%s8176_s5 + $0x298] sm:$0xff] }
 0xe4d   : > { %v7322_v26 = vpop.permute.xlu0 %2274 }
 0xe4e   : > { %8211 = vst [vmem:[#allocation36_spill] sm:$0xff] %v7322_v26  ;;  %5524 = vmatmul.mubr.msk.f32.gmra.mxu0 %vm526_vm6, %v1476_v57  ;;  %2584 = vperm.xlu0 %5731, %v1742_v40   ;;  %v1744_v26 = vld [vmem:[%s8177_s6 + $0x4a8] sm:$0xff]  ;;  %v1479_v57 = vld [vmem:[%s8176_s5 + $0x2a0] sm:$0xff] }
 0xe4f   : > { %v7331_v39 = vpop.permute.xlu1 %2269  ;;  %5526 = vmatprep.mubr.msk.f32.mxu0 %vm526_vm6, %v1477_v8  ;;  %5677 = vmatmul.mubr.msk.f32.gmra.mxu1 %vm526_vm6, %v1578_v46  ;;  %v1580_v40 = vld [vmem:[%s8176_s5 + $0x5c8] sm:$0xff]  ;;  %v1743_v46 = vld [vmem:[%s8177_s6 + $0x4a0] sm:$0xff] }
 0xe50   : > { %8212 = vst [vmem:[#allocation37_spill] sm:$0xff] %v7331_v39  ;;  %2579 = vperm.xlu1 %5732, %v1741_v14   ;;  %5679 = vmatprep.mubr.msk.f32.mxu1 %vm526_vm6, %v1579_v4  ;;  %v1581_v14 = vld [vmem:[%s8176_s5 + $0x5d0] sm:$0xff]  ;;  %v1480_v4 = vld [vmem:[%s8176_s5 + $0x2a8] sm:$0xff] }
 0xe51   : > { %v7348_v8 = vpop.permute.xlu0 %2284 }
 0xe52   : > { %8213 = vst [vmem:[#allocation38_spill] sm:$0xff] %v7348_v8  ;;  %5527 = vmatmul.mubr.msk.f32.gmra.mxu0 %vm526_vm6, %v1478_v32  ;;  %2594 = vperm.xlu0 %5731, %v1744_v26   ;;  %v1746_v8 = vld [vmem:[%s8177_s6 + $0x4b8] sm:$0xff]  ;;  %v1481_v32 = vld [vmem:[%s8176_s5 + $0x2b0] sm:$0xff] }
 0xe53   : > { %v7357_v39 = vpop.permute.xlu1 %2279  ;;  %5529 = vmatprep.mubr.msk.f32.mxu0 %vm526_vm6, %v1479_v57  ;;  %5680 = vmatmul.mubr.msk.f32.gmra.mxu1 %vm526_vm6, %v1580_v40  ;;  %v1582_v26 = vld [vmem:[%s8176_s5 + $0x5d8] sm:$0xff]  ;;  %v1745_v40 = vld [vmem:[%s8177_s6 + $0x4b0] sm:$0xff] }
 0xe54   : > { %8214 = vst [vmem:[#allocation39_spill] sm:$0xff] %v7357_v39  ;;  %2589 = vperm.xlu1 %5732, %v1743_v46   ;;  %5682 = vmatprep.mubr.msk.f32.mxu1 %vm526_vm6, %v1581_v14  ;;  %v1583_v46 = vld [vmem:[%s8176_s5 + $0x5e0] sm:$0xff]  ;;  %v1482_v14 = vld [vmem:[%s8176_s5 + $0x2b8] sm:$0xff] }
 0xe55   : > { %v7374_v57 = vpop.permute.xlu0 %2294 }
 0xe56   : > { %8215 = vst [vmem:[#allocation40_spill] sm:$0xff] %v7374_v57  ;;  %5530 = vmatmul.mubr.msk.f32.gmra.mxu0 %vm526_vm6, %v1480_v4  ;;  %2604 = vperm.xlu0 %5731, %v1746_v8   ;;  %v1748_v57 = vld [vmem:[%s8177_s6 + $0x4c8] sm:$0xff]  ;;  %v1483_v4 = vld [vmem:[%s8176_s5 + $0x2c0] sm:$0xff] }
 0xe57   : > { %v7383_v39 = vpop.permute.xlu1 %2289  ;;  %5532 = vmatprep.mubr.msk.f32.mxu0 %vm526_vm6, %v1481_v32  ;;  %5683 = vmatmul.mubr.msk.f32.gmra.mxu1 %vm526_vm6, %v1582_v26  ;;  %v1584_v8 = vld [vmem:[%s8176_s5 + $0x5e8] sm:$0xff]  ;;  %v1747_v26 = vld [vmem:[%s8177_s6 + $0x4c0] sm:$0xff] }
 0xe58   : > { %8216 = vst [vmem:[#allocation41_spill] sm:$0xff] %v7383_v39  ;;  %2599 = vperm.xlu1 %5732, %v1745_v40   ;;  %5685 = vmatprep.mubr.msk.f32.mxu1 %vm526_vm6, %v1583_v46  ;;  %v1585_v40 = vld [vmem:[%s8176_s5 + $0x5f0] sm:$0xff]  ;;  %v1484_v46 = vld [vmem:[%s8176_s5 + $0x2c8] sm:$0xff] }
 0xe59   : > { %v7400_v32 = vpop.permute.xlu0 %2304 }
 0xe5a   : > { %8217 = vst [vmem:[#allocation42_spill] sm:$0xff] %v7400_v32  ;;  %5533 = vmatmul.mubr.msk.f32.gmra.mxu0 %vm526_vm6, %v1482_v14  ;;  %2614 = vperm.xlu0 %5731, %v1748_v57   ;;  %v1750_v32 = vld [vmem:[%s8177_s6 + $0x4d8] sm:$0xff]  ;;  %v1485_v14 = vld [vmem:[%s8176_s5 + $0x2d0] sm:$0xff] }
 0xe5b   : > { %v7409_v39 = vpop.permute.xlu1 %2299  ;;  %5535 = vmatprep.mubr.msk.f32.mxu0 %vm526_vm6, %v1483_v4  ;;  %5686 = vmatmul.mubr.msk.f32.gmra.mxu1 %vm526_vm6, %v1584_v8  ;;  %v1586_v57 = vld [vmem:[%s8176_s5 + $0x5f8] sm:$0xff]  ;;  %v1749_v8 = vld [vmem:[%s8177_s6 + $0x4d0] sm:$0xff] }
 0xe5c   : > { %8218 = vst [vmem:[#allocation43_spill] sm:$0xff] %v7409_v39  ;;  %2609 = vperm.xlu1 %5732, %v1747_v26   ;;  %5688 = vmatprep.mubr.msk.f32.mxu1 %vm526_vm6, %v1585_v40  ;;  %v1587_v26 = vld [vmem:[%s8176_s5 + $0x600] sm:$0xff]  ;;  %v1486_v40 = vld [vmem:[%s8176_s5 + $0x2d8] sm:$0xff] }
 0xe5d   : > { %v7426_v4 = vpop.permute.xlu0 %2314 }
 0xe5e   : > { %8219 = vst [vmem:[#allocation44_spill] sm:$0xff] %v7426_v4  ;;  %5536 = vmatmul.mubr.msk.f32.gmra.mxu0 %vm526_vm6, %v1484_v46  ;;  %2624 = vperm.xlu0 %5731, %v1750_v32   ;;  %v1752_v4 = vld [vmem:[%s8177_s6 + $0x4e8] sm:$0xff]  ;;  %v1487_v46 = vld [vmem:[%s8176_s5 + $0x2e0] sm:$0xff] }
 0xe5f   : > { %v7435_v39 = vpop.permute.xlu1 %2309  ;;  %5538 = vmatprep.mubr.msk.f32.mxu0 %vm526_vm6, %v1485_v14  ;;  %5689 = vmatmul.mubr.msk.f32.gmra.mxu1 %vm526_vm6, %v1586_v57  ;;  %v1588_v32 = vld [vmem:[%s8176_s5 + $0x608] sm:$0xff]  ;;  %v1751_v57 = vld [vmem:[%s8177_s6 + $0x4e0] sm:$0xff] }
 0xe60   : > { %8220 = vst [vmem:[#allocation45_spill] sm:$0xff] %v7435_v39  ;;  %2619 = vperm.xlu1 %5732, %v1749_v8   ;;  %5691 = vmatprep.mubr.msk.f32.mxu1 %vm526_vm6, %v1587_v26  ;;  %v1589_v8 = vld [vmem:[%s8176_s5 + $0x610] sm:$0xff]  ;;  %v1488_v26 = vld [vmem:[%s8176_s5 + $0x2e8] sm:$0xff] }
 0xe61   : > { %v7452_v14 = vpop.permute.xlu0 %2324 }
 0xe62   : > { %8221 = vst [vmem:[#allocation46_spill] sm:$0xff] %v7452_v14  ;;  %5539 = vmatmul.mubr.msk.f32.gmra.mxu0 %vm526_vm6, %v1486_v40  ;;  %2634 = vperm.xlu0 %5731, %v1752_v4   ;;  %v1754_v14 = vld [vmem:[%s8177_s6 + $0x4f8] sm:$0xff]  ;;  %v1489_v40 = vld [vmem:[%s8176_s5 + $0x2f0] sm:$0xff] }
 0xe63   : > { %v7461_v39 = vpop.permute.xlu1 %2319  ;;  %5541 = vmatprep.mubr.msk.f32.mxu0 %vm526_vm6, %v1487_v46  ;;  %5692 = vmatmul.mubr.msk.f32.gmra.mxu1 %vm526_vm6, %v1588_v32  ;;  %v1590_v4 = vld [vmem:[%s8176_s5 + $0x618] sm:$0xff]  ;;  %v1753_v32 = vld [vmem:[%s8177_s6 + $0x4f0] sm:$0xff] }
 0xe64   : > { %8222 = vst [vmem:[#allocation47_spill] sm:$0xff] %v7461_v39  ;;  %2629 = vperm.xlu1 %5732, %v1751_v57   ;;  %5694 = vmatprep.mubr.msk.f32.mxu1 %vm526_vm6, %v1589_v8  ;;  %v1591_v57 = vld [vmem:[%s8176_s5 + $0x620] sm:$0xff]  ;;  %v1490_v8 = vld [vmem:[%s8176_s5 + $0x2f8] sm:$0xff] }
 0xe65   : > { %v7478_v46 = vpop.permute.xlu0 %2334 }
 0xe66   : > { %8223 = vst [vmem:[#allocation48_spill] sm:$0xff] %v7478_v46  ;;  %5542 = vmatmul.mubr.msk.f32.gmra.mxu0 %vm526_vm6, %v1488_v26  ;;  %2644 = vperm.xlu0 %5731, %v1754_v14   ;;  %v1756_v46 = vld [vmem:[%s8177_s6 + $0x508] sm:$0xff]  ;;  %v1491_v26 = vld [vmem:[%s8176_s5 + $0x300] sm:$0xff] }
 0xe67   : > { %v7487_v39 = vpop.permute.xlu1 %2329  ;;  %5544 = vmatprep.mubr.msk.f32.mxu0 %vm526_vm6, %v1489_v40  ;;  %5695 = vmatmul.mubr.msk.f32.gmra.mxu1 %vm526_vm6, %v1590_v4  ;;  %v1592_v14 = vld [vmem:[%s8176_s5 + $0x628] sm:$0xff]  ;;  %v1755_v4 = vld [vmem:[%s8177_s6 + $0x500] sm:$0xff] }
 0xe68   : > { %8224 = vst [vmem:[#allocation49_spill] sm:$0xff] %v7487_v39  ;;  %2639 = vperm.xlu1 %5732, %v1753_v32   ;;  %5697 = vmatprep.mubr.msk.f32.mxu1 %vm526_vm6, %v1591_v57  ;;  %v1593_v32 = vld [vmem:[%s8176_s5 + $0x630] sm:$0xff]  ;;  %v1492_v57 = vld [vmem:[%s8176_s5 + $0x308] sm:$0xff] }
 0xe69   : > { %v7504_v40 = vpop.permute.xlu0 %2344 }
 0xe6a   : > { %8225 = vst [vmem:[#allocation50_spill] sm:$0xff] %v7504_v40  ;;  %5545 = vmatmul.mubr.msk.f32.gmra.mxu0 %vm526_vm6, %v1490_v8  ;;  %2654 = vperm.xlu0 %5731, %v1756_v46   ;;  %v1758_v40 = vld [vmem:[%s8177_s6 + $0x518] sm:$0xff]  ;;  %v1493_v8 = vld [vmem:[%s8176_s5 + $0x310] sm:$0xff] }
 0xe6b   : > { %v7514_v39 = vpop.permute.xlu1 %2339  ;;  %5547 = vmatprep.mubr.msk.f32.mxu0 %vm526_vm6, %v1491_v26  ;;  %5698 = vmatmul.mubr.msk.f32.gmra.mxu1 %vm526_vm6, %v1592_v14  ;;  %v1594_v46 = vld [vmem:[%s8176_s5 + $0x638] sm:$0xff]  ;;  %v1757_v14 = vld [vmem:[%s8177_s6 + $0x510] sm:$0xff] }
 0xe6c   : > { %8226 = vst [vmem:[#allocation51_spill] sm:$0xff] %v7514_v39  ;;  %2649 = vperm.xlu1 %5732, %v1755_v4   ;;  %5700 = vmatprep.mubr.msk.f32.mxu1 %vm526_vm6, %v1593_v32 }
 0xe6d   : > { %v7531_v26 = vpop.permute.xlu0 %2354 }
 0xe6e   : > { %8227 = vst [vmem:[#allocation52_spill] sm:$0xff] %v7531_v26  ;;  %v5405_v4 = vpop.f32.mrf.mxu0  ;;  %5548 = vmatmul.mubr.msk.f32.gmra.mxu0 %vm526_vm6, %v1492_v57  ;;  %2664 = vperm.xlu0 %5731, %v1758_v40   ;;  %v1494_v26 = vld [vmem:[%s8176_s5 + $0x318] sm:$0xff] }
 0xe6f   : > { %v3519_v32 = vadd.f32 %v5405_v4, %v6253_v48  ;;  %v7543_v39 = vpop.permute.xlu1 %2349  ;;  %5550 = vmatprep.mubr.msk.f32.mxu0 %vm526_vm6, %v1493_v8  ;;  %v5558_v18 = vpop.f32.mrf.mxu1  ;;  %5701 = vmatmul.mubr.msk.f32.gmra.mxu1 %vm526_vm6, %v1594_v46  ;;  %v1495_v48 = vld [vmem:[%s8176_s5 + $0x320] sm:$0xff] }
 0xe70   : > { %8228 = vst [vmem:[#allocation53_spill] sm:$0xff] %v7543_v39  ;;  %v3513_v57 = vpop.f32.mrf.mxu0  ;;  %2659 = vperm.xlu1 %5732, %v1757_v14   ;;  %v1759_v46 = vld [vmem:[%s8177_s6 + $0x520] sm:$0xff] }
 0xe71   : > { %4513 = vst.msk [vmem:[%s7539_s9 + $0x8] sm:$0xff] %vm301_vm2, %v3519_v32  ;;  %v3514_v40 = vadd.f32 %v3513_v57, %v6258_v50  ;;  %v2365_v8 = vpop.permute.xlu0 %2364  ;;  %v4023_v4 = vpop.f32.mrf.mxu1  ;;  %v1496_v50 = vld [vmem:[%s8176_s5 + $0x328] sm:$0xff] }
 0xe72   : > { %v5408_v39 = vpop.f32.mrf.mxu0  ;;  %5551 = vmatmul.mubr.msk.f32.gmra.mxu0 %vm526_vm6, %v1494_v26  ;;  %v4029_v14 = vadd.f32 %v5558_v18, %v2365_v8  ;;  %2674 = vperm.xlu0 %5731, %v1760_v61   ;;  %v1762_v26 = vld [vmem:[%s8177_s6 + $0x538] sm:$0xff] }
 0xe73   : > { %4512 = vst.msk [vmem:[%s7539_s9] sm:$0xff] %vm301_vm2, %v3514_v40  ;;  %v3529_v32 = vadd.f32 %v5408_v39, %v6260_v52  ;;  %v2360_v38 = vpop.permute.xlu1 %2359  ;;  %5553 = vmatprep.mubr.msk.f32.mxu0 %vm526_vm6, %v1495_v48  ;;  %v5561_v57 = vpop.f32.mrf.mxu1  ;;  %v1761_v40 = vld [vmem:[%s8177_s6 + $0x530] sm:$0xff] }
 0xe74   : > { %4615 = vst.msk [vmem:[%s7539_s9 + $0x338] sm:$0xff] %vm301_vm2, %v4029_v14  ;;  %v3523_v61 = vpop.f32.mrf.mxu0  ;;  %v4024_v18 = vadd.f32 %v4023_v4, %v2360_v38  ;;  %2669 = vperm.xlu1 %5732, %v1759_v46   ;;  %v1764_v46 = vld [vmem:[%s8177_s6 + $0x548] sm:$0xff] }
 0xe75   : > { %4515 = vst.msk [vmem:[%s7539_s9 + $0x18] sm:$0xff] %vm301_vm2, %v3529_v32  ;;  %v3524_v52 = vadd.f32 %v3523_v61, %v6265_v55  ;;  %v2375_v39 = vpop.permute.xlu0 %2374  ;;  %v4033_v48 = vpop.f32.mrf.mxu1 }
 0xe76   : > { %4614 = vst.msk [vmem:[%s7539_s9 + $0x330] sm:$0xff] %vm301_vm2, %v4024_v18  ;;  %v5411_v8 = vpop.f32.mrf.mxu0  ;;  %5554 = vmatmul.mubr.msk.f32.gmra.mxu0 %vm526_vm6, %v1496_v50  ;;  %v4039_v14 = vadd.f32 %v5561_v57, %v2375_v39  ;;  %2684 = vperm.xlu0 %5731, %v1762_v26   ;;  %v1763_v26 = vld [vmem:[%s8177_s6 + $0x540] sm:$0xff] }
 0xe77   : > { %4514 = vst.msk [vmem:[%s7539_s9 + $0x10] sm:$0xff] %vm301_vm2, %v3524_v52  ;;  %v3539_v38 = vadd.f32 %v5411_v8, %v6273_v59  ;;  %v2370_v55 = vpop.permute.xlu1 %2369  ;;  %v5564_v4 = vpop.f32.mrf.mxu1 }
 0xe78   : > { %4617 = vst.msk [vmem:[%s7539_s9 + $0x348] sm:$0xff] %vm301_vm2, %v4039_v14  ;;  %v3533_v32 = vpop.f32.mrf.mxu0  ;;  %v4034_v61 = vadd.f32 %v4033_v48, %v2370_v55  ;;  %2679 = vperm.xlu1 %5732, %v1761_v40   ;;  %v1766_v40 = vld [vmem:[%s8177_s6 + $0x558] sm:$0xff] }
 0xe79   : > { %4517 = vst.msk [vmem:[%s7539_s9 + $0x28] sm:$0xff] %vm301_vm2, %v3539_v38  ;;  %v3534_v50 = vadd.f32 %v3533_v32, %v6284_v63  ;;  %v2385_v57 = vpop.permute.xlu0 %2384  ;;  %v4043_v59 = vpop.f32.mrf.mxu1 }
 0xe7a   : > { %4616 = vst.msk [vmem:[%s7539_s9 + $0x340] sm:$0xff] %vm301_vm2, %v4034_v61  ;;  %v5414_v18 = vpop.f32.mrf.mxu0  ;;  %v4049_v52 = vadd.f32 %v5564_v4, %v2385_v57  ;;  %2694 = vperm.xlu0 %5731, %v1764_v46   ;;  %v1765_v4 = vld [vmem:[%s8177_s6 + $0x550] sm:$0xff]  ;;  %v1768_v57 = vld [vmem:[%s8177_s6 + $0x568] sm:$0xff] }
 0xe7b   : > { %4516 = vst.msk [vmem:[%s7539_s9 + $0x20] sm:$0xff] %vm301_vm2, %v3534_v50  ;;  %v3549_v39 = vadd.f32 %v5414_v18, %v6298_v3  ;;  %v2380_v48 = vpop.permute.xlu1 %2379  ;;  %v5567_v63 = vpop.f32.mrf.mxu1 }
 0xe7c   : > { %4619 = vst.msk [vmem:[%s7539_s9 + $0x358] sm:$0xff] %vm301_vm2, %v4049_v52  ;;  %v3543_v8 = vpop.f32.mrf.mxu0  ;;  %v4044_v14 = vadd.f32 %v4043_v59, %v2380_v48  ;;  %2689 = vperm.xlu1 %5732, %v1763_v26  }
 0xe7d   : > { %4519 = vst.msk [vmem:[%s7539_s9 + $0x38] sm:$0xff] %vm301_vm2, %v3549_v39  ;;  %v3544_v38 = vadd.f32 %v3543_v8, %v6310_v7  ;;  %v2395_v55 = vpop.permute.xlu0 %2394  ;;  %v4053_v3 = vpop.f32.mrf.mxu1  ;;  %v1767_v39 = vld [vmem:[%s8177_s6 + $0x560] sm:$0xff] }
 0xe7e   : > { %4618 = vst.msk [vmem:[%s7539_s9 + $0x350] sm:$0xff] %vm301_vm2, %v4044_v14  ;;  %v5417_v46 = vpop.f32.mrf.mxu0  ;;  %v4059_v32 = vadd.f32 %v5567_v63, %v2395_v55  ;;  %2704 = vperm.xlu0 %5731, %v1766_v40   ;;  %v1770_v14 = vld [vmem:[%s8177_s6 + $0x578] sm:$0xff] }
 0xe7f   : > { %4518 = vst.msk [vmem:[%s7539_s9 + $0x30] sm:$0xff] %vm301_vm2, %v3544_v38  ;;  %v3559_v61 = vadd.f32 %v5417_v46, %v6324_v11  ;;  %v2390_v50 = vpop.permute.xlu1 %2389  ;;  %v5570_v7 = vpop.f32.mrf.mxu1  ;;  %v1769_v46 = vld [vmem:[%s8177_s6 + $0x570] sm:$0xff] }
 0xe80   : > { %4621 = vst.msk [vmem:[%s7539_s9 + $0x368] sm:$0xff] %vm301_vm2, %v4059_v32  ;;  %v3553_v59 = vpop.f32.mrf.mxu0  ;;  %v4054_v26 = vadd.f32 %v4053_v3, %v2390_v50  ;;  %2699 = vperm.xlu1 %5732, %v1765_v4  }
 0xe81   : > { %4521 = vst.msk [vmem:[%s7539_s9 + $0x48] sm:$0xff] %vm301_vm2, %v3559_v61  ;;  %v3554_v18 = vadd.f32 %v3553_v59, %v6336_v15  ;;  %v2405_v52 = vpop.permute.xlu0 %2404  ;;  %v4063_v11 = vpop.f32.mrf.mxu1 }
 0xe82   : > { %4620 = vst.msk [vmem:[%s7539_s9 + $0x360] sm:$0xff] %vm301_vm2, %v4054_v26  ;;  %v5420_v48 = vpop.f32.mrf.mxu0  ;;  %v4069_v63 = vadd.f32 %v5570_v7, %v2405_v52  ;;  %2714 = vperm.xlu0 %5731, %v1768_v57   ;;  %v1772_v57 = vld [vmem:[%s8177_s6 + $0x588] sm:$0xff] }
 0xe83   : > { %4520 = vst.msk [vmem:[%s7539_s9 + $0x40] sm:$0xff] %vm301_vm2, %v3554_v18  ;;  %v3569_v40 = vadd.f32 %v5420_v48, %v6350_v19  ;;  %v2400_v8 = vpop.permute.xlu1 %2399  ;;  %v5573_v15 = vpop.f32.mrf.mxu1 }
 0xe84   : > { %4623 = vst.msk [vmem:[%s7539_s9 + $0x378] sm:$0xff] %vm301_vm2, %v4069_v63  ;;  %v3563_v38 = vpop.f32.mrf.mxu0  ;;  %v4064_v55 = vadd.f32 %v4063_v11, %v2400_v8  ;;  %2709 = vperm.xlu1 %5732, %v1767_v39   ;;  %v1771_v11 = vld [vmem:[%s8177_s6 + $0x580] sm:$0xff]  ;;  %v1774_v8 = vld [vmem:[%s8177_s6 + $0x598] sm:$0xff] }
 0xe85   : > { %4523 = vst.msk [vmem:[%s7539_s9 + $0x58] sm:$0xff] %vm301_vm2, %v3569_v40  ;;  %v3564_v3 = vadd.f32 %v3563_v38, %v6362_v23  ;;  %v2415_v4 = vpop.permute.xlu0 %2414  ;;  %v4073_v19 = vpop.f32.mrf.mxu1 }
 0xe86   : > { %4622 = vst.msk [vmem:[%s7539_s9 + $0x370] sm:$0xff] %vm301_vm2, %v4064_v55  ;;  %v5423_v32 = vpop.f32.mrf.mxu0  ;;  %v4079_v61 = vadd.f32 %v5573_v15, %v2415_v4  ;;  %2724 = vperm.xlu0 %5731, %v1770_v14  }
 0xe87   : > { %4522 = vst.msk [vmem:[%s7539_s9 + $0x50] sm:$0xff] %vm301_vm2, %v3564_v3  ;;  %v3579_v50 = vadd.f32 %v5423_v32, %v6376_v27  ;;  %v2410_v7 = vpop.permute.xlu1 %2409  ;;  %v5576_v23 = vpop.f32.mrf.mxu1  ;;  %v1773_v3 = vld [vmem:[%s8177_s6 + $0x590] sm:$0xff] }
 0xe88   : > { %4625 = vst.msk [vmem:[%s7539_s9 + $0x388] sm:$0xff] %vm301_vm2, %v4079_v61  ;;  %v3573_v59 = vpop.f32.mrf.mxu0  ;;  %v4074_v26 = vadd.f32 %v4073_v19, %v2410_v7  ;;  %2719 = vperm.xlu1 %5732, %v1769_v46   ;;  %v1776_v61 = vld [vmem:[%s8177_s6 + $0x5a8] sm:$0xff] }
 0xe89   : > { %4525 = vst.msk [vmem:[%s7539_s9 + $0x68] sm:$0xff] %vm301_vm2, %v3579_v50  ;;  %v3574_v18 = vadd.f32 %v3573_v59, %v6388_v31  ;;  %v2425_v52 = vpop.permute.xlu0 %2424  ;;  %v4083_v27 = vpop.f32.mrf.mxu1  ;;  %v1775_v59 = vld [vmem:[%s8177_s6 + $0x5a0] sm:$0xff] }
 0xe8a   : > { %4624 = vst.msk [vmem:[%s7539_s9 + $0x380] sm:$0xff] %vm301_vm2, %v4074_v26  ;;  %v5426_v39 = vpop.f32.mrf.mxu0  ;;  %v4089_v48 = vadd.f32 %v5576_v23, %v2425_v52  ;;  %2734 = vperm.xlu0 %5731, %v1772_v57  }
 0xe8b   : > { %4524 = vst.msk [vmem:[%s7539_s9 + $0x60] sm:$0xff] %vm301_vm2, %v3574_v18  ;;  %v3589_v63 = vadd.f32 %v5426_v39, %v6402_v41  ;;  %v2420_v40 = vpop.permute.xlu1 %2419  ;;  %v5579_v31 = vpop.f32.mrf.mxu1 }
 0xe8c   : > { %4627 = vst.msk [vmem:[%s7539_s9 + $0x398] sm:$0xff] %vm301_vm2, %v4089_v48  ;;  %v3583_v15 = vpop.f32.mrf.mxu0  ;;  %v4084_v14 = vadd.f32 %v4083_v27, %v2420_v40  ;;  %2729 = vperm.xlu1 %5732, %v1771_v11   ;;  %v1778_v11 = vld [vmem:[%s8177_s6 + $0x5b8] sm:$0xff] }
 0xe8d   : > { %4527 = vst.msk [vmem:[%s7539_s9 + $0x78] sm:$0xff] %vm301_vm2, %v3589_v63  ;;  %v3584_v38 = vadd.f32 %v3583_v15, %v6414_v36  ;;  %v2435_v55 = vpop.permute.xlu0 %2434  ;;  %v4093_v41 = vpop.f32.mrf.mxu1 }
 0xe8e   : > { %4626 = vst.msk [vmem:[%s7539_s9 + $0x390] sm:$0xff] %vm301_vm2, %v4084_v14  ;;  %v5429_v4 = vpop.f32.mrf.mxu0  ;;  %v4099_v19 = vadd.f32 %v5579_v31, %v2435_v55  ;;  %2744 = vperm.xlu0 %5731, %v1774_v8   ;;  %v1777_v31 = vld [vmem:[%s8177_s6 + $0x5b0] sm:$0xff]  ;;  %v1780_v55 = vld [vmem:[%s8177_s6 + $0x5c8] sm:$0xff] }
 0xe8f   : > { %4526 = vst.msk [vmem:[%s7539_s9 + $0x70] sm:$0xff] %vm301_vm2, %v3584_v38  ;;  %v3599_v46 = vadd.f32 %v5429_v4, %v6428_v43  ;;  %v2430_v32 = vpop.permute.xlu1 %2429  ;;  %v5582_v36 = vpop.f32.mrf.mxu1 }
 0xe90   : > { %4629 = vst.msk [vmem:[%s7539_s9 + $0x3a8] sm:$0xff] %vm301_vm2, %v4099_v19  ;;  %v3593_v50 = vpop.f32.mrf.mxu0  ;;  %v4094_v7 = vadd.f32 %v4093_v41, %v2430_v32  ;;  %2739 = vperm.xlu1 %5732, %v1773_v3  }
 0xe91   : > { %4529 = vst.msk [vmem:[%s7539_s9 + $0x88] sm:$0xff] %vm301_vm2, %v3599_v46  ;;  %v3594_v23 = vadd.f32 %v3593_v50, %v6440_v47  ;;  %v2445_v57 = vpop.permute.xlu0 %2444  ;;  %v4103_v43 = vpop.f32.mrf.mxu1  ;;  %v1779_v46 = vld [vmem:[%s8177_s6 + $0x5c0] sm:$0xff] }
 0xe92   : > { %4628 = vst.msk [vmem:[%s7539_s9 + $0x3a0] sm:$0xff] %vm301_vm2, %v4094_v7  ;;  %v5432_v26 = vpop.f32.mrf.mxu0  ;;  %v4109_v18 = vadd.f32 %v5582_v36, %v2445_v57  ;;  %2754 = vperm.xlu0 %5731, %v1776_v61   ;;  %v1782_v7 = vld [vmem:[%s8177_s6 + $0x5d8] sm:$0xff] }
 0xe93   : > { %4528 = vst.msk [vmem:[%s7539_s9 + $0x80] sm:$0xff] %vm301_vm2, %v3594_v23  ;;  %v3609_v52 = vadd.f32 %v5432_v26, %v6454_v54  ;;  %v2440_v27 = vpop.permute.xlu1 %2439  ;;  %v5585_v47 = vpop.f32.mrf.mxu1  ;;  %v1781_v26 = vld [vmem:[%s8177_s6 + $0x5d0] sm:$0xff] }
 0xe94   : > { %4631 = vst.msk [vmem:[%s7539_s9 + $0x3b8] sm:$0xff] %vm301_vm2, %v4109_v18  ;;  %v3603_v39 = vpop.f32.mrf.mxu0  ;;  %v4104_v48 = vadd.f32 %v4103_v43, %v2440_v27  ;;  %2749 = vperm.xlu1 %5732, %v1775_v59  }
 0xe95   : > { %4531 = vst.msk [vmem:[%s7539_s9 + $0x98] sm:$0xff] %vm301_vm2, %v3609_v52  ;;  %v3604_v63 = vadd.f32 %v3603_v39, %v6466_v60  ;;  %v2455_v40 = vpop.permute.xlu0 %2454  ;;  %v4113_v54 = vpop.f32.mrf.mxu1 }
 0xe96   : > { %4630 = vst.msk [vmem:[%s7539_s9 + $0x3b0] sm:$0xff] %vm301_vm2, %v4104_v48  ;;  %v5435_v8 = vpop.f32.mrf.mxu0  ;;  %v4119_v15 = vadd.f32 %v5585_v47, %v2455_v40  ;;  %2764 = vperm.xlu0 %5731, %v1778_v11   ;;  %v1784_v11 = vld [vmem:[%s8177_s6 + $0x5e8] sm:$0xff] }
 0xe97   : > { %4530 = vst.msk [vmem:[%s7539_s9 + $0x90] sm:$0xff] %vm301_vm2, %v3604_v63  ;;  %v3619_v14 = vadd.f32 %v5435_v8, %v6480_v1  ;;  %v2450_v38 = vpop.permute.xlu1 %2449  ;;  %v5588_v60 = vpop.f32.mrf.mxu1 }
 0xe98   : > { %4633 = vst.msk [vmem:[%s7539_s9 + $0x3c8] sm:$0xff] %vm301_vm2, %v4119_v15  ;;  %v3613_v41 = vpop.f32.mrf.mxu0  ;;  %v4114_v3 = vadd.f32 %v4113_v54, %v2450_v38  ;;  %2759 = vperm.xlu1 %5732, %v1777_v31   ;;  %v1783_v54 = vld [vmem:[%s8177_s6 + $0x5e0] sm:$0xff]  ;;  %v1786_v38 = vld [vmem:[%s8177_s6 + $0x5f8] sm:$0xff] }
 0xe99   : > { %4533 = vst.msk [vmem:[%s7539_s9 + $0xa8] sm:$0xff] %vm301_vm2, %v3619_v14  ;;  %v3614_v4 = vadd.f32 %v3613_v41, %v6492_v6  ;;  %v2465_v19 = vpop.permute.xlu0 %2464  ;;  %v4123_v1 = vpop.f32.mrf.mxu1 }
 0xe9a   : > { %4632 = vst.msk [vmem:[%s7539_s9 + $0x3c0] sm:$0xff] %vm301_vm2, %v4114_v3  ;;  %v5438_v32 = vpop.f32.mrf.mxu0  ;;  %v4129_v36 = vadd.f32 %v5588_v60, %v2465_v19  ;;  %2774 = vperm.xlu0 %5731, %v1780_v55  }
 0xe9b   : > { %4532 = vst.msk [vmem:[%s7539_s9 + $0xa0] sm:$0xff] %vm301_vm2, %v3614_v4  ;;  %v3629_v61 = vadd.f32 %v5438_v32, %v6506_v12  ;;  %v2460_v50 = vpop.permute.xlu1 %2459  ;;  %v5591_v6 = vpop.f32.mrf.mxu1  ;;  %v1785_v4 = vld [vmem:[%s8177_s6 + $0x5f0] sm:$0xff] }
 0xe9c   : > { %4635 = vst.msk [vmem:[%s7539_s9 + $0x3d8] sm:$0xff] %vm301_vm2, %v4129_v36  ;;  %v3623_v23 = vpop.f32.mrf.mxu0  ;;  %v4124_v57 = vadd.f32 %v4123_v1, %v2460_v50  ;;  %2769 = vperm.xlu1 %5732, %v1779_v46   ;;  %v1788_v36 = vld [vmem:[%s8177_s6 + $0x608] sm:$0xff] }
 0xe9d   : > { %4535 = vst.msk [vmem:[%s7539_s9 + $0xb8] sm:$0xff] %vm301_vm2, %v3629_v61  ;;  %v3624_v43 = vadd.f32 %v3623_v23, %v6518_v17  ;;  %v2475_v59 = vpop.permute.xlu0 %2474  ;;  %v4133_v12 = vpop.f32.mrf.mxu1  ;;  %v1787_v23 = vld [vmem:[%s8177_s6 + $0x600] sm:$0xff] }
 0xe9e   : > { %4634 = vst.msk [vmem:[%s7539_s9 + $0x3d0] sm:$0xff] %vm301_vm2, %v4124_v57  ;;  %v5441_v18 = vpop.f32.mrf.mxu0  ;;  %v4139_v52 = vadd.f32 %v5591_v6, %v2475_v59  ;;  %2784 = vperm.xlu0 %5731, %v1782_v7  }
 0xe9f   : > { %4534 = vst.msk [vmem:[%s7539_s9 + $0xb0] sm:$0xff] %vm301_vm2, %v3624_v43  ;;  %v3639_v27 = vadd.f32 %v5441_v18, %v6532_v22  ;;  %v2470_v47 = vpop.permute.xlu1 %2469  ;;  %v5594_v17 = vpop.f32.mrf.mxu1 }
 0xea0   : > { %4637 = vst.msk [vmem:[%s7539_s9 + $0x3e8] sm:$0xff] %vm301_vm2, %v4139_v52  ;;  %v3633_v39 = vpop.f32.mrf.mxu0  ;;  %v4134_v48 = vadd.f32 %v4133_v12, %v2470_v47  ;;  %2779 = vperm.xlu1 %5732, %v1781_v26   ;;  %v1790_v26 = vld [vmem:[%s8177_s6 + $0x618] sm:$0xff] }
 0xea1   : > { %4537 = vst.msk [vmem:[%s7539_s9 + $0xc8] sm:$0xff] %vm301_vm2, %v3639_v27  ;;  %v3634_v63 = vadd.f32 %v3633_v39, %v6544_v28  ;;  %v2485_v40 = vpop.permute.xlu0 %2484  ;;  %v4143_v22 = vpop.f32.mrf.mxu1 }
 0xea2   : > { %4636 = vst.msk [vmem:[%s7539_s9 + $0x3e0] sm:$0xff] %vm301_vm2, %v4134_v48  ;;  %v5444_v31 = vpop.f32.mrf.mxu0  ;;  %v4149_v8 = vadd.f32 %v5594_v17, %v2485_v40  ;;  %2794 = vperm.xlu0 %5731, %v1784_v11   ;;  %v1789_v17 = vld [vmem:[%s8177_s6 + $0x610] sm:$0xff]  ;;  %v1792_v40 = vld [vmem:[%s8177_s6 + $0x628] sm:$0xff] }
 0xea3   : > { %4536 = vst.msk [vmem:[%s7539_s9 + $0xc0] sm:$0xff] %vm301_vm2, %v3634_v63  ;;  %v3649_v15 = vadd.f32 %v5444_v31, %v6558_v34  ;;  %v2480_v14 = vpop.permute.xlu1 %2479  ;;  %v5597_v28 = vpop.f32.mrf.mxu1 }
 0xea4   : > { %4639 = vst.msk [vmem:[%s7539_s9 + $0x3f8] sm:$0xff] %vm301_vm2, %v4149_v8  ;;  %v3643_v60 = vpop.f32.mrf.mxu0  ;;  %v4144_v55 = vadd.f32 %v4143_v22, %v2480_v14  ;;  %2789 = vperm.xlu1 %5732, %v1783_v54  }
 0xea5   : > { %4539 = vst.msk [vmem:[%s7539_s9 + $0xd8] sm:$0xff] %vm301_vm2, %v3649_v15  ;;  %v3644_v41 = vadd.f32 %v3643_v60, %v6570_v33  ;;  %v2495_v3 = vpop.permute.xlu0 %2494  ;;  %v4153_v34 = vpop.f32.mrf.mxu1  ;;  %v1791_v15 = vld [vmem:[%s8177_s6 + $0x620] sm:$0xff] }
 0xea6   : > { %4638 = vst.msk [vmem:[%s7539_s9 + $0x3f0] sm:$0xff] %vm301_vm2, %v4144_v55  ;;  %v5447_v19 = vpop.f32.mrf.mxu0  ;;  %v4159_v1 = vadd.f32 %v5597_v28, %v2495_v3  ;;  %2804 = vperm.xlu0 %5731, %v1786_v38   ;;  %v1794_v55 = vld [vmem:[%s8177_s6 + $0x638] sm:$0xff] }
 0xea7   : > { %4538 = vst.msk [vmem:[%s7539_s9 + $0xd0] sm:$0xff] %vm301_vm2, %v3644_v41  ;;  %v3659_v46 = vadd.f32 %v5447_v19, %v6584_v44  ;;  %v2490_v32 = vpop.permute.xlu1 %2489  ;;  %v5600_v33 = vpop.f32.mrf.mxu1  ;;  %v1793_v19 = vld [vmem:[%s8177_s6 + $0x630] sm:$0xff] }
 0xea8   : > { %4641 = vst.msk [vmem:[%s7539_s9 + $0x408] sm:$0xff] %vm301_vm2, %v4159_v1  ;;  %v3653_v61 = vpop.f32.mrf.mxu0  ;;  %v4154_v50 = vadd.f32 %v4153_v34, %v2490_v32  ;;  %2799 = vperm.xlu1 %5732, %v1785_v4  }
 0xea9   : > { %4541 = vst.msk [vmem:[%s7539_s9 + $0xe8] sm:$0xff] %vm301_vm2, %v3659_v46  ;;  %v3654_v6 = vadd.f32 %v3653_v61, %v6596_v51  ;;  %v2505_v7 = vpop.permute.xlu0 %2504  ;;  %v4163_v44 = vpop.f32.mrf.mxu1 }
 0xeaa   : > { %4640 = vst.msk [vmem:[%s7539_s9 + $0x400] sm:$0xff] %vm301_vm2, %v4154_v50  ;;  %v5450_v57 = vpop.f32.mrf.mxu0  ;;  %v4169_v43 = vadd.f32 %v5600_v33, %v2505_v7  ;;  %2814 = vperm.xlu0 %5731, %v1788_v36  }
 0xeab   : > { %4540 = vst.msk [vmem:[%s7539_s9 + $0xe0] sm:$0xff] %vm301_vm2, %v3654_v6  ;;  %v3669_v59 = vadd.f32 %v5450_v57, %v6610_v58  ;;  %v2500_v12 = vpop.permute.xlu1 %2499  ;;  %v5603_v51 = vpop.f32.mrf.mxu1 }
 0xeac   : > { %4643 = vst.msk [vmem:[%s7539_s9 + $0x418] sm:$0xff] %vm301_vm2, %v4169_v43  ;;  %v3663_v18 = vpop.f32.mrf.mxu0  ;;  %v4164_v52 = vadd.f32 %v4163_v44, %v2500_v12  ;;  %2809 = vperm.xlu1 %5732, %v1787_v23  }
 0xead   : > { %4543 = vst.msk [vmem:[%s7539_s9 + $0xf8] sm:$0xff] %vm301_vm2, %v3669_v59  ;;  %v3664_v27 = vadd.f32 %v3663_v18, %v6622_v2  ;;  %v2515_v47 = vpop.permute.xlu0 %2514  ;;  %v4173_v58 = vpop.f32.mrf.mxu1 }
 0xeae   : > { %4642 = vst.msk [vmem:[%s7539_s9 + $0x410] sm:$0xff] %vm301_vm2, %v4164_v52  ;;  %v5453_v11 = vpop.f32.mrf.mxu0  ;;  %v4179_v39 = vadd.f32 %v5603_v51, %v2515_v47  ;;  %2824 = vperm.xlu0 %5731, %v1790_v26  }
 0xeaf   : > { %4542 = vst.msk [vmem:[%s7539_s9 + $0xf0] sm:$0xff] %vm301_vm2, %v3664_v27  ;;  %v3679_v48 = vadd.f32 %v5453_v11, %v6636_v9  ;;  %v2510_v63 = vpop.permute.xlu1 %2509  ;;  %v5606_v2 = vpop.f32.mrf.mxu1 }
 0xeb0   : > { %4645 = vst.msk [vmem:[%s7539_s9 + $0x428] sm:$0xff] %vm301_vm2, %v4179_v39  ;;  %v3673_v22 = vpop.f32.mrf.mxu0  ;;  %v4174_v54 = vadd.f32 %v4173_v58, %v2510_v63  ;;  %2819 = vperm.xlu1 %5732, %v1789_v17  }
 0xeb1   : > { %4545 = vst.msk [vmem:[%s7539_s9 + $0x108] sm:$0xff] %vm301_vm2, %v3679_v48  ;;  %v3674_v31 = vadd.f32 %v3673_v22, %v6648_v16  ;;  %v2525_v8 = vpop.permute.xlu0 %2524  ;;  %v4183_v9 = vpop.f32.mrf.mxu1 }
 0xeb2   : > { %4644 = vst.msk [vmem:[%s7539_s9 + $0x420] sm:$0xff] %vm301_vm2, %v4174_v54  ;;  %v5456_v14 = vpop.f32.mrf.mxu0  ;;  %v4189_v28 = vadd.f32 %v5606_v2, %v2525_v8  ;;  %2834 = vperm.xlu0 %5731, %v1792_v40  }
 0xeb3   : > { %4544 = vst.msk [vmem:[%s7539_s9 + $0x100] sm:$0xff] %vm301_vm2, %v3674_v31  ;;  %v3689_v38 = vadd.f32 %v5456_v14, %v6662_v24  ;;  %v2520_v60 = vpop.permute.xlu1 %2519  ;;  %v5609_v16 = vpop.f32.mrf.mxu1 }
 0xeb4   : > { %4647 = vst.msk [vmem:[%s7539_s9 + $0x438] sm:$0xff] %vm301_vm2, %v4189_v28  ;;  %v3683_v41 = vpop.f32.mrf.mxu0  ;;  %v4184_v3 = vadd.f32 %v4183_v9, %v2520_v60  ;;  %2829 = vperm.xlu1 %5732, %v1791_v15  }
 0xeb5   : > { %4547 = vst.msk [vmem:[%s7539_s9 + $0x118] sm:$0xff] %vm301_vm2, %v3689_v38  ;;  %v3684_v34 = vadd.f32 %v3683_v41, %v6674_v30  ;;  %v2535_v4 = vpop.permute.xlu0 %2534  ;;  %v4193_v24 = vpop.f32.mrf.mxu1 }
 0xeb6   : > { %4646 = vst.msk [vmem:[%s7539_s9 + $0x430] sm:$0xff] %vm301_vm2, %v4184_v3  ;;  %v5459_v1 = vpop.f32.mrf.mxu0  ;;  %v4199_v46 = vadd.f32 %v5609_v16, %v2535_v4  ;;  %2844 = vperm.xlu0 %5731, %v1794_v55  }
 0xeb7   : > { %4546 = vst.msk [vmem:[%s7539_s9 + $0x110] sm:$0xff] %vm301_vm2, %v3684_v34  ;;  %v3699_v32 = vadd.f32 %v5459_v1, %v6688_v35  ;;  %v2530_v33 = vpop.permute.xlu1 %2529  ;;  %v5612_v30 = vpop.f32.mrf.mxu1 }
 0xeb8   : > { %4649 = vst.msk [vmem:[%s7539_s9 + $0x448] sm:$0xff] %vm301_vm2, %v4199_v46  ;;  %v3693_v36 = vpop.f32.mrf.mxu0  ;;  %v4194_v61 = vadd.f32 %v4193_v24, %v2530_v33  ;;  %2839 = vperm.xlu1 %5732, %v1793_v19  }
 0xeb9   : > { %4549 = vst.msk [vmem:[%s7539_s9 + $0x128] sm:$0xff] %vm301_vm2, %v3699_v32  ;;  %v3694_v50 = vadd.f32 %v3693_v36, %v6700_v45  ;;  %v2545_v6 = vpop.permute.xlu0 %2544  ;;  %v4203_v7 = vpop.f32.mrf.mxu1 }
 0xeba   : > { %4648 = vst.msk [vmem:[%s7539_s9 + $0x440] sm:$0xff] %vm301_vm2, %v4194_v61  ;;  %v5462_v44 = vpop.f32.mrf.mxu0  ;;  %v4209_v35 = vadd.f32 %v5612_v30, %v2545_v6 }
 0xebb   : > { %4548 = vst.msk [vmem:[%s7539_s9 + $0x120] sm:$0xff] %vm301_vm2, %v3694_v50  ;;  %v3709_v23 = vadd.f32 %v5462_v44, %v6714_v56  ;;  %v2540_v57 = vpop.permute.xlu1 %2539  ;;  %v5615_v43 = vpop.f32.mrf.mxu1 }
 0xebc   : > { %4651 = vst.msk [vmem:[%s7539_s9 + $0x458] sm:$0xff] %vm301_vm2, %v4209_v35  ;;  %v3703_v59 = vpop.f32.mrf.mxu0  ;;  %v4204_v45 = vadd.f32 %v4203_v7, %v2540_v57 }
 0xebd   : > { %4551 = vst.msk [vmem:[%s7539_s9 + $0x138] sm:$0xff] %vm301_vm2, %v3709_v23  ;;  %v3704_v12 = vadd.f32 %v3703_v59, %v6726_v0  ;;  %v2555_v51 = vpop.permute.xlu0 %2554  ;;  %v4213_v26 = vpop.f32.mrf.mxu1 }
 0xebe   : > { %4650 = vst.msk [vmem:[%s7539_s9 + $0x450] sm:$0xff] %vm301_vm2, %v4204_v45  ;;  %v5465_v18 = vpop.f32.mrf.mxu0  ;;  %v4219_v56 = vadd.f32 %v5615_v43, %v2555_v51 }
 0xebf   : > { %4550 = vst.msk [vmem:[%s7539_s9 + $0x130] sm:$0xff] %vm301_vm2, %v3704_v12  ;;  %v3719_v52 = vadd.f32 %v5465_v18, %v6740_v10  ;;  %v2550_v27 = vpop.permute.xlu1 %2549  ;;  %v5618_v47 = vpop.f32.mrf.mxu1 }
 0xec0   : > { %4653 = vst.msk [vmem:[%s7539_s9 + $0x468] sm:$0xff] %vm301_vm2, %v4219_v56  ;;  %v3713_v58 = vpop.f32.mrf.mxu0  ;;  %v4214_v0 = vadd.f32 %v4213_v26, %v2550_v27  ;;  %v8229_v26 = vld [vmem:[#allocation4_spill] sm:$0xff] }
 0xec1   : > { %4553 = vst.msk [vmem:[%s7539_s9 + $0x148] sm:$0xff] %vm301_vm2, %v3719_v52  ;;  %v3714_v17 = vadd.f32 %v3713_v58, %v6752_v20  ;;  %v2565_v11 = vpop.permute.xlu0 %2564  ;;  %v4223_v39 = vpop.f32.mrf.mxu1 }
 0xec2   : > { %4652 = vst.msk [vmem:[%s7539_s9 + $0x460] sm:$0xff] %vm301_vm2, %v4214_v0  ;;  %v5468_v48 = vpop.f32.mrf.mxu0  ;;  %v4229_v10 = vadd.f32 %v5618_v47, %v2565_v11  ;;  %v8230_v47 = vld [vmem:[#allocation5_spill] sm:$0xff] }
 0xec3   : > { %4552 = vst.msk [vmem:[%s7539_s9 + $0x140] sm:$0xff] %vm301_vm2, %v3714_v17  ;;  %v3729_v63 = vadd.f32 %v5468_v48, %v6766_v29  ;;  %v2560_v2 = vpop.permute.xlu1 %2559  ;;  %v5621_v40 = vpop.f32.mrf.mxu1  ;;  %v8231_v48 = vld [vmem:[#allocation6_spill] sm:$0xff] }
 0xec4   : > { %4655 = vst.msk [vmem:[%s7539_s9 + $0x478] sm:$0xff] %vm301_vm2, %v4229_v10  ;;  %v3723_v22 = vpop.f32.mrf.mxu0  ;;  %v4224_v20 = vadd.f32 %v4223_v39, %v2560_v2 }
 0xec5   : > { %4555 = vst.msk [vmem:[%s7539_s9 + $0x158] sm:$0xff] %vm301_vm2, %v3729_v63  ;;  %v3724_v54 = vadd.f32 %v3723_v22, %v6778_v37  ;;  %v2575_v31 = vpop.permute.xlu0 %2574  ;;  %v4233_v8 = vpop.f32.mrf.mxu1 }
 0xec6   : > { %4654 = vst.msk [vmem:[%s7539_s9 + $0x470] sm:$0xff] %vm301_vm2, %v4224_v20  ;;  %v5471_v9 = vpop.f32.mrf.mxu0  ;;  %v4239_v29 = vadd.f32 %v5621_v40, %v2575_v31  ;;  %v8232_v20 = vld [vmem:[#allocation7_spill] sm:$0xff] }
 0xec7   : > { %4554 = vst.msk [vmem:[%s7539_s9 + $0x150] sm:$0xff] %vm301_vm2, %v3724_v54  ;;  %v3739_v15 = vadd.f32 %v5471_v9, %v6792_v49  ;;  %v2570_v14 = vpop.permute.xlu1 %2569  ;;  %v5624_v28 = vpop.f32.mrf.mxu1 }
 0xec8   : > { %4657 = vst.msk [vmem:[%s7539_s9 + $0x488] sm:$0xff] %vm301_vm2, %v4239_v29  ;;  %v3733_v38 = vpop.f32.mrf.mxu0  ;;  %v4234_v37 = vadd.f32 %v4233_v8, %v2570_v14 }
 0xec9   : > { %4557 = vst.msk [vmem:[%s7539_s9 + $0x168] sm:$0xff] %vm301_vm2, %v3739_v15  ;;  %v3734_v60 = vadd.f32 %v3733_v38, %v6804_v62  ;;  %v2585_v16 = vpop.permute.xlu0 %2584  ;;  %v4243_v55 = vpop.f32.mrf.mxu1  ;;  %v8233_v15 = vld [vmem:[#allocation8_spill] sm:$0xff] }
 0xeca   : > { %4656 = vst.msk [vmem:[%s7539_s9 + $0x480] sm:$0xff] %vm301_vm2, %v4234_v37  ;;  %v5474_v41 = vpop.f32.mrf.mxu0  ;;  %v4249_v49 = vadd.f32 %v5624_v28, %v2585_v16  ;;  %v8234_v16 = vld [vmem:[#allocation9_spill] sm:$0xff] }
 0xecb   : > { %4556 = vst.msk [vmem:[%s7539_s9 + $0x160] sm:$0xff] %vm301_vm2, %v3734_v60  ;;  %v3749_v3 = vadd.f32 %v5474_v41, %v6818_v13  ;;  %v2580_v34 = vpop.permute.xlu1 %2579  ;;  %v5627_v4 = vpop.f32.mrf.mxu1 }
 0xecc   : > { %4659 = vst.msk [vmem:[%s7539_s9 + $0x498] sm:$0xff] %vm301_vm2, %v4249_v49  ;;  %v3743_v24 = vpop.f32.mrf.mxu0  ;;  %v4244_v62 = vadd.f32 %v4243_v55, %v2580_v34 }
 0xecd   : > { %4559 = vst.msk [vmem:[%s7539_s9 + $0x178] sm:$0xff] %vm301_vm2, %v3749_v3  ;;  %v3744_v19 = vadd.f32 %v3743_v24, %v6830_v25  ;;  %v2595_v1 = vpop.permute.xlu0 %2594  ;;  %v4253_v46 = vpop.f32.mrf.mxu1 }
 0xece   : > { %4658 = vst.msk [vmem:[%s7539_s9 + $0x490] sm:$0xff] %vm301_vm2, %v4244_v62  ;;  %v5477_v32 = vpop.f32.mrf.mxu0  ;;  %v4259_v13 = vadd.f32 %v5627_v4, %v2595_v1  ;;  %v8235_v4 = vld [vmem:[#allocation10_spill] sm:$0xff] }
 0xecf   : > { %4558 = vst.msk [vmem:[%s7539_s9 + $0x170] sm:$0xff] %vm301_vm2, %v3744_v19  ;;  %v3759_v33 = vadd.f32 %v5477_v32, %v6844_v42  ;;  %v2590_v30 = vpop.permute.xlu1 %2589  ;;  %v5630_v36 = vpop.f32.mrf.mxu1  ;;  %v8236_v32 = vld [vmem:[#allocation11_spill] sm:$0xff] }
 0xed0   : > { %4661 = vst.msk [vmem:[%s7539_s9 + $0x4a8] sm:$0xff] %vm301_vm2, %v4259_v13  ;;  %v3753_v61 = vpop.f32.mrf.mxu0  ;;  %v4254_v25 = vadd.f32 %v4253_v46, %v2590_v30 }
 0xed1   : > { %4561 = vst.msk [vmem:[%s7539_s9 + $0x188] sm:$0xff] %vm301_vm2, %v3759_v33  ;;  %v3754_v50 = vadd.f32 %v3753_v61, %v6856_v53  ;;  %v2605_v6 = vpop.permute.xlu0 %2604  ;;  %v4263_v7 = vpop.f32.mrf.mxu1 }
 0xed2   : > { %4660 = vst.msk [vmem:[%s7539_s9 + $0x4a0] sm:$0xff] %vm301_vm2, %v4254_v25  ;;  %v5480_v44 = vpop.f32.mrf.mxu0  ;;  %v4269_v42 = vadd.f32 %v5630_v36, %v2605_v6  ;;  %v8237_v25 = vld [vmem:[#allocation12_spill] sm:$0xff] }
 0xed3   : > { %4560 = vst.msk [vmem:[%s7539_s9 + $0x180] sm:$0xff] %vm301_vm2, %v3754_v50  ;;  %v3769_v35 = vadd.f32 %v5480_v44, %v6870_v5  ;;  %v2600_v23 = vpop.permute.xlu1 %2599  ;;  %v5633_v57 = vpop.f32.mrf.mxu1 }
 0xed4   : > { %4663 = vst.msk [vmem:[%s7539_s9 + $0x4b8] sm:$0xff] %vm301_vm2, %v4269_v42  ;;  %v3763_v43 = vpop.f32.mrf.mxu0  ;;  %v4264_v53 = vadd.f32 %v4263_v7, %v2600_v23 }
 0xed5   : > { %4563 = vst.msk [vmem:[%s7539_s9 + $0x198] sm:$0xff] %vm301_vm2, %v3769_v35  ;;  %v3764_v59 = vadd.f32 %v3763_v43, %v6882_v21  ;;  %v2615_v45 = vpop.permute.xlu0 %2614  ;;  %v4273_v12 = vpop.f32.mrf.mxu1  ;;  %v8238_v35 = vld [vmem:[#allocation13_spill] sm:$0xff] }
 0xed6   : > { %4662 = vst.msk [vmem:[%s7539_s9 + $0x4b0] sm:$0xff] %vm301_vm2, %v4264_v53  ;;  %v5483_v51 = vpop.f32.mrf.mxu0  ;;  %v4279_v5 = vadd.f32 %v5633_v57, %v2615_v45  ;;  %v8239_v45 = vld [vmem:[#allocation14_spill] sm:$0xff] }
 0xed7   : > { %4562 = vst.msk [vmem:[%s7539_s9 + $0x190] sm:$0xff] %vm301_vm2, %v3764_v59  ;;  %v3779_v18 = vadd.f32 %v5483_v51, %v8229_v26  ;;  %v2610_v56 = vpop.permute.xlu1 %2609  ;;  %v5636_v52 = vpop.f32.mrf.mxu1 }
 0xed8   : > { %4665 = vst.msk [vmem:[%s7539_s9 + $0x4c8] sm:$0xff] %vm301_vm2, %v4279_v5  ;;  %v3773_v27 = vpop.f32.mrf.mxu0  ;;  %v4274_v21 = vadd.f32 %v4273_v12, %v2610_v56  ;;  %v8240_v56 = vld [vmem:[#allocation15_spill] sm:$0xff] }
 0xed9   : > { %4565 = vst.msk [vmem:[%s7539_s9 + $0x1a8] sm:$0xff] %vm301_vm2, %v3779_v18  ;;  %v3774_v58 = vadd.f32 %v3773_v27, %v8230_v47  ;;  %v2625_v0 = vpop.permute.xlu0 %2624  ;;  %v4283_v17 = vpop.f32.mrf.mxu1 }
 0xeda   : > { %4664 = vst.msk [vmem:[%s7539_s9 + $0x4c0] sm:$0xff] %vm301_vm2, %v4274_v21  ;;  %v5486_v11 = vpop.f32.mrf.mxu0  ;;  %v4289_v39 = vadd.f32 %v5636_v52, %v2625_v0  ;;  %v8241_v0 = vld [vmem:[#allocation16_spill] sm:$0xff] }
 0xedb   : > { %4564 = vst.msk [vmem:[%s7539_s9 + $0x1a0] sm:$0xff] %vm301_vm2, %v3774_v58  ;;  %v3789_v10 = vadd.f32 %v5486_v11, %v8231_v48  ;;  %v2620_v63 = vpop.permute.xlu1 %2619  ;;  %v5639_v2 = vpop.f32.mrf.mxu1 }
 0xedc   : > { %4667 = vst.msk [vmem:[%s7539_s9 + $0x4d8] sm:$0xff] %vm301_vm2, %v4289_v39  ;;  %v3783_v40 = vpop.f32.mrf.mxu0  ;;  %v4284_v22 = vadd.f32 %v4283_v17, %v2620_v63  ;;  %v8242_v63 = vld [vmem:[#allocation17_spill] sm:$0xff] }
 0xedd   : > { %4567 = vst.msk [vmem:[%s7539_s9 + $0x1b8] sm:$0xff] %vm301_vm2, %v3789_v10  ;;  %v3784_v54 = vadd.f32 %v3783_v40, %v8232_v20  ;;  %v2635_v31 = vpop.permute.xlu0 %2634  ;;  %v4293_v8 = vpop.f32.mrf.mxu1 }
 0xede   : > { %4666 = vst.msk [vmem:[%s7539_s9 + $0x4d0] sm:$0xff] %vm301_vm2, %v4284_v22  ;;  %v5489_v9 = vpop.f32.mrf.mxu0  ;;  %v4299_v29 = vadd.f32 %v5639_v2, %v2635_v31  ;;  %v8243_v31 = vld [vmem:[#allocation18_spill] sm:$0xff] }
 0xedf   : > { %4566 = vst.msk [vmem:[%s7539_s9 + $0x1b0] sm:$0xff] %vm301_vm2, %v3784_v54  ;;  %v3799_v14 = vadd.f32 %v5489_v9, %v8233_v15  ;;  %v2630_v28 = vpop.permute.xlu1 %2629  ;;  %v5642_v38 = vpop.f32.mrf.mxu1 }
 0xee0   : > { %4669 = vst.msk [vmem:[%s7539_s9 + $0x4e8] sm:$0xff] %vm301_vm2, %v4299_v29  ;;  %v3793_v37 = vpop.f32.mrf.mxu0  ;;  %v4294_v60 = vadd.f32 %v4293_v8, %v2630_v28  ;;  %v8244_v28 = vld [vmem:[#allocation19_spill] sm:$0xff] }
 0xee1   : > { %4569 = vst.msk [vmem:[%s7539_s9 + $0x1c8] sm:$0xff] %vm301_vm2, %v3799_v14  ;;  %v3794_v55 = vadd.f32 %v3793_v37, %v8234_v16  ;;  %v2645_v41 = vpop.permute.xlu0 %2644  ;;  %v4303_v49 = vpop.f32.mrf.mxu1 }
 0xee2   : > { %4668 = vst.msk [vmem:[%s7539_s9 + $0x4e0] sm:$0xff] %vm301_vm2, %v4294_v60  ;;  %v5492_v3 = vpop.f32.mrf.mxu0  ;;  %v4309_v34 = vadd.f32 %v5642_v38, %v2645_v41  ;;  %v8245_v41 = vld [vmem:[#allocation20_spill] sm:$0xff] }
 0xee3   : > { %4568 = vst.msk [vmem:[%s7539_s9 + $0x1c0] sm:$0xff] %vm301_vm2, %v3794_v55  ;;  %v3809_v24 = vadd.f32 %v5492_v3, %v8235_v4  ;;  %v2640_v62 = vpop.permute.xlu1 %2639  ;;  %v5645_v19 = vpop.f32.mrf.mxu1 }
 0xee4   : > { %4671 = vst.msk [vmem:[%s7539_s9 + $0x4f8] sm:$0xff] %vm301_vm2, %v4309_v34  ;;  %v3803_v1 = vpop.f32.mrf.mxu0  ;;  %v4304_v46 = vadd.f32 %v4303_v49, %v2640_v62  ;;  %v8246_v62 = vld [vmem:[#allocation21_spill] sm:$0xff] }
 0xee5   : > { %4571 = vst.msk [vmem:[%s7539_s9 + $0x1d8] sm:$0xff] %vm301_vm2, %v3809_v24  ;;  %v3804_v13 = vadd.f32 %v3803_v1, %v8236_v32  ;;  %v2655_v33 = vpop.permute.xlu0 %2654  ;;  %v4313_v30 = vpop.f32.mrf.mxu1 }
 0xee6   : > { %4670 = vst.msk [vmem:[%s7539_s9 + $0x4f0] sm:$0xff] %vm301_vm2, %v4304_v46  ;;  %v5495_v36 = vpop.f32.mrf.mxu0  ;;  %v4319_v61 = vadd.f32 %v5645_v19, %v2655_v33  ;;  %v8247_v33 = vld [vmem:[#allocation22_spill] sm:$0xff] }
 0xee7   : > { %4570 = vst.msk [vmem:[%s7539_s9 + $0x1d0] sm:$0xff] %vm301_vm2, %v3804_v13  ;;  %v3819_v50 = vadd.f32 %v5495_v36, %v8237_v25  ;;  %v2650_v6 = vpop.permute.xlu1 %2649  ;;  %v5648_v7 = vpop.f32.mrf.mxu1 }
 0xee8   : > { %4673 = vst.msk [vmem:[%s7539_s9 + $0x508] sm:$0xff] %vm301_vm2, %v4319_v61  ;;  %v3813_v44 = vpop.f32.mrf.mxu0  ;;  %v4314_v42 = vadd.f32 %v4313_v30, %v2650_v6  ;;  %v8248_v6 = vld [vmem:[#allocation23_spill] sm:$0xff] }
 0xee9   : > { %4573 = vst.msk [vmem:[%s7539_s9 + $0x1e8] sm:$0xff] %vm301_vm2, %v3819_v50  ;;  %v3814_v23 = vadd.f32 %v3813_v44, %v8238_v35  ;;  %v2665_v57 = vpop.permute.xlu0 %2664  ;;  %v4323_v43 = vpop.f32.mrf.mxu1 }
 0xeea   : > { %4672 = vst.msk [vmem:[%s7539_s9 + $0x500] sm:$0xff] %vm301_vm2, %v4314_v42  ;;  %v5498_v53 = vpop.f32.mrf.mxu0  ;;  %v4329_v59 = vadd.f32 %v5648_v7, %v2665_v57  ;;  %v8249_v57 = vld [vmem:[#allocation24_spill] sm:$0xff] }
 0xeeb   : > { %4572 = vst.msk [vmem:[%s7539_s9 + $0x1e0] sm:$0xff] %vm301_vm2, %v3814_v23  ;;  %v3829_v12 = vadd.f32 %v5498_v53, %v8239_v45  ;;  %v2660_v51 = vpop.permute.xlu1 %2659  ;;  %v5651_v5 = vpop.f32.mrf.mxu1 }
 0xeec   : > { %4675 = vst.msk [vmem:[%s7539_s9 + $0x518] sm:$0xff] %vm301_vm2, %v4329_v59  ;;  %v3823_v26 = vpop.f32.mrf.mxu0  ;;  %v4324_v18 = vadd.f32 %v4323_v43, %v2660_v51  ;;  %v8250_v51 = vld [vmem:[#allocation25_spill] sm:$0xff] }
 0xeed   : > { %4575 = vst.msk [vmem:[%s7539_s9 + $0x1f8] sm:$0xff] %vm301_vm2, %v3829_v12  ;;  %v3824_v52 = vadd.f32 %v3823_v26, %v8240_v56  ;;  %v2675_v27 = vpop.permute.xlu0 %2674  ;;  %v4333_v21 = vpop.f32.mrf.mxu1 }
 0xeee   : > { %4674 = vst.msk [vmem:[%s7539_s9 + $0x510] sm:$0xff] %vm301_vm2, %v4324_v18  ;;  %v5501_v47 = vpop.f32.mrf.mxu0  ;;  %v4339_v58 = vadd.f32 %v5651_v5, %v2675_v27  ;;  %v8251_v27 = vld [vmem:[#allocation26_spill] sm:$0xff] }
 0xeef   : > { %4574 = vst.msk [vmem:[%s7539_s9 + $0x1f0] sm:$0xff] %vm301_vm2, %v3824_v52  ;;  %v3839_v17 = vadd.f32 %v5501_v47, %v8241_v0  ;;  %v2670_v11 = vpop.permute.xlu1 %2669  ;;  %v5654_v39 = vpop.f32.mrf.mxu1 }
 0xef0   : > { %4677 = vst.msk [vmem:[%s7539_s9 + $0x528] sm:$0xff] %vm301_vm2, %v4339_v58  ;;  %v3833_v48 = vpop.f32.mrf.mxu0  ;;  %v4334_v10 = vadd.f32 %v4333_v21, %v2670_v11  ;;  %v8252_v11 = vld [vmem:[#allocation27_spill] sm:$0xff] }
 0xef1   : > { %4577 = vst.msk [vmem:[%s7539_s9 + $0x208] sm:$0xff] %vm301_vm2, %v3839_v17  ;;  %v3834_v2 = vadd.f32 %v3833_v48, %v8242_v63  ;;  %v2685_v40 = vpop.permute.xlu0 %2684  ;;  %v4343_v22 = vpop.f32.mrf.mxu1 }
 0xef2   : > { %4676 = vst.msk [vmem:[%s7539_s9 + $0x520] sm:$0xff] %vm301_vm2, %v4334_v10  ;;  %v5504_v20 = vpop.f32.mrf.mxu0  ;;  %v4349_v54 = vadd.f32 %v5654_v39, %v2685_v40  ;;  %v8253_v40 = vld [vmem:[#allocation28_spill] sm:$0xff] }
 0xef3   : > { %4576 = vst.msk [vmem:[%s7539_s9 + $0x200] sm:$0xff] %vm301_vm2, %v3834_v2  ;;  %v3849_v8 = vadd.f32 %v5504_v20, %v8243_v31  ;;  %v2680_v9 = vpop.permute.xlu1 %2679  ;;  %v5657_v29 = vpop.f32.mrf.mxu1 }
 0xef4   : > { %4679 = vst.msk [vmem:[%s7539_s9 + $0x538] sm:$0xff] %vm301_vm2, %v4349_v54  ;;  %v3843_v15 = vpop.f32.mrf.mxu0  ;;  %v4344_v14 = vadd.f32 %v4343_v22, %v2680_v9  ;;  %v8254_v9 = vld [vmem:[#allocation29_spill] sm:$0xff] }
 0xef5   : > { %4579 = vst.msk [vmem:[%s7539_s9 + $0x218] sm:$0xff] %vm301_vm2, %v3849_v8  ;;  %v3844_v38 = vadd.f32 %v3843_v15, %v8244_v28  ;;  %v2695_v37 = vpop.permute.xlu0 %2694  ;;  %v4353_v60 = vpop.f32.mrf.mxu1 }
 0xef6   : > { %4678 = vst.msk [vmem:[%s7539_s9 + $0x530] sm:$0xff] %vm301_vm2, %v4344_v14  ;;  %v5507_v16 = vpop.f32.mrf.mxu0  ;;  %v4359_v55 = vadd.f32 %v5657_v29, %v2695_v37  ;;  %v8255_v37 = vld [vmem:[#allocation30_spill] sm:$0xff] }
 0xef7   : > { %4578 = vst.msk [vmem:[%s7539_s9 + $0x210] sm:$0xff] %vm301_vm2, %v3844_v38  ;;  %v3859_v49 = vadd.f32 %v5507_v16, %v8245_v41  ;;  %v2690_v3 = vpop.permute.xlu1 %2689  ;;  %v5660_v34 = vpop.f32.mrf.mxu1 }
 0xef8   : > { %4681 = vst.msk [vmem:[%s7539_s9 + $0x548] sm:$0xff] %vm301_vm2, %v4359_v55  ;;  %v3853_v4 = vpop.f32.mrf.mxu0  ;;  %v4354_v24 = vadd.f32 %v4353_v60, %v2690_v3  ;;  %v8256_v3 = vld [vmem:[#allocation31_spill] sm:$0xff] }
 0xef9   : > { %4581 = vst.msk [vmem:[%s7539_s9 + $0x228] sm:$0xff] %vm301_vm2, %v3859_v49  ;;  %v3854_v19 = vadd.f32 %v3853_v4, %v8246_v62  ;;  %v2705_v1 = vpop.permute.xlu0 %2704  ;;  %v4363_v46 = vpop.f32.mrf.mxu1 }
 0xefa   : > { %4680 = vst.msk [vmem:[%s7539_s9 + $0x540] sm:$0xff] %vm301_vm2, %v4354_v24  ;;  %v5510_v32 = vpop.f32.mrf.mxu0  ;;  %v4369_v13 = vadd.f32 %v5660_v34, %v2705_v1  ;;  %v8257_v1 = vld [vmem:[#allocation32_spill] sm:$0xff] }
 0xefb   : > { %4580 = vst.msk [vmem:[%s7539_s9 + $0x220] sm:$0xff] %vm301_vm2, %v3854_v19  ;;  %v3869_v30 = vadd.f32 %v5510_v32, %v8247_v33  ;;  %v2700_v36 = vpop.permute.xlu1 %2699  ;;  %v5663_v61 = vpop.f32.mrf.mxu1 }
 0xefc   : > { %4683 = vst.msk [vmem:[%s7539_s9 + $0x558] sm:$0xff] %vm301_vm2, %v4369_v13  ;;  %v3863_v25 = vpop.f32.mrf.mxu0  ;;  %v4364_v50 = vadd.f32 %v4363_v46, %v2700_v36  ;;  %v8258_v36 = vld [vmem:[#allocation33_spill] sm:$0xff] }
 0xefd   : > { %4583 = vst.msk [vmem:[%s7539_s9 + $0x238] sm:$0xff] %vm301_vm2, %v3869_v30  ;;  %v3864_v7 = vadd.f32 %v3863_v25, %v8248_v6  ;;  %v2715_v44 = vpop.permute.xlu0 %2714  ;;  %v4373_v42 = vpop.f32.mrf.mxu1 }
 0xefe   : > { %4682 = vst.msk [vmem:[%s7539_s9 + $0x550] sm:$0xff] %vm301_vm2, %v4364_v50  ;;  %v5513_v35 = vpop.f32.mrf.mxu0  ;;  %v4379_v23 = vadd.f32 %v5663_v61, %v2715_v44  ;;  %v8259_v44 = vld [vmem:[#allocation34_spill] sm:$0xff] }
 0xeff   : > { %4582 = vst.msk [vmem:[%s7539_s9 + $0x230] sm:$0xff] %vm301_vm2, %v3864_v7  ;;  %v3879_v43 = vadd.f32 %v5513_v35, %v8249_v57  ;;  %v2710_v53 = vpop.permute.xlu1 %2709  ;;  %v5666_v59 = vpop.f32.mrf.mxu1 }
 0xf00   : > { %4685 = vst.msk [vmem:[%s7539_s9 + $0x568] sm:$0xff] %vm301_vm2, %v4379_v23  ;;  %v3873_v45 = vpop.f32.mrf.mxu0  ;;  %v4374_v12 = vadd.f32 %v4373_v42, %v2710_v53  ;;  %v8260_v53 = vld [vmem:[#allocation35_spill] sm:$0xff] }
 0xf01   : > { %4585 = vst.msk [vmem:[%s7539_s9 + $0x248] sm:$0xff] %vm301_vm2, %v3879_v43  ;;  %v3874_v5 = vadd.f32 %v3873_v45, %v8250_v51  ;;  %v2725_v26 = vpop.permute.xlu0 %2724  ;;  %v4383_v18 = vpop.f32.mrf.mxu1 }
 0xf02   : > { %4684 = vst.msk [vmem:[%s7539_s9 + $0x560] sm:$0xff] %vm301_vm2, %v4374_v12  ;;  %v5516_v56 = vpop.f32.mrf.mxu0  ;;  %v4389_v52 = vadd.f32 %v5666_v59, %v2725_v26  ;;  %v8261_v26 = vld [vmem:[#allocation36_spill] sm:$0xff] }
 0xf03   : > { %4584 = vst.msk [vmem:[%s7539_s9 + $0x240] sm:$0xff] %vm301_vm2, %v3874_v5  ;;  %v3889_v21 = vadd.f32 %v5516_v56, %v8251_v27  ;;  %v2720_v47 = vpop.permute.xlu1 %2719  ;;  %v5669_v58 = vpop.f32.mrf.mxu1 }
 0xf04   : > { %4687 = vst.msk [vmem:[%s7539_s9 + $0x578] sm:$0xff] %vm301_vm2, %v4389_v52  ;;  %v3883_v0 = vpop.f32.mrf.mxu0  ;;  %v4384_v17 = vadd.f32 %v4383_v18, %v2720_v47  ;;  %v8262_v47 = vld [vmem:[#allocation37_spill] sm:$0xff] }
 0xf05   : > { %4587 = vst.msk [vmem:[%s7539_s9 + $0x258] sm:$0xff] %vm301_vm2, %v3889_v21  ;;  %v3884_v39 = vadd.f32 %v3883_v0, %v8252_v11  ;;  %v2735_v48 = vpop.permute.xlu0 %2734  ;;  %v4393_v10 = vpop.f32.mrf.mxu1 }
 0xf06   : > { %4686 = vst.msk [vmem:[%s7539_s9 + $0x570] sm:$0xff] %vm301_vm2, %v4384_v17  ;;  %v5519_v63 = vpop.f32.mrf.mxu0  ;;  %v4399_v2 = vadd.f32 %v5669_v58, %v2735_v48  ;;  %v8263_v48 = vld [vmem:[#allocation38_spill] sm:$0xff] }
 0xf07   : > { %4586 = vst.msk [vmem:[%s7539_s9 + $0x250] sm:$0xff] %vm301_vm2, %v3884_v39  ;;  %v3899_v22 = vadd.f32 %v5519_v63, %v8253_v40  ;;  %v2730_v20 = vpop.permute.xlu1 %2729  ;;  %v5672_v54 = vpop.f32.mrf.mxu1 }
 0xf08   : > { %4689 = vst.msk [vmem:[%s7539_s9 + $0x588] sm:$0xff] %vm301_vm2, %v4399_v2  ;;  %v3893_v31 = vpop.f32.mrf.mxu0  ;;  %v4394_v8 = vadd.f32 %v4393_v10, %v2730_v20  ;;  %v8264_v20 = vld [vmem:[#allocation39_spill] sm:$0xff] }
 0xf09   : > { %4589 = vst.msk [vmem:[%s7539_s9 + $0x268] sm:$0xff] %vm301_vm2, %v3899_v22  ;;  %v3894_v29 = vadd.f32 %v3893_v31, %v8254_v9  ;;  %v2745_v15 = vpop.permute.xlu0 %2744  ;;  %v4403_v14 = vpop.f32.mrf.mxu1 }
 0xf0a   : > { %4688 = vst.msk [vmem:[%s7539_s9 + $0x580] sm:$0xff] %vm301_vm2, %v4394_v8  ;;  %v5522_v28 = vpop.f32.mrf.mxu0  ;;  %v4409_v38 = vadd.f32 %v5672_v54, %v2745_v15  ;;  %v8265_v15 = vld [vmem:[#allocation40_spill] sm:$0xff] }
 0xf0b   : > { %4588 = vst.msk [vmem:[%s7539_s9 + $0x260] sm:$0xff] %vm301_vm2, %v3894_v29  ;;  %v3909_v60 = vadd.f32 %v5522_v28, %v8255_v37  ;;  %v2740_v16 = vpop.permute.xlu1 %2739  ;;  %v5675_v55 = vpop.f32.mrf.mxu1 }
 0xf0c   : > { %4691 = vst.msk [vmem:[%s7539_s9 + $0x598] sm:$0xff] %vm301_vm2, %v4409_v38  ;;  %v3903_v41 = vpop.f32.mrf.mxu0  ;;  %v4404_v49 = vadd.f32 %v4403_v14, %v2740_v16  ;;  %v8266_v16 = vld [vmem:[#allocation41_spill] sm:$0xff] }
 0xf0d   : > { %4591 = vst.msk [vmem:[%s7539_s9 + $0x278] sm:$0xff] %vm301_vm2, %v3909_v60  ;;  %v3904_v34 = vadd.f32 %v3903_v41, %v8256_v3  ;;  %v2755_v4 = vpop.permute.xlu0 %2754  ;;  %v4413_v24 = vpop.f32.mrf.mxu1 }
 0xf0e   : > { %4690 = vst.msk [vmem:[%s7539_s9 + $0x590] sm:$0xff] %vm301_vm2, %v4404_v49  ;;  %v5525_v62 = vpop.f32.mrf.mxu0  ;;  %v4419_v19 = vadd.f32 %v5675_v55, %v2755_v4  ;;  %v8267_v4 = vld [vmem:[#allocation42_spill] sm:$0xff] }
 0xf0f   : > { %4590 = vst.msk [vmem:[%s7539_s9 + $0x270] sm:$0xff] %vm301_vm2, %v3904_v34  ;;  %v3919_v46 = vadd.f32 %v5525_v62, %v8257_v1  ;;  %v2750_v32 = vpop.permute.xlu1 %2749  ;;  %v5678_v13 = vpop.f32.mrf.mxu1 }
 0xf10   : > { %4693 = vst.msk [vmem:[%s7539_s9 + $0x5a8] sm:$0xff] %vm301_vm2, %v4419_v19  ;;  %v3913_v33 = vpop.f32.mrf.mxu0  ;;  %v4414_v30 = vadd.f32 %v4413_v24, %v2750_v32  ;;  %v8268_v32 = vld [vmem:[#allocation43_spill] sm:$0xff] }
 0xf11   : > { %4593 = vst.msk [vmem:[%s7539_s9 + $0x288] sm:$0xff] %vm301_vm2, %v3919_v46  ;;  %v3914_v61 = vadd.f32 %v3913_v33, %v8258_v36  ;;  %v2765_v25 = vpop.permute.xlu0 %2764  ;;  %v4423_v50 = vpop.f32.mrf.mxu1 }
 0xf12   : > { %4692 = vst.msk [vmem:[%s7539_s9 + $0x5a0] sm:$0xff] %vm301_vm2, %v4414_v30  ;;  %v5528_v6 = vpop.f32.mrf.mxu0  ;;  %v4429_v7 = vadd.f32 %v5678_v13, %v2765_v25  ;;  %v8269_v25 = vld [vmem:[#allocation44_spill] sm:$0xff] }
 0xf13   : > { %4592 = vst.msk [vmem:[%s7539_s9 + $0x280] sm:$0xff] %vm301_vm2, %v3914_v61  ;;  %v3929_v42 = vadd.f32 %v5528_v6, %v8259_v44  ;;  %v2760_v35 = vpop.permute.xlu1 %2759  ;;  %v5681_v23 = vpop.f32.mrf.mxu1 }
 0xf14   : > { %4695 = vst.msk [vmem:[%s7539_s9 + $0x5b8] sm:$0xff] %vm301_vm2, %v4429_v7  ;;  %v3923_v57 = vpop.f32.mrf.mxu0  ;;  %v4424_v43 = vadd.f32 %v4423_v50, %v2760_v35  ;;  %v8270_v35 = vld [vmem:[#allocation45_spill] sm:$0xff] }
 0xf15   : > { %4595 = vst.msk [vmem:[%s7539_s9 + $0x298] sm:$0xff] %vm301_vm2, %v3929_v42  ;;  %v3924_v59 = vadd.f32 %v3923_v57, %v8260_v53  ;;  %v2775_v45 = vpop.permute.xlu0 %2774  ;;  %v4433_v12 = vpop.f32.mrf.mxu1 }
 0xf16   : > { %4694 = vst.msk [vmem:[%s7539_s9 + $0x5b0] sm:$0xff] %vm301_vm2, %v4424_v43  ;;  %v5531_v51 = vpop.f32.mrf.mxu0  ;;  %v4439_v5 = vadd.f32 %v5681_v23, %v2775_v45  ;;  %v8271_v45 = vld [vmem:[#allocation46_spill] sm:$0xff] }
 0xf17   : > { %4594 = vst.msk [vmem:[%s7539_s9 + $0x290] sm:$0xff] %vm301_vm2, %v3924_v59  ;;  %v3939_v18 = vadd.f32 %v5531_v51, %v8261_v26  ;;  %v2770_v56 = vpop.permute.xlu1 %2769  ;;  %v5684_v52 = vpop.f32.mrf.mxu1 }
 0xf18   : > { %4697 = vst.msk [vmem:[%s7539_s9 + $0x5c8] sm:$0xff] %vm301_vm2, %v4439_v5  ;;  %v3933_v27 = vpop.f32.mrf.mxu0  ;;  %v4434_v21 = vadd.f32 %v4433_v12, %v2770_v56  ;;  %v8272_v56 = vld [vmem:[#allocation47_spill] sm:$0xff] }
 0xf19   : > { %4597 = vst.msk [vmem:[%s7539_s9 + $0x2a8] sm:$0xff] %vm301_vm2, %v3939_v18  ;;  %v3934_v58 = vadd.f32 %v3933_v27, %v8262_v47  ;;  %v2785_v0 = vpop.permute.xlu0 %2784  ;;  %v4443_v17 = vpop.f32.mrf.mxu1 }
 0xf1a   : > { %4696 = vst.msk [vmem:[%s7539_s9 + $0x5c0] sm:$0xff] %vm301_vm2, %v4434_v21  ;;  %v5534_v11 = vpop.f32.mrf.mxu0  ;;  %v4449_v39 = vadd.f32 %v5684_v52, %v2785_v0  ;;  %v8273_v0 = vld [vmem:[#allocation48_spill] sm:$0xff] }
 0xf1b   : > { %4596 = vst.msk [vmem:[%s7539_s9 + $0x2a0] sm:$0xff] %vm301_vm2, %v3934_v58  ;;  %v3949_v10 = vadd.f32 %v5534_v11, %v8263_v48  ;;  %v2780_v63 = vpop.permute.xlu1 %2779  ;;  %v5687_v2 = vpop.f32.mrf.mxu1 }
 0xf1c   : > { %4699 = vst.msk [vmem:[%s7539_s9 + $0x5d8] sm:$0xff] %vm301_vm2, %v4449_v39  ;;  %v3943_v40 = vpop.f32.mrf.mxu0  ;;  %v4444_v22 = vadd.f32 %v4443_v17, %v2780_v63  ;;  %v8274_v63 = vld [vmem:[#allocation49_spill] sm:$0xff] }
 0xf1d   : > { %4599 = vst.msk [vmem:[%s7539_s9 + $0x2b8] sm:$0xff] %vm301_vm2, %v3949_v10  ;;  %v3944_v54 = vadd.f32 %v3943_v40, %v8264_v20  ;;  %v2795_v31 = vpop.permute.xlu0 %2794  ;;  %v4453_v8 = vpop.f32.mrf.mxu1 }
 0xf1e   : > { %4698 = vst.msk [vmem:[%s7539_s9 + $0x5d0] sm:$0xff] %vm301_vm2, %v4444_v22  ;;  %v5537_v9 = vpop.f32.mrf.mxu0  ;;  %v4459_v29 = vadd.f32 %v5687_v2, %v2795_v31  ;;  %v8275_v31 = vld [vmem:[#allocation50_spill] sm:$0xff] }
 0xf1f   : > { %4598 = vst.msk [vmem:[%s7539_s9 + $0x2b0] sm:$0xff] %vm301_vm2, %v3944_v54  ;;  %v3959_v14 = vadd.f32 %v5537_v9, %v8265_v15  ;;  %v2790_v28 = vpop.permute.xlu1 %2789  ;;  %v5690_v38 = vpop.f32.mrf.mxu1 }
 0xf20   : > { %4701 = vst.msk [vmem:[%s7539_s9 + $0x5e8] sm:$0xff] %vm301_vm2, %v4459_v29  ;;  %v3953_v37 = vpop.f32.mrf.mxu0  ;;  %v4454_v60 = vadd.f32 %v4453_v8, %v2790_v28 }
 0xf21   : > { %4601 = vst.msk [vmem:[%s7539_s9 + $0x2c8] sm:$0xff] %vm301_vm2, %v3959_v14  ;;  %v3954_v55 = vadd.f32 %v3953_v37, %v8266_v16  ;;  %v2805_v41 = vpop.permute.xlu0 %2804  ;;  %v4463_v49 = vpop.f32.mrf.mxu1  ;;  %v8276_v14 = vld [vmem:[#allocation51_spill] sm:$0xff]  ;;  %v8277_v37 = vld [vmem:[#allocation52_spill] sm:$0xff] }
 0xf22   : > { %4700 = vst.msk [vmem:[%s7539_s9 + $0x5e0] sm:$0xff] %vm301_vm2, %v4454_v60  ;;  %v5540_v3 = vpop.f32.mrf.mxu0  ;;  %v4469_v34 = vadd.f32 %v5690_v38, %v2805_v41 }
 0xf23   : > { %4600 = vst.msk [vmem:[%s7539_s9 + $0x2c0] sm:$0xff] %vm301_vm2, %v3954_v55  ;;  %v3969_v24 = vadd.f32 %v5540_v3, %v8267_v4  ;;  %v2800_v62 = vpop.permute.xlu1 %2799  ;;  %v5693_v19 = vpop.f32.mrf.mxu1  ;;  %v8278_v55 = vld [vmem:[#allocation53_spill] sm:$0xff] }
 0xf24   : > { %4703 = vst.msk [vmem:[%s7539_s9 + $0x5f8] sm:$0xff] %vm301_vm2, %v4469_v34  ;;  %v3963_v1 = vpop.f32.mrf.mxu0  ;;  %v4464_v46 = vadd.f32 %v4463_v49, %v2800_v62 }
 0xf25   : > { %4603 = vst.msk [vmem:[%s7539_s9 + $0x2d8] sm:$0xff] %vm301_vm2, %v3969_v24  ;;  %v3964_v13 = vadd.f32 %v3963_v1, %v8268_v32  ;;  %v2815_v33 = vpop.permute.xlu0 %2814  ;;  %v4473_v30 = vpop.f32.mrf.mxu1 }
 0xf26   : > { %4702 = vst.msk [vmem:[%s7539_s9 + $0x5f0] sm:$0xff] %vm301_vm2, %v4464_v46  ;;  %v5543_v36 = vpop.f32.mrf.mxu0  ;;  %v4479_v61 = vadd.f32 %v5693_v19, %v2815_v33 }
 0xf27   : > { %4602 = vst.msk [vmem:[%s7539_s9 + $0x2d0] sm:$0xff] %vm301_vm2, %v3964_v13  ;;  %v3979_v50 = vadd.f32 %v5543_v36, %v8269_v25  ;;  %v2810_v6 = vpop.permute.xlu1 %2809  ;;  %v5696_v7 = vpop.f32.mrf.mxu1 }
 0xf28   : > { %4705 = vst.msk [vmem:[%s7539_s9 + $0x608] sm:$0xff] %vm301_vm2, %v4479_v61  ;;  %v3973_v44 = vpop.f32.mrf.mxu0  ;;  %v4474_v42 = vadd.f32 %v4473_v30, %v2810_v6 }
 0xf29   : > { %4605 = vst.msk [vmem:[%s7539_s9 + $0x2e8] sm:$0xff] %vm301_vm2, %v3979_v50  ;;  %v3974_v23 = vadd.f32 %v3973_v44, %v8270_v35  ;;  %v2825_v57 = vpop.permute.xlu0 %2824  ;;  %v4483_v43 = vpop.f32.mrf.mxu1 }
 0xf2a   : > { %4704 = vst.msk [vmem:[%s7539_s9 + $0x600] sm:$0xff] %vm301_vm2, %v4474_v42  ;;  %v5546_v53 = vpop.f32.mrf.mxu0  ;;  %v4489_v59 = vadd.f32 %v5696_v7, %v2825_v57 }
 0xf2b   : > { %4604 = vst.msk [vmem:[%s7539_s9 + $0x2e0] sm:$0xff] %vm301_vm2, %v3974_v23  ;;  %v3989_v12 = vadd.f32 %v5546_v53, %v8271_v45  ;;  %v2820_v51 = vpop.permute.xlu1 %2819  ;;  %v5699_v5 = vpop.f32.mrf.mxu1 }
 0xf2c   : > { %4707 = vst.msk [vmem:[%s7539_s9 + $0x618] sm:$0xff] %vm301_vm2, %v4489_v59  ;;  %v3983_v26 = vpop.f32.mrf.mxu0  ;;  %v4484_v18 = vadd.f32 %v4483_v43, %v2820_v51 }
 0xf2d   : > { %4607 = vst.msk [vmem:[%s7539_s9 + $0x2f8] sm:$0xff] %vm301_vm2, %v3989_v12  ;;  %v3984_v52 = vadd.f32 %v3983_v26, %v8272_v56  ;;  %v2835_v27 = vpop.permute.xlu0 %2834  ;;  %v4493_v21 = vpop.f32.mrf.mxu1 }
 0xf2e   : > { %4706 = vst.msk [vmem:[%s7539_s9 + $0x610] sm:$0xff] %vm301_vm2, %v4484_v18  ;;  %v5549_v47 = vpop.f32.mrf.mxu0  ;;  %v4499_v58 = vadd.f32 %v5699_v5, %v2835_v27 }
 0xf2f   : > { %4606 = vst.msk [vmem:[%s7539_s9 + $0x2f0] sm:$0xff] %vm301_vm2, %v3984_v52  ;;  %v3999_v17 = vadd.f32 %v5549_v47, %v8273_v0  ;;  %v2830_v11 = vpop.permute.xlu1 %2829  ;;  %v5702_v39 = vpop.f32.mrf.mxu1 }
 0xf30   : > { %4709 = vst.msk [vmem:[%s7539_s9 + $0x628] sm:$0xff] %vm301_vm2, %v4499_v58  ;;  %v3993_v48 = vpop.f32.mrf.mxu0  ;;  %v4494_v10 = vadd.f32 %v4493_v21, %v2830_v11 }
 0xf31   : > { %4609 = vst.msk [vmem:[%s7539_s9 + $0x308] sm:$0xff] %vm301_vm2, %v3999_v17  ;;  %v3994_v2 = vadd.f32 %v3993_v48, %v8274_v63  ;;  %v2845_v40 = vpop.permute.xlu0 %2844  ;;  %v4503_v22 = vpop.f32.mrf.mxu1 }
 0xf32   : > { %4708 = vst.msk [vmem:[%s7539_s9 + $0x620] sm:$0xff] %vm301_vm2, %v4494_v10  ;;  %v5552_v20 = vpop.f32.mrf.mxu0  ;;  %v4509_v54 = vadd.f32 %v5702_v39, %v2845_v40 }
 0xf33   : > { %4608 = vst.msk [vmem:[%s7539_s9 + $0x300] sm:$0xff] %vm301_vm2, %v3994_v2  ;;  %v4009_v8 = vadd.f32 %v5552_v20, %v8275_v31  ;;  %v2840_v9 = vpop.permute.xlu1 %2839 }
 0xf34   : > { %4711 = vst.msk [vmem:[%s7539_s9 + $0x638] sm:$0xff] %vm301_vm2, %v4509_v54  ;;  %v4003_v29 = vpop.f32.mrf.mxu0  ;;  %v4504_v15 = vadd.f32 %v4503_v22, %v2840_v9 }
 0xf35   : > { %4611 = vst.msk [vmem:[%s7539_s9 + $0x318] sm:$0xff] %vm301_vm2, %v4009_v8  ;;  %v4004_v28 = vadd.f32 %v4003_v29, %v8276_v14 }
 0xf36   : > { %4710 = vst.msk [vmem:[%s7539_s9 + $0x630] sm:$0xff] %vm301_vm2, %v4504_v15  ;;  %v5555_v38 = vpop.f32.mrf.mxu0 }
 0xf37   : > { %4610 = vst.msk [vmem:[%s7539_s9 + $0x310] sm:$0xff] %vm301_vm2, %v4004_v28  ;;  %v4019_v60 = vadd.f32 %v5555_v38, %v8277_v37 }
 0xf38   : > { %v4013_v16 = vpop.f32.mrf.mxu0 }
 0xf39   : > { %4613 = vst.msk [vmem:[%s7539_s9 + $0x328] sm:$0xff] %vm301_vm2, %v4019_v60  ;;  %v4014_v41 = vadd.f32 %v4013_v16, %v8278_v55 }
 0xf3b   : > { %4612 = vst.msk [vmem:[%s7539_s9 + $0x320] sm:$0xff] %vm301_vm2, %v4014_v41 }
 0xf3c PF: > { %s17_s24 = sadd.s32 1, %s5739_s24  }
 0xf3d   : > { %p14_p4 = scmp.ge.s32.totalorder %s17_s24, 4  }
 0xf3f   :  { %16 = sbr.rel (!%p14_p4) target bundleno = 1 (0x1), region = 88 }

// kernel: lvc_block_forward.3
= control target key start
LH: loop header
LB: loop body
LE: loop exit
PB: predicated region body
PF: predicated region fallthrough
CT: control target
= control target key end

     0   :  { %12 = vsyncpa [#allocation6], 0  ;;  %s4117_s0 = inlined_call_operand.vmem [shape: f32[2,8,135], index: 0, kind: input, shape index: {}]   ;;  %s4118_s1 = inlined_call_operand.vmem [shape: f32[8,64], index: 1, kind: input, shape index: {}]   ;;  %s4119_s2 = inlined_call_operand.vmem [shape: f32[8,1], index: 2, kind: input, shape index: {}]   ;;  %s4120_s3 = inlined_call_operand.vmem [shape: f32[4,8,24], index: 3, kind: input, shape index: {}]   ;;  %s4121_s4 = inlined_call_operand.vmem [shape: f32[4,8,1], index: 4, kind: input, shape index: {}]   ;;  %s4122_s5 = inlined_call_operand.vmem [shape: f32[2,4,4,16,24], index: 5, kind: input, shape index: {}]   ;;  %s4123_s6 = inlined_call_operand.vmem [shape: f32[2,4,16,128], index: 6, kind: input, shape index: {}]   ;;  %s4124_s7 = inlined_call_operand.hbm [shape: f32[2,8,128], index: 7, kind: output, shape index: {}]  }
   0x1   :  { %14 = vsyncpa [#allocation6 + $0x1], 0  ;;  %s3673_s24 = smov 0   ;;  %s3675_s25 = smov 0  }
   0x2   :  { %s3677_s26 = smov 0   ;;  %s3679_s27 = smov 0  }
   0x3 LB: > { %s3694_s28 = sadd.s32 4294967295, %s3608_s27   ;;  %s3056_s29 = sadd.s32 4294967294, %s3608_s27   ;;  %s3608_s27 = sphi %s3679_s27, %s4130_s27   ;;  %s3604_s26 = sphi %s3677_s26, %s4129_s26   ;;  %s3600_s25 = sphi %s3675_s25, %s4128_s25   ;;  %s3596_s24 = sphi %s3673_s24, %s4127_s24  }
   0x4   : > { %s3698_s30 = sadd.s32 1, %s3608_s27   ;;  %s189_s8 = sadd.s32 1, %s3604_s26 }
   0x5   : > { %s186_s9 = ssub.s32 %s3608_s27, %s3698_s30  ;;  %p199_p0 = scmp.ne.s32.totalorder %s3604_s26, %s3600_s25 }
   0x6   : > { %p187_p1 = scmp.eq.s32.totalorder %s186_s9, 0  ;;  %p200_p2 = scmp.eq.s32.totalorder %s3694_s28, 1 }
   0x7   : > { %p205_p3 = scmp.ne.s32.totalorder %s3600_s25, %s3596_s24  ;;  %p206_p4 = scmp.eq.s32.totalorder %s3056_s29, 1 }
   0x8   : > { %s3709_s10 = scalar_select %p187_p1, %s3604_s26, %s189_s8  }
   0x9   : > { %p3711_p5 = por %p200_p2, %p199_p0  ;;  %p3715_p6 = por %p206_p4, %p205_p3 }
   0xa   : > { %p3059_p7 = scmp.ge.s32.totalorder %s3608_s27, 1  ;;  %p260_p8 = scmp.lt.s32.totalorder %s3608_s27, 3 }
   0xc   : > { %p261_p9 = pnand %p3059_p7, %p260_p8 }
   0xd   : > { %p302_p10 = scmp.lt.s32.totalorder (!%p261_p9), %s3694_s28, 1  ;;  %s3611_s18 = smov (!%p261_p9), 121  }
   0xe   : > { %264 = sbr.rel (%p261_p9) target bundleno = 5109 (0x13f5), region = 48  ;;  %s3612_s19 = smov (!%p261_p9), 122  }
   0xf   : > { %s3613_s20 = smov (!%p261_p9), 123   ;;  %s3614_s21 = smov (!%p261_p9), 124  }
  0x10   : > { %s3616_s22 = smov (!%p261_p9), 125   ;;  %s3618_s23 = smov (!%p261_p9), 126  }
  0x11   : > { %s3619_s29 = smov (!%p261_p9), 127   ;;  %s3620_s16 = smov (!%p261_p9), 27  }
  0x12   : > { %s3624_s15 = smov (!%p261_p9), 96   ;;  %s3628_s9 = smov (!%p261_p9), 104  }
  0x13   : > { %v3610_v0 = vmov 0.0   ;;  %s3726_s13 = scalar_select %p302_p10, %s3694_s28, 1  ;;  %vm3615_vm2 = vmmov 0   ;;  %v3617_v7 = vmov 0   ;;  %v460_v8 = vld [vmem:[%s4119_s2] sm:$0xff]  ;;  %vm447_vm3 = vcmask 990208  }
  0x14   : > { %3262 = vmatprep.subr.mxu0 %v3610_v0  ;;  %317 = vst [vmem:[#allocation2] sm:$0xff] %v3610_v0  ;;  %3281 = vmatprep.subr.mxu1 %v3610_v0  ;;  %vm429_vm4 = vcmask 998400   ;;  %vm411_vm5 = vcmask 1006592   ;;  %vm393_vm6 = vcmask 1014784   ;;  %vm375_vm7 = vcmask 1022976   ;;  %v451_v30 = vld [vmem:[%s4118_s1] sm:$0xff] }
  0x15   : > { %s3154_s14 = sshll.u32 %s3726_s13, 4  ;;  %3278 = vmatprep.mubr.msk.f32.mxu0 %vm3615_vm2, %v3610_v0  ;;  %3287 = vmatprep.mubr.msk.f32.mxu1 %vm3615_vm2, %v3610_v0  ;;  %vm357_vm8 = vcmask 1031168   ;;  %vm339_vm9 = vcmask 1039360   ;;  %vm466_vm10 = vcmask 523264   ;;  %vm318_vm11 = vcmask 441344   ;;  %v593_v40 = vld [vmem:[%s4121_s4] sm:$0xff] }
  0x16   : > { %s306_s17 = scalar_lea.vmem %s4117_s0, %s3154_s14  ;;  %3522 = vset.pattern.permute.xlu0 %v3617_v7  ;;  %3523 = vset.pattern.permute.xlu1 %v3617_v7  ;;  %319 = vst.msk [vmem:[#allocation2 + $0x8] sm:$0xff] %vm318_vm11, %v3610_v0  ;;  %vm549_vm13 = vcmask 1047768   ;;  %vm551_vm14 = vcmask 220160   ;;  %vm585_vm15 = vcmask 818176   ;;  %v589_v49 = vld [vmem:[%s4120_s3] sm:$0xff]  ;;  %vm1169_vm11 = vcmask 850944  }
  0x17   : > { %v433_v1 = vld [vmem:[%s306_s17] sm:$0xff]  ;;  %v434_v2 = vld [vmem:[%s306_s17 + $0x8] sm:$0xff]  ;;  %s3621_s17 = smov 100  }
  0x18   : > { %vm435_vm0 = vcmp.ge.f32.partialorder %v433_v1, 0.0  ;;  %v437_v3 = vmul.f32 0.2, %v433_v1  ;;  %v438_v4 = vmul.f32 0.2, %v434_v2  ;;  %vm436_vm1 = vcmp.ge.f32.partialorder %v434_v2, 0.0 }
  0x1a   : > { %v3732_v5 = vsel %vm435_vm0, %v433_v1, %v437_v3  ;;  %v440_v6 = vsel %vm436_vm1, %v434_v2, %v438_v4  ;;  %vm573_vm0 = vcmask 826368   ;;  %vm561_vm1 = vcmask 834560  }
  0x1b   : > { %443 = vrot.lane.b32.xlu0 %v3732_v5, %s3611_s18  ;;  %425 = vrot.lane.b32.xlu1 %v3732_v5, %s3612_s19 }
  0x1f   : > { %445 = vrot.lane.b32.xlu0 %v440_v6, %s3611_s18  ;;  %427 = vrot.lane.b32.xlu1 %v440_v6, %s3612_s19  ;;  %s3622_s18 = smov 101   ;;  %s3623_s19 = smov 102  }
  0x23   : > { %409 = vrot.lane.b32.xlu1 %v440_v6, %s3613_s20  ;;  %407 = vrot.lane.b32.xlu0 %v3732_v5, %s3613_s20  ;;  %s3625_s20 = smov 64  }
  0x27   : > { %391 = vrot.lane.b32.xlu1 %v440_v6, %s3614_s21  ;;  %389 = vrot.lane.b32.xlu0 %v3732_v5, %s3614_s21  ;;  %s3626_s21 = smov 32  }
  0x2b   : > { %373 = vrot.lane.b32.xlu1 %v440_v6, %s3616_s22  ;;  %371 = vrot.lane.b32.xlu0 %v3732_v5, %s3616_s22  ;;  %s3156_s22 = sshll.u32 %s3726_s13, 6 }
  0x2c   : > { %s3848_s8 = scalar_lea.vmem %s4123_s6, %s3156_s22  ;;  %s3630_s22 = smov 110  }
  0x2f   : > { %355 = vrot.lane.b32.xlu1 %v440_v6, %s3618_s23  ;;  %353 = vrot.lane.b32.xlu0 %v3732_v5, %s3618_s23  ;;  %s3632_s23 = smov [#allocation5]  }
  0x33   : > { %337 = vrot.lane.b32.xlu1 %v440_v6, %s3619_s29  ;;  %335 = vrot.lane.b32.xlu0 %v3732_v5, %s3619_s29  ;;  %s3155_s29 = sshll.u32 %s3726_s13, 8  ;;  %s3627_s13 = smov 98  }
  0x34   : > { %s3799_s14 = scalar_lea.vmem %s4122_s5, %s3155_s29  ;;  %s3552_s29 = sshll.u32 %s3632_s23, 4  ;;  %s3553_s29 = int_to_ptr.vmem [resolvable:$false] %s3552_s29 }
  0x35   : > { %v715_v60 = vld [vmem:[%s3799_s14] sm:$0xff] }
  0x36   : > { %v3075_v4 = vld [vmem:[%s3799_s14 + $0x20] sm:$0xff] }
  0x37   : > { %463 = vperm.xlu0 %3522, %v460_v8   ;;  %v716_v8 = vld [vmem:[%s3799_s14 + $0x8] sm:$0xff] }
  0x8d   : > { %v444_v9 = vpop.permute.xlu0 %443  ;;  %v426_v10 = vpop.permute.xlu1 %425 }
  0x91   : > { %v446_v11 = vpop.permute.xlu0 %445  ;;  %v428_v12 = vpop.permute.xlu1 %427 }
  0x92   : > { %v448_v13 = vsel %vm447_vm3, %v444_v9, %v446_v11  ;;  %v430_v14 = vsel %vm429_vm4, %v426_v10, %v428_v12  ;;  %vm599_vm3 = vcmask 195584   ;;  %v3071_v9 = vld [vmem:[%s3799_s14 + $0x10] sm:$0xff] }
  0x93   : > { %3263 = vmatpush3.msra.mxu0 %v448_v13 }
  0x94   : > { %3264 = vmatprep.subr.mxu0 %v3610_v0 }
  0x95   : > { %3265 = vmatpush3.msra.mxu0 %v430_v14  ;;  %v410_v15 = vpop.permute.xlu1 %409  ;;  %v408_v16 = vpop.permute.xlu0 %407  ;;  %v3072_v14 = vld [vmem:[%s3799_s14 + $0x18] sm:$0xff] }
  0x96   : > { %3266 = vmatprep.subr.mxu0 %v3610_v0  ;;  %v412_v17 = vsel %vm411_vm5, %v408_v16, %v410_v15  ;;  %v3079_v15 = vld [vmem:[%s3799_s14 + $0x30] sm:$0xff]  ;;  %vm801_vm5 = vcmask 261120  }
  0x97   : > { %3267 = vmatpush3.msra.mxu0 %v412_v17 }
  0x98   : > { %3268 = vmatprep.subr.mxu0 %v3610_v0 }
  0x99   : > { %v392_v18 = vpop.permute.xlu1 %391  ;;  %v390_v19 = vpop.permute.xlu0 %389 }
  0x9a   : > { %v394_v20 = vsel %vm393_vm6, %v390_v19, %v392_v18  ;;  %vm911_vm6 = vcmask 523520  }
  0x9b   : > { %3269 = vmatpush3.msra.mxu0 %v394_v20  ;;  %v3076_v20 = vld [vmem:[%s3799_s14 + $0x28] sm:$0xff] }
  0x9c   : > { %3270 = vmatprep.subr.mxu0 %v3610_v0 }
  0x9d   : > { %v374_v21 = vpop.permute.xlu1 %373  ;;  %v372_v22 = vpop.permute.xlu0 %371 }
  0x9e   : > { %v376_v23 = vsel %vm375_vm7, %v372_v22, %v374_v21  ;;  %v3080_v22 = vld [vmem:[%s3799_s14 + $0x38] sm:$0xff]  ;;  %vm1021_vm7 = vcmask 785920  }
  0x9f   : > { %3271 = vmatpush3.msra.mxu0 %v376_v23 }
  0xa0   : > { %3272 = vmatprep.subr.mxu0 %v3610_v0 }
  0xa1   : > { %v356_v24 = vpop.permute.xlu1 %355  ;;  %v354_v25 = vpop.permute.xlu0 %353 }
  0xa2   : > { %v358_v26 = vsel %vm357_vm8, %v354_v25, %v356_v24  ;;  %vm1131_vm8 = vcmask 1048320  }
  0xa3   : > { %3273 = vmatpush3.msra.mxu0 %v358_v26 }
  0xa4   : > { %3274 = vmatprep.subr.mxu0 %v3610_v0 }
  0xa5   : > { %v338_v27 = vpop.permute.xlu1 %337  ;;  %v336_v28 = vpop.permute.xlu0 %335 }
  0xa6   : > { %v340_v29 = vsel %vm339_vm9, %v336_v28, %v338_v27 }
  0xa7   : > { %3275 = vmatpush3.msra.mxu0 %v340_v29 }
  0xa8   : > { %3276 = vmatprep.subr.mxu0 %v3610_v0 }
  0xa9   : > { %3277 = vmatpush3.msra.mxu0 %v3732_v5 }
  0xaa   : > { %3279 = vmatmul.mubr.msk.f32.vlgmr.msra.gmra.mxu0 %vm466_vm10, %v451_v30  ;;  %vm1192_vm10 = vcmask 801792  }
  0xab   : > { %3314 = vmatprep.mubr.msk.f32.mxu0 %vm599_vm3, %v3075_v4 }
  0xb2   : > { %v464_v31 = vpop.permute.xlu0 %463 }
 0x16a   : > { %v536_v32 = vpop.f32.mrf.mxu0 }
 0x16b   : > { %v3760_v33 = vadd.f32 %v536_v32, %v464_v31 }
 0x16c   : > { %v3280_v34 = vpop.f32.mrf.mxu0 }
 0x16d   : > { %vm542_vm12 = vcmp.ge.f32.partialorder %v3760_v33, 0.0  ;;  %v543_v35 = vmul.f32 0.2, %v3760_v33 }
 0x16f   : > { %v544_v36 = vsel %vm542_vm12, %v3760_v33, %v543_v35 }
 0x170   : > { %546 = vrot.lane.b32.xlu1 %v544_v36, %s3620_s16 }
 0x1e2   : > { %v547_v37 = vpop.permute.xlu1 %546 }
 0x1e3   : > { %550 = vst.msk [vmem:[#allocation2] sm:$0xff] %vm549_vm13, %v547_v37 }
 0x1e4   : > { %552 = vst.msk [vmem:[#allocation2 + $0x8] sm:$0xff] %vm551_vm14, %v547_v37 }
 0x1ea   : > { %v577_v39 = vld [vmem:[#allocation2] sm:$0xff] }
 0x1eb   : > { %v578_v38 = vld [vmem:[#allocation2 + $0x8] sm:$0xff]  ;;  %581 = vrot.lane.b32.xlu1 %v577_v39, %s3621_s17 }
 0x1ec   : > { %583 = vrot.lane.b32.xlu0 %v578_v38, %s3621_s17 }
 0x1ef   : > { %569 = vrot.lane.b32.xlu1 %v577_v39, %s3622_s18 }
 0x1f0   : > { %571 = vrot.lane.b32.xlu0 %v578_v38, %s3622_s18 }
 0x1f3   : > { %557 = vrot.lane.b32.xlu1 %v577_v39, %s3623_s19 }
 0x1f4   : > { %559 = vrot.lane.b32.xlu0 %v578_v38, %s3623_s19  ;;  %v1136_v38 = vld [vmem:[%s3848_s8] sm:$0xff] }
 0x1f7   : > { %596 = vperm.xlu1 %3523, %v593_v40  }
 0x25d   : > { %v582_v42 = vpop.permute.xlu1 %581 }
 0x25e   : > { %v584_v41 = vpop.permute.xlu0 %583 }
 0x25f   : > { %v586_v43 = vsel %vm585_vm15, %v582_v42, %v584_v41  ;;  %v1137_v42 = vld [vmem:[%s3848_s8 + $0x8] sm:$0xff] }
 0x260   : > { %3282 = vmatpush3.msra.mxu1 %v586_v43 }
 0x261   : > { %3283 = vmatprep.subr.mxu1 %v3610_v0  ;;  %v570_v45 = vpop.permute.xlu1 %569 }
 0x262   : > { %v572_v44 = vpop.permute.xlu0 %571 }
 0x263   : > { %v574_v46 = vsel %vm573_vm0, %v570_v45, %v572_v44 }
 0x264   : > { %3284 = vmatpush3.msra.mxu1 %v574_v46 }
 0x265   : > { %3285 = vmatprep.subr.mxu1 %v3610_v0  ;;  %v558_v48 = vpop.permute.xlu1 %557 }
 0x266   : > { %v560_v47 = vpop.permute.xlu0 %559 }
 0x267   : > { %v562_v50 = vsel %vm561_vm1, %v558_v48, %v560_v47 }
 0x268   : > { %3286 = vmatpush3.msra.mxu1 %v562_v50 }
 0x269   : > { %3288 = vmatmul.mubr.msk.f32.vlgmr.msra.gmra.mxu1 %vm599_vm3, %v589_v49 }
 0x26a   : > { %3296 = vmatprep.mubr.msk.f32.mxu1 %vm599_vm3, %v715_v60 }
 0x272   : > { %v597_v51 = vpop.permute.xlu1 %596 }
 0x329   : > { %v669_v52 = vpop.f32.mrf.mxu1 }
 0x32a   : > { %v670_v53 = vadd.f32 %v669_v52, %v597_v51 }
 0x32b   : > { %v3289_v54 = vpop.f32.mrf.mxu1 }
 0x32c   : > { %vm673_vm4 = vcmp.ge.f32.partialorder %v670_v53, 0.0  ;;  %v674_v55 = vmul.f32 0.2, %v670_v53 }
 0x32e   : > { %v675_v56 = vsel %vm673_vm4, %v670_v53, %v674_v55 }
 0x32f   : > { %677 = vrot.lane.b32.xlu0 %v675_v56, %s3620_s16 }
 0x3a1   : > { %v678_v57 = vpop.permute.xlu0 %677 }
 0x3a2   : > { %680 = vst.msk [vmem:[#allocation2] sm:$0xff] %vm549_vm13, %v678_v57 }
 0x3a3   : > { %681 = vst.msk [vmem:[#allocation2 + $0x8] sm:$0xff] %vm551_vm14, %v678_v57 }
 0x3a9   : > { %v704_v59 = vld [vmem:[#allocation2] sm:$0xff] }
 0x3aa   : > { %v705_v58 = vld [vmem:[#allocation2 + $0x8] sm:$0xff]  ;;  %708 = vrot.lane.b32.xlu1 %v704_v59, %s3621_s17 }
 0x3ab   : > { %710 = vrot.lane.b32.xlu0 %v705_v58, %s3621_s17 }
 0x3ae   : > { %697 = vrot.lane.b32.xlu1 %v704_v59, %s3622_s18 }
 0x3af   : > { %699 = vrot.lane.b32.xlu0 %v705_v58, %s3622_s18 }
 0x3b2   : > { %686 = vrot.lane.b32.xlu1 %v704_v59, %s3623_s19 }
 0x3b3   : > { %688 = vrot.lane.b32.xlu0 %v705_v58, %s3623_s19 }
 0x41c   : > { %v709_v62 = vpop.permute.xlu1 %708 }
 0x41d   : > { %v711_v61 = vpop.permute.xlu0 %710 }
 0x41e   : > { %v712_v63 = vsel %vm585_vm15, %v709_v62, %v711_v61 }
 0x41f   : > { %3290 = vmatprep.subr.mxu1 %v712_v63  ;;  %817 = vrot.lane.b32.xlu1 %v712_v63, %s3624_s15 }
 0x420   : > { %3291 = vmatpush3.msra.mxu1 %v712_v63  ;;  %v698_v2 = vpop.permute.xlu1 %697 }
 0x421   : > { %v700_v1 = vpop.permute.xlu0 %699 }
 0x422   : > { %v701_v3 = vsel %vm573_vm0, %v698_v2, %v700_v1  ;;  %v3084_v1 = vld [vmem:[%s4120_s3 + $0x8] sm:$0xff] }
 0x423   : > { %815 = vrot.lane.b32.xlu0 %v701_v3, %s3624_s15  ;;  %3292 = vmatprep.subr.mxu1 %v701_v3 }
 0x424   : > { %3293 = vmatpush3.msra.mxu1 %v701_v3  ;;  %v687_v6 = vpop.permute.xlu1 %686 }
 0x425   : > { %v689_v5 = vpop.permute.xlu0 %688 }
 0x426   : > { %v690_v7 = vsel %vm561_vm1, %v687_v6, %v689_v5 }
 0x427   : > { %927 = vrot.lane.b32.xlu0 %v712_v63, %s3625_s20  ;;  %813 = vrot.lane.b32.xlu1 %v690_v7, %s3624_s15 }
 0x428   : > { %3294 = vmatprep.subr.mxu1 %v690_v7 }
 0x429   : > { %3295 = vmatpush3.msra.mxu1 %v690_v7 }
 0x42a   : > { %3297 = vmatmul.mubr.msk.f32.vlgmr.msra.gmra.mxu1 %vm599_vm3, %v716_v8 }
 0x42b   : > { %925 = vrot.lane.b32.xlu0 %v701_v3, %s3625_s20  ;;  %1037 = vrot.lane.b32.xlu1 %v712_v63, %s3626_s21 }
 0x42c   : > { %3305 = vmatprep.mubr.msk.f32.mxu1 %vm599_vm3, %v3071_v9 }
 0x42f   : > { %923 = vrot.lane.b32.xlu0 %v690_v7, %s3625_s20  ;;  %1035 = vrot.lane.b32.xlu1 %v701_v3, %s3626_s21 }
 0x433   : > { %1033 = vrot.lane.b32.xlu1 %v690_v7, %s3626_s21 }
 0x491   : > { %v818_v10 = vpop.permute.xlu1 %817 }
 0x492   : > { %3299 = vmatprep.subr.mxu1 %v818_v10 }
 0x493   : > { %3300 = vmatpush3.msra.mxu1 %v818_v10 }
 0x495   : > { %v816_v11 = vpop.permute.xlu0 %815 }
 0x496   : > { %3301 = vmatprep.subr.mxu1 %v816_v11 }
 0x497   : > { %3302 = vmatpush3.msra.mxu1 %v816_v11 }
 0x499   : > { %v928_v12 = vpop.permute.xlu0 %927  ;;  %v814_v13 = vpop.permute.xlu1 %813 }
 0x49a   : > { %3303 = vmatprep.subr.mxu1 %v814_v13  ;;  %3308 = vmatprep.subr.mxu0 %v928_v12 }
 0x49b   : > { %3304 = vmatpush3.msra.mxu1 %v814_v13  ;;  %3309 = vmatpush3.msra.mxu0 %v928_v12  ;;  %v3087_v12 = vld [vmem:[%s3799_s14 + $0x40] sm:$0xff] }
 0x49c   : > { %3306 = vmatmul.mubr.msk.f32.vlgmr.msra.gmra.mxu1 %vm599_vm3, %v3072_v14 }
 0x49d   : > { %v926_v16 = vpop.permute.xlu0 %925  ;;  %v1038_v17 = vpop.permute.xlu1 %1037  ;;  %3323 = vmatprep.mubr.msk.f32.mxu1 %vm599_vm3, %v3079_v15  ;;  %v3091_v15 = vld [vmem:[%s3799_s14 + $0x50] sm:$0xff] }
 0x49e   : > { %3310 = vmatprep.subr.mxu0 %v926_v16  ;;  %3317 = vmatprep.subr.mxu1 %v1038_v17 }
 0x49f   : > { %3311 = vmatpush3.msra.mxu0 %v926_v16  ;;  %3318 = vmatpush3.msra.mxu1 %v1038_v17 }
 0x4a1   : > { %v924_v18 = vpop.permute.xlu0 %923  ;;  %v1036_v19 = vpop.permute.xlu1 %1035 }
 0x4a2   : > { %3312 = vmatprep.subr.mxu0 %v924_v18  ;;  %3319 = vmatprep.subr.mxu1 %v1036_v19 }
 0x4a3   : > { %3313 = vmatpush3.msra.mxu0 %v924_v18  ;;  %3320 = vmatpush3.msra.mxu1 %v1036_v19 }
 0x4a4   : > { %3315 = vmatmul.mubr.msk.f32.vlgmr.msra.gmra.mxu0 %vm599_vm3, %v3076_v20  ;;  %3326 = vmatprep.subr.mxu0 %v3610_v0 }
 0x4a5   : > { %v1034_v21 = vpop.permute.xlu1 %1033  ;;  %3332 = vmatprep.mubr.msk.f32.mxu0 %vm3615_vm2, %v3610_v0 }
 0x4a6   : > { %3321 = vmatprep.subr.mxu1 %v1034_v21 }
 0x4a7   : > { %3322 = vmatpush3.msra.mxu1 %v1034_v21 }
 0x4a8   : > { %3324 = vmatmul.mubr.msk.f32.vlgmr.msra.gmra.mxu1 %vm599_vm3, %v3080_v22 }
 0x4a9   : > { %3341 = vmatprep.mubr.msk.f32.mxu1 %vm599_vm3, %v3087_v12 }
 0x4ea   : > { %v3298_v23 = vpop.f32.mrf.mxu1 }
 0x4eb   : > { %803 = vst.msk [vmem:[#allocation4 + $0x8] sm:$0xff] %vm801_vm5, %v3298_v23  ;;  %v3088_v23 = vld [vmem:[%s3799_s14 + $0x48] sm:$0xff] }
 0x4ec   : > { %v792_v24 = vpop.f32.mrf.mxu1 }
 0x4ed   : > { %802 = vst.msk [vmem:[#allocation4] sm:$0xff] %vm801_vm5, %v792_v24  ;;  %v3095_v24 = vld [vmem:[%s3799_s14 + $0x60] sm:$0xff] }
 0x55c   : > { %v3307_v25 = vpop.f32.mrf.mxu1 }
 0x55e   : > { %v894_v26 = vpop.f32.mrf.mxu1 }
 0x55f   : > { %905 = vrot.lane.b32.xlu0 %v894_v26, %s3626_s21 }
 0x564   : > { %v3316_v27 = vpop.f32.mrf.mxu0 }
 0x566   : > { %v1004_v28 = vpop.f32.mrf.mxu0 }
 0x567   : > { %1015 = vrot.lane.b32.xlu1 %v1004_v28, %s3625_s20 }
 0x568   : > { %v3325_v29 = vpop.f32.mrf.mxu1 }
 0x56a   : > { %v1114_v30 = vpop.f32.mrf.mxu1 }
 0x56b   : > { %907 = vrot.lane.b32.xlu1 %v3307_v25, %s3626_s21  ;;  %1125 = vrot.lane.b32.xlu0 %v1114_v30, %s3624_s15  ;;  %v3099_v30 = vld [vmem:[%s3799_s14 + $0x70] sm:$0xff] }
 0x56f   : > { %1127 = vrot.lane.b32.xlu1 %v3325_v29, %s3624_s15  ;;  %1017 = vrot.lane.b32.xlu0 %v3316_v27, %s3625_s20  ;;  %v3092_v29 = vld [vmem:[%s3799_s14 + $0x58] sm:$0xff] }
 0x5d1   : > { %v906_v31 = vpop.permute.xlu0 %905 }
 0x5d2   : > { %912 = vst.msk [vmem:[#allocation4] sm:$0xff] %vm911_vm6, %v906_v31 }
 0x5d9   : > { %v1016_v32 = vpop.permute.xlu1 %1015 }
 0x5da   : > { %1022 = vst.msk [vmem:[#allocation4] sm:$0xff] %vm1021_vm7, %v1016_v32 }
 0x5dd   : > { %v1126_v34 = vpop.permute.xlu0 %1125  ;;  %v908_v35 = vpop.permute.xlu1 %907 }
 0x5de   : > { %1132 = vst.msk [vmem:[#allocation4] sm:$0xff] %vm1131_vm8, %v1126_v34 }
 0x5df   : > { %913 = vst.msk [vmem:[#allocation4 + $0x8] sm:$0xff] %vm911_vm6, %v908_v35 }
 0x5e1   : > { %v1018_v36 = vpop.permute.xlu0 %1017  ;;  %v1128_v37 = vpop.permute.xlu1 %1127 }
 0x5e2   : > { %1023 = vst.msk [vmem:[#allocation4 + $0x8] sm:$0xff] %vm1021_vm7, %v1018_v36  ;;  %v3096_v36 = vld [vmem:[%s3799_s14 + $0x68] sm:$0xff] }
 0x5e3   : > { %1133 = vst.msk [vmem:[#allocation4 + $0x8] sm:$0xff] %vm1131_vm8, %v1128_v37 }
 0x5e5   : > { %v1134_v39 = vld [vmem:[#allocation4] sm:$0xff] }
 0x5e6   : > { %v1138_v40 = vadd.f32 %v1136_v38, %v1134_v39  ;;  %v3100_v38 = vld [vmem:[%s3799_s14 + $0x78] sm:$0xff] }
 0x5e8   : > { %v3083_v41 = vmul.f32 -1.442695, %v1138_v40 }
 0x5ea   : > { %3524 = vpow2.f32 %v3083_v41  ;;  %v1135_v43 = vld [vmem:[#allocation4 + $0x8] sm:$0xff] }
 0x5eb   : > { %v1139_v44 = vadd.f32 %v1137_v42, %v1135_v43 }
 0x5ed   : > { %3526 = vtanh.f32 %v1139_v44 }
 0x5f7   : > { %v3525_v45 = vpop.eup %3524 }
 0x5f8   : > { %v1143_v46 = vadd.f32 1.0, %v3525_v45 }
 0x5fa   : > { %3528 = vrcp.f32 %v1143_v46  ;;  %v3527_v47 = vpop.eup %3526 }
 0x607   : > { %v3529_v48 = vpop.eup %3528 }
 0x608   : > { %v1147_v49 = vmul.f32 %v3529_v48, %v3527_v47 }
 0x60a   : > { %v3855_v50 = vadd.f32 %v1147_v49, %v3760_v33  ;;  %v3085_v33 = vld [vmem:[%s4121_s4 + $0x8] sm:$0xff] }
 0x60c   : > { %vm1152_vm9 = vcmp.ge.f32.partialorder %v3855_v50, 0.0  ;;  %v1153_v51 = vmul.f32 0.2, %v3855_v50 }
 0x60e   : > { %v1154_v52 = vsel %vm1152_vm9, %v3855_v50, %v1153_v51  ;;  %vm1798_vm9 = vcmask 752640  }
 0x60f   : > { %1156 = vrot.lane.b32.xlu0 %v1154_v52, %s3620_s16 }
 0x681   : > { %v1157_v53 = vpop.permute.xlu0 %1156 }
 0x682   : > { %1159 = vst.msk [vmem:[#allocation2] sm:$0xff] %vm549_vm13, %v1157_v53 }
 0x683   : > { %1160 = vst.msk [vmem:[#allocation2 + $0x8] sm:$0xff] %vm551_vm14, %v1157_v53 }
 0x689   : > { %v1184_v55 = vld [vmem:[#allocation2] sm:$0xff] }
 0x68a   : > { %v1185_v54 = vld [vmem:[#allocation2 + $0x8] sm:$0xff]  ;;  %1188 = vrot.lane.b32.xlu1 %v1184_v55, %s3627_s13 }
 0x68b   : > { %1190 = vrot.lane.b32.xlu0 %v1185_v54, %s3627_s13 }
 0x68e   : > { %1177 = vrot.lane.b32.xlu1 %v1184_v55, %s3622_s18 }
 0x68f   : > { %1179 = vrot.lane.b32.xlu0 %v1185_v54, %s3622_s18 }
 0x692   : > { %1165 = vrot.lane.b32.xlu1 %v1184_v55, %s3628_s9 }
 0x693   : > { %1167 = vrot.lane.b32.xlu0 %v1185_v54, %s3628_s9  ;;  %v3103_v54 = vld [vmem:[%s3848_s8 + $0x10] sm:$0xff]  ;;  %s3629_s9 = smov 92  }
 0x696   : > { %1205 = vperm.xlu1 %3523, %v3085_v33  }
 0x6fc   : > { %v1189_v57 = vpop.permute.xlu1 %1188 }
 0x6fd   : > { %v1191_v56 = vpop.permute.xlu0 %1190 }
 0x6fe   : > { %v1193_v58 = vsel %vm1192_vm10, %v1189_v57, %v1191_v56  ;;  %v3104_v57 = vld [vmem:[%s3848_s8 + $0x18] sm:$0xff]  ;;  %vm1775_vm10 = vcmask 900096  }
 0x6ff   : > { %3327 = vmatpush3.msra.mxu0 %v1193_v58 }
 0x700   : > { %3328 = vmatprep.subr.mxu0 %v3610_v0  ;;  %v1178_v60 = vpop.permute.xlu1 %1177 }
 0x701   : > { %v1180_v59 = vpop.permute.xlu0 %1179 }
 0x702   : > { %v1181_v61 = vsel %vm573_vm0, %v1178_v60, %v1180_v59 }
 0x703   : > { %3329 = vmatpush3.msra.mxu0 %v1181_v61 }
 0x704   : > { %3330 = vmatprep.subr.mxu0 %v3610_v0  ;;  %v1166_v63 = vpop.permute.xlu1 %1165 }
 0x705   : > { %v1168_v62 = vpop.permute.xlu0 %1167 }
 0x706   : > { %v1170_v2 = vsel %vm1169_vm11, %v1166_v63, %v1168_v62 }
 0x707   : > { %3331 = vmatpush3.msra.mxu0 %v1170_v2 }
 0x708   : > { %3333 = vmatmul.mubr.msk.f32.vlgmr.msra.gmra.mxu0 %vm599_vm3, %v3084_v1 }
 0x709   : > { %3350 = vmatprep.mubr.msk.f32.mxu0 %vm599_vm3, %v3091_v15 }
 0x711   : > { %v1206_v3 = vpop.permute.xlu1 %1205 }
 0x7c8   : > { %v1277_v4 = vpop.f32.mrf.mxu0 }
 0x7c9   : > { %v1278_v5 = vadd.f32 %v1277_v4, %v1206_v3 }
 0x7ca   : > { %v3334_v6 = vpop.f32.mrf.mxu0 }
 0x7cb   : > { %v1282_v7 = vmul.f32 0.2, %v1278_v5  ;;  %vm1281_vm12 = vcmp.ge.f32.partialorder %v1278_v5, 0.0 }
 0x7cd   : > { %v1283_v8 = vsel %vm1281_vm12, %v1278_v5, %v1282_v7  ;;  %vm2394_vm12 = vcmask 605184  }
 0x7ce   : > { %1285 = vrot.lane.b32.xlu0 %v1283_v8, %s3620_s16 }
 0x840   : > { %v1286_v9 = vpop.permute.xlu0 %1285 }
 0x841   : > { %1288 = vst.msk [vmem:[#allocation2] sm:$0xff] %vm549_vm13, %v1286_v9 }
 0x842   : > { %1289 = vst.msk [vmem:[#allocation2 + $0x8] sm:$0xff] %vm551_vm14, %v1286_v9 }
 0x848   : > { %v1312_v11 = vld [vmem:[#allocation2] sm:$0xff] }
 0x849   : > { %v1313_v10 = vld [vmem:[#allocation2 + $0x8] sm:$0xff]  ;;  %1316 = vrot.lane.b32.xlu1 %v1312_v11, %s3621_s17 }
 0x84a   : > { %1318 = vrot.lane.b32.xlu0 %v1313_v10, %s3621_s17 }
 0x84d   : > { %1305 = vrot.lane.b32.xlu1 %v1312_v11, %s3622_s18 }
 0x84e   : > { %1307 = vrot.lane.b32.xlu0 %v1313_v10, %s3622_s18 }
 0x851   : > { %1294 = vrot.lane.b32.xlu1 %v1312_v11, %s3623_s19 }
 0x852   : > { %1296 = vrot.lane.b32.xlu0 %v1313_v10, %s3623_s19 }
 0x8bb   : > { %v1317_v14 = vpop.permute.xlu1 %1316 }
 0x8bc   : > { %v1319_v13 = vpop.permute.xlu0 %1318 }
 0x8bd   : > { %v1320_v16 = vsel %vm585_vm15, %v1317_v14, %v1319_v13 }
 0x8be   : > { %3335 = vmatprep.subr.mxu1 %v1320_v16  ;;  %1425 = vrot.lane.b32.xlu1 %v1320_v16, %s3624_s15 }
 0x8bf   : > { %3336 = vmatpush3.msra.mxu1 %v1320_v16  ;;  %v1306_v18 = vpop.permute.xlu1 %1305 }
 0x8c0   : > { %v1308_v17 = vpop.permute.xlu0 %1307 }
 0x8c1   : > { %v1309_v19 = vsel %vm573_vm0, %v1306_v18, %v1308_v17 }
 0x8c2   : > { %1423 = vrot.lane.b32.xlu0 %v1309_v19, %s3624_s15  ;;  %3337 = vmatprep.subr.mxu1 %v1309_v19 }
 0x8c3   : > { %3338 = vmatpush3.msra.mxu1 %v1309_v19  ;;  %v1295_v21 = vpop.permute.xlu1 %1294 }
 0x8c4   : > { %v1297_v20 = vpop.permute.xlu0 %1296 }
 0x8c5   : > { %v1298_v22 = vsel %vm561_vm1, %v1295_v21, %v1297_v20 }
 0x8c6   : > { %1534 = vrot.lane.b32.xlu0 %v1320_v16, %s3625_s20  ;;  %1421 = vrot.lane.b32.xlu1 %v1298_v22, %s3624_s15 }
 0x8c7   : > { %3339 = vmatprep.subr.mxu1 %v1298_v22 }
 0x8c8   : > { %3340 = vmatpush3.msra.mxu1 %v1298_v22 }
 0x8c9   : > { %3342 = vmatmul.mubr.msk.f32.vlgmr.msra.gmra.mxu1 %vm599_vm3, %v3088_v23 }
 0x8ca   : > { %1532 = vrot.lane.b32.xlu0 %v1309_v19, %s3625_s20  ;;  %1643 = vrot.lane.b32.xlu1 %v1320_v16, %s3626_s21  ;;  %v3106_v16 = vld [vmem:[%s4120_s3 + $0x10] sm:$0xff] }
 0x8cb   : > { %3359 = vmatprep.mubr.msk.f32.mxu1 %vm599_vm3, %v3095_v24 }
 0x8ce   : > { %1530 = vrot.lane.b32.xlu0 %v1298_v22, %s3625_s20  ;;  %1641 = vrot.lane.b32.xlu1 %v1309_v19, %s3626_s21 }
 0x8d2   : > { %1639 = vrot.lane.b32.xlu1 %v1298_v22, %s3626_s21 }
 0x930   : > { %v1426_v25 = vpop.permute.xlu1 %1425 }
 0x931   : > { %3344 = vmatprep.subr.mxu0 %v1426_v25 }
 0x932   : > { %3345 = vmatpush3.msra.mxu0 %v1426_v25 }
 0x934   : > { %v1424_v26 = vpop.permute.xlu0 %1423 }
 0x935   : > { %3346 = vmatprep.subr.mxu0 %v1424_v26 }
 0x936   : > { %3347 = vmatpush3.msra.mxu0 %v1424_v26 }
 0x938   : > { %v1535_v27 = vpop.permute.xlu0 %1534  ;;  %v1422_v28 = vpop.permute.xlu1 %1421 }
 0x939   : > { %3348 = vmatprep.subr.mxu0 %v1422_v28  ;;  %3353 = vmatprep.subr.mxu1 %v1535_v27 }
 0x93a   : > { %3349 = vmatpush3.msra.mxu0 %v1422_v28  ;;  %3354 = vmatpush3.msra.mxu1 %v1535_v27  ;;  %v3109_v27 = vld [vmem:[%s3799_s14 + $0x80] sm:$0xff] }
 0x93b   : > { %3351 = vmatmul.mubr.msk.f32.vlgmr.msra.gmra.mxu0 %vm599_vm3, %v3092_v29 }
 0x93c   : > { %v1533_v31 = vpop.permute.xlu0 %1532  ;;  %v1644_v32 = vpop.permute.xlu1 %1643  ;;  %3368 = vmatprep.mubr.msk.f32.mxu0 %vm599_vm3, %v3099_v30  ;;  %v3113_v30 = vld [vmem:[%s3799_s14 + $0x90] sm:$0xff] }
 0x93d   : > { %3355 = vmatprep.subr.mxu1 %v1533_v31  ;;  %3362 = vmatprep.subr.mxu0 %v1644_v32 }
 0x93e   : > { %3356 = vmatpush3.msra.mxu1 %v1533_v31  ;;  %3363 = vmatpush3.msra.mxu0 %v1644_v32 }
 0x940   : > { %v1531_v34 = vpop.permute.xlu0 %1530  ;;  %v1642_v35 = vpop.permute.xlu1 %1641 }
 0x941   : > { %3357 = vmatprep.subr.mxu1 %v1531_v34  ;;  %3364 = vmatprep.subr.mxu0 %v1642_v35 }
 0x942   : > { %3358 = vmatpush3.msra.mxu1 %v1531_v34  ;;  %3365 = vmatpush3.msra.mxu0 %v1642_v35 }
 0x943   : > { %3360 = vmatmul.mubr.msk.f32.vlgmr.msra.gmra.mxu1 %vm599_vm3, %v3096_v36  ;;  %3371 = vmatprep.subr.mxu1 %v3610_v0 }
 0x944   : > { %v1640_v37 = vpop.permute.xlu1 %1639  ;;  %3377 = vmatprep.mubr.msk.f32.mxu1 %vm3615_vm2, %v3610_v0 }
 0x945   : > { %3366 = vmatprep.subr.mxu0 %v1640_v37 }
 0x946   : > { %3367 = vmatpush3.msra.mxu0 %v1640_v37 }
 0x947   : > { %3369 = vmatmul.mubr.msk.f32.vlgmr.msra.gmra.mxu0 %vm599_vm3, %v3100_v38 }
 0x948   : > { %3386 = vmatprep.mubr.msk.f32.mxu0 %vm599_vm3, %v3109_v27 }
 0x989   : > { %v3343_v39 = vpop.f32.mrf.mxu1 }
 0x98a   : > { %1411 = vst.msk [vmem:[#allocation4 + $0x8] sm:$0xff] %vm801_vm5, %v3343_v39  ;;  %v3110_v39 = vld [vmem:[%s3799_s14 + $0x88] sm:$0xff] }
 0x98b   : > { %v1401_v40 = vpop.f32.mrf.mxu1 }
 0x98c   : > { %1410 = vst.msk [vmem:[#allocation4] sm:$0xff] %vm801_vm5, %v1401_v40  ;;  %v3117_v40 = vld [vmem:[%s3799_s14 + $0xa0] sm:$0xff] }
 0x9fb   : > { %v3352_v41 = vpop.f32.mrf.mxu0 }
 0x9fd   : > { %v1502_v42 = vpop.f32.mrf.mxu0 }
 0x9fe   : > { %1513 = vrot.lane.b32.xlu0 %v1502_v42, %s3626_s21 }
 0xa03   : > { %v3361_v43 = vpop.f32.mrf.mxu1 }
 0xa05   : > { %v1611_v44 = vpop.f32.mrf.mxu1 }
 0xa06   : > { %1622 = vrot.lane.b32.xlu1 %v1611_v44, %s3625_s20 }
 0xa07   : > { %v3370_v45 = vpop.f32.mrf.mxu0 }
 0xa09   : > { %v1720_v46 = vpop.f32.mrf.mxu0 }
 0xa0a   : > { %1515 = vrot.lane.b32.xlu1 %v3352_v41, %s3626_s21  ;;  %1731 = vrot.lane.b32.xlu0 %v1720_v46, %s3624_s15  ;;  %v3121_v46 = vld [vmem:[%s3799_s14 + $0xb0] sm:$0xff] }
 0xa0e   : > { %1733 = vrot.lane.b32.xlu1 %v3370_v45, %s3624_s15  ;;  %1624 = vrot.lane.b32.xlu0 %v3361_v43, %s3625_s20  ;;  %v3114_v45 = vld [vmem:[%s3799_s14 + $0x98] sm:$0xff] }
 0xa70   : > { %v1514_v47 = vpop.permute.xlu0 %1513 }
 0xa71   : > { %1519 = vst.msk [vmem:[#allocation4] sm:$0xff] %vm911_vm6, %v1514_v47 }
 0xa78   : > { %v1623_v48 = vpop.permute.xlu1 %1622 }
 0xa79   : > { %1628 = vst.msk [vmem:[#allocation4] sm:$0xff] %vm1021_vm7, %v1623_v48 }
 0xa7c   : > { %v1732_v49 = vpop.permute.xlu0 %1731  ;;  %v1516_v51 = vpop.permute.xlu1 %1515 }
 0xa7d   : > { %1737 = vst.msk [vmem:[#allocation4] sm:$0xff] %vm1131_vm8, %v1732_v49 }
 0xa7e   : > { %1520 = vst.msk [vmem:[#allocation4 + $0x8] sm:$0xff] %vm911_vm6, %v1516_v51 }
 0xa80   : > { %v1625_v52 = vpop.permute.xlu0 %1624  ;;  %v1734_v53 = vpop.permute.xlu1 %1733 }
 0xa81   : > { %1629 = vst.msk [vmem:[#allocation4 + $0x8] sm:$0xff] %vm1021_vm7, %v1625_v52  ;;  %v3118_v52 = vld [vmem:[%s3799_s14 + $0xa8] sm:$0xff] }
 0xa82   : > { %1738 = vst.msk [vmem:[#allocation4 + $0x8] sm:$0xff] %vm1131_vm8, %v1734_v53 }
 0xa84   : > { %v1739_v55 = vld [vmem:[#allocation4] sm:$0xff] }
 0xa85   : > { %v1744_v33 = vadd.f32 %v3103_v54, %v1739_v55  ;;  %v3122_v54 = vld [vmem:[%s3799_s14 + $0xb8] sm:$0xff] }
 0xa87   : > { %v3105_v56 = vmul.f32 -1.442695, %v1744_v33 }
 0xa89   : > { %3530 = vpow2.f32 %v3105_v56  ;;  %v1740_v58 = vld [vmem:[#allocation4 + $0x8] sm:$0xff] }
 0xa8a   : > { %v1745_v59 = vadd.f32 %v3104_v57, %v1740_v58 }
 0xa8c   : > { %3532 = vtanh.f32 %v1745_v59 }
 0xa96   : > { %v3531_v60 = vpop.eup %3530 }
 0xa97   : > { %v1749_v61 = vadd.f32 1.0, %v3531_v60 }
 0xa99   : > { %3534 = vrcp.f32 %v1749_v61  ;;  %v3533_v62 = vpop.eup %3532 }
 0xaa6   : > { %v3535_v63 = vpop.eup %3534 }
 0xaa7   : > { %v1753_v1 = vmul.f32 %v3535_v63, %v3533_v62 }
 0xaa9   : > { %v3932_v2 = vadd.f32 %v1753_v1, %v3855_v50  ;;  %v3107_v50 = vld [vmem:[%s4121_s4 + $0x10] sm:$0xff] }
 0xaab   : > { %vm1758_vm4 = vcmp.ge.f32.partialorder %v3932_v2, 0.0  ;;  %v1759_v3 = vmul.f32 0.2, %v3932_v2 }
 0xaad   : > { %v1760_v4 = vsel %vm1758_vm4, %v3932_v2, %v1759_v3 }
 0xaae   : > { %1762 = vrot.lane.b32.xlu0 %v1760_v4, %s3620_s16 }
 0xb20   : > { %v1763_v5 = vpop.permute.xlu0 %1762 }
 0xb21   : > { %1765 = vst.msk [vmem:[#allocation2] sm:$0xff] %vm549_vm13, %v1763_v5 }
 0xb22   : > { %1766 = vst.msk [vmem:[#allocation2 + $0x8] sm:$0xff] %vm551_vm14, %v1763_v5 }
 0xb28   : > { %v1790_v7 = vld [vmem:[#allocation2] sm:$0xff] }
 0xb29   : > { %v1791_v6 = vld [vmem:[#allocation2 + $0x8] sm:$0xff]  ;;  %1794 = vrot.lane.b32.xlu1 %v1790_v7, %s3629_s9 }
 0xb2a   : > { %1796 = vrot.lane.b32.xlu0 %v1791_v6, %s3629_s9 }
 0xb2d   : > { %1783 = vrot.lane.b32.xlu1 %v1790_v7, %s3622_s18 }
 0xb2e   : > { %1785 = vrot.lane.b32.xlu0 %v1791_v6, %s3622_s18 }
 0xb31   : > { %1771 = vrot.lane.b32.xlu1 %v1790_v7, %s3630_s22 }
 0xb32   : > { %1773 = vrot.lane.b32.xlu0 %v1791_v6, %s3630_s22  ;;  %v3125_v6 = vld [vmem:[%s3848_s8 + $0x20] sm:$0xff]  ;;  %s3631_s22 = smov 74  }
 0xb35   : > { %1811 = vperm.xlu1 %3523, %v3107_v50  }
 0xb9b   : > { %v1795_v9 = vpop.permute.xlu1 %1794 }
 0xb9c   : > { %v1797_v8 = vpop.permute.xlu0 %1796 }
 0xb9d   : > { %v1799_v10 = vsel %vm1798_vm9, %v1795_v9, %v1797_v8  ;;  %v3126_v9 = vld [vmem:[%s3848_s8 + $0x28] sm:$0xff] }
 0xb9e   : > { %3372 = vmatpush3.msra.mxu1 %v1799_v10 }
 0xb9f   : > { %3373 = vmatprep.subr.mxu1 %v3610_v0  ;;  %v1784_v12 = vpop.permute.xlu1 %1783 }
 0xba0   : > { %v1786_v11 = vpop.permute.xlu0 %1785 }
 0xba1   : > { %v1787_v13 = vsel %vm573_vm0, %v1784_v12, %v1786_v11 }
 0xba2   : > { %3374 = vmatpush3.msra.mxu1 %v1787_v13 }
 0xba3   : > { %3375 = vmatprep.subr.mxu1 %v3610_v0  ;;  %v1772_v15 = vpop.permute.xlu1 %1771 }
 0xba4   : > { %v1774_v14 = vpop.permute.xlu0 %1773 }
 0xba5   : > { %v1776_v17 = vsel %vm1775_vm10, %v1772_v15, %v1774_v14 }
 0xba6   : > { %3376 = vmatpush3.msra.mxu1 %v1776_v17 }
 0xba7   : > { %3378 = vmatmul.mubr.msk.f32.vlgmr.msra.gmra.mxu1 %vm599_vm3, %v3106_v16 }
 0xba8   : > { %3395 = vmatprep.mubr.msk.f32.mxu1 %vm599_vm3, %v3113_v30 }
 0xbb0   : > { %v1812_v18 = vpop.permute.xlu1 %1811 }
 0xc67   : > { %v1883_v19 = vpop.f32.mrf.mxu1 }
 0xc68   : > { %v1884_v20 = vadd.f32 %v1883_v19, %v1812_v18 }
 0xc69   : > { %v3379_v21 = vpop.f32.mrf.mxu1 }
 0xc6a   : > { %v1888_v22 = vmul.f32 0.2, %v1884_v20  ;;  %vm1887_vm11 = vcmp.ge.f32.partialorder %v1884_v20, 0.0 }
 0xc6c   : > { %v1889_v23 = vsel %vm1887_vm11, %v1884_v20, %v1888_v22 }
 0xc6d   : > { %1891 = vrot.lane.b32.xlu0 %v1889_v23, %s3620_s16 }
 0xcdf   : > { %v1892_v24 = vpop.permute.xlu0 %1891 }
 0xce0   : > { %1894 = vst.msk [vmem:[#allocation2] sm:$0xff] %vm549_vm13, %v1892_v24 }
 0xce1   : > { %1895 = vst.msk [vmem:[#allocation2 + $0x8] sm:$0xff] %vm551_vm14, %v1892_v24 }
 0xce7   : > { %v1918_v26 = vld [vmem:[#allocation2] sm:$0xff] }
 0xce8   : > { %v1919_v25 = vld [vmem:[#allocation2 + $0x8] sm:$0xff]  ;;  %1922 = vrot.lane.b32.xlu1 %v1918_v26, %s3621_s17 }
 0xce9   : > { %1924 = vrot.lane.b32.xlu0 %v1919_v25, %s3621_s17 }
 0xcec   : > { %1911 = vrot.lane.b32.xlu1 %v1918_v26, %s3622_s18 }
 0xced   : > { %1913 = vrot.lane.b32.xlu0 %v1919_v25, %s3622_s18 }
 0xcf0   : > { %1900 = vrot.lane.b32.xlu1 %v1918_v26, %s3623_s19 }
 0xcf1   : > { %1902 = vrot.lane.b32.xlu0 %v1919_v25, %s3623_s19 }
 0xd5a   : > { %v1923_v29 = vpop.permute.xlu1 %1922 }
 0xd5b   : > { %v1925_v28 = vpop.permute.xlu0 %1924 }
 0xd5c   : > { %v1926_v31 = vsel %vm585_vm15, %v1923_v29, %v1925_v28  ;;  %v3128_v29 = vld [vmem:[%s4120_s3 + $0x18] sm:$0xff] }
 0xd5d   : > { %3380 = vmatprep.subr.mxu0 %v1926_v31  ;;  %2031 = vrot.lane.b32.xlu1 %v1926_v31, %s3624_s15 }
 0xd5e   : > { %3381 = vmatpush3.msra.mxu0 %v1926_v31  ;;  %v1912_v34 = vpop.permute.xlu1 %1911 }
 0xd5f   : > { %v1914_v32 = vpop.permute.xlu0 %1913 }
 0xd60   : > { %v1915_v35 = vsel %vm573_vm0, %v1912_v34, %v1914_v32 }
 0xd61   : > { %2029 = vrot.lane.b32.xlu0 %v1915_v35, %s3624_s15  ;;  %3382 = vmatprep.subr.mxu0 %v1915_v35 }
 0xd62   : > { %3383 = vmatpush3.msra.mxu0 %v1915_v35  ;;  %v1901_v37 = vpop.permute.xlu1 %1900 }
 0xd63   : > { %v1903_v36 = vpop.permute.xlu0 %1902 }
 0xd64   : > { %v1904_v38 = vsel %vm561_vm1, %v1901_v37, %v1903_v36 }
 0xd65   : > { %2140 = vrot.lane.b32.xlu0 %v1926_v31, %s3625_s20  ;;  %2027 = vrot.lane.b32.xlu1 %v1904_v38, %s3624_s15 }
 0xd66   : > { %3384 = vmatprep.subr.mxu0 %v1904_v38 }
 0xd67   : > { %3385 = vmatpush3.msra.mxu0 %v1904_v38 }
 0xd68   : > { %3387 = vmatmul.mubr.msk.f32.vlgmr.msra.gmra.mxu0 %vm599_vm3, %v3110_v39  ;;  %v3131_v39 = vld [vmem:[%s3799_s14 + $0xc0] sm:$0xff] }
 0xd69   : > { %2138 = vrot.lane.b32.xlu0 %v1915_v35, %s3625_s20  ;;  %2249 = vrot.lane.b32.xlu1 %v1926_v31, %s3626_s21 }
 0xd6a   : > { %3404 = vmatprep.mubr.msk.f32.mxu0 %vm599_vm3, %v3117_v40 }
 0xd6d   : > { %2136 = vrot.lane.b32.xlu0 %v1904_v38, %s3625_s20  ;;  %2247 = vrot.lane.b32.xlu1 %v1915_v35, %s3626_s21 }
 0xd71   : > { %2245 = vrot.lane.b32.xlu1 %v1904_v38, %s3626_s21 }
 0xdcf   : > { %v2032_v41 = vpop.permute.xlu1 %2031 }
 0xdd0   : > { %3389 = vmatprep.subr.mxu1 %v2032_v41 }
 0xdd1   : > { %3390 = vmatpush3.msra.mxu1 %v2032_v41 }
 0xdd3   : > { %v2030_v42 = vpop.permute.xlu0 %2029 }
 0xdd4   : > { %3391 = vmatprep.subr.mxu1 %v2030_v42 }
 0xdd5   : > { %3392 = vmatpush3.msra.mxu1 %v2030_v42  ;;  %v3135_v42 = vld [vmem:[%s3799_s14 + $0xd0] sm:$0xff] }
 0xdd7   : > { %v2141_v43 = vpop.permute.xlu0 %2140  ;;  %v2028_v44 = vpop.permute.xlu1 %2027 }
 0xdd8   : > { %3393 = vmatprep.subr.mxu1 %v2028_v44  ;;  %3398 = vmatprep.subr.mxu0 %v2141_v43 }
 0xdd9   : > { %3394 = vmatpush3.msra.mxu1 %v2028_v44  ;;  %3399 = vmatpush3.msra.mxu0 %v2141_v43 }
 0xdda   : > { %3396 = vmatmul.mubr.msk.f32.vlgmr.msra.gmra.mxu1 %vm599_vm3, %v3114_v45 }
 0xddb   : > { %v2139_v47 = vpop.permute.xlu0 %2138  ;;  %v2250_v48 = vpop.permute.xlu1 %2249  ;;  %3413 = vmatprep.mubr.msk.f32.mxu1 %vm599_vm3, %v3121_v46 }
 0xddc   : > { %3400 = vmatprep.subr.mxu0 %v2139_v47  ;;  %3407 = vmatprep.subr.mxu1 %v2250_v48 }
 0xddd   : > { %3401 = vmatpush3.msra.mxu0 %v2139_v47  ;;  %3408 = vmatpush3.msra.mxu1 %v2250_v48 }
 0xddf   : > { %v2137_v49 = vpop.permute.xlu0 %2136  ;;  %v2248_v51 = vpop.permute.xlu1 %2247 }
 0xde0   : > { %3402 = vmatprep.subr.mxu0 %v2137_v49  ;;  %3409 = vmatprep.subr.mxu1 %v2248_v51 }
 0xde1   : > { %3403 = vmatpush3.msra.mxu0 %v2137_v49  ;;  %3410 = vmatpush3.msra.mxu1 %v2248_v51  ;;  %v3132_v51 = vld [vmem:[%s3799_s14 + $0xc8] sm:$0xff] }
 0xde2   : > { %3405 = vmatmul.mubr.msk.f32.vlgmr.msra.gmra.mxu0 %vm599_vm3, %v3118_v52  ;;  %3416 = vmatprep.subr.mxu0 %v3610_v0  ;;  %v3139_v52 = vld [vmem:[%s3799_s14 + $0xe0] sm:$0xff] }
 0xde3   : > { %v2246_v53 = vpop.permute.xlu1 %2245  ;;  %3422 = vmatprep.mubr.msk.f32.mxu0 %vm3615_vm2, %v3610_v0 }
 0xde4   : > { %3411 = vmatprep.subr.mxu1 %v2246_v53 }
 0xde5   : > { %3412 = vmatpush3.msra.mxu1 %v2246_v53 }
 0xde6   : > { %3414 = vmatmul.mubr.msk.f32.vlgmr.msra.gmra.mxu1 %vm599_vm3, %v3122_v54 }
 0xde7   : > { %3431 = vmatprep.mubr.msk.f32.mxu1 %vm599_vm3, %v3131_v39 }
 0xe28   : > { %v3388_v55 = vpop.f32.mrf.mxu0 }
 0xe29   : > { %2017 = vst.msk [vmem:[#allocation4 + $0x8] sm:$0xff] %vm801_vm5, %v3388_v55 }
 0xe2a   : > { %v2007_v33 = vpop.f32.mrf.mxu0 }
 0xe2b   : > { %2016 = vst.msk [vmem:[#allocation4] sm:$0xff] %vm801_vm5, %v2007_v33 }
 0xe9a   : > { %v3397_v56 = vpop.f32.mrf.mxu1 }
 0xe9c   : > { %v2108_v57 = vpop.f32.mrf.mxu1 }
 0xe9d   : > { %2119 = vrot.lane.b32.xlu0 %v2108_v57, %s3626_s21  ;;  %v3143_v57 = vld [vmem:[%s3799_s14 + $0xf0] sm:$0xff] }
 0xea2   : > { %v3406_v58 = vpop.f32.mrf.mxu0 }
 0xea4   : > { %v2217_v59 = vpop.f32.mrf.mxu0 }
 0xea5   : > { %2228 = vrot.lane.b32.xlu1 %v2217_v59, %s3625_s20 }
 0xea6   : > { %v3415_v60 = vpop.f32.mrf.mxu1 }
 0xea8   : > { %v2326_v61 = vpop.f32.mrf.mxu1 }
 0xea9   : > { %2121 = vrot.lane.b32.xlu1 %v3397_v56, %s3626_s21  ;;  %2337 = vrot.lane.b32.xlu0 %v2326_v61, %s3624_s15  ;;  %v3136_v56 = vld [vmem:[%s3799_s14 + $0xd8] sm:$0xff] }
 0xead   : > { %2339 = vrot.lane.b32.xlu1 %v3415_v60, %s3624_s15  ;;  %2230 = vrot.lane.b32.xlu0 %v3406_v58, %s3625_s20 }
 0xf0f   : > { %v2120_v62 = vpop.permute.xlu0 %2119 }
 0xf10   : > { %2125 = vst.msk [vmem:[#allocation4] sm:$0xff] %vm911_vm6, %v2120_v62  ;;  %v3140_v62 = vld [vmem:[%s3799_s14 + $0xe8] sm:$0xff] }
 0xf17   : > { %v2229_v63 = vpop.permute.xlu1 %2228 }
 0xf18   : > { %2234 = vst.msk [vmem:[#allocation4] sm:$0xff] %vm1021_vm7, %v2229_v63 }
 0xf1b   : > { %v2338_v1 = vpop.permute.xlu0 %2337  ;;  %v2122_v3 = vpop.permute.xlu1 %2121 }
 0xf1c   : > { %2343 = vst.msk [vmem:[#allocation4] sm:$0xff] %vm1131_vm8, %v2338_v1  ;;  %v3144_v1 = vld [vmem:[%s3799_s14 + $0xf8] sm:$0xff] }
 0xf1d   : > { %2126 = vst.msk [vmem:[#allocation4 + $0x8] sm:$0xff] %vm911_vm6, %v2122_v3 }
 0xf1f   : > { %v2231_v4 = vpop.permute.xlu0 %2230  ;;  %v2340_v5 = vpop.permute.xlu1 %2339 }
 0xf20   : > { %2235 = vst.msk [vmem:[#allocation4 + $0x8] sm:$0xff] %vm1021_vm7, %v2231_v4 }
 0xf21   : > { %2344 = vst.msk [vmem:[#allocation4 + $0x8] sm:$0xff] %vm1131_vm8, %v2340_v5 }
 0xf23   : > { %v2345_v7 = vld [vmem:[#allocation4] sm:$0xff] }
 0xf24   : > { %v2350_v50 = vadd.f32 %v3125_v6, %v2345_v7 }
 0xf26   : > { %v3127_v8 = vmul.f32 -1.442695, %v2350_v50 }
 0xf28   : > { %3536 = vpow2.f32 %v3127_v8  ;;  %v2346_v10 = vld [vmem:[#allocation4 + $0x8] sm:$0xff] }
 0xf29   : > { %v2351_v11 = vadd.f32 %v3126_v9, %v2346_v10 }
 0xf2b   : > { %3538 = vtanh.f32 %v2351_v11 }
 0xf35   : > { %v3537_v12 = vpop.eup %3536 }
 0xf36   : > { %v2355_v13 = vadd.f32 1.0, %v3537_v12 }
 0xf38   : > { %3540 = vrcp.f32 %v2355_v13  ;;  %v3539_v14 = vpop.eup %3538 }
 0xf45   : > { %v3541_v15 = vpop.eup %3540 }
 0xf46   : > { %v2359_v16 = vmul.f32 %v3541_v15, %v3539_v14 }
 0xf48   : > { %v4009_v17 = vadd.f32 %v2359_v16, %v3932_v2  ;;  %v3129_v2 = vld [vmem:[%s4121_s4 + $0x18] sm:$0xff]  ;;  %v3147_v16 = vld [vmem:[%s3848_s8 + $0x30] sm:$0xff] }
 0xf4a   : > { %vm2364_vm2 = vcmp.ge.f32.partialorder %v4009_v17, 0.0  ;;  %v2365_v18 = vmul.f32 0.2, %v4009_v17 }
 0xf4c   : > { %v2366_v19 = vsel %vm2364_vm2, %v4009_v17, %v2365_v18 }
 0xf4d   : > { %2368 = vrot.lane.b32.xlu0 %v2366_v19, %s3620_s16 }
 0xfbf   : > { %v2369_v20 = vpop.permute.xlu0 %2368 }
 0xfc0   : > { %2371 = vst.msk [vmem:[#allocation2] sm:$0xff] %vm549_vm13, %v2369_v20 }
 0xfc1   : > { %2372 = vst.msk [vmem:[#allocation2 + $0x8] sm:$0xff] %vm551_vm14, %v2369_v20 }
 0xfc7   : > { %v2386_v22 = vld [vmem:[#allocation2] sm:$0xff] }
 0xfc8   : > { %v2387_v21 = vld [vmem:[#allocation2 + $0x8] sm:$0xff]  ;;  %2390 = vrot.lane.b32.xlu1 %v2386_v22, %s3631_s22 }
 0xfc9   : > { %2392 = vrot.lane.b32.xlu0 %v2387_v21, %s3631_s22 }
 0xfcc   : > { %2379 = vrot.lane.b32.xlu1 %v2386_v22, %s3622_s18 }
 0xfcd   : > { %2381 = vrot.lane.b32.xlu0 %v2387_v21, %s3622_s18 }
 0xfd0   : > { %2407 = vperm.xlu1 %3523, %v3129_v2  }
0x103a   : > { %v2391_v24 = vpop.permute.xlu1 %2390 }
0x103b   : > { %v2393_v23 = vpop.permute.xlu0 %2392 }
0x103c   : > { %v2395_v25 = vsel %vm2394_vm12, %v2391_v24, %v2393_v23 }
0x103d   : > { %3417 = vmatpush3.msra.mxu0 %v2395_v25 }
0x103e   : > { %3418 = vmatprep.subr.mxu0 %v3610_v0  ;;  %v2380_v27 = vpop.permute.xlu1 %2379 }
0x103f   : > { %v2382_v26 = vpop.permute.xlu0 %2381 }
0x1040   : > { %v2383_v28 = vsel %vm573_vm0, %v2380_v27, %v2382_v26 }
0x1041   : > { %3419 = vmatpush3.msra.mxu0 %v2383_v28 }
0x1042   : > { %3420 = vmatprep.subr.mxu0 %v3610_v0 }
0x1043   : > { %3421 = vmatpush3.msra.mxu0 %v2386_v22  ;;  %v3148_v22 = vld [vmem:[%s3848_s8 + $0x38] sm:$0xff] }
0x1044   : > { %3423 = vmatmul.mubr.msk.f32.vlgmr.msra.gmra.mxu0 %vm599_vm3, %v3128_v29 }
0x1045   : > { %3440 = vmatprep.mubr.msk.f32.mxu0 %vm599_vm3, %v3135_v42 }
0x104b   : > { %v2408_v30 = vpop.permute.xlu1 %2407 }
0x1104   : > { %v2479_v31 = vpop.f32.mrf.mxu0 }
0x1105   : > { %v2480_v32 = vadd.f32 %v2479_v31, %v2408_v30 }
0x1106   : > { %v3424_v34 = vpop.f32.mrf.mxu0 }
0x1107   : > { %vm2483_vm4 = vcmp.ge.f32.partialorder %v2480_v32, 0.0  ;;  %v2484_v35 = vmul.f32 0.2, %v2480_v32 }
0x1109   : > { %v2485_v36 = vsel %vm2483_vm4, %v2480_v32, %v2484_v35 }
0x110a   : > { %2487 = vrot.lane.b32.xlu0 %v2485_v36, %s3620_s16  ;;  %s299_s16 = sand.u32 1, %s3600_s25  }
0x110b   : > { %s2960_s8 = scalar_lea.sflag [#allocation6], %s299_s16 }
0x117c   : > { %v2488_v37 = vpop.permute.xlu0 %2487 }
0x117d   : > { %2490 = vst.msk [vmem:[#allocation2] sm:$0xff] %vm549_vm13, %v2488_v37 }
0x117e   : > { %2491 = vst.msk [vmem:[#allocation2 + $0x8] sm:$0xff] %vm551_vm14, %v2488_v37 }
0x1184   : > { %v2514_v38 = vld [vmem:[#allocation2] sm:$0xff] }
0x1185   : > { %v2515_v0 = vld [vmem:[#allocation2 + $0x8] sm:$0xff]  ;;  %2518 = vrot.lane.b32.xlu1 %v2514_v38, %s3621_s17 }
0x1186   : > { %2520 = vrot.lane.b32.xlu0 %v2515_v0, %s3621_s17  ;;  %s3060_s17 = sshll.u32 %s299_s16, 3 }
0x1189   : > { %2507 = vrot.lane.b32.xlu1 %v2514_v38, %s3622_s18 }
0x118a   : > { %2509 = vrot.lane.b32.xlu0 %v2515_v0, %s3622_s18  ;;  %s3151_s18 = sshll.u32 %s3694_s28, 7  ;;  %s3554_s28 = scalar_lea.vmem %s3553_s29, 256 }
0x118d   : > { %2496 = vrot.lane.b32.xlu1 %v2514_v38, %s3623_s19 }
0x118e   : > { %2498 = vrot.lane.b32.xlu0 %v2515_v0, %s3623_s19  ;;  %s301_s19 = scalar_lea.vmem [#allocation5], %s3060_s17 }
0x118f   : > { %s2973_s14 = sshll.u32 %s301_s19, 4  ;;  %s2974_s14 = int_to_ptr.vmem [resolvable:$true] %s2973_s14 }
0x1190   : > { %s3548_s22 = scalar_lea.vmem %s2974_s14, 128  ;;  %p3555_p0 = scmp.lt.s32.totalorder %s2974_s14, %s3553_s29 }
0x1191   : > { %p3549_p11 = scmp.ne.s32.totalorder %s2974_s14, %s3548_s22  ;;  %p3556_p1 = scmp.lt.s32.totalorder %s3554_s28, %s3548_s22 }
0x1193   : > { %p3550_p12 = pnand %p3549_p11, %p3711_p5  ;;  %p3557_p2 = por %p3556_p1, %p3555_p0 }
0x1195   : > { %p3551_p13 = pneg %p3550_p12 }
0x1197   : > { %p3558_p3 = pnand %p3557_p2, %p3551_p13 }
0x11f7   : > { %v2519_v41 = vpop.permute.xlu1 %2518 }
0x11f8   : > { %v2521_v40 = vpop.permute.xlu0 %2520 }
0x11f9   : > { %v2522_v43 = vsel %vm585_vm15, %v2519_v41, %v2521_v40 }
0x11fa   : > { %3425 = vmatprep.subr.mxu1 %v2522_v43  ;;  %2627 = vrot.lane.b32.xlu1 %v2522_v43, %s3624_s15 }
0x11fb   : > { %3426 = vmatpush3.msra.mxu1 %v2522_v43  ;;  %v2508_v45 = vpop.permute.xlu1 %2507 }
0x11fc   : > { %v2510_v44 = vpop.permute.xlu0 %2509 }
0x11fd   : > { %v2511_v46 = vsel %vm573_vm0, %v2508_v45, %v2510_v44 }
0x11fe   : > { %2625 = vrot.lane.b32.xlu0 %v2511_v46, %s3624_s15  ;;  %3427 = vmatprep.subr.mxu1 %v2511_v46 }
0x11ff   : > { %3428 = vmatpush3.msra.mxu1 %v2511_v46  ;;  %v2497_v48 = vpop.permute.xlu1 %2496 }
0x1200   : > { %v2499_v47 = vpop.permute.xlu0 %2498 }
0x1201   : > { %v2500_v49 = vsel %vm561_vm1, %v2497_v48, %v2499_v47 }
0x1202   : > { %2736 = vrot.lane.b32.xlu0 %v2522_v43, %s3625_s20  ;;  %2623 = vrot.lane.b32.xlu1 %v2500_v49, %s3624_s15 }
0x1203   : > { %3429 = vmatprep.subr.mxu1 %v2500_v49 }
0x1204   : > { %3430 = vmatpush3.msra.mxu1 %v2500_v49 }
0x1205   : > { %3432 = vmatmul.mubr.msk.f32.vlgmr.msra.gmra.mxu1 %vm599_vm3, %v3132_v51 }
0x1206   : > { %2734 = vrot.lane.b32.xlu0 %v2511_v46, %s3625_s20  ;;  %2845 = vrot.lane.b32.xlu1 %v2522_v43, %s3626_s21 }
0x1207   : > { %3449 = vmatprep.mubr.msk.f32.mxu1 %vm599_vm3, %v3139_v52 }
0x120a   : > { %2732 = vrot.lane.b32.xlu0 %v2500_v49, %s3625_s20  ;;  %2843 = vrot.lane.b32.xlu1 %v2511_v46, %s3626_s21 }
0x120e   : > { %2841 = vrot.lane.b32.xlu1 %v2500_v49, %s3626_s21 }
0x126c   : > { %v2628_v53 = vpop.permute.xlu1 %2627 }
0x126d   : > { %3434 = vmatprep.subr.mxu0 %v2628_v53 }
0x126e   : > { %3435 = vmatpush3.msra.mxu0 %v2628_v53 }
0x1270   : > { %v2626_v54 = vpop.permute.xlu0 %2625 }
0x1271   : > { %3436 = vmatprep.subr.mxu0 %v2626_v54 }
0x1272   : > { %3437 = vmatpush3.msra.mxu0 %v2626_v54 }
0x1274   : > { %v2737_v55 = vpop.permute.xlu0 %2736  ;;  %v2624_v33 = vpop.permute.xlu1 %2623 }
0x1275   : > { %3438 = vmatprep.subr.mxu0 %v2624_v33  ;;  %3443 = vmatprep.subr.mxu1 %v2737_v55 }
0x1276   : > { %3439 = vmatpush3.msra.mxu0 %v2624_v33  ;;  %3444 = vmatpush3.msra.mxu1 %v2737_v55 }
0x1277   : > { %3441 = vmatmul.mubr.msk.f32.vlgmr.msra.gmra.mxu0 %vm599_vm3, %v3136_v56 }
0x1278   : > { %v2735_v58 = vpop.permute.xlu0 %2734  ;;  %v2846_v59 = vpop.permute.xlu1 %2845  ;;  %3458 = vmatprep.mubr.msk.f32.mxu0 %vm599_vm3, %v3143_v57 }
0x1279   : > { %3445 = vmatprep.subr.mxu1 %v2735_v58  ;;  %3452 = vmatprep.subr.mxu0 %v2846_v59 }
0x127a   : > { %3446 = vmatpush3.msra.mxu1 %v2735_v58  ;;  %3453 = vmatpush3.msra.mxu0 %v2846_v59 }
0x127c   : > { %v2733_v60 = vpop.permute.xlu0 %2732  ;;  %v2844_v61 = vpop.permute.xlu1 %2843 }
0x127d   : > { %3447 = vmatprep.subr.mxu1 %v2733_v60  ;;  %3454 = vmatprep.subr.mxu0 %v2844_v61 }
0x127e   : > { %3448 = vmatpush3.msra.mxu1 %v2733_v60  ;;  %3455 = vmatpush3.msra.mxu0 %v2844_v61 }
0x127f   : > { %3450 = vmatmul.mubr.msk.f32.vlgmr.msra.gmra.mxu1 %vm599_vm3, %v3140_v62 }
0x1280   : > { %v2842_v63 = vpop.permute.xlu1 %2841 }
0x1281   : > { %3456 = vmatprep.subr.mxu0 %v2842_v63 }
0x1282   : > { %3457 = vmatpush3.msra.mxu0 %v2842_v63 }
0x1283   : > { %3459 = vmatmul.mubr.msk.f32.vlgmr.msra.gmra.mxu0 %vm599_vm3, %v3144_v1 }
0x12c5   : > { %v3433_v3 = vpop.f32.mrf.mxu1 }
0x12c6   : > { %2613 = vst.msk [vmem:[#allocation4 + $0x8] sm:$0xff] %vm801_vm5, %v3433_v3 }
0x12c7   : > { %v2603_v4 = vpop.f32.mrf.mxu1 }
0x12c8   : > { %2612 = vst.msk [vmem:[#allocation4] sm:$0xff] %vm801_vm5, %v2603_v4 }
0x1337   : > { %v3442_v5 = vpop.f32.mrf.mxu0 }
0x1339   : > { %v2704_v6 = vpop.f32.mrf.mxu0 }
0x133a   : > { %2715 = vrot.lane.b32.xlu0 %v2704_v6, %s3626_s21 }
0x133f   : > { %v3451_v7 = vpop.f32.mrf.mxu1 }
0x1341   : > { %v2813_v50 = vpop.f32.mrf.mxu1 }
0x1342   : > { %2824 = vrot.lane.b32.xlu1 %v2813_v50, %s3625_s20 }
0x1343   : > { %v3460_v8 = vpop.f32.mrf.mxu0 }
0x1345   : > { %v2922_v9 = vpop.f32.mrf.mxu0 }
0x1346   : > { %2717 = vrot.lane.b32.xlu1 %v3442_v5, %s3626_s21  ;;  %2933 = vrot.lane.b32.xlu0 %v2922_v9, %s3624_s15  ;;  %s2971_s21 = scalar_lea.hbm %s4124_s7, %s3151_s18 }
0x134a   : > { %2935 = vrot.lane.b32.xlu1 %v3460_v8, %s3624_s15  ;;  %2826 = vrot.lane.b32.xlu0 %v3451_v7, %s3625_s20 }
0x13ac   : > { %v2716_v10 = vpop.permute.xlu0 %2715 }
0x13ad   : > { %2721 = vst.msk [vmem:[#allocation4] sm:$0xff] %vm911_vm6, %v2716_v10 }
0x13b4   : > { %v2825_v11 = vpop.permute.xlu1 %2824 }
0x13b5   : > { %2830 = vst.msk [vmem:[#allocation4] sm:$0xff] %vm1021_vm7, %v2825_v11 }
0x13b8   : > { %v2718_v12 = vpop.permute.xlu1 %2717  ;;  %v2934_v13 = vpop.permute.xlu0 %2933 }
0x13b9   : > { %2722 = vst.msk [vmem:[#allocation4 + $0x8] sm:$0xff] %vm911_vm6, %v2718_v12 }
0x13ba   : > { %2939 = vst.msk [vmem:[#allocation4] sm:$0xff] %vm1131_vm8, %v2934_v13 }
0x13bc   : > { %v2936_v14 = vpop.permute.xlu1 %2935  ;;  %v2827_v15 = vpop.permute.xlu0 %2826 }
0x13bd   : > { %2831 = vst.msk [vmem:[#allocation4 + $0x8] sm:$0xff] %vm1021_vm7, %v2827_v15 }
0x13be   : > { %2940 = vst.msk [vmem:[#allocation4 + $0x8] sm:$0xff] %vm1131_vm8, %v2936_v14 }
0x13c1   : > { %v2941_v18 = vld [vmem:[#allocation4] sm:$0xff] }
0x13c2   : > { %v2946_v19 = vadd.f32 %v3147_v16, %v2941_v18 }
0x13c4   : > { %v3149_v20 = vmul.f32 -1.442695, %v2946_v19 }
0x13c5   : > { %v2942_v21 = vld [vmem:[#allocation4 + $0x8] sm:$0xff] }
0x13c6   : > { %3542 = vpow2.f32 %v3149_v20  ;;  %v2947_v2 = vadd.f32 %v3148_v22, %v2942_v21 }
0x13c8   : > { %3544 = vtanh.f32 %v2947_v2 }
0x13d3   : > { %v3543_v23 = vpop.eup %3542 }
0x13d4   : > { %v2951_v24 = vadd.f32 1.0, %v3543_v23 }
0x13d5   : > { %v3545_v25 = vpop.eup %3544 }
0x13d6   : > { %3546 = vrcp.f32 %v2951_v24 }
0x13e3   : > { %v3547_v26 = vpop.eup %3546 }
0x13e4   : > { %v2955_v27 = vmul.f32 %v3547_v26, %v3545_v25 }
0x13e6   : > { %v2957_v28 = vadd.f32 %v2955_v27, %v4009_v17 }
0x13e8   : > { %2958 = vst [vmem:[%s301_s19] sm:$0xff] %v2957_v28 }
0x13e9   : > { %3561 = shalt.err (!%p3558_p3)
}
0x13ea   : > { %s3562_s13 = scalar_lea.hbm %s2971_s21, 128  ;;  %s3566_s17 = scalar_lea.hbm %s4124_s7, 256 }
0x13eb   : > { %p3563_p4 = scmp.ne.s32.totalorder %s2971_s21, %s3562_s13  ;;  %p3567_p9 = scmp.lt.s32.totalorder %s2971_s21, %s4124_s7 }
0x13ec   : > { %p3568_p10 = scmp.lt.s32.totalorder %s3566_s17, %s3562_s13 }
0x13ed   : > { %p3564_p7 = pnand %p3563_p4, %p3711_p5 }
0x13ee   : > { %p3569_p11 = por %p3568_p10, %p3567_p9 }
0x13ef   : > { %p3565_p8 = pneg %p3564_p7 }
0x13f1   : > { %p3570_p12 = pnand %p3569_p11, %p3565_p8 }
0x13f3   : > { %3573 = shalt.err (!%p3570_p12)
}
0x13f4   : > { %3461 = dma.vmem_to_hbm [thread:$0]  (%p3711_p5), %s2974_s14, 128, %s2971_s21, %s2960_s8  }
0x13f5 PF: > { %p3467_p13 = scmp.ge.s32.totalorder %s3608_s27, 2  ;;  %s2985_s15 = sand.u32 1, %s3596_s24  }
0x13f6   : > { %s2986_s20 = scalar_lea.sflag [#allocation6], %s2985_s15 }
0x13f7   : > { %p3464_p0 = pnand %p3467_p13, %p3715_p6 }
0x13f9   : > { %p3465_p1 = pneg %p3464_p0 }
0x13fb   : > { %3591 = dma.done.wait (%p3465_p1), %s2986_s20, 128  }
0x13fc   : > { %3593 = vsyncadd (%p3465_p1), %s2986_s20, 4294967168  ;;  %p17_p2 = scmp.ge.s32.totalorder %s3698_s30, 4   ;;  %s4127_s24 = smov %s3600_s25 }
0x13fd   : > { %s4128_s25 = smov %s3604_s26  ;;  %s4129_s26 = smov %s3709_s10 }
0x13fe   : > { %s4130_s27 = smov %s3698_s30  ;;  %19 = sbr.rel (!%p17_p2) target bundleno = 3 (0x3), region = 113 }
0x1403   :  { %2991 = vsyncpa [#allocation6], 1 }
0x1404   :  { %2993 = vsyncpa [#allocation6 + $0x1], 1 }

</bundles_post_ra>
